<compile_context>
chip_gen: v7x
topology: tpu7x:2x2x1
jax: 0.10.0
libtpu: 0.0.40
codegen_flags: <defaults>
</compile_context>

<pallas_src>
import functools

import jax
import jax.numpy as jnp
from jax.experimental import pallas as pl
from jax.experimental.pallas import tpu as pltpu

# Shapes forced by the module: fc1 expects 32*29*31 features, conv1 expects
# 5 input channels, so x is (B, 5, 29, 31).
H, W = 29, 31
HW = H * W                       # 899
HW_PAD = 1024                    # 899 -> 8*128: lane-dense conv output columns
IN_C = 5
CIN_PAD = 8                      # conv1 input channels padded 5 -> 8 (sublane-aligned taps)
C1, C2 = 16, 32
HIDDEN = 256
OUT_DIM = 4

K_FC1 = C2 * HW                  # 28768 (PyTorch C,H,W flatten order)
K_FC1_PAD = C2 * HW_PAD          # 32768; padded fc1_w rows are zero

PAD_OFF = 128                    # lane-aligned start of live data in the halo'ed scratch
PAD_COLS = PAD_OFF + HW + PAD_OFF   # 1155; 3x3 taps read offsets in [96, 160]

BATCH_BLOCK = 8                  # images per conv grid step (amortizes step overhead)

# fc1 weights + conv activations are streamed in bf16 with f32 MXU
# accumulation (intentional: halves the model's dominant HBM traffic; checked
# below against the f32 reference at 6e-2).  Set to jnp.float32 for exact
# numerics (and drop tk on v5e so the weight double-buffer still fits).
FC_DTYPE = jnp.bfloat16


# --------------------------------------------------------------------------
# Per-generation configuration (queried lazily at trace time).
# --------------------------------------------------------------------------
@functools.lru_cache(maxsize=None)
def _device_kind():
    try:
        return jax.devices()[0].device_kind.lower()
    except Exception:
        return ""


def _is_v7x():
    k = _device_kind()
    return ("v7" in k) or ("7x" in k)


def _fc_config():
    """(n_split, tk, vmem_limit_bytes) for the fc kernel, per generation."""
    if _is_v7x():
        # 2 TensorCores: each streams half of fc1_w (n_tile=128, 2 K steps).
        # v7x has half the VMEM of v5e/v6e -> keep the limit conservative.
        return 2, 16384, 48 * 1024 * 1024
    if "v6" in _device_kind():
        return 1, 16384, 64 * 1024 * 1024
    # v5e / unknown: smaller K tiles keep the bf16 weight double-buffer modest.
    return 1, 8192, 64 * 1024 * 1024


def _core_parallel(fallback):
    # Only CORE_PARALLEL actually shards a grid axis across TensorCores;
    # plain "parallel" barely changes codegen.  Harmless (== fallback) off v7x.
    if _is_v7x() and hasattr(pltpu, "CORE_PARALLEL"):
        return pltpu.CORE_PARALLEL
    return fallback


# --------------------------------------------------------------------------
# Kernel 1: fused conv1+conv2 (+ReLU), activations channels-major (C, cols).
# Each 3x3 conv = one MXU contraction (Cout, Cin*9) x (Cin*9, HW_PAD) against
# a stacked patch scratch built from 9 shifted slices of a zero-halo'ed
# activation buffer.  W (width) boundaries are handled with iota masks, H
# boundaries by the zero halo.  Output is lane-dense (C2, 1024) per image.
# --------------------------------------------------------------------------
def _conv_stack_kernel(x_ref, w1_ref, b1_ref, w2_ref, b2_ref, o_ref,
                       pad1, pad2, patch1, patch2):
    # x_ref:   (BT, IN_C, HW) f32         o_ref: (BT, C2, HW_PAD) FC_DTYPE
    # w1_ref:  (C1, CIN_PAD*9) f32        b1_ref: (C1, 1) f32
    # w2_ref:  (C2, C1*9) f32             b2_ref: (C2, 1) f32
    # pad1/pad2:     (CIN_PAD / C1, PAD_COLS) f32   zero-halo'ed activations
    # patch1/patch2: (CIN_PAD*9 / C1*9, HW_PAD) f32 stacked 3x3 patches
    bt = x_ref.shape[0]

    # Zero only what per-image writes never touch: halos, unused padded input
    # channel rows, and the lane-padding tails of the patches.  (The tails
    # must be finite -- they land in o_ref's padded columns, which the zero
    # rows of the padded fc1 weight later annihilate.)
    pad1[:, :PAD_OFF] = jnp.zeros((CIN_PAD, PAD_OFF), jnp.float32)
    pad1[:, PAD_OFF + HW:] = jnp.zeros((CIN_PAD, PAD_COLS - PAD_OFF - HW), jnp.float32)
    pad1[IN_C:, PAD_OFF:PAD_OFF + HW] = jnp.zeros((CIN_PAD - IN_C, HW), jnp.float32)
    pad2[:, :PAD_OFF] = jnp.zeros((C1, PAD_OFF), jnp.float32)
    pad2[:, PAD_OFF + HW:] = jnp.zeros((C1, PAD_COLS - PAD_OFF - HW), jnp.float32)
    patch1[:, HW:] = jnp.zeros((CIN_PAD * 9, HW_PAD - HW), jnp.float32)
    patch2[:, HW:] = jnp.zeros((C1 * 9, HW_PAD - HW), jnp.float32)

    # Column masks handle the W boundary; the zero halo handles H.
    col = jax.lax.broadcasted_iota(jnp.int32, (1, HW), 1) % W
    not_left = col != 0            # tap dw == -1 invalid at output col 0
    not_right = col != (W - 1)     # tap dw == +1 invalid at output col W-1

    def build_patches(pad_ref, patch_ref, rows):
        t = 0
        for dh in (-1, 0, 1):
            for dw in (-1, 0, 1):
                off = PAD_OFF + dh * W + dw            # static offset (96..160)
                sl = pad_ref[:, off:off + HW]          # (rows, HW)
                if dw == -1:
                    sl = jnp.where(not_left, sl, 0.0)
                elif dw == 1:
                    sl = jnp.where(not_right, sl, 0.0)
                patch_ref[t * rows:(t + 1) * rows, :HW] = sl
                t += 1

    def per_image(b, carry):
        pad1[:IN_C, PAD_OFF:PAD_OFF + HW] = x_ref[b]
        build_patches(pad1, patch1, CIN_PAD)
        y1 = jnp.maximum(
            jnp.dot(w1_ref[...], patch1[...],
                    preferred_element_type=jnp.float32) + b1_ref[...], 0.0)  # (C1, 1024)
        pad2[:, PAD_OFF:PAD_OFF + HW] = y1[:, :HW]
        build_patches(pad2, patch2, C1)
        y2 = jnp.maximum(
            jnp.dot(w2_ref[...], patch2[...],
                    preferred_element_type=jnp.float32) + b2_ref[...], 0.0)  # (C2, 1024)
        o_ref[b] = y2.astype(o_ref.dtype)              # lane-dense store
        return carry

    jax.lax.fori_loop(0, bt, per_image, 0)


def conv_stack(x_chw, w1, b1, w2, b2, *, bt):
    """x_chw: (B, IN_C, H*W) f32 with B % bt == 0 -> (B, C2, HW_PAD) FC_DTYPE."""
    bsz = x_chw.shape[0]
    assert bsz % bt == 0
    return pl.pallas_call(
        _conv_stack_kernel,
        out_shape=jax.ShapeDtypeStruct((bsz, C2, HW_PAD), FC_DTYPE),
        grid_spec=pltpu.PrefetchScalarGridSpec(
            num_scalar_prefetch=0,
            grid=(bsz // bt,),
            in_specs=[
                pl.BlockSpec((bt, IN_C, HW), lambda i: (i, 0, 0)),
                pl.BlockSpec((C1, CIN_PAD * 9), lambda i: (0, 0)),
                pl.BlockSpec((C1, 1), lambda i: (0, 0)),
                pl.BlockSpec((C2, C1 * 9), lambda i: (0, 0)),
                pl.BlockSpec((C2, 1), lambda i: (0, 0)),
            ],
            out_specs=pl.BlockSpec((bt, C2, HW_PAD), lambda i: (i, 0, 0)),
            scratch_shapes=[
                pltpu.VMEM((CIN_PAD, PAD_COLS), jnp.float32),
                pltpu.VMEM((C1, PAD_COLS), jnp.float32),
                pltpu.VMEM((CIN_PAD * 9, HW_PAD), jnp.float32),
                pltpu.VMEM((C1 * 9, HW_PAD), jnp.float32),
            ],
        ),
        # On v7x, shard the batch-block axis across the two TensorCores.
        compiler_params=pltpu.CompilerParams(
            dimension_semantics=(_core_parallel("parallel"),)),
    )(x_chw, w1, b1, w2, b2)


# --------------------------------------------------------------------------
# Kernel 2: fc1 (tiled K reduction, bf16 streaming, f32 accumulation) with
# fc2 + fc2 bias fused into the epilogue.  Grid = (n_split, K tiles).
#
# Resident-accumulator contract: o_ref's index_map is constant in k, k is the
# innermost ("arbitrary") axis, and o_ref is written only at the last k step.
# Keep k innermost if this kernel is ever re-tiled (e.g. adding an M axis for
# batch > 256 on v7x: insert it BETWEEN the split axis and k).
# --------------------------------------------------------------------------
def _fc_fused_kernel(x_ref, w1_ref, b1_ref, w2_ref, b2_ref, o_ref, acc_ref,
                     *, split):
    k = pl.program_id(1)

    @pl.when(k == 0)
    def _():
        acc_ref[...] = jnp.zeros_like(acc_ref)

    acc_ref[...] += jnp.dot(x_ref[...], w1_ref[...],
                            preferred_element_type=jnp.float32)

    @pl.when(k == pl.num_programs(1) - 1)
    def _():
        h = jnp.maximum(acc_ref[...] + b1_ref[...], 0.0)          # (m, n_tile) f32
        out = jnp.dot(h, w2_ref[...],
                      preferred_element_type=jnp.float32)          # (m, OUT)
        b2 = b2_ref[...]
        if split:
            # Only the first N-slot carries the fc2 bias; the two tiny
            # partials are summed in the wrapper.
            b2 = jnp.where(pl.program_id(0) == 0, b2, jnp.zeros_like(b2))
            o_ref[0] = out + b2
        else:
            o_ref[...] = out + b2


def fc_fused(x, w1_padded, b1, w2, b2):
    """x: (m, K_FC1_PAD) FC_DTYPE -> (m, OUT_DIM) f32 = fc2(relu(fc1(x)))."""
    m, kdim = x.shape
    n_split, tk, vmem_limit = _fc_config()
    assert kdim % tk == 0 and HIDDEN % n_split == 0
    n_tile = HIDDEN // n_split
    n_out = w2.shape[1]
    split = n_split > 1

    if split:
        out_shape = jax.ShapeDtypeStruct((n_split, m, n_out), jnp.float32)
        out_spec = pl.BlockSpec((1, m, n_out), lambda j, k: (j, 0, 0))
    else:
        out_shape = jax.ShapeDtypeStruct((m, n_out), jnp.float32)
        out_spec = pl.BlockSpec((m, n_out), lambda j, k: (0, 0))

    if split and hasattr(pltpu, "CORE_PARALLEL"):
        # Shard the hidden-dim split across the two v7x TensorCores so each
        # streams half of fc1_w (plain "parallel" would not shard it).
        sems = (pltpu.CORE_PARALLEL, pltpu.ARBITRARY)
    else:
        sems = ("arbitrary", "arbitrary")

    out = pl.pallas_call(
        functools.partial(_fc_fused_kernel, split=split),
        out_shape=out_shape,
        grid_spec=pltpu.PrefetchScalarGridSpec(
            num_scalar_prefetch=0,
            grid=(n_split, kdim // tk),
            in_specs=[
                pl.BlockSpec((m, tk), lambda j, k: (0, k)),
                pl.BlockSpec((tk, n_tile), lambda j, k: (k, j)),
                pl.BlockSpec((1, n_tile), lambda j, k: (0, j)),
                pl.BlockSpec((n_tile, n_out), lambda j, k: (j, 0)),
                pl.BlockSpec((1, n_out), lambda j, k: (0, 0)),
            ],
            out_specs=out_spec,
            scratch_shapes=[pltpu.VMEM((m, n_tile), jnp.float32)],
        ),
        compiler_params=pltpu.CompilerParams(
            dimension_semantics=sems, vmem_limit_bytes=vmem_limit),
    )(x, w1_padded, b1, w2, b2)

    return jnp.sum(out, axis=0) if split else out


# --------------------------------------------------------------------------
# Parameters (deterministic, PyTorch-default-style uniform init).
# --------------------------------------------------------------------------
def init_params(key, output_dim=OUT_DIM):
    ks = jax.random.split(key, 8)

    def u(k, shape, fan_in):
        bound = 1.0 / jnp.sqrt(float(fan_in))
        return jax.random.uniform(k, shape, jnp.float32, -bound, bound)

    return dict(
        conv1_w=u(ks[0], (C1, IN_C, 3, 3), IN_C * 9),
        conv1_b=u(ks[1], (C1,), IN_C * 9),
        conv2_w=u(ks[2], (C2, C1, 3, 3), C1 * 9),
        conv2_b=u(ks[3], (C2,), C1 * 9),
        fc1_w=u(ks[4], (K_FC1, HIDDEN), K_FC1),       # (in, out)
        fc1_b=u(ks[5], (HIDDEN,), K_FC1),
        fc2_w=u(ks[6], (HIDDEN, output_dim), HIDDEN),
        fc2_b=u(ks[7], (output_dim,), HIDDEN),
    )


def prepare_params(raw):
    """Kernel-ready parameters.

    * Conv weights flatten to (Cout, Cin*9), tap-major in K, matching the
      stacked patch scratch; conv1's input channels are zero-padded 5 -> 8.
    * fc1's weight is re-padded row-wise per channel (899 -> 1024 rows) so the
      lane-dense conv output flattens straight into the fc K dim; padded rows
      are zero, so the matmul is exact w.r.t. the unpadded one.  It is stored
      in bf16 (this weight stream is the model's entire HBM roofline);
      accumulation stays f32.
    """
    def conv_taps_2d(w, cin_pad):
        cout, cin = w.shape[0], w.shape[1]
        w = jnp.transpose(w, (0, 2, 3, 1))                     # (Cout, 3, 3, Cin)
        w = jnp.pad(w, ((0, 0), (0, 0), (0, 0), (0, cin_pad - cin)))
        return w.reshape(cout, 9 * cin_pad)                    # K index = t*cin_pad + ci

    fc1 = raw["fc1_w"].reshape(C2, HW, HIDDEN)
    fc1 = jnp.pad(fc1, ((0, 0), (0, HW_PAD - HW), (0, 0)))
    return dict(
        conv1_w2d=conv_taps_2d(raw["conv1_w"], CIN_PAD),
        conv1_b=raw["conv1_b"].reshape(C1, 1),
        conv2_w2d=conv_taps_2d(raw["conv2_w"], C1),
        conv2_b=raw["conv2_b"].reshape(C2, 1),
        fc1_w_padded=fc1.reshape(K_FC1_PAD, HIDDEN).astype(FC_DTYPE),
        fc1_b=raw["fc1_b"].reshape(1, HIDDEN),
        fc2_w=raw["fc2_w"],
        fc2_b=raw["fc2_b"].reshape(1, -1),
    )


# --------------------------------------------------------------------------
# Forward pass (matches DQN.forward).
# --------------------------------------------------------------------------
@jax.jit
def dqn_forward(params, x_nchw):
    bsz = x_nchw.shape[0]
    x = x_nchw.reshape(bsz, IN_C, HW)                     # CHW layout kept (free)
    bt = min(BATCH_BLOCK, bsz)
    padded_b = -(-bsz // bt) * bt
    if padded_b != bsz:
        x = jnp.pad(x, ((0, padded_b - bsz), (0, 0), (0, 0)))
    y = conv_stack(x, params["conv1_w2d"], params["conv1_b"],
                   params["conv2_w2d"], params["conv2_b"], bt=bt)  # (pB, C2, 1024)
    feats = y.reshape(padded_b, K_FC1_PAD)                # lane-dense, no copy / pad
    out = fc_fused(feats, params["fc1_w_padded"], params["fc1_b"],
                   params["fc2_w"], params["fc2_b"])      # (pB, OUT_DIM)
    if padded_b != bsz:
        out = out[:bsz]
    return out


# --------------------------------------------------------------------------
# Pure-JAX f32 reference (mirrors the PyTorch module) for a sanity check.
# --------------------------------------------------------------------------
def reference_forward(raw, x_nchw):
    def conv_ref(x, w, b):
        y = jax.lax.conv_general_dilated(
            x, w, window_strides=(1, 1), padding="SAME",
            dimension_numbers=("NCHW", "OIHW", "NCHW"))
        return jax.nn.relu(y + b.reshape(1, -1, 1, 1))

    bsz = x_nchw.shape[0]
    x = conv_ref(x_nchw, raw["conv1_w"], raw["conv1_b"])
    x = conv_ref(x, raw["conv2_w"], raw["conv2_b"])
    feats = x.reshape(bsz, K_FC1)
    h = jax.nn.relu(feats @ raw["fc1_w"] + raw["fc1_b"])
    return h @ raw["fc2_w"] + raw["fc2_b"]


if __name__ == "__main__":
    key = jax.random.PRNGKey(0)
    pkey, xkey = jax.random.split(key)
    raw = init_params(pkey)
    params = prepare_params(raw)
    x = jax.random.normal(xkey, (2, IN_C, H, W), dtype=jnp.float32)

    out = jax.block_until_ready(dqn_forward(params, x))
    assert out.shape == (2, OUT_DIM), out.shape
    assert bool(jnp.all(jnp.isfinite(out)))

    # Loose tolerance: fc1 weights / conv activations are streamed in bf16.
    ref = reference_forward(raw, x)
    assert bool(jnp.allclose(out, ref, rtol=6e-2, atol=6e-2)), (
        float(jnp.max(jnp.abs(out - ref))))

    print("KERNEL_OK")
</pallas_src>

<mosaic_0001>
module attributes {stable_mosaic.version = 11 : i64} {
  func.func @_conv_stack_kernel(%arg0: i32, %arg1: memref<2x5x899xf32, #tpu.memory_space<vmem>>, %arg2: memref<16x72xf32, #tpu.memory_space<vmem>>, %arg3: memref<16x1xf32, #tpu.memory_space<vmem>>, %arg4: memref<32x144xf32, #tpu.memory_space<vmem>>, %arg5: memref<32x1xf32, #tpu.memory_space<vmem>>, %arg6: memref<2x32x1024xbf16, #tpu.memory_space<vmem>>, %arg7: memref<8x1155xf32, #tpu.memory_space<vmem>>, %arg8: memref<16x1155xf32, #tpu.memory_space<vmem>>, %arg9: memref<72x1024xf32, #tpu.memory_space<vmem>>, %arg10: memref<144x1024xf32, #tpu.memory_space<vmem>>) attributes {dimension_semantics = [#tpu.dimension_semantics<parallel>], iteration_bounds = array<i64: 1>, scalar_prefetch = 0 : i64, scratch_operands = 4 : i64, tpu.core_type = #tpu.core_type<tc>, window_params = [{transform_indices = @transform_0, window_bounds = array<i64: 2, 5, 899>}, {pipeline_mode = #tpu.pipeline_mode<synchronous>, transform_indices = @transform_1, window_bounds = array<i64: 16, 72>}, {pipeline_mode = #tpu.pipeline_mode<synchronous>, transform_indices = @transform_2, window_bounds = array<i64: 16, 1>}, {pipeline_mode = #tpu.pipeline_mode<synchronous>, transform_indices = @transform_3, window_bounds = array<i64: 32, 144>}, {pipeline_mode = #tpu.pipeline_mode<synchronous>, transform_indices = @transform_4, window_bounds = array<i64: 32, 1>}, {transform_indices = @transform_5, window_bounds = array<i64: 2, 32, 1024>}]} {
    %cst = arith.constant 0.000000e+00 : f32
    %0 = vector.broadcast %cst : f32 to vector<8x128xf32>
    %c0 = arith.constant 0 : index
    %c0_0 = arith.constant 0 : index
    %1 = vector.load %arg7[%c0, %c0_0] : memref<8x1155xf32, #tpu.memory_space<vmem>>, vector<8x128xf32>
    tpu.vector_store %arg7[%c0, %c0_0], %0 {strides = array<i32>} : memref<8x1155xf32, #tpu.memory_space<vmem>>, vector<8x128xf32>,
    %cst_1 = arith.constant 0.000000e+00 : f32
    %2 = vector.broadcast %cst_1 : f32 to vector<8x128xf32>
    %c0_2 = arith.constant 0 : index
    %c1027 = arith.constant 1027 : index
    %3 = vector.load %arg7[%c0_2, %c1027] : memref<8x1155xf32, #tpu.memory_space<vmem>>, vector<8x128xf32>
    tpu.vector_store %arg7[%c0_2, %c1027], %2 {strides = array<i32>} : memref<8x1155xf32, #tpu.memory_space<vmem>>, vector<8x128xf32>,
    %cst_3 = arith.constant 0.000000e+00 : f32
    %4 = vector.broadcast %cst_3 : f32 to vector<3x899xf32>
    %c5 = arith.constant 5 : index
    %c128 = arith.constant 128 : index
    %5 = vector.load %arg7[%c5, %c128] : memref<8x1155xf32, #tpu.memory_space<vmem>>, vector<3x899xf32>
    tpu.vector_store %arg7[%c5, %c128], %4 {strides = array<i32>} : memref<8x1155xf32, #tpu.memory_space<vmem>>, vector<3x899xf32>,
    %cst_4 = arith.constant 0.000000e+00 : f32
    %6 = vector.broadcast %cst_4 : f32 to vector<16x128xf32>
    %c0_5 = arith.constant 0 : index
    %c0_6 = arith.constant 0 : index
    %7 = vector.load %arg8[%c0_5, %c0_6] : memref<16x1155xf32, #tpu.memory_space<vmem>>, vector<16x128xf32>
    tpu.vector_store %arg8[%c0_5, %c0_6], %6 {strides = array<i32>} : memref<16x1155xf32, #tpu.memory_space<vmem>>, vector<16x128xf32>,
    %cst_7 = arith.constant 0.000000e+00 : f32
    %8 = vector.broadcast %cst_7 : f32 to vector<16x128xf32>
    %c0_8 = arith.constant 0 : index
    %c1027_9 = arith.constant 1027 : index
    %9 = vector.load %arg8[%c0_8, %c1027_9] : memref<16x1155xf32, #tpu.memory_space<vmem>>, vector<16x128xf32>
    tpu.vector_store %arg8[%c0_8, %c1027_9], %8 {strides = array<i32>} : memref<16x1155xf32, #tpu.memory_space<vmem>>, vector<16x128xf32>,
    %cst_10 = arith.constant 0.000000e+00 : f32
    %10 = vector.broadcast %cst_10 : f32 to vector<72x125xf32>
    %c0_11 = arith.constant 0 : index
    %c899 = arith.constant 899 : index
    %11 = vector.load %arg9[%c0_11, %c899] : memref<72x1024xf32, #tpu.memory_space<vmem>>, vector<72x125xf32>
    tpu.vector_store %arg9[%c0_11, %c899], %10 {strides = array<i32>} : memref<72x1024xf32, #tpu.memory_space<vmem>>, vector<72x125xf32>,
    %cst_12 = arith.constant 0.000000e+00 : f32
    %12 = vector.broadcast %cst_12 : f32 to vector<144x125xf32>
    %c0_13 = arith.constant 0 : index
    %c899_14 = arith.constant 899 : index
    %13 = vector.load %arg10[%c0_13, %c899_14] : memref<144x1024xf32, #tpu.memory_space<vmem>>, vector<144x125xf32>
    tpu.vector_store %arg10[%c0_13, %c899_14], %12 {strides = array<i32>} : memref<144x1024xf32, #tpu.memory_space<vmem>>, vector<144x125xf32>,
    %14 = tpu.iota {dimensions = array<i32: 1>} : vector<1x899xi32>
    %c31_i32 = arith.constant 31 : i32
    %c0_i32 = arith.constant 0 : i32
    %15 = arith.cmpi eq, %c31_i32, %c0_i32 : i32
    %c1_i32 = arith.constant 1 : i32
    %16 = arith.select %15, %c1_i32, %c31_i32 : i32
    %17 = vector.broadcast %16 : i32 to vector<1x899xi32>
    %18 = arith.remsi %14, %17 : vector<1x899xi32>
    %c0_i32_15 = arith.constant 0 : i32
    %19 = vector.broadcast %c0_i32_15 : i32 to vector<1x899xi32>
    %20 = arith.cmpi ne, %18, %19 : vector<1x899xi32>
    %c0_i32_16 = arith.constant 0 : i32
    %21 = vector.broadcast %c0_i32_16 : i32 to vector<1x899xi32>
    %22 = arith.cmpi slt, %18, %21 : vector<1x899xi32>
    %c0_i32_17 = arith.constant 0 : i32
    %23 = arith.cmpi slt, %16, %c0_i32_17 : i32
    %24 = vector.broadcast %23 : i1 to vector<1x899xi1>
    %25 = vector.broadcast %24 : vector<1x899xi1> to vector<1x899xi1>
    %26 = arith.xori %22, %25 : vector<1x899xi1>
    %27 = arith.andi %26, %20 : vector<1x899xi1>
    %28 = vector.broadcast %16 : i32 to vector<1x899xi32>
    %29 = arith.addi %18, %28 : vector<1x899xi32>
    %30 = arith.select %27, %29, %18 : vector<1x899xi1>, vector<1x899xi32>
    %c0_i32_18 = arith.constant 0 : i32
    %31 = vector.broadcast %c0_i32_18 : i32 to vector<1x899xi32>
    %32 = arith.cmpi ne, %30, %31 : vector<1x899xi32>
    %c30_i32 = arith.constant 30 : i32
    %33 = vector.broadcast %c30_i32 : i32 to vector<1x899xi32>
    %34 = arith.cmpi ne, %30, %33 : vector<1x899xi32>
    %c0_i32_19 = arith.constant 0 : i32
    %c2_i32 = arith.constant 2 : i32
    %35 = arith.addi %c0_i32_19, %c2_i32 : i32
    %c1_i32_20 = arith.constant 1 : i32
    scf.for %arg11 = %c0_i32_19 to %35 step %c1_i32_20  : i32 {
      %36 = arith.index_cast %arg11 : i32 to index
      %c0_22 = arith.constant 0 : index
      %c0_23 = arith.constant 0 : index
      %37 = vector.load %arg1[%36, %c0_22, %c0_23] : memref<2x5x899xf32, #tpu.memory_space<vmem>>, vector<1x5x899xf32>
      %38 = vector.shape_cast %37 : vector<1x5x899xf32> to vector<5x899xf32>
      %c0_24 = arith.constant 0 : index
      %c128_25 = arith.constant 128 : index
      %39 = vector.load %arg7[%c0_24, %c128_25] : memref<8x1155xf32, #tpu.memory_space<vmem>>, vector<5x899xf32>
      tpu.vector_store %arg7[%c0_24, %c128_25], %38 {strides = array<i32>} : memref<8x1155xf32, #tpu.memory_space<vmem>>, vector<5x899xf32>,
      %c0_26 = arith.constant 0 : index
      %c96 = arith.constant 96 : index
      %40 = vector.load %arg7[%c0_26, %c96] : memref<8x1155xf32, #tpu.memory_space<vmem>>, vector<8x899xf32>
      %cst_27 = arith.constant 0.000000e+00 : f32
      %41 = vector.shape_cast %32 : vector<1x899xi1> to vector<1x899xi1>
      %42 = vector.broadcast %41 : vector<1x899xi1> to vector<8x899xi1>
      %43 = vector.broadcast %cst_27 : f32 to vector<8x899xf32>
      %44 = arith.select %42, %40, %43 : vector<8x899xi1>, vector<8x899xf32>
      %c0_28 = arith.constant 0 : index
      %c0_29 = arith.constant 0 : index
      %45 = vector.load %arg9[%c0_28, %c0_29] : memref<72x1024xf32, #tpu.memory_space<vmem>>, vector<8x899xf32>
      tpu.vector_store %arg9[%c0_28, %c0_29], %44 {strides = array<i32>} : memref<72x1024xf32, #tpu.memory_space<vmem>>, vector<8x899xf32>,
      %c0_30 = arith.constant 0 : index
      %c97 = arith.constant 97 : index
      %46 = vector.load %arg7[%c0_30, %c97] : memref<8x1155xf32, #tpu.memory_space<vmem>>, vector<8x899xf32>
      %c8 = arith.constant 8 : index
      %c0_31 = arith.constant 0 : index
      %47 = vector.load %arg9[%c8, %c0_31] : memref<72x1024xf32, #tpu.memory_space<vmem>>, vector<8x899xf32>
      tpu.vector_store %arg9[%c8, %c0_31], %46 {strides = array<i32>} : memref<72x1024xf32, #tpu.memory_space<vmem>>, vector<8x899xf32>,
      %c0_32 = arith.constant 0 : index
      %c98 = arith.constant 98 : index
      %48 = vector.load %arg7[%c0_32, %c98] : memref<8x1155xf32, #tpu.memory_space<vmem>>, vector<8x899xf32>
      %cst_33 = arith.constant 0.000000e+00 : f32
      %49 = vector.shape_cast %34 : vector<1x899xi1> to vector<1x899xi1>
      %50 = vector.broadcast %49 : vector<1x899xi1> to vector<8x899xi1>
      %51 = vector.broadcast %cst_33 : f32 to vector<8x899xf32>
      %52 = arith.select %50, %48, %51 : vector<8x899xi1>, vector<8x899xf32>
      %c16 = arith.constant 16 : index
      %c0_34 = arith.constant 0 : index
      %53 = vector.load %arg9[%c16, %c0_34] : memref<72x1024xf32, #tpu.memory_space<vmem>>, vector<8x899xf32>
      tpu.vector_store %arg9[%c16, %c0_34], %52 {strides = array<i32>} : memref<72x1024xf32, #tpu.memory_space<vmem>>, vector<8x899xf32>,
      %c0_35 = arith.constant 0 : index
      %c127 = arith.constant 127 : index
      %54 = vector.load %arg7[%c0_35, %c127] : memref<8x1155xf32, #tpu.memory_space<vmem>>, vector<8x899xf32>
      %cst_36 = arith.constant 0.000000e+00 : f32
      %55 = vector.shape_cast %32 : vector<1x899xi1> to vector<1x899xi1>
      %56 = vector.broadcast %55 : vector<1x899xi1> to vector<8x899xi1>
      %57 = vector.broadcast %cst_36 : f32 to vector<8x899xf32>
      %58 = arith.select %56, %54, %57 : vector<8x899xi1>, vector<8x899xf32>
      %c24 = arith.constant 24 : index
      %c0_37 = arith.constant 0 : index
      %59 = vector.load %arg9[%c24, %c0_37] : memref<72x1024xf32, #tpu.memory_space<vmem>>, vector<8x899xf32>
      tpu.vector_store %arg9[%c24, %c0_37], %58 {strides = array<i32>} : memref<72x1024xf32, #tpu.memory_space<vmem>>, vector<8x899xf32>,
      %c0_38 = arith.constant 0 : index
      %c128_39 = arith.constant 128 : index
      %60 = vector.load %arg7[%c0_38, %c128_39] : memref<8x1155xf32, #tpu.memory_space<vmem>>, vector<8x899xf32>
      %c32 = arith.constant 32 : index
      %c0_40 = arith.constant 0 : index
      %61 = vector.load %arg9[%c32, %c0_40] : memref<72x1024xf32, #tpu.memory_space<vmem>>, vector<8x899xf32>
      tpu.vector_store %arg9[%c32, %c0_40], %60 {strides = array<i32>} : memref<72x1024xf32, #tpu.memory_space<vmem>>, vector<8x899xf32>,
      %c0_41 = arith.constant 0 : index
      %c129 = arith.constant 129 : index
      %62 = vector.load %arg7[%c0_41, %c129] : memref<8x1155xf32, #tpu.memory_space<vmem>>, vector<8x899xf32>
      %cst_42 = arith.constant 0.000000e+00 : f32
      %63 = vector.shape_cast %34 : vector<1x899xi1> to vector<1x899xi1>
      %64 = vector.broadcast %63 : vector<1x899xi1> to vector<8x899xi1>
      %65 = vector.broadcast %cst_42 : f32 to vector<8x899xf32>
      %66 = arith.select %64, %62, %65 : vector<8x899xi1>, vector<8x899xf32>
      %c40 = arith.constant 40 : index
      %c0_43 = arith.constant 0 : index
      %67 = vector.load %arg9[%c40, %c0_43] : memref<72x1024xf32, #tpu.memory_space<vmem>>, vector<8x899xf32>
      tpu.vector_store %arg9[%c40, %c0_43], %66 {strides = array<i32>} : memref<72x1024xf32, #tpu.memory_space<vmem>>, vector<8x899xf32>,
      %c0_44 = arith.constant 0 : index
      %c158 = arith.constant 158 : index
      %68 = vector.load %arg7[%c0_44, %c158] : memref<8x1155xf32, #tpu.memory_space<vmem>>, vector<8x899xf32>
      %cst_45 = arith.constant 0.000000e+00 : f32
      %69 = vector.shape_cast %32 : vector<1x899xi1> to vector<1x899xi1>
      %70 = vector.broadcast %69 : vector<1x899xi1> to vector<8x899xi1>
      %71 = vector.broadcast %cst_45 : f32 to vector<8x899xf32>
      %72 = arith.select %70, %68, %71 : vector<8x899xi1>, vector<8x899xf32>
      %c48 = arith.constant 48 : index
      %c0_46 = arith.constant 0 : index
      %73 = vector.load %arg9[%c48, %c0_46] : memref<72x1024xf32, #tpu.memory_space<vmem>>, vector<8x899xf32>
      tpu.vector_store %arg9[%c48, %c0_46], %72 {strides = array<i32>} : memref<72x1024xf32, #tpu.memory_space<vmem>>, vector<8x899xf32>,
      %c0_47 = arith.constant 0 : index
      %c159 = arith.constant 159 : index
      %74 = vector.load %arg7[%c0_47, %c159] : memref<8x1155xf32, #tpu.memory_space<vmem>>, vector<8x899xf32>
      %c56 = arith.constant 56 : index
      %c0_48 = arith.constant 0 : index
      %75 = vector.load %arg9[%c56, %c0_48] : memref<72x1024xf32, #tpu.memory_space<vmem>>, vector<8x899xf32>
      tpu.vector_store %arg9[%c56, %c0_48], %74 {strides = array<i32>} : memref<72x1024xf32, #tpu.memory_space<vmem>>, vector<8x899xf32>,
      %c0_49 = arith.constant 0 : index
      %c160 = arith.constant 160 : index
      %76 = vector.load %arg7[%c0_49, %c160] : memref<8x1155xf32, #tpu.memory_space<vmem>>, vector<8x899xf32>
      %cst_50 = arith.constant 0.000000e+00 : f32
      %77 = vector.shape_cast %34 : vector<1x899xi1> to vector<1x899xi1>
      %78 = vector.broadcast %77 : vector<1x899xi1> to vector<8x899xi1>
      %79 = vector.broadcast %cst_50 : f32 to vector<8x899xf32>
      %80 = arith.select %78, %76, %79 : vector<8x899xi1>, vector<8x899xf32>
      %c64 = arith.constant 64 : index
      %c0_51 = arith.constant 0 : index
      %81 = vector.load %arg9[%c64, %c0_51] : memref<72x1024xf32, #tpu.memory_space<vmem>>, vector<8x899xf32>
      tpu.vector_store %arg9[%c64, %c0_51], %80 {strides = array<i32>} : memref<72x1024xf32, #tpu.memory_space<vmem>>, vector<8x899xf32>,
      %c0_52 = arith.constant 0 : index
      %c0_53 = arith.constant 0 : index
      %82 = vector.load %arg2[%c0_52, %c0_53] : memref<16x72xf32, #tpu.memory_space<vmem>>, vector<16x72xf32>
      %c0_54 = arith.constant 0 : index
      %c0_55 = arith.constant 0 : index
      %83 = vector.load %arg9[%c0_54, %c0_55] : memref<72x1024xf32, #tpu.memory_space<vmem>>, vector<72x1024xf32>
      %cst_56 = arith.constant dense<0.000000e+00> : vector<16x1024xf32>
      %84 = tpu.matmul %82, %83, %cst_56 {dimension_numbers = #tpu.dot_dimension_numbers<[1], [0], [0], [1], [0, 0, 1, 1], [], []>} : vector<16x72xf32>, vector<72x1024xf32>, vector<16x1024xf32> -> vector<16x1024xf32>
      %c0_57 = arith.constant 0 : index
      %c0_58 = arith.constant 0 : index
      %85 = vector.load %arg3[%c0_57, %c0_58] : memref<16x1xf32, #tpu.memory_space<vmem>>, vector<16x1xf32>
      %86 = vector.broadcast %85 : vector<16x1xf32> to vector<16x1024xf32>
      %87 = arith.addf %84, %86 : vector<16x1024xf32>
      %cst_59 = arith.constant 0.000000e+00 : f32
      %88 = vector.broadcast %cst_59 : f32 to vector<16x1024xf32>
      %89 = arith.maximumf %87, %88 : vector<16x1024xf32>
      %90 = vector.extract_strided_slice %89 {offsets = [0, 0], sizes = [16, 899], strides = [1, 1]} : vector<16x1024xf32> to vector<16x899xf32>
      %c0_60 = arith.constant 0 : index
      %c128_61 = arith.constant 128 : index
      %91 = vector.load %arg8[%c0_60, %c128_61] : memref<16x1155xf32, #tpu.memory_space<vmem>>, vector<16x899xf32>
      tpu.vector_store %arg8[%c0_60, %c128_61], %90 {strides = array<i32>} : memref<16x1155xf32, #tpu.memory_space<vmem>>, vector<16x899xf32>,
      %c0_62 = arith.constant 0 : index
      %c96_63 = arith.constant 96 : index
      %92 = vector.load %arg8[%c0_62, %c96_63] : memref<16x1155xf32, #tpu.memory_space<vmem>>, vector<16x899xf32>
      %cst_64 = arith.constant 0.000000e+00 : f32
      %93 = vector.shape_cast %32 : vector<1x899xi1> to vector<1x899xi1>
      %94 = vector.broadcast %93 : vector<1x899xi1> to vector<16x899xi1>
      %95 = vector.broadcast %cst_64 : f32 to vector<16x899xf32>
      %96 = arith.select %94, %92, %95 : vector<16x899xi1>, vector<16x899xf32>
      %c0_65 = arith.constant 0 : index
      %c0_66 = arith.constant 0 : index
      %97 = vector.load %arg10[%c0_65, %c0_66] : memref<144x1024xf32, #tpu.memory_space<vmem>>, vector<16x899xf32>
      tpu.vector_store %arg10[%c0_65, %c0_66], %96 {strides = array<i32>} : memref<144x1024xf32, #tpu.memory_space<vmem>>, vector<16x899xf32>,
      %c0_67 = arith.constant 0 : index
      %c97_68 = arith.constant 97 : index
      %98 = vector.load %arg8[%c0_67, %c97_68] : memref<16x1155xf32, #tpu.memory_space<vmem>>, vector<16x899xf32>
      %c16_69 = arith.constant 16 : index
      %c0_70 = arith.constant 0 : index
      %99 = vector.load %arg10[%c16_69, %c0_70] : memref<144x1024xf32, #tpu.memory_space<vmem>>, vector<16x899xf32>
      tpu.vector_store %arg10[%c16_69, %c0_70], %98 {strides = array<i32>} : memref<144x1024xf32, #tpu.memory_space<vmem>>, vector<16x899xf32>,
      %c0_71 = arith.constant 0 : index
      %c98_72 = arith.constant 98 : index
      %100 = vector.load %arg8[%c0_71, %c98_72] : memref<16x1155xf32, #tpu.memory_space<vmem>>, vector<16x899xf32>
      %cst_73 = arith.constant 0.000000e+00 : f32
      %101 = vector.shape_cast %34 : vector<1x899xi1> to vector<1x899xi1>
      %102 = vector.broadcast %101 : vector<1x899xi1> to vector<16x899xi1>
      %103 = vector.broadcast %cst_73 : f32 to vector<16x899xf32>
      %104 = arith.select %102, %100, %103 : vector<16x899xi1>, vector<16x899xf32>
      %c32_74 = arith.constant 32 : index
      %c0_75 = arith.constant 0 : index
      %105 = vector.load %arg10[%c32_74, %c0_75] : memref<144x1024xf32, #tpu.memory_space<vmem>>, vector<16x899xf32>
      tpu.vector_store %arg10[%c32_74, %c0_75], %104 {strides = array<i32>} : memref<144x1024xf32, #tpu.memory_space<vmem>>, vector<16x899xf32>,
      %c0_76 = arith.constant 0 : index
      %c127_77 = arith.constant 127 : index
      %106 = vector.load %arg8[%c0_76, %c127_77] : memref<16x1155xf32, #tpu.memory_space<vmem>>, vector<16x899xf32>
      %cst_78 = arith.constant 0.000000e+00 : f32
      %107 = vector.shape_cast %32 : vector<1x899xi1> to vector<1x899xi1>
      %108 = vector.broadcast %107 : vector<1x899xi1> to vector<16x899xi1>
      %109 = vector.broadcast %cst_78 : f32 to vector<16x899xf32>
      %110 = arith.select %108, %106, %109 : vector<16x899xi1>, vector<16x899xf32>
      %c48_79 = arith.constant 48 : index
      %c0_80 = arith.constant 0 : index
      %111 = vector.load %arg10[%c48_79, %c0_80] : memref<144x1024xf32, #tpu.memory_space<vmem>>, vector<16x899xf32>
      tpu.vector_store %arg10[%c48_79, %c0_80], %110 {strides = array<i32>} : memref<144x1024xf32, #tpu.memory_space<vmem>>, vector<16x899xf32>,
      %c0_81 = arith.constant 0 : index
      %c128_82 = arith.constant 128 : index
      %112 = vector.load %arg8[%c0_81, %c128_82] : memref<16x1155xf32, #tpu.memory_space<vmem>>, vector<16x899xf32>
      %c64_83 = arith.constant 64 : index
      %c0_84 = arith.constant 0 : index
      %113 = vector.load %arg10[%c64_83, %c0_84] : memref<144x1024xf32, #tpu.memory_space<vmem>>, vector<16x899xf32>
      tpu.vector_store %arg10[%c64_83, %c0_84], %112 {strides = array<i32>} : memref<144x1024xf32, #tpu.memory_space<vmem>>, vector<16x899xf32>,
      %c0_85 = arith.constant 0 : index
      %c129_86 = arith.constant 129 : index
      %114 = vector.load %arg8[%c0_85, %c129_86] : memref<16x1155xf32, #tpu.memory_space<vmem>>, vector<16x899xf32>
      %cst_87 = arith.constant 0.000000e+00 : f32
      %115 = vector.shape_cast %34 : vector<1x899xi1> to vector<1x899xi1>
      %116 = vector.broadcast %115 : vector<1x899xi1> to vector<16x899xi1>
      %117 = vector.broadcast %cst_87 : f32 to vector<16x899xf32>
      %118 = arith.select %116, %114, %117 : vector<16x899xi1>, vector<16x899xf32>
      %c80 = arith.constant 80 : index
      %c0_88 = arith.constant 0 : index
      %119 = vector.load %arg10[%c80, %c0_88] : memref<144x1024xf32, #tpu.memory_space<vmem>>, vector<16x899xf32>
      tpu.vector_store %arg10[%c80, %c0_88], %118 {strides = array<i32>} : memref<144x1024xf32, #tpu.memory_space<vmem>>, vector<16x899xf32>,
      %c0_89 = arith.constant 0 : index
      %c158_90 = arith.constant 158 : index
      %120 = vector.load %arg8[%c0_89, %c158_90] : memref<16x1155xf32, #tpu.memory_space<vmem>>, vector<16x899xf32>
      %cst_91 = arith.constant 0.000000e+00 : f32
      %121 = vector.shape_cast %32 : vector<1x899xi1> to vector<1x899xi1>
      %122 = vector.broadcast %121 : vector<1x899xi1> to vector<16x899xi1>
      %123 = vector.broadcast %cst_91 : f32 to vector<16x899xf32>
      %124 = arith.select %122, %120, %123 : vector<16x899xi1>, vector<16x899xf32>
      %c96_92 = arith.constant 96 : index
      %c0_93 = arith.constant 0 : index
      %125 = vector.load %arg10[%c96_92, %c0_93] : memref<144x1024xf32, #tpu.memory_space<vmem>>, vector<16x899xf32>
      tpu.vector_store %arg10[%c96_92, %c0_93], %124 {strides = array<i32>} : memref<144x1024xf32, #tpu.memory_space<vmem>>, vector<16x899xf32>,
      %c0_94 = arith.constant 0 : index
      %c159_95 = arith.constant 159 : index
      %126 = vector.load %arg8[%c0_94, %c159_95] : memref<16x1155xf32, #tpu.memory_space<vmem>>, vector<16x899xf32>
      %c112 = arith.constant 112 : index
      %c0_96 = arith.constant 0 : index
      %127 = vector.load %arg10[%c112, %c0_96] : memref<144x1024xf32, #tpu.memory_space<vmem>>, vector<16x899xf32>
      tpu.vector_store %arg10[%c112, %c0_96], %126 {strides = array<i32>} : memref<144x1024xf32, #tpu.memory_space<vmem>>, vector<16x899xf32>,
      %c0_97 = arith.constant 0 : index
      %c160_98 = arith.constant 160 : index
      %128 = vector.load %arg8[%c0_97, %c160_98] : memref<16x1155xf32, #tpu.memory_space<vmem>>, vector<16x899xf32>
      %cst_99 = arith.constant 0.000000e+00 : f32
      %129 = vector.shape_cast %34 : vector<1x899xi1> to vector<1x899xi1>
      %130 = vector.broadcast %129 : vector<1x899xi1> to vector<16x899xi1>
      %131 = vector.broadcast %cst_99 : f32 to vector<16x899xf32>
      %132 = arith.select %130, %128, %131 : vector<16x899xi1>, vector<16x899xf32>
      %c128_100 = arith.constant 128 : index
      %c0_101 = arith.constant 0 : index
      %133 = vector.load %arg10[%c128_100, %c0_101] : memref<144x1024xf32, #tpu.memory_space<vmem>>, vector<16x899xf32>
      tpu.vector_store %arg10[%c128_100, %c0_101], %132 {strides = array<i32>} : memref<144x1024xf32, #tpu.memory_space<vmem>>, vector<16x899xf32>,
      %c0_102 = arith.constant 0 : index
      %c0_103 = arith.constant 0 : index
      %134 = vector.load %arg4[%c0_102, %c0_103] : memref<32x144xf32, #tpu.memory_space<vmem>>, vector<32x144xf32>
      %c0_104 = arith.constant 0 : index
      %c0_105 = arith.constant 0 : index
      %135 = vector.load %arg10[%c0_104, %c0_105] : memref<144x1024xf32, #tpu.memory_space<vmem>>, vector<144x1024xf32>
      %cst_106 = arith.constant dense<0.000000e+00> : vector<32x1024xf32>
      %136 = tpu.matmul %134, %135, %cst_106 {dimension_numbers = #tpu.dot_dimension_numbers<[1], [0], [0], [1], [0, 0, 1, 1], [], []>} : vector<32x144xf32>, vector<144x1024xf32>, vector<32x1024xf32> -> vector<32x1024xf32>
      %c0_107 = arith.constant 0 : index
      %c0_108 = arith.constant 0 : index
      %137 = vector.load %arg5[%c0_107, %c0_108] : memref<32x1xf32, #tpu.memory_space<vmem>>, vector<32x1xf32>
      %138 = vector.broadcast %137 : vector<32x1xf32> to vector<32x1024xf32>
      %139 = arith.addf %136, %138 : vector<32x1024xf32>
      %cst_109 = arith.constant 0.000000e+00 : f32
      %140 = vector.broadcast %cst_109 : f32 to vector<32x1024xf32>
      %141 = arith.maximumf %139, %140 : vector<32x1024xf32>
      %142 = arith.truncf %141 : vector<32x1024xf32> to vector<32x1024xbf16>
      %143 = arith.index_cast %arg11 : i32 to index
      %c0_110 = arith.constant 0 : index
      %c0_111 = arith.constant 0 : index
      %144 = vector.load %arg6[%143, %c0_110, %c0_111] : memref<2x32x1024xbf16, #tpu.memory_space<vmem>>, vector<1x32x1024xbf16>
      %145 = vector.shape_cast %144 : vector<1x32x1024xbf16> to vector<32x1024xbf16>
      %146 = vector.shape_cast %142 : vector<32x1024xbf16> to vector<1x32x1024xbf16>
      tpu.vector_store %arg6[%143, %c0_110, %c0_111], %146 {strides = array<i32>} : memref<2x32x1024xbf16, #tpu.memory_space<vmem>>, vector<1x32x1024xbf16>,
    }
    %c2_i32_21 = arith.constant 2 : i32
    return
  }
  func.func @transform_0(%arg0: i32) -> (i32, i32, i32) {
    %c0_i32 = arith.constant 0 : i32
    %c0_i32_0 = arith.constant 0 : i32
    %c0_i32_1 = arith.constant 0 : i32
    return %arg0, %c0_i32, %c0_i32_0 : i32, i32, i32
  }
  func.func @transform_1(%arg0: i32) -> (i32, i32) {
    %c0_i32 = arith.constant 0 : i32
    %c0_i32_0 = arith.constant 0 : i32
    %c0_i32_1 = arith.constant 0 : i32
    return %c0_i32, %c0_i32_0 : i32, i32
  }
  func.func @transform_2(%arg0: i32) -> (i32, i32) {
    %c0_i32 = arith.constant 0 : i32
    %c0_i32_0 = arith.constant 0 : i32
    %c0_i32_1 = arith.constant 0 : i32
    return %c0_i32, %c0_i32_0 : i32, i32
  }
  func.func @transform_3(%arg0: i32) -> (i32, i32) {
    %c0_i32 = arith.constant 0 : i32
    %c0_i32_0 = arith.constant 0 : i32
    %c0_i32_1 = arith.constant 0 : i32
    return %c0_i32, %c0_i32_0 : i32, i32
  }
  func.func @transform_4(%arg0: i32) -> (i32, i32) {
    %c0_i32 = arith.constant 0 : i32
    %c0_i32_0 = arith.constant 0 : i32
    %c0_i32_1 = arith.constant 0 : i32
    return %c0_i32, %c0_i32_0 : i32, i32
  }
  func.func @transform_5(%arg0: i32) -> (i32, i32, i32) {
    %c0_i32 = arith.constant 0 : i32
    %c0_i32_0 = arith.constant 0 : i32
    %c0_i32_1 = arith.constant 0 : i32
    return %arg0, %c0_i32, %c0_i32_0 : i32, i32, i32
  }
}

module attributes {stable_mosaic.version = 11 : i64} {
  func.func @_fc_fused_kernel(%arg0: i32, %arg1: i32, %arg2: memref<2x8192xbf16, #tpu.memory_space<vmem>>, %arg3: memref<8192x256xbf16, #tpu.memory_space<vmem>>, %arg4: memref<1x256xf32, #tpu.memory_space<vmem>>, %arg5: memref<256x4xf32, #tpu.memory_space<vmem>>, %arg6: memref<1x4xf32, #tpu.memory_space<vmem>>, %arg7: memref<2x4xf32, #tpu.memory_space<vmem>>, %arg8: memref<2x256xf32, #tpu.memory_space<vmem>>) attributes {dimension_semantics = [#tpu.dimension_semantics<arbitrary>, #tpu.dimension_semantics<arbitrary>], iteration_bounds = array<i64: 1, 4>, scalar_prefetch = 0 : i64, scratch_operands = 1 : i64, tpu.core_type = #tpu.core_type<tc>, window_params = [{transform_indices = @transform_0, window_bounds = array<i64: 2, 8192>}, {transform_indices = @transform_1, window_bounds = array<i64: 8192, 256>}, {transform_indices = @transform_2, window_bounds = array<i64: 1, 256>}, {transform_indices = @transform_3, window_bounds = array<i64: 256, 4>}, {pipeline_mode = #tpu.pipeline_mode<synchronous>, transform_indices = @transform_4, window_bounds = array<i64: 1, 4>}, {pipeline_mode = #tpu.pipeline_mode<synchronous>, transform_indices = @transform_5, window_bounds = array<i64: 2, 4>}]} {
    %c0_i32 = arith.constant 0 : i32
    %0 = arith.cmpi eq, %arg1, %c0_i32 : i32
    %1 = arith.extui %0 : i1 to i32
    %c0_i32_0 = arith.constant 0 : i32
    %2 = arith.cmpi ne, %1, %c0_i32_0 : i32
    scf.if %2 {
      %cst_9 = arith.constant 0.000000e+00 : f32
      %12 = vector.broadcast %cst_9 : f32 to vector<2x256xf32>
      %c0_10 = arith.constant 0 : index
      %c0_11 = arith.constant 0 : index
      %13 = vector.load %arg8[%c0_10, %c0_11] : memref<2x256xf32, #tpu.memory_space<vmem>>, vector<2x256xf32>
      tpu.vector_store %arg8[%c0_10, %c0_11], %12 {strides = array<i32>} : memref<2x256xf32, #tpu.memory_space<vmem>>, vector<2x256xf32>,
    } else {
    }
    %c0 = arith.constant 0 : index
    %c0_1 = arith.constant 0 : index
    %3 = vector.load %arg8[%c0, %c0_1] : memref<2x256xf32, #tpu.memory_space<vmem>>, vector<2x256xf32>
    %c0_2 = arith.constant 0 : index
    %c0_3 = arith.constant 0 : index
    %4 = vector.load %arg2[%c0_2, %c0_3] : memref<2x8192xbf16, #tpu.memory_space<vmem>>, vector<2x8192xbf16>
    %c0_4 = arith.constant 0 : index
    %c0_5 = arith.constant 0 : index
    %5 = vector.load %arg3[%c0_4, %c0_5] : memref<8192x256xbf16, #tpu.memory_space<vmem>>, vector<8192x256xbf16>
    %cst = arith.constant dense<0.000000e+00> : vector<2x256xf32>
    %6 = tpu.matmul %4, %5, %cst {dimension_numbers = #tpu.dot_dimension_numbers<[1], [0], [0], [1], [0, 0, 1, 1], [], []>} : vector<2x8192xbf16>, vector<8192x256xbf16>, vector<2x256xf32> -> vector<2x256xf32>
    %7 = arith.addf %3, %6 : vector<2x256xf32>
    %c0_6 = arith.constant 0 : index
    %c0_7 = arith.constant 0 : index
    %8 = vector.load %arg8[%c0_6, %c0_7] : memref<2x256xf32, #tpu.memory_space<vmem>>, vector<2x256xf32>
    tpu.vector_store %arg8[%c0_6, %c0_7], %7 {strides = array<i32>} : memref<2x256xf32, #tpu.memory_space<vmem>>, vector<2x256xf32>,
    %c3_i32 = arith.constant 3 : i32
    %9 = arith.cmpi eq, %arg1, %c3_i32 : i32
    %10 = arith.extui %9 : i1 to i32
    %c0_i32_8 = arith.constant 0 : i32
    %11 = arith.cmpi ne, %10, %c0_i32_8 : i32
    scf.if %11 {
      %c0_9 = arith.constant 0 : index
      %c0_10 = arith.constant 0 : index
      %12 = vector.load %arg8[%c0_9, %c0_10] : memref<2x256xf32, #tpu.memory_space<vmem>>, vector<2x256xf32>
      %c0_11 = arith.constant 0 : index
      %c0_12 = arith.constant 0 : index
      %13 = vector.load %arg4[%c0_11, %c0_12] : memref<1x256xf32, #tpu.memory_space<vmem>>, vector<1x256xf32>
      %14 = vector.broadcast %13 : vector<1x256xf32> to vector<2x256xf32>
      %15 = arith.addf %12, %14 : vector<2x256xf32>
      %cst_13 = arith.constant 0.000000e+00 : f32
      %16 = vector.broadcast %cst_13 : f32 to vector<2x256xf32>
      %17 = arith.maximumf %15, %16 : vector<2x256xf32>
      %c0_14 = arith.constant 0 : index
      %c0_15 = arith.constant 0 : index
      %18 = vector.load %arg5[%c0_14, %c0_15] : memref<256x4xf32, #tpu.memory_space<vmem>>, vector<256x4xf32>
      %cst_16 = arith.constant dense<0.000000e+00> : vector<2x4xf32>
      %19 = tpu.matmul %17, %18, %cst_16 {dimension_numbers = #tpu.dot_dimension_numbers<[1], [0], [0], [1], [0, 0, 1, 1], [], []>} : vector<2x256xf32>, vector<256x4xf32>, vector<2x4xf32> -> vector<2x4xf32>
      %c0_17 = arith.constant 0 : index
      %c0_18 = arith.constant 0 : index
      %20 = vector.load %arg6[%c0_17, %c0_18] : memref<1x4xf32, #tpu.memory_space<vmem>>, vector<1x4xf32>
      %21 = vector.broadcast %20 : vector<1x4xf32> to vector<2x4xf32>
      %22 = arith.addf %19, %21 : vector<2x4xf32>
      %c0_19 = arith.constant 0 : index
      %c0_20 = arith.constant 0 : index
      %23 = vector.load %arg7[%c0_19, %c0_20] : memref<2x4xf32, #tpu.memory_space<vmem>>, vector<2x4xf32>
      tpu.vector_store %arg7[%c0_19, %c0_20], %22 {strides = array<i32>} : memref<2x4xf32, #tpu.memory_space<vmem>>, vector<2x4xf32>,
    } else {
    }
    return
  }
  func.func @transform_0(%arg0: i32, %arg1: i32) -> (i32, i32) {
    %c0_i32 = arith.constant 0 : i32
    %c0_i32_0 = arith.constant 0 : i32
    return %c0_i32, %arg1 : i32, i32
  }
  func.func @transform_1(%arg0: i32, %arg1: i32) -> (i32, i32) {
    %c0_i32 = arith.constant 0 : i32
    return %arg1, %arg0 : i32, i32
  }
  func.func @transform_2(%arg0: i32, %arg1: i32) -> (i32, i32) {
    %c0_i32 = arith.constant 0 : i32
    %c0_i32_0 = arith.constant 0 : i32
    return %c0_i32, %arg0 : i32, i32
  }
  func.func @transform_3(%arg0: i32, %arg1: i32) -> (i32, i32) {
    %c0_i32 = arith.constant 0 : i32
    %c0_i32_0 = arith.constant 0 : i32
    return %arg0, %c0_i32 : i32, i32
  }
  func.func @transform_4(%arg0: i32, %arg1: i32) -> (i32, i32) {
    %c0_i32 = arith.constant 0 : i32
    %c0_i32_0 = arith.constant 0 : i32
    %c0_i32_1 = arith.constant 0 : i32
    return %c0_i32, %c0_i32_0 : i32, i32
  }
  func.func @transform_5(%arg0: i32, %arg1: i32) -> (i32, i32) {
    %c0_i32 = arith.constant 0 : i32
    %c0_i32_0 = arith.constant 0 : i32
    %c0_i32_1 = arith.constant 0 : i32
    return %c0_i32, %c0_i32_0 : i32, i32
  }
}

</mosaic_0001>

<bundles_post_ra>
// kernel: dqn_forward.2
= control target key start
LH: loop header
LB: loop body
LE: loop exit
PB: predicated region body
PF: predicated region fallthrough
CT: control target
= control target key end

     0   :  { %10 = vsyncpa [#allocation7], 0  ;;  %s5340_s0 = inlined_call_operand.vmem [shape: f32[2,5,899], index: 0, kind: input, shape index: {}]   ;;  %s5341_s1 = inlined_call_operand.hbm [shape: f32[16,72], index: 1, kind: input, shape index: {}]   ;;  %s5342_s2 = inlined_call_operand.vmem [shape: f32[16,1], index: 2, kind: input, shape index: {}]   ;;  %s5343_s3 = inlined_call_operand.hbm [shape: f32[32,144], index: 3, kind: input, shape index: {}]   ;;  %s5344_s4 = inlined_call_operand.vmem [shape: f32[32,1], index: 4, kind: input, shape index: {}]   ;;  %s5345_s5 = inlined_call_operand.vmem [shape: bf16[2,32,1024], index: 5, kind: output, shape index: {}]  }
   0x1   :  { %11 = vsyncpa [#allocation9], 0  ;;  %s3593_s18 = smov [#allocation6]   ;;  %s3537_s22 = scalar_lea.hbm %s5341_s1, 256 }
   0x2   :  { %s19_s19 = sshll.u32 %s3593_s18, 4  ;;  %p3538_p0 = scmp.ne.s32.totalorder %s5341_s1, %s3537_s22  ;;  %s20_s19 = int_to_ptr.vmem [resolvable:$true] %s19_s19 }
   0x3   :  { %p3541_p1 = scmp.lt.u32.totalorder %s3537_s22, %s5341_s1 }
   0x5   :  { %p3543_p2 = pnand %p3541_p1, %p3538_p0 }
   0x7   :  { %3546 = shalt.err (!%p3543_p2)
}
   0x8   :  { %s3547_s27 = scalar_lea.vmem %s20_s19, 256  ;;  %p3552_p4 = scmp.lt.s32.totalorder %s20_s19, %s20_s19 }
   0x9   :  { %p3548_p3 = scmp.ne.s32.totalorder %s20_s19, %s3547_s27  ;;  %p3553_p5 = scmp.lt.s32.totalorder %s3547_s27, %s3547_s27 }
   0xb   :  { %p3554_p6 = por %p3553_p5, %p3552_p4 }
   0xd   :  { %p3555_p7 = pnand %p3554_p6, %p3548_p3 }
   0xf   :  { %3558 = shalt.err (!%p3555_p7)
}
  0x10   :  { %s3594_s28 = smov 128   ;;  %s3595_s29 = smov 8  }
  0x11   :  { %25 = dma.hbm_to_vmem [thread:$0]  %s5341_s1, 256, %s20_s19, [#allocation7], %s3594_s28, %s3594_s28, %s3595_s29  }
  0x12   :  { %s3596_s7 = smov [#allocation8]   ;;  %s3559_s11 = scalar_lea.hbm %s5343_s3, 1024 }
  0x13   :  { %s33_s8 = sshll.u32 %s3596_s7, 4  ;;  %p3560_p8 = scmp.ne.s32.totalorder %s5343_s3, %s3559_s11  ;;  %s34_s8 = int_to_ptr.vmem [resolvable:$true] %s33_s8 }
  0x14   :  { %p3563_p9 = scmp.lt.u32.totalorder %s3559_s11, %s5343_s3 }
  0x16   :  { %p3565_p10 = pnand %p3563_p9, %p3560_p8 }
  0x18   :  { %3568 = shalt.err (!%p3565_p10)
}
  0x19   :  { %s3569_s16 = scalar_lea.vmem %s34_s8, 1024  ;;  %p3574_p12 = scmp.lt.s32.totalorder %s34_s8, %s34_s8 }
  0x1a   :  { %p3570_p11 = scmp.ne.s32.totalorder %s34_s8, %s3569_s16  ;;  %p3575_p13 = scmp.lt.s32.totalorder %s3569_s16, %s3569_s16 }
  0x1c   :  { %p3576_p0 = por %p3575_p13, %p3574_p12 }
  0x1e   :  { %p3577_p1 = pnand %p3576_p0, %p3570_p11 }
  0x20   :  { %3580 = shalt.err (!%p3577_p1)
}
  0x21   :  { %s3597_s1 = smov 256   ;;  %s3598_s17 = smov 16  }
  0x22   :  { %39 = dma.hbm_to_vmem [thread:$0]  %s5343_s3, 1024, %s34_s8, [#allocation9], %s3597_s1, %s3597_s1, %s3598_s17  }
  0x23   :  { %3585 = dma.done.wait [#allocation7], 256  }
  0x24   :  { %3586 = vsyncadd [#allocation7], 4294967040 }
  0x25   :  { %3587 = dma.done.wait [#allocation9], 1024  }
  0x26   :  { %3588 = vsyncadd [#allocation9], 4294966272  ;;  %vm49_vm0 = vcmask 1047576   ;;  %v95_v0 = vlaneseq  ;;  %v3599_v1 = vmov 0.0   ;;  %vm60_vm2 = vcmask 23557   ;;  %s3765_s3 = smov 0  }
  0x27   :  { %50 = vst.msk [vmem:[#allocation2 + $0x40] sm:$0xff] %vm49_vm0, %v3599_v1  ;;  %48 = vst [vmem:[#allocation2] sm:$0xff] %v3599_v1  ;;  %v3600_v17 = vmov 0  }
  0x28   :  { %53 = vst [vmem:[#allocation2 + $0x8] sm:$0xe0] %v3599_v1  ;;  %54 = vst [vmem:[#allocation2 + $0x10] sm:$0xe0] %v3599_v1  ;;  %v96_v2 = vand.u32 127, %v95_v0 }
  0x29   :  { %55 = vst [vmem:[#allocation2 + $0x18] sm:$0xe0] %v3599_v1  ;;  %56 = vst [vmem:[#allocation2 + $0x20] sm:$0xe0] %v3599_v1 }
  0x2a   :  { %57 = vst [vmem:[#allocation2 + $0x28] sm:$0xe0] %v3599_v1  ;;  %58 = vst [vmem:[#allocation2 + $0x30] sm:$0xe0] %v3599_v1  ;;  %v97_v3 = vadd.s32 128, %v96_v2  ;;  %v98_v4 = vadd.s32 256, %v96_v2 }
  0x2b   :  { %59 = vst [vmem:[#allocation2 + $0x38] sm:$0xe0] %v3599_v1  ;;  %62 = vst [vmem:[#allocation3] sm:$0xff] %v3599_v1  ;;  %v99_v5 = vadd.s32 384, %v96_v2  ;;  %v100_v6 = vadd.s32 512, %v96_v2  ;;  %v101_v26 = vadd.s32 640, %v96_v2 }
  0x2c   :  { %63 = vst [vmem:[#allocation3 + $0x50] sm:$0xff] %v3599_v1  ;;  %64 = vst.msk [vmem:[#allocation3 + $0x40] sm:$0xff] %vm49_vm0, %v3599_v1  ;;  %v3696_v7 = vmul.u32.u64.low 2216757314, %v96_v2  ;;  %v3697_v8 = vmul.u32.u64.high 2216757314, %v96_v2, %v3696_v7  ;;  %v3699_v9 = vmul.u32.u64.low 2216757314, %v97_v3  ;;  %v3700_v10 = vmul.u32.u64.high 2216757314, %v97_v3, %v3699_v9 }
  0x2d   :  { %66 = vst.msk [vmem:[#allocation3 + $0x90] sm:$0xff] %vm49_vm0, %v3599_v1  ;;  %68 = vst.msk [vmem:[#allocation4 + $0x38] sm:$0xff] %vm49_vm0, %v3599_v1  ;;  %v3702_v11 = vmul.u32.u64.low 2216757314, %v98_v4  ;;  %v3703_v12 = vmul.u32.u64.high 2216757314, %v98_v4, %v3702_v11  ;;  %v3705_v13 = vmul.u32.u64.low 2216757314, %v99_v5  ;;  %v3706_v14 = vmul.u32.u64.high 2216757314, %v99_v5, %v3705_v13 }
  0x2e   :  { %69 = vst.msk [vmem:[#allocation4 + $0x78] sm:$0xff] %vm49_vm0, %v3599_v1  ;;  %70 = vst.msk [vmem:[#allocation4 + $0xb8] sm:$0xff] %vm49_vm0, %v3599_v1  ;;  %vm110_vm3 = vc.u32 %v3696_v7, 2216757314  ;;  %vm124_vm4 = vc.u32 %v3699_v9, 2216757314 }
  0x2f   :  { %71 = vst.msk [vmem:[#allocation4 + $0xf8] sm:$0xff] %vm49_vm0, %v3599_v1  ;;  %72 = vst.msk [vmem:[#allocation4 + $0x138] sm:$0xff] %vm49_vm0, %v3599_v1  ;;  %v3708_v15 = vmul.u32.u64.low 2216757314, %v100_v6  ;;  %v3709_v16 = vmul.u32.u64.high 2216757314, %v100_v6, %v3708_v15  ;;  %v111_v18 = vsel %vm110_vm3, 1, %v3600_v17  ;;  %v125_v19 = vsel %vm124_vm4, 1, %v3600_v17 }
  0x30   :  { %73 = vst.msk [vmem:[#allocation4 + $0x178] sm:$0xff] %vm49_vm0, %v3599_v1  ;;  %74 = vst.msk [vmem:[#allocation4 + $0x1b8] sm:$0xff] %vm49_vm0, %v3599_v1  ;;  %vm138_vm5 = vc.u32 %v3702_v11, 2216757314  ;;  %vm152_vm6 = vc.u32 %v3705_v13, 2216757314  ;;  %v112_v20 = vadd.s32 %v3697_v8, %v111_v18  ;;  %v126_v21 = vadd.s32 %v3700_v10, %v125_v19 }
  0x31   :  { %75 = vst.msk [vmem:[#allocation4 + $0x1f8] sm:$0xff] %vm49_vm0, %v3599_v1  ;;  %76 = vst.msk [vmem:[#allocation4 + $0x238] sm:$0xff] %vm49_vm0, %v3599_v1  ;;  %v139_v22 = vsel %vm138_vm5, 1, %v3600_v17  ;;  %v153_v23 = vsel %vm152_vm6, 1, %v3600_v17  ;;  %vm166_vm7 = vc.u32 %v3708_v15, 2216757314 }
  0x32   :  { %77 = vst.msk [vmem:[#allocation5 + $0x38] sm:$0xff] %vm49_vm0, %v3599_v1  ;;  %78 = vst.msk [vmem:[#allocation5 + $0x78] sm:$0xff] %vm49_vm0, %v3599_v1  ;;  %v140_v24 = vadd.s32 %v3703_v12, %v139_v22  ;;  %v154_v25 = vadd.s32 %v3706_v14, %v153_v23  ;;  %v113_v27 = vshrl.u32 %v112_v20, 4  ;;  %v127_v28 = vshrl.u32 %v126_v21, 4 }
  0x33   :  { %79 = vst.msk [vmem:[#allocation5 + $0xb8] sm:$0xff] %vm49_vm0, %v3599_v1  ;;  %80 = vst.msk [vmem:[#allocation5 + $0xf8] sm:$0xff] %vm49_vm0, %v3599_v1  ;;  %v167_v29 = vsel %vm166_vm7, 1, %v3600_v17  ;;  %v102_v33 = vadd.s32 768, %v96_v2  ;;  %v103_v36 = vadd.s32 896, %v96_v2 }
  0x34   :  { %81 = vst.msk [vmem:[#allocation5 + $0x138] sm:$0xff] %vm49_vm0, %v3599_v1  ;;  %82 = vst.msk [vmem:[#allocation5 + $0x178] sm:$0xff] %vm49_vm0, %v3599_v1  ;;  %v141_v30 = vshrl.u32 %v140_v24, 4  ;;  %v155_v31 = vshrl.u32 %v154_v25, 4  ;;  %v168_v32 = vadd.s32 %v3709_v16, %v167_v29  ;;  %v114_v34 = vmul.u32 31, %v113_v27 }
  0x35   :  { %83 = vst.msk [vmem:[#allocation5 + $0x1b8] sm:$0xff] %vm49_vm0, %v3599_v1  ;;  %84 = vst.msk [vmem:[#allocation5 + $0x1f8] sm:$0xff] %vm49_vm0, %v3599_v1  ;;  %v128_v35 = vmul.u32 31, %v127_v28  ;;  %v3716_v42 = vmul.u32.u64.low 2216757314, %v101_v26  ;;  %v3717_v43 = vmul.u32.u64.high 2216757314, %v101_v26, %v3716_v42 }
  0x36   :  { %85 = vst.msk [vmem:[#allocation5 + $0x238] sm:$0xff] %vm49_vm0, %v3599_v1  ;;  %86 = vst.msk [vmem:[#allocation5 + $0x278] sm:$0xff] %vm49_vm0, %v3599_v1  ;;  %v142_v37 = vmul.u32 31, %v141_v30  ;;  %v156_v38 = vmul.u32 31, %v155_v31  ;;  %v169_v39 = vshrl.u32 %v168_v32, 4  ;;  %v115_v40 = vsub.s32 %v96_v2, %v114_v34 }
  0x37   :  { %87 = vst.msk [vmem:[#allocation5 + $0x2b8] sm:$0xff] %vm49_vm0, %v3599_v1  ;;  %88 = vst.msk [vmem:[#allocation5 + $0x2f8] sm:$0xff] %vm49_vm0, %v3599_v1  ;;  %v129_v41 = vsub.s32 %v97_v3, %v128_v35  ;;  %vm180_vm8 = vc.u32 %v3716_v42, 2216757314  ;;  %v3719_v47 = vmul.u32.u64.low 2216757314, %v102_v33  ;;  %v3720_v48 = vmul.u32.u64.high 2216757314, %v102_v33, %v3719_v47 }
  0x38   :  { %89 = vst.msk [vmem:[#allocation5 + $0x338] sm:$0xff] %vm49_vm0, %v3599_v1  ;;  %90 = vst.msk [vmem:[#allocation5 + $0x378] sm:$0xff] %vm49_vm0, %v3599_v1  ;;  %v143_v44 = vsub.s32 %v98_v4, %v142_v37  ;;  %v157_v45 = vsub.s32 %v99_v5, %v156_v38  ;;  %v170_v46 = vmul.u32 31, %v169_v39  ;;  %vm216_vm9 = vcmp.ne.s32.totalorder %v115_v40, 0 }
  0x39   :  { %91 = vst.msk [vmem:[#allocation5 + $0x3b8] sm:$0xff] %vm49_vm0, %v3599_v1  ;;  %92 = vst.msk [vmem:[#allocation5 + $0x3f8] sm:$0xff] %vm49_vm0, %v3599_v1  ;;  %v181_v50 = vsel %vm180_vm8, 1, %v3600_v17  ;;  %v3722_v51 = vmul.u32.u64.low 2216757314, %v103_v36  ;;  %v3723_v52 = vmul.u32.u64.high 2216757314, %v103_v36, %v3722_v51  ;;  %vm217_vm11 = vcmp.ne.s32.totalorder %v129_v41, 0 }
  0x3a   :  { %93 = vst.msk [vmem:[#allocation5 + $0x438] sm:$0xff] %vm49_vm0, %v3599_v1  ;;  %94 = vst.msk [vmem:[#allocation5 + $0x478] sm:$0xff] %vm49_vm0, %v3599_v1  ;;  %v171_v49 = vsub.s32 %v100_v6, %v170_v46  ;;  %v182_v53 = vadd.s32 %v3717_v43, %v181_v50  ;;  %vm194_vm10 = vc.u32 %v3719_v47, 2216757314  ;;  %vm218_vm12 = vcmp.ne.s32.totalorder %v143_v44, 0 }
  0x3b   :  { %61 = vst.msk [vmem:[#allocation2 + $0x40] sm:$0xe0] %vm60_vm2, %v3599_v1  ;;  %v195_v54 = vsel %vm194_vm10, 1, %v3600_v17  ;;  %vm208_vm13 = vc.u32 %v3722_v51, 2216757314  ;;  %vm219_vm14 = vcmp.ne.s32.totalorder %v157_v45, 0 }
  0x3c   :  { %vm220_vm15 = vcmp.ne.s32.totalorder %v171_v49, 0  ;;  %v183_v55 = vshrl.u32 %v182_v53, 4  ;;  %v196_v56 = vadd.s32 %v3720_v48, %v195_v54  ;;  %v209_v57 = vsel %vm208_vm13, 1, %v3600_v17 }
  0x3d   :  { %vm224_vm0 = vcmp.lt.s32.totalorder %v115_v40, 0  ;;  %v210_v58 = vadd.s32 %v3723_v52, %v209_v57  ;;  %vm225_vm2 = vcmp.lt.s32.totalorder %v129_v41, 0  ;;  %vm226_vm3 = vcmp.lt.s32.totalorder %v143_v44, 0 }
  0x3e   :  { %vm227_vm4 = vcmp.lt.s32.totalorder %v157_v45, 0  ;;  %vm232_vm5 = vmand %vm224_vm0, %vm216_vm9  ;;  %v184_v59 = vmul.u32 31, %v183_v55  ;;  %v197_v60 = vshrl.u32 %v196_v56, 4  ;;  %vm228_vm6 = vcmp.lt.s32.totalorder %v171_v49, 0 }
  0x3f   :  { %vm233_vm7 = vmand %vm225_vm2, %vm217_vm11  ;;  %v240_v61 = vadd.s32 31, %v115_v40  ;;  %v211_v62 = vshrl.u32 %v210_v58, 4  ;;  %v241_v63 = vadd.s32 31, %v129_v41  ;;  %v242_v0 = vadd.s32 31, %v143_v44 }
  0x40   :  { %vm234_vm8 = vmand %vm226_vm3, %vm218_vm12  ;;  %v243_v1 = vadd.s32 31, %v157_v45  ;;  %v185_v2 = vsub.s32 %v101_v26, %v184_v59  ;;  %v198_v3 = vmul.u32 31, %v197_v60  ;;  %v244_v4 = vadd.s32 31, %v171_v49 }
  0x41   :  { %vm235_vm10 = vmand %vm227_vm4, %vm219_vm14  ;;  %v3732_v5 = vsel %vm232_vm5, %v240_v61, %v115_v40  ;;  %v212_v6 = vmul.u32 31, %v211_v62  ;;  %v3735_v7 = vsel %vm233_vm7, %v241_v63, %v129_v41  ;;  %v3737_v8 = vsel %vm234_vm8, %v242_v0, %v143_v44 }
  0x42   :  { %5373 = vst [vmem:[#allocation12_spill] sm:$0xff] %v3732_v5  ;;  %vm236_vm9 = vmand %vm228_vm6, %vm220_vm15  ;;  %v3739_v9 = vsel %vm235_vm10, %v243_v1, %v157_v45  ;;  %v199_v10 = vsub.s32 %v102_v33, %v198_v3  ;;  %vm221_vm11 = vcmp.ne.s32.totalorder %v185_v2, 0  ;;  %vm229_vm12 = vcmp.lt.s32.totalorder %v185_v2, 0 }
  0x43   :  { %5374 = vst [vmem:[#allocation13_spill] sm:$0xff] %v3735_v7  ;;  %5375 = vst [vmem:[#allocation14_spill] sm:$0xff] %v3737_v8  ;;  %v245_v11 = vadd.s32 31, %v185_v2  ;;  %v213_v12 = vsub.s32 %v103_v36, %v212_v6  ;;  %v3741_v13 = vsel %vm236_vm9, %v244_v4, %v171_v49 }
  0x44   :  { %vm237_vm13 = vmand %vm229_vm12, %vm221_vm11  ;;  %5376 = vst [vmem:[#allocation15_spill] sm:$0xff] %v3741_v13  ;;  %vm222_vm2 = vcmp.ne.s32.totalorder %v199_v10, 0  ;;  %vm230_vm15 = vcmp.lt.s32.totalorder %v199_v10, 0  ;;  %v246_v14 = vadd.s32 31, %v199_v10 }
  0x45   :  { %v3745_v15 = vsel %vm237_vm13, %v245_v11, %v185_v2  ;;  %vm223_vm3 = vcmp.ne.s32.totalorder %v213_v12, 0  ;;  %vm231_vm4 = vcmp.lt.s32.totalorder %v213_v12, 0  ;;  %vm238_vm5 = vmand %vm230_vm15, %vm222_vm2  ;;  %v247_v16 = vadd.s32 31, %v213_v12 }
  0x46   :  { %5377 = vst [vmem:[#allocation16_spill] sm:$0xff] %v3745_v15  ;;  %vm239_vm7 = vmand %vm231_vm4, %vm223_vm3  ;;  %v3748_v17 = vsel %vm238_vm5, %v246_v14, %v199_v10 }
  0x47   :  { %5378 = vst [vmem:[#allocation17_spill] sm:$0xff] %v3748_v17  ;;  %v3753_v18 = vsel %vm239_vm7, %v247_v16, %v213_v12 }
  0x48   :  { %5379 = vst [vmem:[#allocation18_spill] sm:$0xff] %v3753_v18 }
  0x49 LB: > { %v5382_v5 = vld [vmem:[#allocation12_spill] sm:$0xff]  ;;  %s3601_s20 = smov 32   ;;  %s3049_s21 = sshll.u32 %s3591_s3, 6  ;;  %vm296_vm10 = vcmask 20480   ;;  %vm5387_vm1 = vcmask 23552   ;;  %v3608_v36 = vmov 0.0   ;;  %s3591_s3 = sphi %s3765_s3, %s277_s3  }
  0x4a   : > { %v5380_v8 = vld [vmem:[#allocation14_spill] sm:$0xff]  ;;  %v5381_v7 = vld [vmem:[#allocation13_spill] sm:$0xff]  ;;  %v298_v19 = vld [vmem:[#allocation2] sm:$0xff]  ;;  %s280_s24 = scalar_lea.vmem %s5340_s0, %s3049_s21  ;;  %s3602_s25 = smov 31   ;;  %1081 = vmatprep.mubr.f32.mxu1 %v3608_v36  ;;  %1004 = vmatprep.mubr.f32.mxu0 %v3608_v36  ;;  %vm5346_vm11 = vcmask 252928   ;;  %vm3610_vm7 = vmmov 1  }
  0x4b   : > { %v5386_v13 = vld [vmem:[#allocation15_spill] sm:$0xff]  ;;  %330 = vrot.lane.b32.xlu0 %v298_v19, %s3601_s20  ;;  %v283_v20 = vld [vmem:[%s280_s24 + $0x10] sm:$0x1f]  ;;  %v281_v21 = vld [vmem:[%s280_s24] sm:$0x1f]  ;;  %s3603_s26 = smov 30  }
  0x4c   : > { %v284_v22 = vld [vmem:[%s280_s24 + $0x18] sm:$0x1f]  ;;  %291 = vst [vmem:[#allocation2 + $0x18] sm:$0x1f] %v283_v20  ;;  %289 = vst [vmem:[#allocation2 + $0x8] sm:$0x1f] %v281_v21 }
  0x4d   : > { %v5384_v15 = vld [vmem:[#allocation16_spill] sm:$0xff]  ;;  %292 = vst [vmem:[#allocation2 + $0x20] sm:$0x1f] %v284_v22  ;;  %v282_v23 = vld [vmem:[%s280_s24 + $0x8] sm:$0x1f]  ;;  %s3604_s27 = smov 1  }
  0x4e   : > { %v5385_v17 = vld [vmem:[#allocation17_spill] sm:$0xff]  ;;  %v285_v24 = vld [vmem:[%s280_s24 + $0x20] sm:$0x1f]  ;;  %290 = vst [vmem:[#allocation2 + $0x10] sm:$0x1f] %v282_v23  ;;  %s3605_s28 = smov 127  }
  0x4f   : > { %v5383_v18 = vld [vmem:[#allocation18_spill] sm:$0xff]  ;;  %293 = vst [vmem:[#allocation2 + $0x28] sm:$0x1f] %v285_v24  ;;  %v286_v25 = vld [vmem:[%s280_s24 + $0x28] sm:$0x1f]  ;;  %s3606_s29 = smov 98  }
  0x50   : > { %v287_v26 = vld [vmem:[%s280_s24 + $0x30] sm:$0x1f]  ;;  %294 = vst [vmem:[#allocation2 + $0x30] sm:$0x1f] %v286_v25  ;;  %v288_v27 = vld [vmem:[%s280_s24 + $0x38] sm:$0x1f] }
  0x51   : > { %295 = vst [vmem:[#allocation2 + $0x38] sm:$0x1f] %v287_v26  ;;  %297 = vst.msk [vmem:[#allocation2 + $0x40] sm:$0x1f] %vm296_vm10, %v288_v27  ;;  %s3607_s30 = smov 97   ;;  %s3609_s6 = smov 96  }
  0x52   : > { %vm5347_vm10 = vcmask 261120   ;;  %vm5388_vm0 = vcmp.ne.s32.totalorder %v5381_v7, 0  ;;  %vm5391_vm8 = vcmp.ne.s32.totalorder %v3739_v9, 0  ;;  %vm5394_vm6 = vcmp.ne.s32.totalorder %v5380_v8, 0  ;;  %v921_v62 = vld [vmem:[%s5342_s2] sm:$0xff]  ;;  %v922_v63 = vld [vmem:[%s5342_s2 + $0x8] sm:$0xff] }
  0x53   : > { %v3775_v28 = vld [vmem:[#allocation2 + $0x18] sm:$0xff]  ;;  %v3777_v29 = vld [vmem:[#allocation2 + $0x8] sm:$0xff]  ;;  %vm3945_vm2 = vmpackc.low %vm3610_vm7, %vm5391_vm8  ;;  %vm5348_vm5 = vcmask 244736   ;;  %vm5397_vm14 = vcmp.ne.s32.totalorder %v5382_v5, 0  ;;  %v3611_v4 = vmov 0   ;;  %vm5400_vm13 = vcmp.ne.s32.totalorder %v5381_v7, 30 }
  0x54   : > { %v3779_v30 = vld [vmem:[#allocation2 + $0x20] sm:$0xff]  ;;  %336 = vrot.lane.b32.xlu1 %v3775_v28, %s3601_s20  ;;  %332 = vrot.lane.b32.xlu0 %v3777_v29, %s3601_s20  ;;  %vm3955_vm4 = vmpackc.low %vm3610_vm7, %vm5394_vm6  ;;  %v1280_v12 = vld [vmem:[#allocation3] sm:$0xff]  ;;  %vm5401_vm3 = vcmp.ne.s32.totalorder %v3739_v9, 30  ;;  %vm5402_vm15 = vcmp.ne.s32.totalorder %v5380_v8, 30  ;;  %vm5403_vm12 = vcmp.ne.s32.totalorder %v5382_v5, 30  ;;  %s3066_s18 = sshll.u32 %s3591_s3, 7 }
  0x55   : > { %v3785_v31 = vld [vmem:[#allocation2 + $0x10] sm:$0xff]  ;;  %vm3970_vm9 = vmpackc.low %vm3610_vm7, %vm5397_vm14  ;;  %3317 = vset.pattern.permute.xlu1 %v3611_v4  ;;  %3318 = vset.pattern.permute.xlu0 %v3611_v4  ;;  %v1288_v11 = vld [vmem:[#allocation3 + $0x50] sm:$0xff]  ;;  %s5285_s21 = scalar_lea.vmem %s5345_s5, %s3066_s18  ;;  %s277_s3 = sadd.s32 1, %s3591_s3  }
  0x56   : > { %v3787_v32 = vld [vmem:[#allocation2 + $0x28] sm:$0xff]  ;;  %p274_p2 = scmp.ge.s32.totalorder %s277_s3, 2  }
  0x57   : > { %v3789_v33 = vld [vmem:[#allocation2 + $0x30] sm:$0xff] }
  0x58   : > { %v3791_v34 = vld [vmem:[#allocation2 + $0x38] sm:$0xff]  ;;  %v3793_v35 = vld [vmem:[#allocation2 + $0x40] sm:$0xff]  ;;  %338 = vrot.lane.b32.xlu1 %v3779_v30, %s3601_s20  ;;  %334 = vrot.lane.b32.xlu0 %v3785_v31, %s3601_s20 }
  0x59   : > { %598 = vst.msk [vmem:[#allocation4 + $0x138] sm:$0xff] %vm5387_vm1, %v3793_v35  ;;  %vm3933_vm1 = vmpackc.low %vm3610_vm7, %vm5388_vm0 }
  0x5c   : > { %396 = vrot.lane.b32.xlu1 %v3777_v29, %s3602_s25  ;;  %398 = vrot.lane.b32.xlu0 %v3785_v31, %s3602_s25 }
  0x60   : > { %400 = vrot.lane.b32.xlu1 %v3775_v28, %s3602_s25  ;;  %402 = vrot.lane.b32.xlu0 %v3779_v30, %s3602_s25 }
  0x64   : > { %394 = vrot.lane.b32.xlu1 %v298_v19, %s3602_s25  ;;  %468 = vrot.lane.b32.xlu0 %v3777_v29, %s3603_s26 }
  0x68   : > { %470 = vrot.lane.b32.xlu1 %v3785_v31, %s3603_s26  ;;  %472 = vrot.lane.b32.xlu0 %v3775_v28, %s3603_s26 }
  0x6c   : > { %474 = vrot.lane.b32.xlu1 %v3779_v30, %s3603_s26  ;;  %534 = vrot.lane.b32.xlu0 %v3777_v29, %s3604_s27 }
  0x70   : > { %536 = vrot.lane.b32.xlu1 %v3785_v31, %s3604_s27  ;;  %538 = vrot.lane.b32.xlu0 %v3775_v28, %s3604_s27 }
  0x74   : > { %540 = vrot.lane.b32.xlu1 %v3779_v30, %s3604_s27  ;;  %466 = vrot.lane.b32.xlu0 %v298_v19, %s3603_s26 }
  0x78   : > { %532 = vrot.lane.b32.xlu1 %v298_v19, %s3604_s27  ;;  %617 = vrot.lane.b32.xlu0 %v3785_v31, %s3605_s28 }
  0x7c   : > { %619 = vrot.lane.b32.xlu1 %v3775_v28, %s3605_s28  ;;  %621 = vrot.lane.b32.xlu0 %v3779_v30, %s3605_s28 }
  0x80   : > { %623 = vrot.lane.b32.xlu1 %v3787_v32, %s3605_s28  ;;  %615 = vrot.lane.b32.xlu0 %v3777_v29, %s3605_s28 }
  0x84   : > { %681 = vrot.lane.b32.xlu1 %v3785_v31, %s3606_s29  ;;  %683 = vrot.lane.b32.xlu0 %v3775_v28, %s3606_s29 }
  0x88   : > { %685 = vrot.lane.b32.xlu1 %v3779_v30, %s3606_s29  ;;  %687 = vrot.lane.b32.xlu0 %v3787_v32, %s3606_s29 }
  0x8c   : > { %679 = vrot.lane.b32.xlu1 %v3777_v29, %s3606_s29  ;;  %745 = vrot.lane.b32.xlu0 %v3785_v31, %s3607_s30 }
  0x90   : > { %747 = vrot.lane.b32.xlu1 %v3775_v28, %s3607_s30  ;;  %749 = vrot.lane.b32.xlu0 %v3779_v30, %s3607_s30 }
  0x94   : > { %751 = vrot.lane.b32.xlu1 %v3787_v32, %s3607_s30  ;;  %743 = vrot.lane.b32.xlu0 %v3777_v29, %s3607_s30 }
  0x98   : > { %801 = vrot.lane.b32.xlu1 %v3785_v31, %s3609_s6  ;;  %803 = vrot.lane.b32.xlu0 %v3775_v28, %s3609_s6 }
  0x9c   : > { %805 = vrot.lane.b32.xlu1 %v3779_v30, %s3609_s6  ;;  %807 = vrot.lane.b32.xlu0 %v3787_v32, %s3609_s6 }
  0xa0   : > { %799 = vrot.lane.b32.xlu1 %v3777_v29, %s3609_s6  ;;  %340 = vrot.lane.b32.xlu0 %v3787_v32, %s3601_s20 }
  0xa4   : > { %342 = vrot.lane.b32.xlu1 %v3789_v33, %s3601_s20  ;;  %404 = vrot.lane.b32.xlu0 %v3787_v32, %s3602_s25 }
  0xa8   : > { %406 = vrot.lane.b32.xlu1 %v3789_v33, %s3602_s25  ;;  %476 = vrot.lane.b32.xlu0 %v3787_v32, %s3603_s26 }
  0xac   : > { %478 = vrot.lane.b32.xlu1 %v3789_v33, %s3603_s26  ;;  %542 = vrot.lane.b32.xlu0 %v3787_v32, %s3604_s27 }
  0xb0   : > { %544 = vrot.lane.b32.xlu1 %v3789_v33, %s3604_s27  ;;  %625 = vrot.lane.b32.xlu0 %v3789_v33, %s3605_s28 }
  0xb4   : > { %627 = vrot.lane.b32.xlu1 %v3791_v34, %s3605_s28  ;;  %689 = vrot.lane.b32.xlu0 %v3789_v33, %s3606_s29 }
  0xb8   : > { %691 = vrot.lane.b32.xlu1 %v3791_v34, %s3606_s29  ;;  %753 = vrot.lane.b32.xlu0 %v3789_v33, %s3607_s30 }
  0xbc   : > { %755 = vrot.lane.b32.xlu1 %v3791_v34, %s3607_s30  ;;  %344 = vrot.lane.b32.xlu0 %v3791_v34, %s3601_s20 }
  0xbd   : > { %v331_v37 = vpop.permute.xlu0 %330 }
  0xc0   : > { %809 = vrot.lane.b32.xlu1 %v3789_v33, %s3609_s6  ;;  %811 = vrot.lane.b32.xlu0 %v3791_v34, %s3609_s6 }
  0xc4   : > { %408 = vrot.lane.b32.xlu1 %v3791_v34, %s3602_s25  ;;  %546 = vrot.lane.b32.xlu0 %v3791_v34, %s3604_s27 }
  0xc6   : > { %v337_v38 = vpop.permute.xlu1 %336  ;;  %v333_v39 = vpop.permute.xlu0 %332 }
  0xc7   : > { %v347_v40 = vsel %vm5347_vm10, %v331_v37, %v333_v39 }
  0xc8   : > { %548 = vrot.lane.b32.xlu1 %v3793_v35, %s3604_s27  ;;  %480 = vrot.lane.b32.xlu0 %v3791_v34, %s3603_s26 }
  0xca   : > { %v3913_v41 = vpop.permute.xlu1 %338  ;;  %v335_v42 = vpop.permute.xlu0 %334 }
  0xcb   : > { %v350_v43 = vsel %vm5347_vm10, %v337_v38, %v3913_v41  ;;  %v348_v44 = vsel %vm5347_vm10, %v333_v39, %v335_v42  ;;  %v349_v45 = vsel %vm5347_vm10, %v335_v42, %v337_v38  ;;  %vm3332_vm10 = vmpackc.low %vm5388_vm0, %vm5400_vm13  ;;  %vm631_vm0 = vcmask 1039360  }
  0xcc   : > { %629 = vrot.lane.b32.xlu1 %v3793_v35, %s3605_s28  ;;  %693 = vrot.lane.b32.xlu0 %v3793_v35, %s3606_s29 }
  0xce   : > { %v397_v46 = vpop.permute.xlu1 %396  ;;  %v399_v47 = vpop.permute.xlu0 %398 }
  0xcf   : > { %v412_v48 = vsel %vm5346_vm11, %v397_v46, %v399_v47 }
  0xd0   : > { %757 = vrot.lane.b32.xlu1 %v3793_v35, %s3607_s30  ;;  %813 = vrot.lane.b32.xlu0 %v3793_v35, %s3609_s6  ;;  %v3321_v52 = vpack.c.bf16 %v412_v48, %v348_v44 }
  0xd2   : > { %v401_v49 = vpop.permute.xlu1 %400  ;;  %v3928_v50 = vpop.permute.xlu0 %402  ;;  %3322 = vmatprep.subr.msk.bf16.mxu0 %vm3933_vm1, %v3321_v52 }
  0xd3   : > { %v413_v53 = vsel %vm5346_vm11, %v399_v47, %v401_v49  ;;  %v414_v54 = vsel %vm5346_vm11, %v401_v49, %v3928_v50 }
  0xd4   : > { %v3324_v58 = vpack.c.bf16 %v414_v54, %v350_v43  ;;  %v3327_v61 = vpack.c.bf16 %v413_v53, %v349_v45  ;;  %925 = vperm.xlu1 %3317, %v921_v62   ;;  %930 = vperm.xlu0 %3318, %v922_v63  }
  0xd6   : > { %v395_v55 = vpop.permute.xlu1 %394  ;;  %v469_v56 = vpop.permute.xlu0 %468  ;;  %3325 = vmatprep.subr.msk.bf16.mxu1 %vm3945_vm2, %v3324_v58 }
  0xd7   : > { %v411_v59 = vsel %vm5346_vm11, %v395_v55, %v397_v46  ;;  %3328 = vmatpush1.bf16.msk.msra.mxu1 %vm3955_vm4, %v3327_v61  ;;  %vm550_vm11 = vcmask 7168  }
  0xd8   : > { %v3330_v3 = vpack.c.bf16 %v411_v59, %v347_v40  ;;  %1328 = vrot.lane.b32.xlu1 %v1288_v11, %s3601_s20  ;;  %1312 = vrot.lane.b32.xlu0 %v1280_v12, %s3601_s20 }
  0xda   : > { %v471_v0 = vpop.permute.xlu1 %470  ;;  %v473_v1 = vpop.permute.xlu0 %472  ;;  %3331 = vmatpush1.bf16.msk.msra.mxu0 %vm3970_vm9, %v3330_v3 }
  0xdb   : > { %v484_v6 = vsel %vm5348_vm5, %v469_v56, %v471_v0  ;;  %v485_v10 = vsel %vm5348_vm5, %v471_v0, %v473_v1 }
  0xdc   : > { %1454 = vrot.lane.b32.xlu1 %v1288_v11, %s3602_s25  ;;  %1438 = vrot.lane.b32.xlu0 %v1280_v12, %s3602_s25 }
  0xde   : > { %v3978_v14 = vpop.permute.xlu1 %474  ;;  %v535_v16 = vpop.permute.xlu0 %534 }
  0xdf   : > { %v486_v19 = vsel %vm5348_vm5, %v473_v1, %v3978_v14 }
  0xe0   : > { %1564 = vrot.lane.b32.xlu1 %v1288_v11, %s3603_s26  ;;  %1548 = vrot.lane.b32.xlu0 %v1280_v12, %s3603_s26 }
  0xe2   : > { %v537_v20 = vpop.permute.xlu1 %536  ;;  %v539_v21 = vpop.permute.xlu0 %538 }
  0xe3   : > { %v552_v22 = vsel %vm550_vm11, %v535_v16, %v537_v20  ;;  %v553_v23 = vsel %vm550_vm11, %v537_v20, %v539_v21 }
  0xe4   : > { %v3333_v35 = vpack.c.bf16 %v552_v22, %v484_v6  ;;  %1696 = vrot.lane.b32.xlu1 %v1288_v11, %s3604_s27  ;;  %v3339_v42 = vpack.c.bf16 %v553_v23, %v485_v10  ;;  %1678 = vrot.lane.b32.xlu0 %v1280_v12, %s3604_s27 }
  0xe6   : > { %v3988_v24 = vpop.permute.xlu1 %540  ;;  %v467_v25 = vpop.permute.xlu0 %466  ;;  %3334 = vmatprep.subr.msk.bf16.mxu0 %vm3332_vm10, %v3333_v35  ;;  %vm3338_vm10 = vmpackc.low %vm5394_vm6, %vm5402_vm15  ;;  %vm695_vm6 = vcmask 801792  }
  0xe7   : > { %v554_v26 = vsel %vm550_vm11, %v539_v21, %v3988_v24  ;;  %v483_v27 = vsel %vm5348_vm5, %v467_v25, %v469_v56  ;;  %vm3335_vm5 = vmpackc.low %vm5391_vm8, %vm5401_vm3 }
  0xe8   : > { %v3336_v40 = vpack.c.bf16 %v554_v26, %v486_v19  ;;  %vm3350_vm8 = vmpackc.low %vm5401_vm3, %vm3610_vm7 }
  0xea   : > { %v533_v37 = vpop.permute.xlu1 %532  ;;  %v618_v38 = vpop.permute.xlu0 %617  ;;  %3337 = vmatprep.subr.msk.bf16.mxu1 %vm3335_vm5, %v3336_v40  ;;  %vm3341_vm5 = vmpackc.low %vm5397_vm14, %vm5403_vm12 }
  0xeb   : > { %v551_v39 = vsel %vm550_vm11, %v533_v37, %v535_v16  ;;  %3340 = vmatpush1.bf16.msk.msra.mxu1 %vm3338_vm10, %v3339_v42  ;;  %vm3344_vm10 = vmpackc.low %vm5400_vm13, %vm3610_vm7  ;;  %v4079_v42 = vld [vmem:[#allocation6 + $0x8] sm:$0xff] }
  0xec   : > { %v3342_v47 = vpack.c.bf16 %v551_v39, %v483_v27 }
  0xee   : > { %v620_v43 = vpop.permute.xlu1 %619  ;;  %v622_v44 = vpop.permute.xlu0 %621  ;;  %3343 = vmatpush1.bf16.msk.msra.mxu0 %vm3341_vm5, %v3342_v47  ;;  %vm3347_vm5 = vmpackc.low %vm5403_vm12, %vm3610_vm7 }
  0xef   : > { %v633_v45 = vsel %vm631_vm0, %v618_v38, %v620_v43  ;;  %v634_v46 = vsel %vm631_vm0, %v620_v43, %v622_v44 }
  0xf0   : > { %v3345_v54 = vpack.c.bf16 %v633_v45, %v3785_v31  ;;  %v3354_v31 = vpack.c.bf16 %v634_v46, %v3775_v28 }
  0xf2   : > { %v4016_v48 = vpop.permute.xlu1 %623  ;;  %v616_v49 = vpop.permute.xlu0 %615  ;;  %3346 = vmatprep.subr.msk.bf16.mxu0 %vm3344_vm10, %v3345_v54  ;;  %vm3353_vm10 = vmpackc.low %vm5402_vm15, %vm3610_vm7 }
  0xf3   : > { %v635_v52 = vsel %vm631_vm0, %v622_v44, %v4016_v48  ;;  %v632_v53 = vsel %vm631_vm0, %v616_v49, %v618_v38  ;;  %v4067_v38 = vld [vmem:[#allocation6] sm:$0xff] }
  0xf4   : > { %v3348_v59 = vpack.c.bf16 %v632_v53, %v3777_v29  ;;  %v3351_v61 = vpack.c.bf16 %v635_v52, %v3779_v30 }
  0xf6   : > { %v682_v55 = vpop.permute.xlu1 %681  ;;  %v684_v56 = vpop.permute.xlu0 %683  ;;  %3349 = vmatpush1.bf16.msk.msra.mxu0 %vm3347_vm5, %v3348_v59  ;;  %3352 = vmatprep.subr.msk.bf16.mxu1 %vm3350_vm8, %v3351_v61  ;;  %vm759_vm8 = vcmask 793600   ;;  %vm815_vm5 = vcmask 785408  }
  0xf7   : > { %v697_v58 = vsel %vm695_vm6, %v682_v55, %v684_v56  ;;  %3355 = vmatpush1.bf16.msk.msra.mxu1 %vm3353_vm10, %v3354_v31 }
  0xfa   : > { %v686_v62 = vpop.permute.xlu1 %685  ;;  %v4038_v63 = vpop.permute.xlu0 %687 }
  0xfb   : > { %v698_v29 = vsel %vm695_vm6, %v684_v56, %v686_v62  ;;  %v699_v0 = vsel %vm695_vm6, %v686_v62, %v4038_v63 }
  0xfe   : > { %v680_v1 = vpop.permute.xlu1 %679  ;;  %v746_v3 = vpop.permute.xlu0 %745 }
  0xff   : > { %v696_v30 = vsel %vm695_vm6, %v680_v1, %v682_v55 }
 0x102   : > { %v748_v4 = vpop.permute.xlu1 %747  ;;  %v750_v6 = vpop.permute.xlu0 %749 }
 0x103   : > { %v761_v10 = vsel %vm759_vm8, %v746_v3, %v748_v4  ;;  %v762_v28 = vsel %vm759_vm8, %v748_v4, %v750_v6 }
 0x104   : > { %v3357_v16 = vpack.c.bf16 %v761_v10, %v697_v58  ;;  %v3366_v51 = vpack.c.bf16 %v762_v28, %v698_v29 }
 0x106   : > { %v4046_v11 = vpop.permute.xlu1 %751  ;;  %v744_v12 = vpop.permute.xlu0 %743  ;;  %3358 = vmatprep.subr.msk.bf16.mxu0 %vm3933_vm1, %v3357_v16  ;;  %vm933_vm1 = vcmask 588800  }
 0x107   : > { %v763_v19 = vsel %vm759_vm8, %v750_v6, %v4046_v11  ;;  %v760_v20 = vsel %vm759_vm8, %v744_v12, %v746_v3 }
 0x108   : > { %v3360_v23 = vpack.c.bf16 %v760_v20, %v696_v30  ;;  %v3363_v25 = vpack.c.bf16 %v763_v19, %v699_v0 }
 0x10a   : > { %v802_v21 = vpop.permute.xlu1 %801  ;;  %v804_v22 = vpop.permute.xlu0 %803  ;;  %3361 = vmatpush1.bf16.msk.msra.mxu0 %vm3970_vm9, %v3360_v23  ;;  %3364 = vmatprep.subr.msk.bf16.mxu1 %vm3945_vm2, %v3363_v25  ;;  %vm5404_vm9 = vcmask 261120  }
 0x10b   : > { %v817_v26 = vsel %vm815_vm5, %v802_v21, %v804_v22  ;;  %3367 = vmatpush1.bf16.msk.msra.mxu1 %vm3955_vm4, %v3366_v51  ;;  %vm5405_vm2 = vmmov %vm5404_vm9  ;;  %vm5406_vm4 = vcmask 252928  }
 0x10c   : > { %3368 = vmatprep.subr.msk.mxu0 %vm5400_vm13, %v817_v26  ;;  %vm5407_vm10 = vmmov %vm5406_vm4 }
 0x10e   : > { %v806_v27 = vpop.permute.xlu1 %805  ;;  %v4062_v35 = vpop.permute.xlu0 %807 }
 0x10f   : > { %v818_v37 = vsel %vm815_vm5, %v804_v22, %v806_v27  ;;  %v819_v2 = vsel %vm815_vm5, %v806_v27, %v4062_v35 }
 0x110   : > { %3369 = vmatprep.subr.msk.mxu1 %vm5401_vm3, %v819_v2  ;;  %vm5417_vm3 = vcmp.ne.s32.totalorder %v5386_v13, 30 }
 0x111   : > { %3370 = vmatpush1.msk.msra.mxu1 %vm5402_vm15, %v818_v37 }
 0x112   : > { %v800_v57 = vpop.permute.xlu1 %799  ;;  %v341_v60 = vpop.permute.xlu0 %340  ;;  %3009 = vmatmul.mubr.msk.f32.vlgmr.msra.gmra.mrb[0].mxu1 %vm933_vm1, %v4067_v38 }
 0x113   : > { %v816_v39 = vsel %vm815_vm5, %v800_v57, %v802_v21  ;;  %v351_v40 = vsel %vm5404_vm9, %v3913_v41, %v341_v60  ;;  %1087 = vmatprep.mubr.f32.mxu1 %v3608_v36  ;;  %vm5408_vm9 = vcmask 244736  }
 0x114   : > { %3371 = vmatpush1.msk.msra.mxu0 %vm5403_vm12, %v816_v39  ;;  %vm5412_vm15 = vmmov %vm5408_vm9  ;;  %vm5418_vm12 = vcmp.ne.s32.totalorder %v5386_v13, 0 }
 0x115   : > { %3007 = vmatmul.mubr.msk.f32.vlgmr.msra.gmra.mrb[0].mxu0 %vm933_vm1, %v4067_v38  ;;  %vm3381_vm13 = vmpackc.low %vm5418_vm12, %vm5417_vm3 }
 0x116   : > { %v343_v43 = vpop.permute.xlu1 %342  ;;  %v405_v44 = vpop.permute.xlu0 %404  ;;  %3010 = vmatmul.mubr.msk.f32.gmra.mrb[2].mxu1 %vm933_vm1, %v4079_v42  ;;  %1010 = vmatprep.mubr.f32.mxu0 %v3608_v36 }
 0x117   : > { %v352_v45 = vsel %vm5405_vm2, %v341_v60, %v343_v43  ;;  %v415_v41 = vsel %vm5406_vm4, %v3928_v50, %v405_v44  ;;  %1235 = vmatprep.mubr.f32.mxu1 %v3608_v36  ;;  %vm5409_vm2 = vcmp.ne.s32.totalorder %v5384_v15, 0 }
 0x118   : > { %vm4101_vm4 = vmpackc.low %vm3610_vm7, %vm5409_vm2  ;;  %v3376_v59 = vpack.c.bf16 %v415_v41, %v351_v40 }
 0x119   : > { %3008 = vmatmul.mubr.msk.f32.gmra.mrb[2].mxu0 %vm933_vm1, %v4079_v42 }
 0x11a   : > { %v407_v46 = vpop.permute.xlu1 %406  ;;  %v477_v47 = vpop.permute.xlu0 %476  ;;  %1158 = vmatprep.mubr.f32.mxu0 %v3608_v36 }
 0x11b   : > { %v416_v49 = vsel %vm5407_vm10, %v405_v44, %v407_v46  ;;  %v487_v52 = vsel %vm5408_vm9, %v3978_v14, %v477_v47  ;;  %vm5413_vm10 = vcmp.ne.s32.totalorder %v5386_v13, 0 }
 0x11c   : > { %v3373_v55 = vpack.c.bf16 %v416_v49, %v352_v45  ;;  %vm4113_vm9 = vmpackc.low %vm3610_vm7, %vm5413_vm10 }
 0x11e   : > { %v479_v50 = vpop.permute.xlu1 %478  ;;  %v543_v53 = vpop.permute.xlu0 %542  ;;  %3374 = vmatprep.subr.msk.bf16.mxu0 %vm4101_vm4, %v3373_v55 }
 0x11f   : > { %v488_v56 = vsel %vm5412_vm15, %v477_v47, %v479_v50  ;;  %v555_v14 = vsel %vm550_vm11, %v3988_v24, %v543_v53  ;;  %3377 = vmatpush1.bf16.msk.msra.mxu0 %vm4113_vm9, %v3376_v59  ;;  %vm5416_vm15 = vcmp.ne.s32.totalorder %v5384_v15, 30 }
 0x120   : > { %vm3378_vm10 = vmpackc.low %vm5409_vm2, %vm5416_vm15 }
 0x121   : > { %vm5419_vm14 = vmmov %vm5416_vm15 }
 0x122   : > { %v545_v61 = vpop.permute.xlu1 %544  ;;  %v626_v31 = vpop.permute.xlu0 %625  ;;  %vm3384_vm15 = vmpackc.low %vm5419_vm14, %vm3610_vm7  ;;  %vm5423_vm14 = vcmask 23552  }
 0x123   : > { %v556_v62 = vsel %vm550_vm11, %v543_v53, %v545_v61  ;;  %v636_v29 = vsel %vm631_vm0, %v4016_v48, %v626_v31  ;;  %v3382_v48 = vpack.c.bf16 %v555_v14, %v487_v52  ;;  %vm5420_vm2 = vmmov %vm5417_vm3  ;;  %vm5422_vm3 = vcmp.ne.s32.totalorder %v5383_v18, 0 }
 0x124   : > { %v3379_v30 = vpack.c.bf16 %v556_v62, %v488_v56  ;;  %vm3387_vm12 = vmpackc.low %vm5420_vm2, %vm3610_vm7  ;;  %v3388_v12 = vpack.c.bf16 %v636_v29, %v3787_v32 }
 0x125   : > { %vm5426_vm2 = vmmov %vm5423_vm14 }
 0x126   : > { %v628_v0 = vpop.permute.xlu1 %627  ;;  %v690_v24 = vpop.permute.xlu0 %689  ;;  %3380 = vmatprep.subr.msk.bf16.mxu0 %vm3378_vm10, %v3379_v30  ;;  %vm5424_vm10 = vcmp.ne.s32.totalorder %v5384_v15, 30 }
 0x127   : > { %v637_v1 = vsel %vm631_vm0, %v626_v31, %v628_v0  ;;  %v700_v3 = vsel %vm695_vm6, %v4038_v63, %v690_v24  ;;  %3383 = vmatpush1.bf16.msk.msra.mxu0 %vm3381_vm13, %v3382_v48  ;;  %vm5421_vm13 = vcmask 261120  }
 0x128   : > { %v3385_v28 = vpack.c.bf16 %v637_v1, %v3789_v33 }
 0x12a   : > { %v692_v4 = vpop.permute.xlu1 %691  ;;  %v754_v6 = vpop.permute.xlu0 %753  ;;  %3386 = vmatprep.subr.msk.bf16.mxu0 %vm3384_vm15, %v3385_v28  ;;  %vm5425_vm15 = vcmask 252928  }
 0x12b   : > { %v701_v10 = vsel %vm695_vm6, %v690_v24, %v692_v4  ;;  %v764_v63 = vsel %vm759_vm8, %v4046_v11, %v754_v6  ;;  %3389 = vmatpush1.bf16.msk.msra.mxu0 %vm3387_vm12, %v3388_v12  ;;  %vm5429_vm12 = vcmp.ne.s32.totalorder %v5383_v18, 30 }
 0x12c   : > { %v3394_v26 = vpack.c.bf16 %v764_v63, %v700_v3 }
 0x12e   : > { %v756_v16 = vpop.permute.xlu1 %755  ;;  %v345_v19 = vpop.permute.xlu0 %344 }
 0x12f   : > { %v765_v20 = vsel %vm759_vm8, %v754_v6, %v756_v16  ;;  %v353_v11 = vsel %vm5421_vm13, %v343_v43, %v345_v19  ;;  %v369_v21 = vsel %vm5422_vm3, %v345_v19, 0.0  ;;  %vm5430_vm13 = vmmov %vm5422_vm3 }
 0x130   : > { %377 = vst.msk [vmem:[#allocation4 + $0x38] sm:$0xff] %vm5423_vm14, %v369_v21  ;;  %v3391_v23 = vpack.c.bf16 %v765_v20, %v701_v10  ;;  %vm5431_vm3 = vmmov %vm5426_vm2 }
 0x131   : > { %vm5432_vm14 = vmmov %vm5426_vm2 }
 0x132   : > { %v810_v33 = vpop.permute.xlu1 %809  ;;  %v812_v22 = vpop.permute.xlu0 %811  ;;  %3392 = vmatprep.subr.msk.bf16.mxu0 %vm4101_vm4, %v3391_v23  ;;  %vm5427_vm4 = vcmp.ne.s32.totalorder %v5386_v13, 30 }
 0x133   : > { %v820_v32 = vsel %vm815_vm5, %v4062_v35, %v810_v33  ;;  %v821_v25 = vsel %vm815_vm5, %v810_v33, %v812_v22  ;;  %3395 = vmatpush1.bf16.msk.msra.mxu0 %vm4113_vm9, %v3394_v26  ;;  %vm5428_vm9 = vcmask 244736  }
 0x134   : > { %3396 = vmatprep.subr.msk.mxu0 %vm5424_vm10, %v821_v25  ;;  %vm5433_vm10 = vmmov %vm5429_vm12 }
 0x136   : > { %v409_v51 = vpop.permute.xlu1 %408  ;;  %v547_v27 = vpop.permute.xlu0 %546 }
 0x137   : > { %v417_v37 = vsel %vm5425_vm15, %v407_v46, %v409_v51  ;;  %433 = vst.msk [vmem:[#allocation4 + $0x78] sm:$0xff] %vm5426_vm2, %v409_v51  ;;  %v557_v2 = vsel %vm550_vm11, %v545_v61, %v547_v27  ;;  %3397 = vmatpush1.msk.msra.mxu0 %vm5427_vm4, %v820_v32  ;;  %v856_v44 = vld [vmem:[#allocation4 + $0x38] sm:$0xff]  ;;  %vm5434_vm15 = vmmov %vm5426_vm2 }
 0x138   : > { %3011 = vmatmul.mubr.msk.f32.vlgmr.msra.gmra.mrb[4].mxu0 %vm933_vm1, %v4067_v38  ;;  %vm5435_vm2 = vmmov %vm5430_vm13  ;;  %v3399_v56 = vpack.c.bf16 %v417_v37, %v353_v11 }
 0x139   : > { %1164 = vmatprep.mubr.f32.mxu0 %v3608_v36  ;;  %vm5436_vm4 = vmmov %vm5431_vm3 }
 0x13a   : > { %v549_v35 = vpop.permute.xlu1 %548  ;;  %v481_v57 = vpop.permute.xlu0 %480 }
 0x13b   : > { %v558_v60 = vsel %vm550_vm11, %v547_v27, %v549_v35  ;;  %v489_v39 = vsel %vm5428_vm9, %v479_v50, %v481_v57  ;;  %v505_v40 = vsel %vm5429_vm12, %v481_v57, 0.0  ;;  %vm5437_vm9 = vcmp.ne.s32.totalorder %v5385_v17, 0 }
 0x13c   : > { %v574_v43 = vsel %vm5430_vm13, %v558_v60, 0.0  ;;  %513 = vst.msk [vmem:[#allocation4 + $0xb8] sm:$0xff] %vm5431_vm3, %v505_v40  ;;  %3012 = vmatmul.mubr.msk.f32.gmra.mrb[6].mxu0 %vm933_vm1, %v4079_v42  ;;  %vm4187_vm12 = vmpackc.low %vm3610_vm7, %vm5437_vm9  ;;  %v3402_v1 = vpack.c.bf16 %v557_v2, %v489_v39 }
 0x13d   : > { %582 = vst.msk [vmem:[#allocation4 + $0xf8] sm:$0xff] %vm5432_vm14, %v574_v43  ;;  %vm5440_vm13 = vmmov %vm5431_vm3 }
 0x13e   : > { %v630_v45 = vpop.permute.xlu1 %629  ;;  %v864_v41 = vld [vmem:[#allocation4 + $0x78] sm:$0xff]  ;;  %v694_v46 = vpop.permute.xlu0 %693  ;;  %vm5441_vm3 = vmmov %vm5433_vm10 }
 0x13f   : > { %v638_v47 = vsel %vm631_vm0, %v628_v0, %v630_v45  ;;  %v654_v49 = vsel %vm5433_vm10, %v630_v45, 0.0  ;;  %v3115_v52 = vpack.c.bf16 %v864_v41, %v856_v44  ;;  %v702_v50 = vsel %vm695_vm6, %v692_v4, %v694_v46  ;;  %vm5442_vm14 = vmmov %vm5436_vm4  ;;  %v888_v0 = vld [vmem:[#allocation4 + $0x138] sm:$0xff] }
 0x140   : > { %662 = vst.msk [vmem:[#allocation4 + $0x178] sm:$0xff] %vm5434_vm15, %v654_v49  ;;  %v718_v53 = vsel %vm5435_vm2, %v694_v46, 0.0  ;;  %vm5443_vm10 = vcmp.ne.s32.totalorder %v5385_v17, 30  ;;  %vm5444_vm15 = vmmov %vm5437_vm9  ;;  %v3405_v6 = vpack.c.bf16 %v638_v47, %v3791_v34 }
 0x141   : > { %3116 = vmatprep.subr.bf16.mxu1 %v3115_v52  ;;  %726 = vst.msk [vmem:[#allocation4 + $0x1b8] sm:$0xff] %vm5436_vm4, %v718_v53  ;;  %vm3401_vm2 = vmpackc.low %vm5444_vm15, %vm5443_vm10  ;;  %vm2474_vm15 = vcmask 130048  }
 0x142   : > { %v758_v54 = vpop.permute.xlu1 %757  ;;  %3400 = vmatpush1.bf16.msk.msra.mxu1 %vm4187_vm12, %v3399_v56  ;;  %v814_v14 = vpop.permute.xlu0 %813  ;;  %vm5445_vm4 = vmmov %vm5443_vm10  ;;  %vm5452_vm10 = vcmask 252928  }
 0x143   : > { %v766_v58 = vsel %vm759_vm8, %v756_v16, %v758_v54  ;;  %782 = vst.msk [vmem:[#allocation4 + $0x1f8] sm:$0xff] %vm5440_vm13, %v758_v54  ;;  %v872_v59 = vld [vmem:[#allocation4 + $0xb8] sm:$0xff]  ;;  %v822_v61 = vsel %vm815_vm5, %v812_v22, %v814_v14  ;;  %v838_v31 = vsel %vm5441_vm3, %v814_v14, 0.0  ;;  %vm3404_vm9 = vmpackc.low %vm5445_vm4, %vm3610_vm7 }
 0x144   : > { %v880_v62 = vld [vmem:[#allocation4 + $0xf8] sm:$0xff]  ;;  %846 = vst.msk [vmem:[#allocation4 + $0x238] sm:$0xff] %vm5442_vm14, %v838_v31  ;;  %v3408_v63 = vpack.c.bf16 %v766_v58, %v702_v50  ;;  %vm5446_vm13 = vmmov %vm5445_vm4 }
 0x145   : > { %v3119_v29 = vpack.c.bf16 %v880_v62, %v872_v59  ;;  %vm5447_vm7 = vmmov %vm5442_vm14  ;;  %vm5451_vm14 = vcmask 261120  }
 0x146   : > { %vm5455_vm4 = vmmov %vm5451_vm14 }
 0x147   : > { %3120 = vmatprep.subr.bf16.mxu1 %v3119_v29  ;;  %v896_v24 = vld [vmem:[#allocation4 + $0x178] sm:$0xff] }
 0x148   : > { %3403 = vmatpush1.bf16.msk.msra.mxu1 %vm3401_vm2, %v3402_v1  ;;  %v3123_v3 = vpack.c.bf16 %v896_v24, %v888_v0  ;;  %v904_v30 = vld [vmem:[#allocation4 + $0x1b8] sm:$0xff]  ;;  %vm5454_vm2 = vcmask 244736  }
 0x14a   : > { %3124 = vmatprep.subr.bf16.mxu1 %v3123_v3  ;;  %v912_v48 = vld [vmem:[#allocation4 + $0x1f8] sm:$0xff] }
 0x14b   : > { %v3127_v4 = vpack.c.bf16 %v912_v48, %v904_v30  ;;  %v920_v10 = vld [vmem:[#allocation4 + $0x238] sm:$0xff] }
 0x14c   : > { %3406 = vmatpush1.bf16.msk.msra.mxu1 %vm3404_vm9, %v3405_v6  ;;  %vm5456_vm9 = vmmov %vm5455_vm4 }
 0x14d   : > { %3128 = vmatprep.subr.bf16.mxu1 %v3127_v4 }
 0x150   : > { %3409 = vmatpush1.bf16.msk.msra.mxu1 %vm4187_vm12, %v3408_v63 }
 0x151   : > { %1187 = vmatprep.subr.mxu1 %v920_v10 }
 0x153   : > { %v4216_v34 = vpop.permute.xlu1 %925  ;;  %v4220_v20 = vpop.permute.xlu0 %930 }
 0x154   : > { %3410 = vmatpush1.msk.msra.mxu1 %vm5446_vm13, %v822_v61  ;;  %vm5458_vm13 = vmmov %vm5455_vm4 }
 0x155   : > { %3013 = vmatmul.mubr.msk.f32.vlgmr.msra.gmra.mrb[4].mxu1 %vm933_vm1, %v4067_v38 }
 0x156   : > { %1241 = vmatprep.mubr.f32.mxu1 %v3608_v36 }
 0x157   : > { %v1313_v6 = vpop.permute.xlu0 %1312  ;;  %v4362_v10 = vpop.permute.xlu1 %1328 }
 0x159   : > { %3014 = vmatmul.mubr.msk.f32.gmra.mrb[6].mxu1 %vm933_vm1, %v4079_v42  ;;  %vm5448_vm1 = vmmov %vm5447_vm7 }
 0x15a   : > { %vm5449_vm12 = vmmov %vm5448_vm1 }
 0x15b   : > { %vm5450_vm3 = vmmov %vm5448_vm1  ;;  %v1439_v63 = vpop.permute.xlu0 %1438 }
 0x1e5   : > { %v1083_v28 = vpop.f32.mrb[0].mxu1 }
 0x1e6   : > { %v1084_v12 = vadd.f32 %v1083_v28, %v4216_v34  ;;  %v1085_v16 = vpop.f32.mrb[1].mxu1  ;;  %v1549_v28 = vpop.permute.xlu0 %1548 }
 0x1e7   : > { %v1086_v19 = vadd.f32 %v1085_v16, %v4216_v34 }
 0x1e8   : > { %v1250_v11 = vmax.f32 %v1084_v12, 0.0  ;;  %v1006_v21 = vpop.f32.mrb[0].mxu0 }
 0x1e9   : > { %v1007_v33 = vadd.f32 %v1006_v21, %v4216_v34  ;;  %v4223_v38 = vmax.f32 %v1086_v19, 0.0  ;;  %v1008_v36 = vpop.f32.mrb[1].mxu0  ;;  %v1089_v22 = vpop.f32.mrb[2].mxu1 }
 0x1ea   : > { %1796 = vst [vmem:[#allocation5 + $0x210] sm:$0xff] %v1250_v11  ;;  %v1009_v42 = vadd.f32 %v1008_v36, %v4216_v34  ;;  %v1090_v23 = vadd.f32 %v1089_v22, %v4220_v20  ;;  %v1091_v32 = vpop.f32.mrb[3].mxu1  ;;  %1318 = vrot.lane.b32.xlu0 %v1250_v11, %s3601_s20  ;;  %v1679_v16 = vpop.permute.xlu0 %1678 }
 0x1eb   : > { %v1248_v25 = vmax.f32 %v1007_v33, 0.0  ;;  %1797 = vst [vmem:[#allocation5 + $0x218] sm:$0xff] %v4223_v38  ;;  %v1092_v26 = vadd.f32 %v1091_v32, %v4220_v20  ;;  %v4410_v32 = vld [vmem:[#allocation8 + $0x8] sm:$0xff] }
 0x1ec   : > { %v4230_v51 = vmax.f32 %v1009_v42, 0.0  ;;  %v4232_v27 = vmax.f32 %v1090_v23, 0.0  ;;  %v1012_v37 = vpop.f32.mrb[2].mxu0  ;;  %5453 = vst [vmem:[#allocation19_spill] sm:$0xff] %v4410_v32  ;;  %3015 = vmatprep.mubr.msk.f32.mxu0 %vm2474_vm15, %v4410_v32  ;;  %3019 = vmatprep.mubr.msk.f32.mxu1 %vm2474_vm15, %v4410_v32 }
 0x1ed   : > { %1794 = vst [vmem:[#allocation5 + $0x200] sm:$0xff] %v1248_v25  ;;  %v4234_v2 = vmax.f32 %v1092_v26, 0.0  ;;  %v1013_v35 = vadd.f32 %v1012_v37, %v4220_v20  ;;  %v1014_v57 = vpop.f32.mrb[3].mxu0  ;;  %1314 = vrot.lane.b32.xlu1 %v1248_v25, %s3601_s20 }
 0x1ee   : > { %1795 = vst [vmem:[#allocation5 + $0x208] sm:$0xff] %v4230_v51  ;;  %1274 = vst [vmem:[#allocation3 + $0x68] sm:$0xff] %v4232_v27  ;;  %v1015_v60 = vadd.f32 %v1014_v57, %v4220_v20  ;;  %1440 = vrot.lane.b32.xlu0 %v1248_v25, %s3602_s25 }
 0x1ef   : > { %1805 = vst [vmem:[#allocation5 + $0x258] sm:$0xff] %v4234_v2  ;;  %v4243_v39 = vmax.f32 %v1013_v35, 0.0 }
 0x1f0   : > { %v4245_v40 = vmax.f32 %v1015_v60, 0.0 }
 0x1f1   : > { %1802 = vst [vmem:[#allocation5 + $0x240] sm:$0xff] %v4243_v39  ;;  %1846 = vrot.lane.b32.xlu1 %v1250_v11, %s3605_s28 }
 0x1f2   : > { %1803 = vst [vmem:[#allocation5 + $0x248] sm:$0xff] %v4245_v40  ;;  %1444 = vrot.lane.b32.xlu0 %v1250_v11, %s3602_s25 }
 0x1f5   : > { %1972 = vrot.lane.b32.xlu1 %v1250_v11, %s3606_s29  ;;  %v4252_v43 = vld [vmem:[#allocation3 + $0x68] sm:$0xff] }
 0x1f6   : > { %1550 = vrot.lane.b32.xlu0 %v1248_v25, %s3603_s26 }
 0x1f9   : > { %2098 = vrot.lane.b32.xlu1 %v1250_v11, %s3607_s30 }
 0x1fa   : > { %1554 = vrot.lane.b32.xlu0 %v1250_v11, %s3603_s26 }
 0x1fd   : > { %2208 = vrot.lane.b32.xlu1 %v1250_v11, %s3609_s6 }
 0x1fe   : > { %1680 = vrot.lane.b32.xlu0 %v1248_v25, %s3604_s27 }
 0x201   : > { %1316 = vrot.lane.b32.xlu1 %v4230_v51, %s3601_s20 }
 0x202   : > { %1684 = vrot.lane.b32.xlu0 %v1250_v11, %s3604_s27 }
 0x205   : > { %1320 = vrot.lane.b32.xlu1 %v4223_v38, %s3601_s20 }
 0x206   : > { %1842 = vrot.lane.b32.xlu0 %v1248_v25, %s3605_s28 }
 0x209   : > { %1442 = vrot.lane.b32.xlu1 %v4230_v51, %s3602_s25 }
 0x20a   : > { %1968 = vrot.lane.b32.xlu0 %v1248_v25, %s3606_s29 }
 0x20b   : > { %v1160_v44 = vpop.f32.mrb[4].mxu0 }
 0x20c   : > { %v1161_v45 = vadd.f32 %v1160_v44, %v4216_v34  ;;  %v1162_v41 = vpop.f32.mrb[5].mxu0 }
 0x20d   : > { %v1163_v46 = vadd.f32 %v1162_v41, %v4216_v34  ;;  %1446 = vrot.lane.b32.xlu1 %v4223_v38, %s3602_s25 }
 0x20e   : > { %v4270_v47 = vmax.f32 %v1161_v45, 0.0  ;;  %2094 = vrot.lane.b32.xlu0 %v1248_v25, %s3607_s30 }
 0x20f   : > { %v4274_v49 = vmax.f32 %v1163_v46, 0.0  ;;  %v1166_v52 = vpop.f32.mrb[6].mxu0 }
 0x210   : > { %1798 = vst [vmem:[#allocation5 + $0x220] sm:$0xff] %v4270_v47  ;;  %v1167_v50 = vadd.f32 %v1166_v52, %v4220_v20  ;;  %v1168_v53 = vpop.f32.mrb[7].mxu0 }
 0x211   : > { %1799 = vst [vmem:[#allocation5 + $0x228] sm:$0xff] %v4274_v49  ;;  %v1169_v54 = vadd.f32 %v1168_v53, %v4220_v20  ;;  %1552 = vrot.lane.b32.xlu1 %v4230_v51, %s3603_s26 }
 0x212   : > { %v4281_v55 = vmax.f32 %v1167_v50, 0.0  ;;  %2204 = vrot.lane.b32.xlu0 %v1248_v25, %s3609_s6 }
 0x213   : > { %v4285_v56 = vmax.f32 %v1169_v54, 0.0 }
 0x214   : > { %1806 = vst [vmem:[#allocation5 + $0x260] sm:$0xff] %v4281_v55 }
 0x215   : > { %1807 = vst [vmem:[#allocation5 + $0x268] sm:$0xff] %v4285_v56  ;;  %1556 = vrot.lane.b32.xlu1 %v4223_v38, %s3603_s26 }
 0x216   : > { %1844 = vrot.lane.b32.xlu0 %v4230_v51, %s3605_s28 }
 0x219   : > { %1682 = vrot.lane.b32.xlu1 %v4230_v51, %s3604_s27 }
 0x21a   : > { %1848 = vrot.lane.b32.xlu0 %v4223_v38, %s3605_s28 }
 0x21d   : > { %1686 = vrot.lane.b32.xlu1 %v4223_v38, %s3604_s27 }
 0x21e   : > { %1970 = vrot.lane.b32.xlu0 %v4230_v51, %s3606_s29 }
 0x221   : > { %1862 = vrot.lane.b32.xlu1 %v4232_v27, %s3605_s28 }
 0x222   : > { %1974 = vrot.lane.b32.xlu0 %v4223_v38, %s3606_s29 }
 0x225   : > { %1858 = vrot.lane.b32.xlu1 %v4243_v39, %s3605_s28 }
 0x226   : > { %2096 = vrot.lane.b32.xlu0 %v4230_v51, %s3607_s30 }
 0x228   : > { %v1237_v14 = vpop.f32.mrb[4].mxu1 }
 0x229   : > { %v1238_v58 = vadd.f32 %v1237_v14, %v4216_v34  ;;  %v1239_v59 = vpop.f32.mrb[5].mxu1  ;;  %1988 = vrot.lane.b32.xlu1 %v4232_v27, %s3606_s29 }
 0x22a   : > { %v1240_v61 = vadd.f32 %v1239_v59, %v4216_v34  ;;  %2100 = vrot.lane.b32.xlu0 %v4223_v38, %s3607_s30  ;;  %v4370_v34 = vpop.permute.xlu1 %1454 }
 0x22b   : > { %v4314_v31 = vmax.f32 %v1238_v58, 0.0 }
 0x22c   : > { %v1255_v62 = vmax.f32 %v1240_v61, 0.0  ;;  %v1243_v29 = vpop.f32.mrb[6].mxu1 }
 0x22d   : > { %1800 = vst [vmem:[#allocation5 + $0x230] sm:$0xff] %v4314_v31  ;;  %v1244_v0 = vadd.f32 %v1243_v29, %v4220_v20  ;;  %v1245_v24 = vpop.f32.mrb[7].mxu1  ;;  %1984 = vrot.lane.b32.xlu1 %v4243_v39, %s3606_s29 }
 0x22e   : > { %1271 = vst.msk [vmem:[#allocation3 + $0x40] sm:$0xff] %vm5447_vm7, %v1255_v62  ;;  %v1246_v1 = vadd.f32 %v1245_v24, %v4220_v20  ;;  %2206 = vrot.lane.b32.xlu0 %v4230_v51, %s3609_s6  ;;  %v4378_v12 = vpop.permute.xlu1 %1564  ;;  %vm5459_vm7 = vmmov %vm5452_vm10 }
 0x22f   : > { %v4324_v3 = vmax.f32 %v1244_v0, 0.0 }
 0x230   : > { %v1263_v30 = vmax.f32 %v1246_v1, 0.0 }
 0x231   : > { %1808 = vst [vmem:[#allocation5 + $0x270] sm:$0xff] %v4324_v3  ;;  %2114 = vrot.lane.b32.xlu1 %v4232_v27, %s3607_s30 }
 0x232   : > { %1279 = vst.msk [vmem:[#allocation3 + $0x90] sm:$0xff] %vm5448_vm1, %v1263_v30  ;;  %2210 = vrot.lane.b32.xlu0 %v4223_v38, %s3609_s6  ;;  %v4386_v19 = vpop.permute.xlu1 %1696  ;;  %vm5460_vm1 = vmmov %vm5459_vm7 }
 0x235   : > { %v4334_v48 = vld [vmem:[#allocation3 + $0x40] sm:$0xff]  ;;  %2110 = vrot.lane.b32.xlu1 %v4243_v39, %s3607_s30 }
 0x236   : > { %1801 = vst.msk [vmem:[#allocation5 + $0x238] sm:$0xff] %vm5449_vm12, %v4334_v48  ;;  %1330 = vrot.lane.b32.xlu0 %v4243_v39, %s3601_s20  ;;  %vm5462_vm12 = vmmov %vm5460_vm1 }
 0x239   : > { %v4342_v4 = vld [vmem:[#allocation3 + $0x90] sm:$0xff]  ;;  %2224 = vrot.lane.b32.xlu1 %v4232_v27, %s3609_s6 }
 0x23a   : > { %1809 = vst.msk [vmem:[#allocation5 + $0x278] sm:$0xff] %vm5450_vm3, %v4342_v4  ;;  %1334 = vrot.lane.b32.xlu0 %v4232_v27, %s3601_s20  ;;  %vm5463_vm3 = vmmov %vm5454_vm2 }
 0x23d   : > { %2220 = vrot.lane.b32.xlu1 %v4243_v39, %s3609_s6 }
 0x23e   : > { %1456 = vrot.lane.b32.xlu0 %v4243_v39, %s3602_s25 }
 0x241   : > { %1332 = vrot.lane.b32.xlu1 %v4245_v40, %s3601_s20 }
 0x242   : > { %1460 = vrot.lane.b32.xlu0 %v4232_v27, %s3602_s25 }
 0x245   : > { %1336 = vrot.lane.b32.xlu1 %v4234_v2, %s3601_s20 }
 0x246   : > { %1566 = vrot.lane.b32.xlu0 %v4243_v39, %s3603_s26 }
 0x249   : > { %1458 = vrot.lane.b32.xlu1 %v4245_v40, %s3602_s25 }
 0x24a   : > { %1570 = vrot.lane.b32.xlu0 %v4232_v27, %s3603_s26 }
 0x24d   : > { %1462 = vrot.lane.b32.xlu1 %v4234_v2, %s3602_s25 }
 0x24e   : > { %1698 = vrot.lane.b32.xlu0 %v4243_v39, %s3604_s27 }
 0x251   : > { %1568 = vrot.lane.b32.xlu1 %v4245_v40, %s3603_s26 }
 0x252   : > { %1702 = vrot.lane.b32.xlu0 %v4232_v27, %s3604_s27 }
 0x255   : > { %1572 = vrot.lane.b32.xlu1 %v4234_v2, %s3603_s26 }
 0x256   : > { %1860 = vrot.lane.b32.xlu0 %v4245_v40, %s3605_s28 }
 0x259   : > { %1700 = vrot.lane.b32.xlu1 %v4245_v40, %s3604_s27 }
 0x25a   : > { %1864 = vrot.lane.b32.xlu0 %v4234_v2, %s3605_s28 }
 0x25c   : > { %v1319_v20 = vpop.permute.xlu0 %1318 }
 0x25d   : > { %1704 = vrot.lane.b32.xlu1 %v4234_v2, %s3604_s27 }
 0x25e   : > { %1986 = vrot.lane.b32.xlu0 %v4245_v40, %s3606_s29 }
 0x25f   : > { %v1315_v11 = vpop.permute.xlu1 %1314 }
 0x260   : > { %v4395_v21 = vsel %vm5451_vm14, %v1313_v6, %v1315_v11  ;;  %v1441_v33 = vpop.permute.xlu0 %1440  ;;  %vm5464_vm14 = vmmov %vm5454_vm2 }
 0x261   : > { %v4398_v38 = vsel %vm5452_vm10, %v1439_v63, %v1441_v33  ;;  %1850 = vrot.lane.b32.xlu1 %v4270_v47, %s3605_s28  ;;  %vm5466_vm10 = vmmov %vm5454_vm2 }
 0x262   : > { %1990 = vrot.lane.b32.xlu0 %v4234_v2, %s3606_s29 }
 0x263   : > { %v1847_v36 = vpop.permute.xlu1 %1846 }
 0x264   : > { %v1445_v22 = vpop.permute.xlu0 %1444 }
 0x265   : > { %1976 = vrot.lane.b32.xlu1 %v4270_v47, %s3606_s29 }
 0x266   : > { %2112 = vrot.lane.b32.xlu0 %v4245_v40, %s3607_s30 }
 0x267   : > { %v4408_v42 = vpop.permute.xlu1 %1972 }
 0x268   : > { %v1551_v23 = vpop.permute.xlu0 %1550 }
 0x269   : > { %v4413_v25 = vsel %vm5454_vm2, %v1549_v28, %v1551_v23  ;;  %2102 = vrot.lane.b32.xlu1 %v4270_v47, %s3607_s30  ;;  %vm5472_vm2 = vmmov %vm5455_vm4 }
 0x26a   : > { %2116 = vrot.lane.b32.xlu0 %v4234_v2, %s3607_s30 }
 0x26b   : > { %v4423_v26 = vpop.permute.xlu1 %2098 }
 0x26c   : > { %v1555_v51 = vpop.permute.xlu0 %1554 }
 0x26d   : > { %2212 = vrot.lane.b32.xlu1 %v4270_v47, %s3609_s6 }
 0x26e   : > { %2222 = vrot.lane.b32.xlu0 %v4245_v40, %s3609_s6 }
 0x26f   : > { %v4429_v27 = vpop.permute.xlu1 %2208 }
 0x270   : > { %v1681_v37 = vpop.permute.xlu0 %1680 }
 0x271   : > { %v4432_v35 = vsel %vm550_vm11, %v1679_v16, %v1681_v37  ;;  %1854 = vrot.lane.b32.xlu1 %v4314_v31, %s3605_s28 }
 0x272   : > { %2226 = vrot.lane.b32.xlu0 %v4234_v2, %s3609_s6 }
 0x273   : > { %v1317_v57 = vpop.permute.xlu1 %1316 }
 0x274   : > { %v4439_v60 = vsel %vm5455_vm4, %v1315_v11, %v1317_v57  ;;  %v4442_v39 = vsel %vm5456_vm9, %v1317_v57, %v1319_v20  ;;  %v1685_v40 = vpop.permute.xlu0 %1684  ;;  %vm5473_vm4 = vmmov %vm5460_vm1 }
 0x275   : > { %1980 = vrot.lane.b32.xlu1 %v4314_v31, %s3606_s29  ;;  %vm5474_vm9 = vmmov %vm5472_vm2 }
 0x276   : > { %1322 = vrot.lane.b32.xlu0 %v4270_v47, %s3601_s20 }
 0x277   : > { %v4448_v44 = vpop.permute.xlu1 %1320 }
 0x278   : > { %5457 = vst [vmem:[#allocation20_spill] sm:$0xff] %v4448_v44  ;;  %v4452_v45 = vsel %vm5458_vm13, %v1319_v20, %v4448_v44  ;;  %v1843_v2 = vpop.permute.xlu0 %1842  ;;  %vm5475_vm13 = vmmov %vm5472_vm2 }
 0x279   : > { %2106 = vrot.lane.b32.xlu1 %v4314_v31, %s3607_s30 }
 0x27a   : > { %1326 = vrot.lane.b32.xlu0 %v4314_v31, %s3601_s20 }
 0x27b   : > { %v1443_v41 = vpop.permute.xlu1 %1442 }
 0x27c   : > { %v4459_v46 = vsel %vm5459_vm7, %v1441_v33, %v1443_v41  ;;  %v4462_v52 = vsel %vm5460_vm1, %v1443_v41, %v1445_v22  ;;  %v1969_v50 = vpop.permute.xlu0 %1968  ;;  %vm5477_vm7 = vmmov %vm5472_vm2  ;;  %vm5478_vm1 = vcmp.ne.s32.totalorder %v5381_v7, 0 }
 0x27d   : > { %1324 = vrot.lane.b32.xlu1 %v4274_v49, %s3601_s20 }
 0x27e   : > { %1448 = vrot.lane.b32.xlu0 %v4270_v47, %s3602_s25 }
 0x27f   : > { %v4468_v53 = vpop.permute.xlu1 %1446 }
 0x280   : > { %5461 = vst [vmem:[#allocation21_spill] sm:$0xff] %v4468_v53  ;;  %v4472_v54 = vsel %vm5462_vm12, %v1445_v22, %v4468_v53  ;;  %v2095_v14 = vpop.permute.xlu0 %2094  ;;  %vm4637_vm12 = vmpackc.low %vm5478_vm1, %vm5478_vm1 }
 0x281   : > { %1450 = vrot.lane.b32.xlu1 %v4274_v49, %s3602_s25 }
 0x282   : > { %1452 = vrot.lane.b32.xlu0 %v4314_v31, %s3602_s25 }
 0x283   : > { %v1553_v58 = vpop.permute.xlu1 %1552 }
 0x284   : > { %v4479_v59 = vsel %vm5463_vm3, %v1551_v23, %v1553_v58  ;;  %v4482_v61 = vsel %vm5464_vm14, %v1553_v58, %v1555_v51  ;;  %v2205_v62 = vpop.permute.xlu0 %2204  ;;  %vm5481_vm14 = vcmp.ne.s32.totalorder %v5382_v5, 0 }
 0x285   : > { %1560 = vrot.lane.b32.xlu1 %v4274_v49, %s3603_s26 }
 0x286   : > { %1558 = vrot.lane.b32.xlu0 %v4270_v47, %s3603_s26 }
 0x287   : > { %v4488_v29 = vpop.permute.xlu1 %1556 }
 0x288   : > { %5465 = vst [vmem:[#allocation22_spill] sm:$0xff] %v4488_v29  ;;  %v4492_v0 = vsel %vm5466_vm10, %v1555_v51, %v4488_v29  ;;  %v1845_v24 = vpop.permute.xlu0 %1844  ;;  %vm4651_vm10 = vmpackc.low %vm5481_vm14, %vm5481_vm14  ;;  %vm5493_vm14 = vcmask 244736  }
 0x289   : > { %v4495_v1 = vsel %vm631_vm0, %v1843_v2, %v1845_v24  ;;  %v4498_v30 = vsel %vm631_vm0, %v1845_v24, %v1847_v36  ;;  %1690 = vrot.lane.b32.xlu1 %v4274_v49, %s3604_s27 }
 0x28a   : > { %1562 = vrot.lane.b32.xlu0 %v4314_v31, %s3603_s26 }
 0x28b   : > { %v1683_v6 = vpop.permute.xlu1 %1682 }
 0x28c   : > { %v4505_v63 = vsel %vm550_vm11, %v1681_v37, %v1683_v6  ;;  %v4508_v28 = vsel %vm550_vm11, %v1683_v6, %v1685_v40  ;;  %v4510_v16 = vpop.permute.xlu0 %1848 }
 0x28d   : > { %v4514_v20 = vsel %vm631_vm0, %v1847_v36, %v4510_v16  ;;  %1694 = vrot.lane.b32.xlu1 %v4334_v48, %s3604_s27 }
 0x28e   : > { %5467 = vst [vmem:[#allocation23_spill] sm:$0xff] %v4514_v20  ;;  %1688 = vrot.lane.b32.xlu0 %v4270_v47, %s3604_s27 }
 0x28f   : > { %v4520_v11 = vpop.permute.xlu1 %1686 }
 0x290   : > { %5468 = vst [vmem:[#allocation24_spill] sm:$0xff] %v4520_v11  ;;  %v4524_v33 = vsel %vm550_vm11, %v1685_v40, %v4520_v11  ;;  %v1971_v22 = vpop.permute.xlu0 %1970 }
 0x291   : > { %v4527_v23 = vsel %vm695_vm6, %v1969_v50, %v1971_v22  ;;  %v4531_v36 = vsel %vm695_vm6, %v1971_v22, %v4408_v42  ;;  %1866 = vrot.lane.b32.xlu1 %v4281_v55, %s3605_s28 }
 0x292   : > { %1692 = vrot.lane.b32.xlu0 %v4314_v31, %s3604_s27 }
 0x293   : > { %v4537_v47 = vpop.permute.xlu1 %1862 }
 0x294   : > { %v4539_v51 = vpop.permute.xlu0 %1974 }
 0x295   : > { %v4544_v37 = vsel %vm695_vm6, %v4408_v42, %v4539_v51  ;;  %1992 = vrot.lane.b32.xlu1 %v4281_v55, %s3606_s29 }
 0x296   : > { %5469 = vst [vmem:[#allocation25_spill] sm:$0xff] %v4544_v37  ;;  %1852 = vrot.lane.b32.xlu0 %v4274_v49, %s3605_s28 }
 0x297   : > { %v4550_v57 = vpop.permute.xlu1 %1858 }
 0x298   : > { %v2097_v40 = vpop.permute.xlu0 %2096 }
 0x299   : > { %v4553_v2 = vsel %vm759_vm8, %v2095_v14, %v2097_v40  ;;  %v4557_v41 = vsel %vm759_vm8, %v2097_v40, %v4423_v26  ;;  %2118 = vrot.lane.b32.xlu1 %v4281_v55, %s3607_s30 }
 0x29a   : > { %1856 = vrot.lane.b32.xlu0 %v4334_v48, %s3605_s28 }
 0x29b   : > { %v4563_v42 = vpop.permute.xlu1 %1988 }
 0x29c   : > { %v4565_v50 = vpop.permute.xlu0 %2100 }
 0x29d   : > { %v4570_v58 = vsel %vm759_vm8, %v4423_v26, %v4565_v50  ;;  %2228 = vrot.lane.b32.xlu1 %v4281_v55, %s3609_s6 }
 0x29e   : > { %5470 = vst [vmem:[#allocation26_spill] sm:$0xff] %v4570_v58  ;;  %1978 = vrot.lane.b32.xlu0 %v4274_v49, %s3606_s29 }
 0x29f   : > { %v4576_v14 = vpop.permute.xlu1 %1984 }
 0x2a0   : > { %v2207_v24 = vpop.permute.xlu0 %2206 }
 0x2a1   : > { %v4579_v6 = vsel %vm815_vm5, %v2205_v62, %v2207_v24  ;;  %v4583_v22 = vsel %vm815_vm5, %v2207_v24, %v4429_v27  ;;  %1342 = vrot.lane.b32.xlu1 %v4324_v3, %s3601_s20 }
 0x2a2   : > { %1982 = vrot.lane.b32.xlu0 %v4334_v48, %s3606_s29 }
 0x2a3   : > { %v4589_v26 = vpop.permute.xlu1 %2114 }
 0x2a4   : > { %v4591_v40 = vpop.permute.xlu0 %2210 }
 0x2a5   : > { %v4596_v13 = vsel %vm815_vm5, %v4429_v27, %v4591_v40  ;;  %1468 = vrot.lane.b32.xlu1 %v4324_v3, %s3602_s25  ;;  %v5533_v44 = vld [vmem:[#allocation26_spill] sm:$0xff] }
 0x2a6   : > { %5471 = vst [vmem:[#allocation27_spill] sm:$0xff] %v4596_v13  ;;  %2104 = vrot.lane.b32.xlu0 %v4274_v49, %s3607_s30 }
 0x2a7   : > { %v4602_v62 = vpop.permute.xlu1 %2110 }
 0x2a8   : > { %v1331_v24 = vpop.permute.xlu0 %1330 }
 0x2a9   : > { %v1351_v17 = vsel %vm5472_vm2, %v4362_v10, %v1331_v24  ;;  %1578 = vrot.lane.b32.xlu1 %v4324_v3, %s3603_s26  ;;  %vm5484_vm2 = vmmov %vm5473_vm4 }
 0x2aa   : > { %2108 = vrot.lane.b32.xlu0 %v4334_v48, %s3607_s30 }
 0x2ab   : > { %v4610_v27 = vpop.permute.xlu1 %2224 }
 0x2ac   : > { %v1335_v15 = vpop.permute.xlu0 %1334 }
 0x2ad   : > { %1870 = vrot.lane.b32.xlu1 %v4324_v3, %s3605_s28 }
 0x2ae   : > { %1338 = vrot.lane.b32.xlu0 %v4281_v55, %s3601_s20 }
 0x2af   : > { %v4616_v13 = vpop.permute.xlu1 %2220 }
 0x2b0   : > { %v1457_v58 = vpop.permute.xlu0 %1456 }
 0x2b1   : > { %v1477_v10 = vsel %vm5473_vm4, %v4370_v34, %v1457_v58  ;;  %1996 = vrot.lane.b32.xlu1 %v4324_v3, %s3606_s29  ;;  %vm5485_vm4 = vmmov %vm5484_vm2 }
 0x2b2   : > { %1464 = vrot.lane.b32.xlu0 %v4281_v55, %s3602_s25 }
 0x2b3   : > { %v1333_v37 = vpop.permute.xlu1 %1332 }
 0x2b4   : > { %v1352_v20 = vsel %vm5474_vm9, %v1331_v24, %v1333_v37  ;;  %v1353_v11 = vsel %vm5475_vm13, %v1333_v37, %v1335_v15  ;;  %v1461_v29 = vpop.permute.xlu0 %1460  ;;  %vm5486_vm9 = vcmp.ne.s32.totalorder %v3739_v9, 0 }
 0x2b5   : > { %2122 = vrot.lane.b32.xlu1 %v4324_v3, %s3607_s30  ;;  %v3412_v37 = vpack.c.bf16 %v1352_v20, %v4439_v60  ;;  %vm4665_vm13 = vmpackc.low %vm5486_vm9, %vm5486_vm9  ;;  %vm5496_vm9 = vcmp.ne.s32.totalorder %v5381_v7, 30 }
 0x2b6   : > { %1574 = vrot.lane.b32.xlu0 %v4281_v55, %s3603_s26 }
 0x2b7   : > { %v4630_v32 = vpop.permute.xlu1 %1336  ;;  %3413 = vmatprep.subr.msk.bf16.mxu0 %vm4637_vm12, %v3412_v37 }
 0x2b8   : > { %5476 = vst [vmem:[#allocation28_spill] sm:$0xff] %v4630_v32  ;;  %v1354_v34 = vsel %vm5477_vm7, %v1335_v15, %v4630_v32  ;;  %v1567_v53 = vpop.permute.xlu0 %1566  ;;  %v3415_v32 = vpack.c.bf16 %v1351_v17, %v4395_v21  ;;  %vm5489_vm7 = vcmp.ne.s32.totalorder %v5380_v8, 0  ;;  %v3421_v21 = vpack.c.bf16 %v1353_v11, %v4442_v39 }
 0x2b9   : > { %v1587_v18 = vsel %vm5463_vm3, %v4378_v12, %v1567_v53  ;;  %1340 = vrot.lane.b32.xlu1 %v4285_v56, %s3601_s20  ;;  %v3418_v17 = vpack.c.bf16 %v1354_v34, %v4452_v45  ;;  %vm4677_vm1 = vmpackc.low %vm5489_vm7, %vm5489_vm7  ;;  %v3137_v45 = vpack.c.bf16 %v1477_v10, %v4398_v38 }
 0x2ba   : > { %3416 = vmatpush1.bf16.msk.msra.mxu0 %vm4651_vm10, %v3415_v32  ;;  %1706 = vrot.lane.b32.xlu0 %v4281_v55, %s3604_s27  ;;  %vm5492_vm3 = vmmov %vm5484_vm2 }
 0x2bb   : > { %v1459_v60 = vpop.permute.xlu1 %1458  ;;  %3419 = vmatprep.subr.msk.bf16.mxu1 %vm4665_vm13, %v3418_v17  ;;  %vm4713_vm7 = vmpackc.low %vm5496_vm9, %vm5496_vm9  ;;  %vm5505_vm9 = vcmp.ne.s32.totalorder %v5380_v8, 30 }
 0x2bc   : > { %v1478_v12 = vsel %vm5484_vm2, %v1457_v58, %v1459_v60  ;;  %v1479_v20 = vsel %vm5485_vm4, %v1459_v60, %v1461_v29  ;;  %v1571_v37 = vpop.permute.xlu0 %1570  ;;  %3422 = vmatpush1.bf16.msk.msra.mxu1 %vm4677_vm1, %v3421_v21  ;;  %vm5494_vm2 = vmmov %vm5493_vm14 }
 0x2bd   : > { %1466 = vrot.lane.b32.xlu1 %v4285_v56, %s3602_s25  ;;  %v3135_v32 = vpack.c.bf16 %v1478_v12, %v4459_v46  ;;  %v3173_v38 = vpack.c.bf16 %v1479_v20, %v4462_v52  ;;  %vm5495_vm4 = vmmov %vm5494_vm2 }
 0x2be   : > { %1710 = vrot.lane.b32.xlu0 %v4324_v3, %s3604_s27 }
 0x2bf   : > { %v4688_v58 = vpop.permute.xlu1 %1462  ;;  %3136 = vmatprep.subr.bf16.mxu0 %v3135_v32 }
 0x2c0   : > { %v1480_v34 = vsel %vm5492_vm3, %v1461_v29, %v4688_v58  ;;  %v1699_v60 = vpop.permute.xlu0 %1698  ;;  %3138 = vmatpush1.bf16.msra.mxu0 %v3137_v45  ;;  %vm5499_vm3 = vcmp.ne.s32.totalorder %v5382_v5, 30  ;;  %v5551_v5 = vld [vmem:[#allocation16_spill] sm:$0xff] }
 0x2c1   : > { %v1722_v39 = vsel %vm550_vm11, %v4386_v19, %v1699_v60  ;;  %1576 = vrot.lane.b32.xlu1 %v4285_v56, %s3603_s26  ;;  %v3171_v46 = vpack.c.bf16 %v1480_v34, %v4472_v54 }
 0x2c2   : > { %2214 = vrot.lane.b32.xlu0 %v4274_v49, %s3609_s6 }
 0x2c3   : > { %v1569_v11 = vpop.permute.xlu1 %1568  ;;  %3172 = vmatprep.subr.bf16.mxu1 %v3171_v46  ;;  %v2379_v46 = vld [vmem:[#allocation5 + $0x248] sm:$0xff] }
 0x2c4   : > { %v1588_v10 = vsel %vm5493_vm14, %v1567_v53, %v1569_v11  ;;  %v1589_v29 = vsel %vm5494_vm2, %v1569_v11, %v1571_v37  ;;  %v1703_v12 = vpop.permute.xlu0 %1702  ;;  %3174 = vmatpush1.bf16.msra.mxu1 %v3173_v38  ;;  %vm4731_vm14 = vmpackc.low %vm5499_vm3, %vm5499_vm3  ;;  %vm5502_vm2 = vcmp.ne.s32.totalorder %v3739_v9, 30  ;;  %v2371_v38 = vld [vmem:[#allocation5 + $0x208] sm:$0xff] }
 0x2c5   : > { %1708 = vrot.lane.b32.xlu1 %v4285_v56, %s3604_s27  ;;  %v3424_v54 = vpack.c.bf16 %v1588_v10, %v4479_v59  ;;  %v3427_v59 = vpack.c.bf16 %v1587_v18, %v4413_v25  ;;  %vm4764_vm3 = vmpackc.low %vm5505_vm9, %vm5505_vm9  ;;  %vm5516_vm9 = vcmask 252928  }
 0x2c6   : > { %1868 = vrot.lane.b32.xlu0 %v4285_v56, %s3605_s28 }
 0x2c7   : > { %v4706_v19 = vpop.permute.xlu1 %1572  ;;  %3425 = vmatprep.subr.msk.bf16.mxu0 %vm4713_vm7, %v3424_v54  ;;  %v3439_v54 = vpack.c.bf16 %v1722_v39, %v4432_v35  ;;  %v2373_v39 = vld [vmem:[#allocation5 + $0x218] sm:$0xff] }
 0x2c8   : > { %v1590_v49 = vsel %vm5495_vm4, %v1571_v37, %v4706_v19  ;;  %v1861_v52 = vpop.permute.xlu0 %1860  ;;  %3428 = vmatpush1.bf16.msk.msra.mxu0 %vm4731_vm14, %v3427_v59  ;;  %vm4747_vm4 = vmpackc.low %vm5502_vm2, %vm5502_vm2 }
 0x2c9   : > { %v4722_v20 = vsel %vm631_vm0, %v4550_v57, %v1861_v52  ;;  %v1882_v37 = vsel %vm631_vm0, %v1861_v52, %v4537_v47  ;;  %1712 = vrot.lane.b32.xlu1 %v4342_v4, %s3604_s27  ;;  %v3430_v18 = vpack.c.bf16 %v1590_v49, %v4492_v0  ;;  %v3433_v0 = vpack.c.bf16 %v1589_v29, %v4482_v61  ;;  %v2378_v29 = vld [vmem:[#allocation5 + $0x240] sm:$0xff] }
 0x2ca   : > { %1994 = vrot.lane.b32.xlu0 %v4285_v56, %s3606_s29  ;;  %v3147_v61 = vpack.c.bf16 %v2379_v46, %v2371_v38 }
 0x2cb   : > { %v1701_v57 = vpop.permute.xlu1 %1700  ;;  %3431 = vmatprep.subr.msk.bf16.mxu1 %vm4747_vm4, %v3430_v18 }
 0x2cc   : > { %v1723_v21 = vsel %vm550_vm11, %v1699_v60, %v1701_v57  ;;  %v1724_v32 = vsel %vm550_vm11, %v1701_v57, %v1703_v12  ;;  %v4742_v45 = vpop.permute.xlu0 %1864  ;;  %3434 = vmatpush1.bf16.msk.msra.mxu1 %vm4764_vm3, %v3433_v0  ;;  %v3448_v0 = vpack.c.bf16 %v1882_v37, %v4498_v30  ;;  %v3451_v30 = vpack.c.bf16 %v4722_v20, %v4495_v1 }
 0x2cd   : > { %v4757_v25 = vsel %vm631_vm0, %v4537_v47, %v4742_v45  ;;  %2216 = vrot.lane.b32.xlu1 %v4314_v31, %s3609_s6  ;;  %v3436_v10 = vpack.c.bf16 %v1723_v21, %v4505_v63  ;;  %v2370_v63 = vld [vmem:[#allocation5 + $0x200] sm:$0xff] }
 0x2ce   : > { %2120 = vrot.lane.b32.xlu0 %v4285_v56, %s3607_s30 }
 0x2cf   : > { %v4773_v47 = vpop.permute.xlu1 %1704  ;;  %3437 = vmatprep.subr.msk.bf16.mxu0 %vm4637_vm12, %v3436_v10 }
 0x2d0   : > { %v1725_v31 = vsel %vm550_vm11, %v1703_v12, %v4773_v47  ;;  %v1987_v11 = vpop.permute.xlu0 %1986  ;;  %3440 = vmatpush1.bf16.msk.msra.mxu0 %vm4651_vm10, %v3439_v54  ;;  %v2381_v12 = vld [vmem:[#allocation5 + $0x258] sm:$0xff] }
 0x2d1   : > { %v2007_v49 = vsel %vm695_vm6, %v4576_v14, %v1987_v11  ;;  %v2008_v52 = vsel %vm695_vm6, %v1987_v11, %v4563_v42  ;;  %2232 = vrot.lane.b32.xlu1 %v4324_v3, %s3609_s6  ;;  %3148 = vmatprep.subr.bf16.mxu0 %v3147_v61  ;;  %v3149_v14 = vpack.c.bf16 %v2378_v29, %v2370_v63  ;;  %v2187_v11 = vld [vmem:[#allocation3 + $0x90] sm:$0xff]  ;;  %v2453_v61 = vld [vmem:[%s5344_s4 + $0x18] sm:$0xff]  ;;  %v4916_v63 = vld [vmem:[#allocation8 + $0x28] sm:$0xff] }
 0x2d2   : > { %2230 = vrot.lane.b32.xlu0 %v4285_v56, %s3609_s6  ;;  %v3442_v35 = vpack.c.bf16 %v1725_v31, %v4524_v33  ;;  %v3183_v21 = vpack.c.bf16 %v2381_v12, %v2373_v39  ;;  %v3445_v33 = vpack.c.bf16 %v1724_v32, %v4508_v28  ;;  %v4924_v39 = vld [vmem:[#allocation8 + $0x20] sm:$0xff] }
 0x2d3   : > { %v4791_v59 = vpop.permute.xlu1 %1850 }
 0x2d4   : > { %v4796_v57 = vsel %vm631_vm0, %v4510_v16, %v4791_v59  ;;  %v4798_v3 = vpop.permute.xlu0 %1990  ;;  %3443 = vmatprep.subr.msk.bf16.mxu1 %vm4665_vm13, %v3442_v35  ;;  %3150 = vmatpush1.bf16.msra.mxu0 %v3149_v14  ;;  %v2372_v16 = vld [vmem:[#allocation5 + $0x210] sm:$0xff]  ;;  %v5510_v14 = vld [vmem:[#allocation18_spill] sm:$0xff] }
 0x2d5   : > { %v4806_v56 = vsel %vm695_vm6, %v4563_v42, %v4798_v3  ;;  %1872 = vrot.lane.b32.xlu1 %v4342_v4, %s3605_s28  ;;  %3446 = vmatpush1.bf16.msk.msra.mxu1 %vm4677_vm1, %v3445_v33  ;;  %v2450_v42 = vld [vmem:[%s5344_s4] sm:$0xff]  ;;  %v3185_v32 = vpack.c.bf16 %v4252_v43, %v2372_v16  ;;  %v2452_v43 = vld [vmem:[%s5344_s4 + $0x10] sm:$0xff]  ;;  %v4926_v16 = vld [vmem:[#allocation8 + $0x38] sm:$0xff] }
 0x2d6   : > { %2218 = vrot.lane.b32.xlu0 %v4334_v48, %s3609_s6  ;;  %3449 = vmatprep.subr.msk.bf16.mxu0 %vm4713_vm7, %v3448_v0 }
 0x2d7   : > { %v4815_v18 = vpop.permute.xlu1 %1976  ;;  %3184 = vmatprep.subr.bf16.mxu1 %v3183_v21 }
 0x2d8   : > { %v4826_v48 = vsel %vm695_vm6, %v4539_v51, %v4815_v18  ;;  %v2113_v28 = vpop.permute.xlu0 %2112  ;;  %3452 = vmatpush1.bf16.msk.msra.mxu0 %vm4731_vm14, %v3451_v30 }
 0x2d9   : > { %v2133_v46 = vsel %vm759_vm8, %v4602_v62, %v2113_v28  ;;  %v2134_v38 = vsel %vm759_vm8, %v2113_v28, %v4589_v26  ;;  %1998 = vrot.lane.b32.xlu1 %v4342_v4, %s3606_s29  ;;  %3186 = vmatpush1.bf16.msra.mxu1 %v3185_v32  ;;  %v3454_v62 = vpack.c.bf16 %v2008_v52, %v4531_v36  ;;  %v5515_v28 = vld [vmem:[#allocation21_spill] sm:$0xff] }
 0x2da   : > { %2456 = vperm.xlu0 %3318, %v2450_v42   ;;  %v3159_v37 = vpack.c.bf16 %v2134_v38, %v4557_v41  ;;  %v3457_v36 = vpack.c.bf16 %v2007_v49, %v4527_v23  ;;  %v3161_v24 = vpack.c.bf16 %v2133_v46, %v4553_v2  ;;  %v2451_v2 = vld [vmem:[%s5344_s4 + $0x8] sm:$0xff]  ;;  %v4899_v49 = vld [vmem:[#allocation8] sm:$0xff]  ;;  %v4941_v46 = vld [vmem:[#allocation8 + $0x30] sm:$0xff] }
 0x2db   : > { %v4839_v51 = vpop.permute.xlu1 %2102  ;;  %3455 = vmatprep.subr.msk.bf16.mxu0 %vm4637_vm12, %v3454_v62  ;;  %vm5509_vm12 = vcmask 261120  }
 0x2dc   : > { %v4850_v1 = vsel %vm759_vm8, %v4565_v50, %v4839_v51  ;;  %v4852_v20 = vpop.permute.xlu0 %2116  ;;  %3458 = vmatpush1.bf16.msk.msra.mxu0 %vm4651_vm10, %v3457_v36  ;;  %vm5511_vm10 = vcmp.ne.s32.totalorder %v5510_v14, 0  ;;  %vm5514_vm2 = vmmov %vm5509_vm12 }
 0x2dd   : > { %v4858_v31 = vsel %vm759_vm8, %v4589_v26, %v4852_v20  ;;  %2124 = vrot.lane.b32.xlu1 %v4342_v4, %s3607_s30  ;;  %3160 = vmatprep.subr.bf16.mxu0 %v3159_v37  ;;  %v5519_v37 = vld [vmem:[#allocation19_spill] sm:$0xff] }
 0x2de   : > { %2466 = vperm.xlu0 %3318, %v2452_v43  }
 0x2df   : > { %v4865_v50 = vpop.permute.xlu1 %2212 }
 0x2e0   : > { %v4871_v41 = vsel %vm815_vm5, %v4591_v40, %v4865_v50  ;;  %v2223_v26 = vpop.permute.xlu0 %2222  ;;  %3162 = vmatpush1.bf16.msra.mxu0 %v3161_v24 }
 0x2e1   : > { %v2243_v4 = vsel %vm815_vm5, %v4616_v13, %v2223_v26  ;;  %v2244_v23 = vsel %vm815_vm5, %v2223_v26, %v4610_v27  ;;  %2234 = vrot.lane.b32.xlu1 %v2187_v11, %s3609_s6  ;;  %v5520_v26 = vld [vmem:[#allocation22_spill] sm:$0xff] }
 0x2e2   : > { %v3460_v13 = vpack.c.bf16 %v2244_v23, %v4583_v22  ;;  %v3463_v29 = vpack.c.bf16 %v2243_v4, %v4579_v6  ;;  %v5508_v22 = vld [vmem:[#allocation20_spill] sm:$0xff]  ;;  %v4912_v6 = vld [vmem:[#allocation8 + $0x10] sm:$0xff] }
 0x2e3   : > { %v4881_v15 = vpop.permute.xlu1 %1854 }
 0x2e4   : > { %v4883_v10 = vpop.permute.xlu0 %2226  ;;  %3461 = vmatprep.subr.msk.bf16.mxu0 %vm4713_vm7, %v3460_v13  ;;  %vm5512_vm7 = vcmask 23552  }
 0x2e5   : > { %v4888_v40 = vsel %vm815_vm5, %v4610_v27, %v4883_v10  ;;  %2461 = vperm.xlu1 %3317, %v2451_v2   ;;  %3464 = vmatpush1.bf16.msk.msra.mxu0 %vm4731_vm14, %v3463_v29  ;;  %v4903_v27 = vld [vmem:[#allocation8 + $0x18] sm:$0xff]  ;;  %vm5513_vm14 = vmmov %vm5509_vm12 }
 0x2e7   : > { %v4901_v52 = vpop.permute.xlu1 %1980 }
 0x2e8   : > { %v1323_v54 = vpop.permute.xlu0 %1322  ;;  %2552 = vmatmul.mubr.f32.vlgmr.msra.gmra.mrb[8].mxu0 %v4899_v49 }
 0x2e9   : > { %v4907_v53 = vsel %vm5509_vm12, %v5508_v22, %v1323_v54  ;;  %2471 = vperm.xlu1 %3317, %v2453_v61   ;;  %3016 = vmatprep.mubr.msk.f32.mxu0 %vm2474_vm15, %v4903_v27  ;;  %vm5517_vm12 = vmmov %vm5516_vm9  ;;  %v5526_v22 = vld [vmem:[#allocation24_spill] sm:$0xff] }
 0x2eb   : > { %v4914_v17 = vpop.permute.xlu1 %2106 }
 0x2ec   : > { %v1327_v12 = vpop.permute.xlu0 %1326  ;;  %2558 = vmatmul.mubr.f32.gmra.mrb[10].mxu0 %v4912_v6 }
 0x2ed   : > { %v1381_v35 = vsel %vm5511_vm10, %v1327_v12, 0.0  ;;  %3017 = vmatprep.mubr.msk.f32.mxu0 %vm2474_vm15, %v4916_v63  ;;  %vm5518_vm10 = vmmov %vm5516_vm9 }
 0x2ee   : > { %1397 = vst.msk [vmem:[#allocation5 + $0x38] sm:$0xff] %vm5512_vm7, %v1381_v35 }
 0x2ef   : > { %v1325_v21 = vpop.permute.xlu1 %1324 }
 0x2f0   : > { %v4929_v33 = vsel %vm5513_vm14, %v1323_v54, %v1325_v21  ;;  %v4932_v42 = vsel %vm5514_vm2, %v1325_v21, %v1327_v12  ;;  %v1449_v0 = vpop.permute.xlu0 %1448  ;;  %2564 = vmatmul.mubr.f32.gmra.mrb[12].mxu0 %v4924_v39  ;;  %vm5521_vm14 = vcmask 244736  }
 0x2f1   : > { %v4936_v32 = vsel %vm5516_vm9, %v5515_v28, %v1449_v0  ;;  %3018 = vmatprep.mubr.msk.f32.mxu0 %vm2474_vm15, %v4926_v16  ;;  %vm5522_vm2 = vmmov %vm5521_vm14 }
 0x2f2   : > { %vm5523_vm9 = vmmov %vm5522_vm2 }
 0x2f3   : > { %v1451_v38 = vpop.permute.xlu1 %1450 }
 0x2f4   : > { %v4944_v30 = vsel %vm5517_vm12, %v1449_v0, %v1451_v38  ;;  %v1453_v43 = vpop.permute.xlu0 %1452  ;;  %2570 = vmatmul.mubr.f32.gmra.mrb[14].mxu0 %v4941_v46  ;;  %vm5524_vm12 = vcmp.ne.s32.totalorder %v5510_v14, 30 }
 0x2f5   : > { %v4947_v62 = vsel %vm5518_vm10, %v1451_v38, %v1453_v43  ;;  %1507 = vst.msk [vmem:[#allocation5 + $0xb8] sm:$0xff] %vm5512_vm7, %v1453_v43  ;;  %3023 = vmatprep.mubr.msk.f32.mxu0 %vm2474_vm15, %v5519_v37  ;;  %vm5525_vm10 = vmmov %vm5512_vm7  ;;  %vm5527_vm7 = vcmp.ne.s32.totalorder %v5510_v14, 0 }
 0x2f7   : > { %v1561_v36 = vpop.permute.xlu1 %1560 }
 0x2f8   : > { %v1559_v24 = vpop.permute.xlu0 %1558 }
 0x2f9   : > { %v4955_v11 = vsel %vm5521_vm14, %v5520_v26, %v1559_v24  ;;  %v4958_v4 = vsel %vm5522_vm2, %v1559_v24, %v1561_v36  ;;  %vm5528_vm14 = vmmov %vm5525_vm10 }
 0x2fa   : > { %vm5530_vm2 = vmmov %vm5524_vm12 }
 0x2fb   : > { %v1691_v23 = vpop.permute.xlu1 %1690 }
 0x2fc   : > { %v1563_v2 = vpop.permute.xlu0 %1562 }
 0x2fd   : > { %v4961_v13 = vsel %vm5523_vm9, %v1561_v36, %v1563_v2  ;;  %v1617_v61 = vsel %vm5524_vm12, %v1563_v2, 0.0  ;;  %vm5532_vm9 = vmmov %vm5525_vm10 }
 0x2fe   : > { %1633 = vst.msk [vmem:[#allocation5 + $0x138] sm:$0xff] %vm5525_vm10, %v1617_v61  ;;  %v5529_v61 = vld [vmem:[#allocation23_spill] sm:$0xff]  ;;  %vm5536_vm12 = vmmov %vm5527_vm7 }
 0x2ff   : > { %v1695_v29 = vpop.permute.xlu1 %1694 }
 0x300   : > { %v1689_v54 = vpop.permute.xlu0 %1688 }
 0x301   : > { %v4968_v12 = vsel %vm550_vm11, %v5526_v22, %v1689_v54  ;;  %v4971_v35 = vsel %vm550_vm11, %v1689_v54, %v1691_v23 }
 0x303   : > { %v4973_v21 = vpop.permute.xlu1 %1866 }
 0x304   : > { %v1884_v0 = vsel %vm631_vm0, %v4742_v45, %v4973_v21  ;;  %v1693_v28 = vpop.permute.xlu0 %1692 }
 0x305   : > { %v4979_v38 = vsel %vm550_vm11, %v1691_v23, %v1693_v28  ;;  %v1721_v43 = vsel %vm550_vm11, %v1693_v28, %v1695_v29  ;;  %v3466_v45 = vpack.c.bf16 %v1884_v0, %v4796_v57  ;;  %v3469_v29 = vpack.c.bf16 %v4757_v25, %v5529_v61  ;;  %v5531_v0 = vld [vmem:[#allocation25_spill] sm:$0xff] }
 0x306   : > { %v1753_v37 = vsel %vm5527_vm7, %v1721_v43, 0.0  ;;  %v3475_v28 = vpack.c.bf16 %v4806_v56, %v5531_v0 }
 0x307   : > { %1769 = vst.msk [vmem:[#allocation5 + $0x1b8] sm:$0xff] %vm5528_vm14, %v1753_v37  ;;  %v4985_v36 = vpop.permute.xlu1 %1992  ;;  %3467 = vmatprep.subr.msk.bf16.mxu1 %vm4747_vm4, %v3466_v45  ;;  %v5537_v45 = vld [vmem:[#allocation27_spill] sm:$0xff] }
 0x308   : > { %v2010_v24 = vsel %vm695_vm6, %v4798_v3, %v4985_v36  ;;  %v1853_v26 = vpop.permute.xlu0 %1852  ;;  %3470 = vmatpush1.bf16.msk.msra.mxu1 %vm4764_vm3, %v3469_v29  ;;  %v3481_v61 = vpack.c.bf16 %v4888_v40, %v5537_v45 }
 0x309   : > { %v4995_v23 = vsel %vm631_vm0, %v4791_v59, %v1853_v26  ;;  %v4999_v2 = vsel %vm631_vm0, %v1853_v26, %v4881_v15  ;;  %v3472_v59 = vpack.c.bf16 %v2010_v24, %v4826_v48 }
 0x30b   : > { %v5005_v3 = vpop.permute.xlu1 %2118  ;;  %3473 = vmatprep.subr.msk.bf16.mxu1 %vm4665_vm13, %v3472_v59  ;;  %vm5534_vm13 = vmmov %vm5527_vm7 }
 0x30c   : > { %v2136_v57 = vsel %vm759_vm8, %v4852_v20, %v5005_v3  ;;  %v1857_v54 = vpop.permute.xlu0 %1856  ;;  %3476 = vmatpush1.bf16.msk.msra.mxu1 %vm4677_vm1, %v3475_v28  ;;  %vm5535_vm1 = vmmov %vm5532_vm9 }
 0x30d   : > { %v5015_v22 = vsel %vm631_vm0, %v4881_v15, %v1857_v54  ;;  %v1911_v25 = vsel %vm5530_vm2, %v1857_v54, 0.0  ;;  %v3195_v20 = vpack.c.bf16 %v2136_v57, %v4850_v1  ;;  %v3197_v15 = vpack.c.bf16 %v4858_v31, %v5533_v44  ;;  %vm5538_vm10 = vmmov %vm5535_vm1  ;;  %v2313_v54 = vld [vmem:[#allocation5 + $0x38] sm:$0xff] }
 0x30e   : > { %1927 = vst.msk [vmem:[#allocation5 + $0x2b8] sm:$0xff] %vm5532_vm9, %v1911_v25  ;;  %vm5539_vm7 = vmmov %vm5535_vm1  ;;  %vm5545_vm9 = vcmask 252928  }
 0x30f   : > { %v5025_v48 = vpop.permute.xlu1 %2228  ;;  %3196 = vmatprep.subr.bf16.mxu1 %v3195_v20  ;;  %vm5542_vm14 = vmmov %vm5535_vm1  ;;  %v5543_v20 = vld [vmem:[#allocation28_spill] sm:$0xff] }
 0x310   : > { %v2246_v43 = vsel %vm815_vm5, %v4883_v10, %v5025_v48  ;;  %v1979_v37 = vpop.permute.xlu0 %1978  ;;  %3198 = vmatpush1.bf16.msra.mxu1 %v3197_v15 }
 0x311   : > { %v5034_v56 = vsel %vm695_vm6, %v4815_v18, %v1979_v37  ;;  %v5038_v55 = vsel %vm695_vm6, %v1979_v37, %v4901_v52  ;;  %v3478_v31 = vpack.c.bf16 %v2246_v43, %v4871_v41  ;;  %v3319_v37 = vld [vmem:[#allocation8 + $0x8] sm:$0xff] }
 0x313   : > { %v1343_v1 = vpop.permute.xlu1 %1342  ;;  %3479 = vmatprep.subr.msk.bf16.mxu1 %vm4747_vm4, %v3478_v31  ;;  %vm5540_vm4 = vmmov %vm5530_vm2  ;;  %vm5544_vm2 = vcmask 261120  }
 0x314   : > { %v1389_v24 = vsel %vm5534_vm13, %v1343_v1, 0.0  ;;  %v1983_v26 = vpop.permute.xlu0 %1982  ;;  %3482 = vmatpush1.bf16.msk.msra.mxu1 %vm4764_vm3, %v3481_v61  ;;  %vm5541_vm3 = vmmov %vm5535_vm1  ;;  %vm5546_vm13 = vcmask 244736  }
 0x315   : > { %1405 = vst.msk [vmem:[#allocation5 + $0x78] sm:$0xff] %vm5535_vm1, %v1389_v24  ;;  %v5048_v18 = vsel %vm695_vm6, %v4901_v52, %v1983_v26  ;;  %v2037_v10 = vsel %vm5536_vm12, %v1983_v26, 0.0  ;;  %vm5547_vm1 = vmmov %vm5544_vm2 }
 0x316   : > { %2053 = vst.msk [vmem:[#allocation5 + $0x338] sm:$0xff] %vm5538_vm10, %v2037_v10  ;;  %vm5548_vm12 = vmmov %vm5547_vm1 }
 0x317   : > { %v1469_v41 = vpop.permute.xlu1 %1468  ;;  %2641 = vmatmul.mubr.f32.vlgmr.msra.gmra.mrb[8].mxu1 %v4899_v49  ;;  %vm5549_vm10 = vmmov %vm5545_vm9 }
 0x318   : > { %1515 = vst.msk [vmem:[#allocation5 + $0xf8] sm:$0xff] %vm5539_vm7, %v1469_v41  ;;  %v2105_v34 = vpop.permute.xlu0 %2104  ;;  %3020 = vmatprep.mubr.msk.f32.mxu1 %vm2474_vm15, %v4903_v27  ;;  %vm5550_vm7 = vmmov %vm5545_vm9 }
 0x319   : > { %v5061_v52 = vsel %vm759_vm8, %v4839_v51, %v2105_v34  ;;  %v5065_v29 = vsel %vm759_vm8, %v2105_v34, %v4914_v17 }
 0x31b   : > { %v1579_v60 = vpop.permute.xlu1 %1578  ;;  %2647 = vmatmul.mubr.f32.gmra.mrb[10].mxu1 %v4912_v6 }
 0x31c   : > { %v1625_v40 = vsel %vm5540_vm4, %v1579_v60, 0.0  ;;  %v2109_v57 = vpop.permute.xlu0 %2108  ;;  %v2321_v59 = vld [vmem:[#allocation5 + $0x78] sm:$0xff]  ;;  %3021 = vmatprep.mubr.msk.f32.mxu1 %vm2474_vm15, %v4916_v63  ;;  %vm5552_vm4 = vcmp.ne.s32.totalorder %v5551_v5, 0 }
 0x31d   : > { %1641 = vst.msk [vmem:[#allocation5 + $0x178] sm:$0xff] %vm5541_vm3, %v1625_v40  ;;  %v5075_v51 = vsel %vm759_vm8, %v4914_v17, %v2109_v57  ;;  %v3239_v25 = vpack.c.bf16 %v2321_v59, %v2313_v54  ;;  %vm5106_vm3 = vmpackc.low %vm5552_vm4, %vm5552_vm4 }
 0x31e   : > { %2163 = vst.msk [vmem:[#allocation5 + $0x3b8] sm:$0xff] %vm5542_vm14, %v2109_v57 }
 0x31f   : > { %v5080_v0 = vpop.permute.xlu1 %1870  ;;  %3240 = vmatprep.subr.bf16.mxu1 %v3239_v25  ;;  %2653 = vmatmul.mubr.f32.gmra.mrb[12].mxu1 %v4924_v39  ;;  %v2337_v40 = vld [vmem:[#allocation5 + $0xf8] sm:$0xff] }
 0x320   : > { %v1339_v28 = vpop.permute.xlu0 %1338  ;;  %3022 = vmatprep.mubr.msk.f32.mxu1 %vm2474_vm15, %v4926_v16 }
 0x321   : > { %v1355_v44 = vsel %vm5544_vm2, %v5543_v20, %v1339_v28 }
 0x323   : > { %v5087_v17 = vpop.permute.xlu1 %1996  ;;  %2659 = vmatmul.mubr.f32.gmra.mrb[14].mxu1 %v4941_v46 }
 0x324   : > { %v1465_v15 = vpop.permute.xlu0 %1464  ;;  %3027 = vmatprep.mubr.msk.f32.mxu1 %vm2474_vm15, %v3319_v37 }
 0x325   : > { %v1481_v43 = vsel %vm5545_vm9, %v4688_v58, %v1465_v15  ;;  %v2329_v58 = vld [vmem:[#allocation5 + $0xb8] sm:$0xff] }
 0x326   : > { %v3243_v59 = vpack.c.bf16 %v2337_v40, %v2329_v58 }
 0x327   : > { %v5093_v24 = vpop.permute.xlu1 %2122 }
 0x328   : > { %v1575_v26 = vpop.permute.xlu0 %1574 }
 0x329   : > { %v1591_v31 = vsel %vm5546_vm13, %v4706_v19, %v1575_v26 }
 0x32b   : > { %v1341_v10 = vpop.permute.xlu1 %1340 }
 0x32c   : > { %v1356_v45 = vsel %vm5547_vm1, %v1339_v28, %v1341_v10  ;;  %v1357_v61 = vsel %vm5548_vm12, %v1341_v10, %v1343_v1  ;;  %v1707_v34 = vpop.permute.xlu0 %1706  ;;  %v5559_v10 = vld [vmem:[#allocation15_spill] sm:$0xff]  ;;  %vm5563_vm1 = vcmask 244736  }
 0x32d   : > { %v1726_v57 = vsel %vm550_vm11, %v4773_v47, %v1707_v34  ;;  %v3484_v1 = vpack.c.bf16 %v1356_v45, %v4929_v33  ;;  %v5555_v47 = vld [vmem:[#allocation17_spill] sm:$0xff]  ;;  %vm5560_vm9 = vcmp.ne.s32.totalorder %v5559_v10, 0  ;;  %v3490_v45 = vpack.c.bf16 %v1355_v44, %v4907_v53  ;;  %vm5564_vm12 = vmmov %vm5563_vm1 }
 0x32e   : > { %vm5556_vm14 = vcmp.ne.s32.totalorder %v5555_v47, 0  ;;  %vm5126_vm13 = vmpackc.low %vm5560_vm9, %vm5560_vm9  ;;  %vm5568_vm4 = vcmp.ne.s32.totalorder %v5555_v47, 30  ;;  %vm5571_vm9 = vcmp.ne.s32.totalorder %v5559_v10, 30  ;;  %v2382_v10 = vld [vmem:[#allocation5 + $0x260] sm:$0xff] }
 0x32f   : > { %v1467_v54 = vpop.permute.xlu1 %1466  ;;  %3485 = vmatprep.subr.msk.bf16.mxu0 %vm5106_vm3, %v3484_v1  ;;  %vm5116_vm2 = vmpackc.low %vm5556_vm14, %vm5556_vm14 }
 0x330   : > { %v1482_v25 = vsel %vm5549_vm10, %v1465_v15, %v1467_v54  ;;  %v1483_v20 = vsel %vm5550_vm7, %v1467_v54, %v1469_v41  ;;  %v1711_v37 = vpop.permute.xlu0 %1710  ;;  %v3487_v41 = vpack.c.bf16 %v1357_v61, %v4932_v42  ;;  %v2353_v15 = vld [vmem:[#allocation5 + $0x178] sm:$0xff]  ;;  %3491 = vmatpush1.bf16.msk.msra.mxu0 %vm5126_vm13, %v3490_v45  ;;  %v3209_v54 = vpack.c.bf16 %v1481_v43, %v4936_v32  ;;  %vm5159_vm14 = vmpackc.low %vm5568_vm4, %vm5568_vm4 }
 0x331   : > { %v3207_v40 = vpack.c.bf16 %v1482_v25, %v4944_v30  ;;  %v3245_v42 = vpack.c.bf16 %v1483_v20, %v4947_v62  ;;  %v2345_v61 = vld [vmem:[#allocation5 + $0x138] sm:$0xff]  ;;  %vm5565_vm10 = vcmp.ne.s32.totalorder %v5551_v5, 30  ;;  %v2375_v25 = vld [vmem:[#allocation5 + $0x228] sm:$0xff] }
 0x332   : > { %3488 = vmatpush1.bf16.msk.msra.mxu1 %vm5116_vm2, %v3487_v41  ;;  %v3247_v1 = vpack.c.bf16 %v2353_v15, %v2345_v61  ;;  %vm5149_vm7 = vmpackc.low %vm5565_vm10, %vm5565_vm10  ;;  %vm5576_vm10 = vcmp.ne.s32.totalorder %v5510_v14, 30 }
 0x333   : > { %3244 = vmatprep.subr.bf16.mxu1 %v3243_v59  ;;  %v1577_v58 = vpop.permute.xlu1 %1576  ;;  %3208 = vmatprep.subr.bf16.mxu0 %v3207_v40  ;;  %v3499_v59 = vpack.c.bf16 %v1591_v31, %v4955_v11  ;;  %v3505_v40 = vpack.c.bf16 %v1726_v57, %v4968_v12 }
 0x334   : > { %v1592_v41 = vsel %vm5563_vm1, %v1575_v26, %v1577_v58  ;;  %v1593_v7 = vsel %vm5564_vm12, %v1577_v58, %v1579_v60  ;;  %v2215_v8 = vpop.permute.xlu0 %2214  ;;  %3210 = vmatpush1.bf16.msra.mxu0 %v3209_v54  ;;  %vm5173_vm1 = vmpackc.low %vm5571_vm9, %vm5571_vm9  ;;  %vm5574_vm12 = vcmp.ne.s32.totalorder %v5510_v14, 0 }
 0x335   : > { %v5140_v53 = vsel %vm815_vm5, %v4865_v50, %v2215_v8  ;;  %v3493_v43 = vpack.c.bf16 %v1592_v41, %v4958_v4  ;;  %v3496_v26 = vpack.c.bf16 %v1593_v7, %v4961_v13  ;;  %v2383_v7 = vld [vmem:[#allocation5 + $0x268] sm:$0xff]  ;;  %vm5580_vm9 = vmmov %vm5574_vm12 }
 0x336   : > { %3246 = vmatpush1.bf16.msra.mxu1 %v3245_v42  ;;  %v3219_v15 = vpack.c.bf16 %v2383_v7, %v2375_v25 }
 0x337   : > { %3248 = vmatprep.subr.bf16.mxu1 %v3247_v1  ;;  %v1709_v30 = vpop.permute.xlu1 %1708  ;;  %3494 = vmatprep.subr.msk.bf16.mxu0 %vm5149_vm7, %v3493_v43 }
 0x338   : > { %v1727_v62 = vsel %vm550_vm11, %v1707_v34, %v1709_v30  ;;  %v5144_v44 = vsel %vm550_vm11, %v1709_v30, %v1711_v37  ;;  %v1869_v32 = vpop.permute.xlu0 %1868  ;;  %3500 = vmatpush1.bf16.msk.msra.mxu0 %vm5173_vm1, %v3499_v59  ;;  %v2361_v30 = vld [vmem:[#allocation5 + $0x1b8] sm:$0xff] }
 0x339   : > { %v1885_v5 = vsel %vm631_vm0, %v4973_v21, %v1869_v32  ;;  %v1886_v4 = vsel %vm631_vm0, %v1869_v32, %v5080_v0  ;;  %v3502_v47 = vpack.c.bf16 %v1727_v62, %v4971_v35  ;;  %v2374_v35 = vld [vmem:[#allocation5 + $0x220] sm:$0xff]  ;;  %v2385_v32 = vld [vmem:[#allocation5 + $0x278] sm:$0xff]  ;;  %v3517_v25 = vpack.c.bf16 %v5144_v44, %v4979_v38 }
 0x33a   : > { %3497 = vmatpush1.bf16.msk.msra.mxu1 %vm5159_vm14, %v3496_v26  ;;  %v3221_v42 = vpack.c.bf16 %v2382_v10, %v2374_v35  ;;  %v3508_v12 = vpack.c.bf16 %v1886_v4, %v4999_v2  ;;  %v2377_v4 = vld [vmem:[#allocation5 + $0x238] sm:$0xff] }
 0x33b   : > { %v1713_v13 = vpop.permute.xlu1 %1712  ;;  %3503 = vmatprep.subr.msk.bf16.mxu0 %vm5106_vm3, %v3502_v47  ;;  %v2425_v34 = vld [vmem:[#allocation5 + $0x3b8] sm:$0xff] }
 0x33c   : > { %v1729_v21 = vsel %vm550_vm11, %v1711_v37, %v1713_v13  ;;  %v1995_v20 = vpop.permute.xlu0 %1994  ;;  %3506 = vmatpush1.bf16.msk.msra.mxu0 %vm5126_vm13, %v3505_v40  ;;  %vm5575_vm11 = vcmask 23552  }
 0x33d   : > { %v1761_v45 = vsel %vm5574_vm12, %v1729_v21, 0.0  ;;  %v2011_v11 = vsel %vm695_vm6, %v4985_v36, %v1995_v20  ;;  %v2012_v31 = vsel %vm695_vm6, %v1995_v20, %v5087_v17  ;;  %3220 = vmatprep.subr.bf16.mxu0 %v3219_v15  ;;  %vm5577_vm4 = vmmov %vm5575_vm11 }
 0x33e   : > { %1777 = vst.msk [vmem:[#allocation5 + $0x1f8] sm:$0xff] %vm5575_vm11, %v1761_v45  ;;  %v3514_v2 = vpack.c.bf16 %v2012_v31, %v5038_v55 }
 0x33f   : > { %v2217_v37 = vpop.permute.xlu1 %2216 }
 0x340   : > { %v2241_v61 = vsel %vm815_vm5, %v2215_v8, %v2217_v37  ;;  %v2121_v58 = vpop.permute.xlu0 %2120  ;;  %3222 = vmatpush1.bf16.msra.mxu0 %v3221_v42 }
 0x341   : > { %v2137_v36 = vsel %vm759_vm8, %v5005_v3, %v2121_v58  ;;  %v2138_v54 = vsel %vm759_vm8, %v2121_v58, %v5093_v24  ;;  %3509 = vmatprep.subr.msk.bf16.mxu0 %vm5149_vm7, %v3508_v12  ;;  %v3511_v3 = vpack.c.bf16 %v1885_v5, %v4995_v23  ;;  %v3255_v23 = vpack.c.bf16 %v2385_v32, %v2377_v4  ;;  %v2384_v5 = vld [vmem:[#allocation5 + $0x270] sm:$0xff] }
 0x342   : > { %v3231_v13 = vpack.c.bf16 %v2138_v54, %v5065_v29  ;;  %v2376_v29 = vld [vmem:[#allocation5 + $0x230] sm:$0xff]  ;;  %v3233_v47 = vpack.c.bf16 %v2137_v36, %v5061_v52  ;;  %v2393_v52 = vld [vmem:[#allocation5 + $0x2b8] sm:$0xff] }
 0x343   : > { %v2233_v57 = vpop.permute.xlu1 %2232  ;;  %v3257_v20 = vpack.c.bf16 %v2384_v5, %v2376_v29 }
 0x344   : > { %v2231_v1 = vpop.permute.xlu0 %2230  ;;  %3512 = vmatpush1.bf16.msk.msra.mxu0 %vm5173_vm1, %v3511_v3 }
 0x345   : > { %v2247_v41 = vsel %vm815_vm5, %v5025_v48, %v2231_v1  ;;  %v2248_v8 = vsel %vm815_vm5, %v2231_v1, %v2233_v57  ;;  %v2369_v62 = vld [vmem:[#allocation5 + $0x1f8] sm:$0xff]  ;;  %3515 = vmatprep.subr.msk.bf16.mxu0 %vm5106_vm3, %v3514_v2  ;;  %vm5578_vm3 = vmmov %vm5576_vm10 }
 0x346   : > { %v3251_v43 = vpack.c.bf16 %v2369_v62, %v2361_v30  ;;  %v3526_v45 = vpack.c.bf16 %v2247_v41, %v5140_v53 }
 0x347   : > { %v1873_v26 = vpop.permute.xlu1 %1872 }
 0x348   : > { %v1887_v48 = vsel %vm631_vm0, %v5080_v0, %v1873_v26  ;;  %v1919_v59 = vsel %vm5576_vm10, %v1873_v26, 0.0  ;;  %3252 = vmatprep.subr.bf16.mxu1 %v3251_v43  ;;  %v2219_v7 = vpop.permute.xlu0 %2218  ;;  %v3520_v0 = vpack.c.bf16 %v2011_v11, %v5034_v56  ;;  %vm5579_vm0 = vmmov %vm5577_vm4  ;;  %v3523_v56 = vpack.c.bf16 %v2248_v8, %v2241_v61 }
 0x349   : > { %1935 = vst.msk [vmem:[#allocation5 + $0x2f8] sm:$0xff] %vm5577_vm4, %v1919_v59  ;;  %v2242_v55 = vsel %vm815_vm5, %v2217_v37, %v2219_v7  ;;  %v2273_v19 = vsel %vm5578_vm3, %v2219_v7, 0.0  ;;  %3518 = vmatpush1.bf16.msk.msra.mxu1 %vm5116_vm2, %v3517_v25  ;;  %vm5581_vm12 = vmmov %vm5579_vm0  ;;  %v3529_v40 = vpack.c.bf16 %v1887_v48, %v5015_v22 }
 0x34a   : > { %3521 = vmatpush1.bf16.msk.msra.mxu0 %vm5126_vm13, %v3520_v0  ;;  %2289 = vst.msk [vmem:[#allocation5 + $0x438] sm:$0xff] %vm5579_vm0, %v2273_v19  ;;  %3256 = vmatprep.subr.bf16.mxu1 %v3255_v23  ;;  %vm5582_vm13 = vmmov %vm5579_vm0 }
 0x34b   : > { %3232 = vmatprep.subr.bf16.mxu0 %v3231_v13  ;;  %v1999_v21 = vpop.permute.xlu1 %1998 }
 0x34c   : > { %v2013_v38 = vsel %vm695_vm6, %v5087_v17, %v1999_v21  ;;  %v2045_v44 = vsel %vm5580_vm9, %v1999_v21, 0.0  ;;  %vm5583_vm6 = vmmov %vm5578_vm3 }
 0x34d   : > { %2061 = vst.msk [vmem:[#allocation5 + $0x378] sm:$0xff] %vm5581_vm12, %v2045_v44  ;;  %3258 = vmatpush1.bf16.msra.mxu1 %v3257_v20  ;;  %v3532_v14 = vpack.c.bf16 %v2013_v38, %v5048_v18 }
 0x34e   : > { %3234 = vmatpush1.bf16.msra.mxu0 %v3233_v47 }
 0x34f   : > { %3524 = vmatprep.subr.msk.bf16.mxu0 %vm5149_vm7, %v3523_v56  ;;  %v2125_v33 = vpop.permute.xlu1 %2124 }
 0x350   : > { %v2139_v15 = vsel %vm759_vm8, %v5093_v24, %v2125_v33  ;;  %2171 = vst.msk [vmem:[#allocation5 + $0x3f8] sm:$0xff] %vm5582_vm13, %v2125_v33  ;;  %v2401_v10 = vld [vmem:[#allocation5 + $0x2f8] sm:$0xff]  ;;  %vm5584_vm8 = vmmov %vm5579_vm0 }
 0x351   : > { %v3259_v17 = vpack.c.bf16 %v2401_v10, %v2393_v52  ;;  %v2409_v24 = vld [vmem:[#allocation5 + $0x338] sm:$0xff]  ;;  %v3269_v42 = vpack.c.bf16 %v2139_v15, %v5075_v51 }
 0x352   : > { %3527 = vmatpush1.bf16.msk.msra.mxu0 %vm5173_vm1, %v3526_v45  ;;  %v2441_v61 = vld [vmem:[#allocation5 + $0x438] sm:$0xff] }
 0x353   : > { %v2235_v11 = vpop.permute.xlu1 %2234  ;;  %3260 = vmatprep.subr.bf16.mxu1 %v3259_v17 }
 0x354   : > { %v2249_v31 = vsel %vm815_vm5, %v2233_v57, %v2235_v11  ;;  %v2281_v60 = vsel %vm5583_vm6, %v2235_v11, 0.0  ;;  %3530 = vmatpush1.bf16.msk.msra.mxu1 %vm5159_vm14, %v3529_v40  ;;  %v2417_v35 = vld [vmem:[#allocation5 + $0x378] sm:$0xff] }
 0x355   : > { %2730 = vmatmul.mubr.f32.vlgmr.msra.gmra.mrb[16].mxu0 %v4899_v49  ;;  %2297 = vst.msk [vmem:[#allocation5 + $0x478] sm:$0xff] %vm5584_vm8, %v2281_v60  ;;  %v3263_v53 = vpack.c.bf16 %v2417_v35, %v2409_v24  ;;  %v3535_v18 = vpack.c.bf16 %v2249_v31, %v2242_v55 }
 0x356   : > { %3024 = vmatprep.mubr.msk.f32.mxu0 %vm2474_vm15, %v4903_v27 }
 0x357   : > { %3264 = vmatprep.subr.bf16.mxu1 %v3263_v53  ;;  %v2433_v37 = vld [vmem:[#allocation5 + $0x3f8] sm:$0xff] }
 0x358   : > { %3533 = vmatpush1.bf16.msk.msra.mxu1 %vm5116_vm2, %v3532_v14  ;;  %v3267_v22 = vpack.c.bf16 %v2433_v37, %v2425_v34 }
 0x359   : > { %2736 = vmatmul.mubr.f32.gmra.mrb[18].mxu0 %v4912_v6  ;;  %v5275_v51 = vpop.permute.xlu0 %2456 }
 0x35a   : > { %3025 = vmatprep.mubr.msk.f32.mxu0 %vm2474_vm15, %v4916_v63  ;;  %3268 = vmatprep.subr.bf16.mxu1 %v3267_v22 }
 0x35c   : > { %3270 = vmatpush1.bf16.msra.mxu1 %v3269_v42  ;;  %v2449_v58 = vld [vmem:[#allocation5 + $0x478] sm:$0xff] }
 0x35d   : > { %2742 = vmatmul.mubr.f32.gmra.mrb[20].mxu0 %v4924_v39  ;;  %v3271_v36 = vpack.c.bf16 %v2449_v58, %v2441_v61  ;;  %v5289_v41 = vpop.permute.xlu0 %2466 }
 0x35e   : > { %3026 = vmatprep.mubr.msk.f32.mxu0 %vm2474_vm15, %v4926_v16 }
 0x35f   : > { %3272 = vmatprep.subr.bf16.mxu1 %v3271_v36 }
 0x360   : > { %3536 = vmatpush1.bf16.msk.msra.mxu1 %vm5159_vm14, %v3535_v18 }
 0x361   : > { %2748 = vmatmul.mubr.f32.gmra.mrb[22].mxu0 %v4941_v46 }
 0x363   : > { %2819 = vmatmul.mubr.f32.vlgmr.msra.gmra.mrb[16].mxu1 %v4899_v49 }
 0x364   : > { %3028 = vmatprep.mubr.msk.f32.mxu1 %vm2474_vm15, %v4903_v27  ;;  %v5280_v54 = vpop.permute.xlu1 %2461 }
 0x367   : > { %2825 = vmatmul.mubr.f32.gmra.mrb[18].mxu1 %v4912_v6 }
 0x368   : > { %3029 = vmatprep.mubr.msk.f32.mxu1 %vm2474_vm15, %v4916_v63  ;;  %v5294_v26 = vpop.permute.xlu1 %2471 }
 0x36b   : > { %2831 = vmatmul.mubr.f32.gmra.mrb[20].mxu1 %v4924_v39 }
 0x36c   : > { %3030 = vmatprep.mubr.msk.f32.mxu1 %vm2474_vm15, %v4926_v16 }
 0x36f   : > { %2837 = vmatmul.mubr.f32.gmra.mrb[22].mxu1 %v4941_v46 }
 0x3bb   : > { %v2553_v28 = vpop.f32.mrb[8].mxu0 }
 0x3bc   : > { %v2554_v49 = vadd.f32 %v2553_v28, %v5275_v51  ;;  %v2555_v50 = vpop.f32.mrb[9].mxu0 }
 0x3bd   : > { %v2556_v27 = vadd.f32 %v2555_v50, %v5275_v51 }
 0x3be   : > { %v2843_v6 = vmax.f32 %v2554_v49, 0.0 }
 0x3bf   : > { %v2844_v63 = vmax.f32 %v2556_v27, 0.0  ;;  %v2559_v12 = vpop.f32.mrb[10].mxu0 }
 0x3c0   : > { %v2560_v39 = vadd.f32 %v2559_v12, %v5280_v54  ;;  %v2561_v16 = vpop.f32.mrb[11].mxu0 }
 0x3c1   : > { %v3050_v46 = vpack.c.bf16 %v2844_v63, %v2843_v6  ;;  %v2562_v57 = vadd.f32 %v2561_v16, %v5280_v54 }
 0x3c2   : > { %v2851_v1 = vmax.f32 %v2560_v39, 0.0 }
 0x3c3   : > { %2974 = vst [vmem:[%s5285_s21] sm:$0xff] %v3050_v46  ;;  %v2852_v8 = vmax.f32 %v2562_v57, 0.0  ;;  %v2565_v30 = vpop.f32.mrb[12].mxu0 }
 0x3c4   : > { %v2566_v62 = vadd.f32 %v2565_v30, %v5289_v41  ;;  %v2567_v32 = vpop.f32.mrb[13].mxu0 }
 0x3c5   : > { %v3054_v3 = vpack.c.bf16 %v2852_v8, %v2851_v1  ;;  %v2568_v43 = vadd.f32 %v2567_v32, %v5289_v41 }
 0x3c6   : > { %v2859_v2 = vmax.f32 %v2566_v62, 0.0 }
 0x3c7   : > { %2978 = vst [vmem:[%s5285_s21 + $0x20] sm:$0xff] %v3054_v3  ;;  %v2860_v4 = vmax.f32 %v2568_v43, 0.0  ;;  %v2571_v48 = vpop.f32.mrb[14].mxu0 }
 0x3c8   : > { %v2572_v59 = vadd.f32 %v2571_v48, %v5294_v26  ;;  %v2573_v7 = vpop.f32.mrb[15].mxu0 }
 0x3c9   : > { %v3058_v23 = vpack.c.bf16 %v2860_v4, %v2859_v2  ;;  %v2574_v5 = vadd.f32 %v2573_v7, %v5294_v26 }
 0x3ca   : > { %v2867_v13 = vmax.f32 %v2572_v59, 0.0 }
 0x3cb   : > { %2982 = vst [vmem:[%s5285_s21 + $0x40] sm:$0xff] %v3058_v23  ;;  %v2868_v55 = vmax.f32 %v2574_v5, 0.0 }
 0x3cd   : > { %v3062_v19 = vpack.c.bf16 %v2868_v55, %v2867_v13 }
 0x3cf   : > { %2986 = vst [vmem:[%s5285_s21 + $0x60] sm:$0xff] %v3062_v19 }
 0x3ea   : > { %v2642_v25 = vpop.f32.mrb[8].mxu1 }
 0x3eb   : > { %v2643_v0 = vadd.f32 %v2642_v25, %v5275_v51  ;;  %v2644_v29 = vpop.f32.mrb[9].mxu1 }
 0x3ec   : > { %v2645_v21 = vadd.f32 %v2644_v29, %v5275_v51 }
 0x3ed   : > { %v2845_v20 = vmax.f32 %v2643_v0, 0.0 }
 0x3ee   : > { %v2846_v47 = vmax.f32 %v2645_v21, 0.0  ;;  %v2648_v38 = vpop.f32.mrb[10].mxu1 }
 0x3ef   : > { %v2649_v44 = vadd.f32 %v2648_v38, %v5280_v54  ;;  %v2650_v56 = vpop.f32.mrb[11].mxu1 }
 0x3f0   : > { %v3051_v33 = vpack.c.bf16 %v2846_v47, %v2845_v20  ;;  %v2651_v15 = vadd.f32 %v2650_v56, %v5280_v54 }
 0x3f1   : > { %v2853_v52 = vmax.f32 %v2649_v44, 0.0 }
 0x3f2   : > { %2975 = vst [vmem:[%s5285_s21 + $0x8] sm:$0xff] %v3051_v33  ;;  %v2854_v10 = vmax.f32 %v2651_v15, 0.0  ;;  %v2654_v17 = vpop.f32.mrb[12].mxu1 }
 0x3f3   : > { %v2655_v45 = vadd.f32 %v2654_v17, %v5289_v41  ;;  %v2656_v11 = vpop.f32.mrb[13].mxu1 }
 0x3f4   : > { %v3055_v31 = vpack.c.bf16 %v2854_v10, %v2853_v52  ;;  %v2657_v60 = vadd.f32 %v2656_v11, %v5289_v41 }
 0x3f5   : > { %v2861_v40 = vmax.f32 %v2655_v45, 0.0 }
 0x3f6   : > { %2979 = vst [vmem:[%s5285_s21 + $0x28] sm:$0xff] %v3055_v31  ;;  %v2862_v24 = vmax.f32 %v2657_v60, 0.0  ;;  %v2660_v35 = vpop.f32.mrb[14].mxu1 }
 0x3f7   : > { %v2661_v53 = vadd.f32 %v2660_v35, %v5294_v26  ;;  %v2662_v34 = vpop.f32.mrb[15].mxu1 }
 0x3f8   : > { %v3059_v37 = vpack.c.bf16 %v2862_v24, %v2861_v40  ;;  %v2663_v14 = vadd.f32 %v2662_v34, %v5294_v26 }
 0x3f9   : > { %v2869_v22 = vmax.f32 %v2661_v53, 0.0 }
 0x3fa   : > { %2983 = vst [vmem:[%s5285_s21 + $0x48] sm:$0xff] %v3059_v37  ;;  %v2870_v42 = vmax.f32 %v2663_v14, 0.0 }
 0x3fc   : > { %v3063_v61 = vpack.c.bf16 %v2870_v42, %v2869_v22 }
 0x3fe   : > { %2987 = vst [vmem:[%s5285_s21 + $0x68] sm:$0xff] %v3063_v61 }
 0x428   : > { %v2731_v58 = vpop.f32.mrb[16].mxu0 }
 0x429   : > { %v2732_v36 = vadd.f32 %v2731_v58, %v5275_v51  ;;  %v2733_v18 = vpop.f32.mrb[17].mxu0 }
 0x42a   : > { %v2734_v28 = vadd.f32 %v2733_v18, %v5275_v51 }
 0x42b   : > { %v2847_v49 = vmax.f32 %v2732_v36, 0.0 }
 0x42c   : > { %v2848_v50 = vmax.f32 %v2734_v28, 0.0  ;;  %v2737_v27 = vpop.f32.mrb[18].mxu0 }
 0x42d   : > { %v2738_v6 = vadd.f32 %v2737_v27, %v5280_v54  ;;  %v2739_v63 = vpop.f32.mrb[19].mxu0 }
 0x42e   : > { %v3052_v12 = vpack.c.bf16 %v2848_v50, %v2847_v49  ;;  %v2740_v39 = vadd.f32 %v2739_v63, %v5280_v54 }
 0x42f   : > { %v2855_v16 = vmax.f32 %v2738_v6, 0.0 }
 0x430   : > { %2976 = vst [vmem:[%s5285_s21 + $0x10] sm:$0xff] %v3052_v12  ;;  %v2856_v46 = vmax.f32 %v2740_v39, 0.0  ;;  %v2743_v57 = vpop.f32.mrb[20].mxu0 }
 0x431   : > { %v2744_v1 = vadd.f32 %v2743_v57, %v5289_v41  ;;  %v2745_v8 = vpop.f32.mrb[21].mxu0 }
 0x432   : > { %v3056_v30 = vpack.c.bf16 %v2856_v46, %v2855_v16  ;;  %v2746_v62 = vadd.f32 %v2745_v8, %v5289_v41 }
 0x433   : > { %v2863_v32 = vmax.f32 %v2744_v1, 0.0 }
 0x434   : > { %2980 = vst [vmem:[%s5285_s21 + $0x30] sm:$0xff] %v3056_v30  ;;  %v2864_v3 = vmax.f32 %v2746_v62, 0.0  ;;  %v2749_v43 = vpop.f32.mrb[22].mxu0 }
 0x435   : > { %v2750_v2 = vadd.f32 %v2749_v43, %v5294_v26  ;;  %v2751_v4 = vpop.f32.mrb[23].mxu0 }
 0x436   : > { %v3060_v48 = vpack.c.bf16 %v2864_v3, %v2863_v32  ;;  %v2752_v59 = vadd.f32 %v2751_v4, %v5294_v26  ;;  %v2820_v7 = vpop.f32.mrb[16].mxu1 }
 0x437   : > { %v2871_v23 = vmax.f32 %v2750_v2, 0.0  ;;  %v2821_v5 = vadd.f32 %v2820_v7, %v5275_v51  ;;  %v2822_v13 = vpop.f32.mrb[17].mxu1 }
 0x438   : > { %2984 = vst [vmem:[%s5285_s21 + $0x50] sm:$0xff] %v3060_v48  ;;  %v2872_v55 = vmax.f32 %v2752_v59, 0.0  ;;  %v2823_v19 = vadd.f32 %v2822_v13, %v5275_v51 }
 0x439   : > { %v2849_v25 = vmax.f32 %v2821_v5, 0.0 }
 0x43a   : > { %v3064_v0 = vpack.c.bf16 %v2872_v55, %v2871_v23  ;;  %v2850_v29 = vmax.f32 %v2823_v19, 0.0  ;;  %v2826_v21 = vpop.f32.mrb[18].mxu1 }
 0x43b   : > { %v2827_v20 = vadd.f32 %v2826_v21, %v5280_v54  ;;  %v2828_v47 = vpop.f32.mrb[19].mxu1 }
 0x43c   : > { %2988 = vst [vmem:[%s5285_s21 + $0x70] sm:$0xff] %v3064_v0  ;;  %v3053_v38 = vpack.c.bf16 %v2850_v29, %v2849_v25  ;;  %v2829_v44 = vadd.f32 %v2828_v47, %v5280_v54 }
 0x43d   : > { %v2857_v56 = vmax.f32 %v2827_v20, 0.0 }
 0x43e   : > { %2977 = vst [vmem:[%s5285_s21 + $0x18] sm:$0xff] %v3053_v38  ;;  %v2858_v33 = vmax.f32 %v2829_v44, 0.0  ;;  %v2832_v15 = vpop.f32.mrb[20].mxu1 }
 0x43f   : > { %v2833_v52 = vadd.f32 %v2832_v15, %v5289_v41  ;;  %v2834_v51 = vpop.f32.mrb[21].mxu1 }
 0x440   : > { %v3057_v10 = vpack.c.bf16 %v2858_v33, %v2857_v56  ;;  %v2835_v17 = vadd.f32 %v2834_v51, %v5289_v41 }
 0x441   : > { %v2865_v45 = vmax.f32 %v2833_v52, 0.0 }
 0x442   : > { %2981 = vst [vmem:[%s5285_s21 + $0x38] sm:$0xff] %v3057_v10  ;;  %v2866_v11 = vmax.f32 %v2835_v17, 0.0  ;;  %v2838_v31 = vpop.f32.mrb[22].mxu1 }
 0x443   : > { %v2839_v60 = vadd.f32 %v2838_v31, %v5294_v26  ;;  %v2840_v40 = vpop.f32.mrb[23].mxu1 }
 0x444   : > { %v3061_v54 = vpack.c.bf16 %v2866_v11, %v2865_v45  ;;  %v2841_v24 = vadd.f32 %v2840_v40, %v5294_v26  ;;  %276 = sbr.rel (!%p274_p2) target bundleno = 73 (0x49), region = 57 }
 0x445   : > { %v2873_v35 = vmax.f32 %v2839_v60, 0.0 }
 0x446   : > { %2985 = vst [vmem:[%s5285_s21 + $0x58] sm:$0xff] %v3061_v54  ;;  %v2874_v53 = vmax.f32 %v2841_v24, 0.0 }
 0x448   : > { %v3065_v34 = vpack.c.bf16 %v2874_v53, %v2873_v35 }
 0x44a   : > { %2989 = vst [vmem:[%s5285_s21 + $0x78] sm:$0xff] %v3065_v34 }
 0x44b   :  { %2994 = vsyncpa [#allocation7], 1 }
 0x44c   :  { %2995 = vsyncpa [#allocation9], 1 }

// kernel: dqn_forward.3
= control target key start
LH: loop header
LB: loop body
LE: loop exit
PB: predicated region body
PF: predicated region fallthrough
CT: control target
= control target key end

     0   :  { %10 = vsyncpa [#allocation4], 0  ;;  %s13376_s0 = inlined_call_operand.hbm [shape: bf16[2,32768], index: 0, kind: input, shape index: {}]   ;;  %s13377_s1 = inlined_call_operand.hbm [shape: bf16[32768,256], index: 1, kind: input, shape index: {}]   ;;  %s13378_s2 = inlined_call_operand.hbm [shape: f32[1,256], index: 2, kind: input, shape index: {}]   ;;  %s13379_s3 = inlined_call_operand.hbm [shape: f32[256,4], index: 3, kind: input, shape index: {}]   ;;  %s13380_s4 = inlined_call_operand.hbm [shape: f32[1,4], index: 4, kind: input, shape index: {}]   ;;  %s13381_s5 = inlined_call_operand.hbm [shape: f32[2,4], index: 5, kind: output, shape index: {}]  }
   0x1   :  { %12 = vsyncpa [#allocation4 + $0x1], 0 }
   0x2   :  { %13 = vsyncpa [#allocation7], 0 }
   0x3   :  { %15 = vsyncpa [#allocation7 + $0x1], 0 }
   0x4   :  { %16 = vsyncpa [#allocation10], 0 }
   0x5   :  { %17 = vsyncpa [#allocation5], 0  ;;  %s11737_s18 = smov 0   ;;  %s11739_s19 = smov 0  }
   0x6   :  { %s11741_s20 = smov 0   ;;  %s11743_s21 = smov 0  }
   0x7   :  { %s11745_s22 = smov 0   ;;  %s11747_s23 = smov 0  }
   0x8 LB: > { %s11766_s24 = sadd.s32 4294967295, %s11694_s23   ;;  %p55_p0 = scmp.ne.s32.totalorder %s11678_s19, %s11674_s18  ;;  %s11694_s23 = sphi %s11747_s23, %s23_s23   ;;  %s11690_s22 = sphi %s11745_s22, %s13405_s22   ;;  %s11686_s21 = sphi %s11743_s21, %s13404_s21   ;;  %s11682_s20 = sphi %s11741_s20, %s13403_s20   ;;  %s11678_s19 = sphi %s11739_s19, %s13402_s19   ;;  %s11674_s18 = sphi %s11737_s18, %s13401_s18  }
   0x9   : > { %p13382_p1 = scmp.eq.s32.totalorder %s11766_s24, 0  ;;  %p8566_p2 = scmp.ge.s32.totalorder %s11694_s23, 1 }
   0xa   : > { %p188_p3 = scmp.lt.s32.totalorder %s11694_s23, 5  ;;  %s11696_s27 = smov [#allocation8]  }
   0xb   : > { %p11774_p4 = por %p13382_p1, %p55_p0  ;;  %s204_s28 = sshll.u32 %s11696_s27, 4  ;;  %s205_s28 = int_to_ptr.vmem [resolvable:$true] %s204_s28 }
   0xc   : > { %p11778_p5 = pnand %p8566_p2, %p188_p3  ;;  %s11697_s29 = smov [#allocation9]  }
   0xd   : > { %s13387_s25 = scalar_select %p11774_p4, 1, 0 }
   0xe   : > { %s13388_s26 = scalar_select %p11778_p5, 1, 0 }
   0xf   : > { %p9827_p6 = pneg %p11778_p5  ;;  %s217_s30 = sshll.u32 %s11697_s29, 4  ;;  %s11790_s30 = int_to_ptr.vmem [resolvable:$true] %s217_s30 }
  0x10   : > { %s11698_s7 = smov [#allocation11]   ;;  %s11458_s11 = scalar_lea.hbm %s13378_s2, 32 }
  0x11   : > { %p11786_p7 = pnand %p9827_p6, %p13382_p1  ;;  %s11792_s8 = sshll.u32 %s11698_s7, 4  ;;  %s232_s8 = int_to_ptr.vmem [resolvable:$true] %s11792_s8 }
  0x12   : > { %p11459_p8 = scmp.ne.s32.totalorder %s13378_s2, %s11458_s11  ;;  %p11465_p12 = scmp.lt.u32.totalorder %s11458_s11, %s13378_s2 }
  0x13   : > { %p11802_p9 = pneg %p11786_p7 }
  0x15   : > { %p11461_p10 = pnand %p11802_p9, %p11459_p8 }
  0x17   : > { %p11462_p11 = pneg %p11461_p10 }
  0x19   : > { %p11467_p13 = pnand %p11465_p12, %p11462_p11 }
  0x1b   : > { %11470 = shalt.err (!%p11467_p13)
}
  0x1c   : > { %s11471_s17 = scalar_lea.vmem %s205_s28, 32  ;;  %p11479_p6 = scmp.lt.s32.totalorder %s205_s28, %s205_s28 }
  0x1d   : > { %p11472_p0 = scmp.ne.s32.totalorder %s205_s28, %s11471_s17  ;;  %p11480_p1 = scmp.lt.s32.totalorder %s11471_s17, %s11471_s17 }
  0x1f   : > { %p11474_p2 = pnand %p11472_p0, %p11802_p9  ;;  %p11481_p4 = por %p11480_p1, %p11479_p6 }
  0x21   : > { %p11475_p3 = pneg %p11474_p2 }
  0x23   : > { %p11482_p5 = pnand %p11481_p4, %p11475_p3 }
  0x25   : > { %11485 = shalt.err (!%p11482_p5)
}
  0x26   : > { %9830 = dma.hbm_to_vmem [thread:$0]  (!%p11786_p7), %s13378_s2, 32, %s205_s28, [#allocation7]  }
  0x27   : > { %s11486_s9 = scalar_lea.hbm %s13379_s3, 4096 }
  0x28   : > { %p11487_p8 = scmp.ne.s32.totalorder %s13379_s3, %s11486_s9  ;;  %p11493_p4 = scmp.lt.u32.totalorder %s11486_s9, %s13379_s3 }
  0x2a   : > { %p11489_p10 = pnand %p11487_p8, %p11802_p9 }
  0x2c   : > { %p11490_p1 = pneg %p11489_p10 }
  0x2e   : > { %p11495_p5 = pnand %p11493_p4, %p11490_p1 }
  0x30   : > { %11498 = shalt.err (!%p11495_p5)
}
  0x31   : > { %s11499_s28 = scalar_lea.vmem %s11790_s30, 4096  ;;  %p11507_p0 = scmp.lt.s32.totalorder %s11790_s30, %s11790_s30 }
  0x32   : > { %p11500_p11 = scmp.ne.s32.totalorder %s11790_s30, %s11499_s28  ;;  %p11508_p2 = scmp.lt.s32.totalorder %s11499_s28, %s11499_s28 }
  0x34   : > { %p11502_p12 = pnand %p11500_p11, %p11802_p9  ;;  %p11509_p3 = por %p11508_p2, %p11507_p0 }
  0x36   : > { %p11503_p13 = pneg %p11502_p12 }
  0x38   : > { %p11510_p6 = pnand %p11509_p3, %p11503_p13 }
  0x3a   : > { %11513 = shalt.err (!%p11510_p6)
}
  0x3b   : > { %s13385_s15 = smov 128   ;;  %s13386_s16 = smov 8  }
  0x3c   : > { %9833 = dma.hbm_to_vmem [thread:$0]  (!%p11786_p7), %s13379_s3, 4096, %s11790_s30, [#allocation10], %s13385_s15, %s13385_s15, %s13386_s16  }
  0x3d   : > { %s11514_s7 = scalar_lea.hbm %s13380_s4, 16 }
  0x3e   : > { %p11515_p8 = scmp.ne.s32.totalorder %s13380_s4, %s11514_s7  ;;  %p11521_p4 = scmp.lt.u32.totalorder %s11514_s7, %s13380_s4 }
  0x40   : > { %p11517_p10 = pnand %p11515_p8, %p11802_p9 }
  0x42   : > { %p11518_p1 = pneg %p11517_p10 }
  0x44   : > { %p11523_p5 = pnand %p11521_p4, %p11518_p1 }
  0x46   : > { %11526 = shalt.err (!%p11523_p5)
}
  0x47   : > { %s11527_s13 = scalar_lea.vmem %s232_s8, 16  ;;  %s11534_s30 = scalar_lea.vmem %s232_s8, 32 }
  0x48   : > { %p11528_p11 = scmp.ne.s32.totalorder %s232_s8, %s11527_s13  ;;  %p11535_p0 = scmp.lt.s32.totalorder %s232_s8, %s232_s8 }
  0x49   : > { %p11536_p2 = scmp.lt.s32.totalorder %s11534_s30, %s11527_s13 }
  0x4a   : > { %p11530_p12 = pnand %p11528_p11, %p11802_p9 }
  0x4b   : > { %p11537_p3 = por %p11536_p2, %p11535_p0 }
  0x4c   : > { %p11531_p13 = pneg %p11530_p12 }
  0x4e   : > { %p11538_p6 = pnand %p11537_p3, %p11531_p13 }
  0x50   : > { %11541 = shalt.err (!%p11538_p6)
}
  0x51   : > { %9836 = dma.hbm_to_vmem [thread:$0]  (!%p11786_p7), %s13380_s4, 16, %s232_s8, [#allocation10]  }
  0x52   : > { %s42_s14 = sadd.s32 1, %s11682_s20  ;;  %s32_s18 = sadd.s32 1, %s11690_s22 }
  0x53   : > { %p49_p9 = scmp.ne.s32.totalorder %s11682_s20, %s11678_s19  ;;  %p33_p8 = scmp.ge.s32.totalorder %s32_s18, 4 }
  0x54   : > { %p50_p10 = scmp.eq.s32.totalorder %s11694_s23, 0  ;;  %p9847_p1 = scmp.lt.s32.totalorder %s11694_s23, 4 }
  0x55   : > { %s11870_s6 = sand.u32 1, %s11682_s20   ;;  %s13407_s18 = smov (%p33_p8, %s32_s18), 0 }
  0x56   : > { %p51_p4 = por %p50_p10, %p49_p9  ;;  %s39_s27 = ssub.s32 %s11690_s22, %s13407_s18 }
  0x57   : > { %s8571_s8 = sshll.u32 %s11870_s6, 6  ;;  %p40_p7 = scmp.eq.s32.totalorder %s39_s27, 0 }
  0x58   : > { %s9615_s29 = sshll.u32 %s11690_s22, 10  ;;  %s246_s7 = scalar_lea.vmem [#allocation3], %s8571_s8 }
  0x59   : > { %s254_s9 = sshll.u32 %s246_s7, 4  ;;  %s11884_s13 = scalar_lea.hbm %s13376_s0, %s9615_s29  ;;  %s11886_s9 = int_to_ptr.vmem [resolvable:$true] %s254_s9 }
  0x5a   : > { %s11879_s10 = scalar_select %p40_p7, %s11682_s20, %s42_s14  }
  0x5b   : > { %p11890_p5 = pnand %p9847_p1, %p51_p4  ;;  %s8574_s28 = sshll.u32 %s11870_s6, 13 }
  0x5c   : > { %s9617_s17 = sshll.u32 %s11690_s22, 17  ;;  %s11896_s14 = scalar_lea.vmem [#allocation6], %s8574_s28 }
  0x5d   : > { %s275_s27 = sshll.u32 %s11896_s14, 4  ;;  %s243_s8 = scalar_lea.sflag [#allocation4], %s11870_s6  ;;  %s11927_s27 = int_to_ptr.vmem [resolvable:$true] %s275_s27 }
  0x5e   : > { %s11542_s29 = scalar_lea.hbm %s11884_s13, 1024  ;;  %p11544_p12 = pneg %p11890_p5 }
  0x5f   : > { %p11543_p11 = scmp.ne.s32.totalorder %s11884_s13, %s11542_s29  ;;  %s11547_s12 = scalar_lea.hbm %s13376_s0, 4096 }
  0x60   : > { %p11548_p2 = scmp.lt.u32.totalorder %s11884_s13, %s13376_s0  ;;  %p11549_p3 = scmp.lt.u32.totalorder %s11547_s12, %s11542_s29 }
  0x61   : > { %p11545_p13 = pnand %p11544_p12, %p11543_p11  ;;  %p11551_p9 = scmp.lt.u32.totalorder %s11542_s29, %s11884_s13 }
  0x62   : > { %p11550_p6 = por %p11549_p3, %p11548_p2 }
  0x63   : > { %p11546_p0 = pneg %p11545_p13 }
  0x64   : > { %p11552_p8 = por %p11551_p9, %p11550_p6 }
  0x66   : > { %p11553_p10 = pnand %p11552_p8, %p11546_p0 }
  0x68   : > { %11556 = shalt.err (!%p11553_p10)
}
  0x69   : > { %s11557_s6 = scalar_lea.vmem %s11886_s9, 1024  ;;  %s11701_s28 = smov [#allocation3]  }
  0x6a   : > { %p11558_p1 = scmp.ne.s32.totalorder %s11886_s9, %s11557_s6  ;;  %s11562_s7 = sshll.u32 %s11701_s28, 4  ;;  %s11563_s7 = int_to_ptr.vmem [resolvable:$false] %s11562_s7 }
  0x6b   : > { %s11564_s15 = scalar_lea.vmem %s11563_s7, 2048  ;;  %p11565_p11 = scmp.lt.s32.totalorder %s11886_s9, %s11563_s7 }
  0x6c   : > { %p11560_p4 = pnand %p11558_p1, %p11544_p12  ;;  %p11566_p13 = scmp.lt.s32.totalorder %s11564_s15, %s11557_s6 }
  0x6e   : > { %p11561_p7 = pneg %p11560_p4  ;;  %p11567_p2 = por %p11566_p13, %p11565_p11 }
  0x70   : > { %p11568_p3 = pnand %p11567_p2, %p11561_p7 }
  0x72   : > { %11571 = shalt.err (!%p11568_p3)
}
  0x73   : > { %9840 = dma.hbm_to_vmem [thread:$0]  (!%p11890_p5), %s11884_s13, 1024, %s11886_s9, %s243_s8  }
  0x74   : > { %s261_s16 = sand.u32 1, %s11694_s23   ;;  %s11935_s12 = scalar_lea.hbm %s13377_s1, %s9617_s17 }
  0x75   : > { %s11937_s6 = scalar_lea.sflag [#allocation7], %s261_s16  ;;  %s11572_s28 = scalar_lea.hbm %s11935_s12, 131072 }
  0x76   : > { %p11573_p0 = scmp.ne.s32.totalorder %s11935_s12, %s11572_s28  ;;  %s11577_s14 = scalar_lea.hbm %s13377_s1, 524288 }
  0x77   : > { %p11578_p8 = scmp.lt.u32.totalorder %s11935_s12, %s13377_s1  ;;  %p11579_p10 = scmp.lt.u32.totalorder %s11577_s14, %s11572_s28 }
  0x78   : > { %p11575_p6 = pnand %p11573_p0, %p11544_p12  ;;  %p11581_p4 = scmp.lt.u32.totalorder %s11572_s28, %s11935_s12 }
  0x79   : > { %p11580_p1 = por %p11579_p10, %p11578_p8 }
  0x7a   : > { %p11576_p9 = pneg %p11575_p6 }
  0x7b   : > { %p11582_p7 = por %p11581_p4, %p11580_p1 }
  0x7d   : > { %p11583_p11 = pnand %p11582_p7, %p11576_p9 }
  0x7f   : > { %11586 = shalt.err (!%p11583_p11)
}
  0x80   : > { %s11587_s17 = scalar_lea.vmem %s11927_s27, 131072  ;;  %s11702_s15 = smov [#allocation6]  }
  0x81   : > { %p11588_p13 = scmp.ne.s32.totalorder %s11927_s27, %s11587_s17  ;;  %s11592_s16 = sshll.u32 %s11702_s15, 4  ;;  %s11593_s16 = int_to_ptr.vmem [resolvable:$false] %s11592_s16 }
  0x82   : > { %s11594_s29 = scalar_lea.vmem %s11593_s16, 262144  ;;  %p11595_p0 = scmp.lt.s32.totalorder %s11927_s27, %s11593_s16 }
  0x83   : > { %p11590_p2 = pnand %p11588_p13, %p11544_p12  ;;  %p11596_p6 = scmp.lt.s32.totalorder %s11594_s29, %s11587_s17 }
  0x85   : > { %p11591_p3 = pneg %p11590_p2  ;;  %p11597_p8 = por %p11596_p6, %p11595_p0 }
  0x87   : > { %p11598_p10 = pnand %p11597_p8, %p11591_p3 }
  0x89   : > { %11601 = shalt.err (!%p11598_p10)
}
  0x8a   : > { %s13392_s11 = smov 8   ;;  %s13393_s28 = smov 128  }
  0x8b   : > { %9843 = dma.hbm_to_vmem [thread:$0]  (!%p11890_p5), %s11935_s12, 131072, %s11927_s27, %s11937_s6, %s13393_s28, %s13393_s28, %s13392_s11  }
  0x8c   : > { %p13394_p12 = scmp.ne.s32.totalorder %s13388_s26, 0 }
  0x8d   : > { %s289_s9 = sand.u32 (!%p13394_p12), 1, %s11678_s19   ;;  %p13395_p9 = scmp.ne.s32.totalorder (!%p13394_p12), %s13387_s25, 0 }
  0x8e   : > { %287 = sbr.rel (%p13394_p12) target bundleno = 1676 (0x68c), region = 40  ;;  %s8579_s13 = sshll.u32 (!%p13394_p12), %s289_s9, 6 }
  0x8f   : > { %s290_s14 = scalar_lea.sflag (!%p13394_p12), [#allocation4], %s289_s9  ;;  %s11969_s8 = scalar_lea.vmem (!%p13394_p12), [#allocation3], %s8579_s13 }
  0x95   : > { %11653 = dma.done.wait (%p13395_p9), %s290_s14, 1024  }
  0x96   : > { %11655 = vsyncadd (%p13395_p9), %s290_s14, 4294966272  ;;  %s298_s30 = sand.u32 1, %s11766_s24   ;;  %s8580_s7 = sshll.u32 %s289_s9, 13 }
  0x97   : > { %s299_s27 = scalar_lea.sflag [#allocation7], %s298_s30  ;;  %s11976_s12 = scalar_lea.vmem [#allocation6], %s8580_s7 }
  0x98   : > { %11657 = dma.done.wait (%p13395_p9), %s299_s27, 131072  }
  0x99   : > { %11659 = vsyncadd (%p13395_p9), %s299_s27, 4294836224  ;;  %p13396_p5 = scmp.eq.s32.totalorder %s11766_s24, 0 }
  0x9b   : > { %11661 = dma.done.wait (%p13396_p5), [#allocation7], 32   ;;  %p13397_p1 = pmov %p13396_p5 }
  0x9d   : > { %11663 = vsyncadd (%p13397_p1), [#allocation7], 4294967264  ;;  %p13398_p4 = pmov %p13397_p1 }
  0x9e   : > { %p13399_p7 = pmov %p13397_p1 }
  0x9f   : > { %11665 = dma.done.wait (%p13398_p4), [#allocation10], 4112  }
  0xa0   : > { %11667 = vsyncadd (%p13399_p7), [#allocation10], 4294963184  ;;  %p8584_p11 = scmp.ne.s32.totalorder %s11686_s21, 0 }
  0xa1   : > { %v11703_v0 = vmov (!%p8584_p11), 0.0  }
  0xa2   : > { %349 = sbr.rel (%p8584_p11) target bundleno = 169 (0xa9), region = 64  ;;  %350 = vst [vmem:[#allocation2] sm:$0xf] (!%p8584_p11), %v11703_v0 }
  0xa9 PF: > { %v9910_v1 = vld [vmem:[%s11976_s12 + $0x4] ss:$8 sps:$4 sm:$0xff]   ;;  %v9914_v3 = vld [vmem:[%s11976_s12] ss:$8 sps:$4 sm:$0xff]   ;;  %v9916_v5 = vld [vmem:[%s11976_s12 + $0x14] ss:$8 sps:$4 sm:$0xff]   ;;  %v1396_v39 = vlaneseq }
  0xaa   : > { %v9912_v2 = vld [vmem:[%s11976_s12 + $0x1004] ss:$8 sps:$4 sm:$0xff]   ;;  %6968 = vmatprep.subr.bf16.mxu1 %v9910_v1  ;;  %v9915_v4 = vld [vmem:[%s11976_s12 + $0x1000] ss:$8 sps:$4 sm:$0xff]   ;;  %v9918_v6 = vld [vmem:[%s11976_s12 + $0x1014] ss:$8 sps:$4 sm:$0xff]  }
  0xab   : > { %7624 = vmatprep.subr.bf16.mxu0 %v9912_v2  ;;  %6969 = vmatpush1.bf16.msra.mxu1 %v9914_v3  ;;  %v9920_v7 = vld [vmem:[%s11976_s12 + $0x10] ss:$8 sps:$4 sm:$0xff]   ;;  %v9922_v9 = vld [vmem:[%s11976_s12 + $0x24] ss:$8 sps:$4 sm:$0xff]   ;;  %v9926_v11 = vld [vmem:[%s11976_s12 + $0x20] ss:$8 sps:$4 sm:$0xff]  }
  0xac   : > { %7625 = vmatpush1.bf16.msra.mxu0 %v9915_v4  ;;  %6970 = vmatprep.subr.bf16.mxu1 %v9916_v5  ;;  %v9921_v8 = vld [vmem:[%s11976_s12 + $0x1010] ss:$8 sps:$4 sm:$0xff]   ;;  %v9924_v10 = vld [vmem:[%s11976_s12 + $0x1024] ss:$8 sps:$4 sm:$0xff]   ;;  %v9927_v12 = vld [vmem:[%s11976_s12 + $0x1020] ss:$8 sps:$4 sm:$0xff]  }
  0xad   : > { %7626 = vmatprep.subr.bf16.mxu0 %v9918_v6  ;;  %v9928_v13 = vld [vmem:[%s11976_s12 + $0x34] ss:$8 sps:$4 sm:$0xff]   ;;  %v9932_v15 = vld [vmem:[%s11976_s12 + $0x30] ss:$8 sps:$4 sm:$0xff]   ;;  %v9934_v17 = vld [vmem:[%s11976_s12 + $0x44] ss:$8 sps:$4 sm:$0xff]  }
  0xae   : > { %v9930_v14 = vld [vmem:[%s11976_s12 + $0x1034] ss:$8 sps:$4 sm:$0xff]   ;;  %v9933_v16 = vld [vmem:[%s11976_s12 + $0x1030] ss:$8 sps:$4 sm:$0xff]   ;;  %v9936_v18 = vld [vmem:[%s11976_s12 + $0x1044] ss:$8 sps:$4 sm:$0xff]  }
  0xaf   : > { %6971 = vmatpush1.bf16.msra.mxu1 %v9920_v7  ;;  %v9938_v19 = vld [vmem:[%s11976_s12 + $0x40] ss:$8 sps:$4 sm:$0xff]   ;;  %v9940_v21 = vld [vmem:[%s11976_s12 + $0x54] ss:$8 sps:$4 sm:$0xff]   ;;  %v9944_v23 = vld [vmem:[%s11976_s12 + $0x50] ss:$8 sps:$4 sm:$0xff]  }
  0xb0   : > { %7627 = vmatpush1.bf16.msra.mxu0 %v9921_v8  ;;  %6972 = vmatprep.subr.bf16.mxu1 %v9922_v9  ;;  %v9939_v20 = vld [vmem:[%s11976_s12 + $0x1040] ss:$8 sps:$4 sm:$0xff]   ;;  %v9942_v22 = vld [vmem:[%s11976_s12 + $0x1054] ss:$8 sps:$4 sm:$0xff]   ;;  %v9945_v24 = vld [vmem:[%s11976_s12 + $0x1050] ss:$8 sps:$4 sm:$0xff]  }
  0xb1   : > { %7628 = vmatprep.subr.bf16.mxu0 %v9924_v10  ;;  %v9946_v25 = vld [vmem:[%s11976_s12 + $0x64] ss:$8 sps:$4 sm:$0xff]   ;;  %v9950_v27 = vld [vmem:[%s11976_s12 + $0x60] ss:$8 sps:$4 sm:$0xff]   ;;  %v9952_v29 = vld [vmem:[%s11976_s12 + $0x74] ss:$8 sps:$4 sm:$0xff]  }
  0xb2   : > { %v9948_v26 = vld [vmem:[%s11976_s12 + $0x1064] ss:$8 sps:$4 sm:$0xff]   ;;  %v9951_v28 = vld [vmem:[%s11976_s12 + $0x1060] ss:$8 sps:$4 sm:$0xff]   ;;  %v9954_v30 = vld [vmem:[%s11976_s12 + $0x1074] ss:$8 sps:$4 sm:$0xff]  }
  0xb3   : > { %6973 = vmatpush1.bf16.msra.mxu1 %v9926_v11  ;;  %v9956_v31 = vld [vmem:[%s11976_s12 + $0x70] ss:$8 sps:$4 sm:$0xff]   ;;  %v9958_v33 = vld [vmem:[%s11976_s12 + $0x84] ss:$8 sps:$4 sm:$0xff]   ;;  %v9962_v35 = vld [vmem:[%s11976_s12 + $0x80] ss:$8 sps:$4 sm:$0xff]  }
  0xb4   : > { %7629 = vmatpush1.bf16.msra.mxu0 %v9927_v12  ;;  %6974 = vmatprep.subr.bf16.mxu1 %v9928_v13  ;;  %v9957_v32 = vld [vmem:[%s11976_s12 + $0x1070] ss:$8 sps:$4 sm:$0xff]   ;;  %v9960_v34 = vld [vmem:[%s11976_s12 + $0x1084] ss:$8 sps:$4 sm:$0xff]   ;;  %v9963_v36 = vld [vmem:[%s11976_s12 + $0x1080] ss:$8 sps:$4 sm:$0xff]  }
  0xb5   : > { %7630 = vmatprep.subr.bf16.mxu0 %v9930_v14  ;;  %v11704_v37 = vmov 1966171168   ;;  %v9964_v40 = vld [vmem:[%s11976_s12 + $0x94] ss:$8 sps:$4 sm:$0xff]   ;;  %v9968_v42 = vld [vmem:[%s11976_s12 + $0x90] ss:$8 sps:$4 sm:$0xff]  }
  0xb6   : > { %v1394_v38 = vunpack.c.l.s4 %v11704_v37  ;;  %v9966_v41 = vld [vmem:[%s11976_s12 + $0x1094] ss:$8 sps:$4 sm:$0xff]   ;;  %v12030_v44 = vshrl.u32 %v1396_v39, 7  ;;  %v9969_v45 = vld [vmem:[%s11976_s12 + $0x1090] ss:$8 sps:$4 sm:$0xff]   ;;  %v12043_v53 = vld [vmem:[%s11969_s8] sm:$0xff] }
  0xb7   : > { %6975 = vmatpush1.bf16.msra.mxu1 %v9932_v15  ;;  %v9970_v46 = vld [vmem:[%s11976_s12 + $0xa4] ss:$8 sps:$4 sm:$0xff]   ;;  %v9974_v48 = vld [vmem:[%s11976_s12 + $0xa0] ss:$8 sps:$4 sm:$0xff]   ;;  %v9976_v51 = vld [vmem:[%s11976_s12 + $0xb4] ss:$8 sps:$4 sm:$0xff]  }
  0xb8   : > { %7631 = vmatpush1.bf16.msra.mxu0 %v9933_v16  ;;  %6976 = vmatprep.subr.bf16.mxu1 %v9934_v17  ;;  %v1395_v43 = vunpack.c.0.s8 %v1394_v38  ;;  %v9972_v47 = vld [vmem:[%s11976_s12 + $0x10a4] ss:$8 sps:$4 sm:$0xff]   ;;  %v9975_v49 = vld [vmem:[%s11976_s12 + $0x10a0] ss:$8 sps:$4 sm:$0xff]   ;;  %v9978_v52 = vld [vmem:[%s11976_s12 + $0x10b4] ss:$8 sps:$4 sm:$0xff]  }
  0xb9   : > { %7632 = vmatprep.subr.bf16.mxu0 %v9936_v18  ;;  %v9980_v54 = vld [vmem:[%s11976_s12 + $0xb0] ss:$8 sps:$4 sm:$0xff]   ;;  %v12050_v57 = vld [vmem:[%s11969_s8 + $0x20] sm:$0xff]  ;;  %v9988_v2 = vld [vmem:[%s11976_s12 + $0xd4] ss:$8 sps:$4 sm:$0xff]   ;;  %p9609_p13 = scmp.ne.s32.totalorder %s11686_s21, 3 }
  0xba   : > { %v12038_v50 = vsub.s32 %v1395_v43, %v12030_v44  ;;  %v9981_v56 = vld [vmem:[%s11976_s12 + $0x10b0] ss:$8 sps:$4 sm:$0xff]   ;;  %v9982_v58 = vld [vmem:[%s11976_s12 + $0xc4] ss:$8 sps:$4 sm:$0xff]   ;;  %v9986_v0 = vld [vmem:[%s11976_s12 + $0xc0] ss:$8 sps:$4 sm:$0xff]  }
  0xbb   : > { %6977 = vmatpush1.bf16.msra.mxu1 %v9938_v19  ;;  %v9984_v59 = vld [vmem:[%s11976_s12 + $0x10c4] ss:$8 sps:$4 sm:$0xff]   ;;  %v9987_v1 = vld [vmem:[%s11976_s12 + $0x10c0] ss:$8 sps:$4 sm:$0xff]   ;;  %v9990_v3 = vld [vmem:[%s11976_s12 + $0x10d4] ss:$8 sps:$4 sm:$0xff]  }
  0xbc   : > { %7633 = vmatpush1.bf16.msra.mxu0 %v9939_v20  ;;  %6978 = vmatprep.subr.bf16.mxu1 %v9940_v21  ;;  %v1399_v55 = vrot.slane %v12043_v53, %v12038_v50  ;;  %v1595_v61 = vrot.slane %v12050_v57, %v12038_v50  ;;  %v9992_v5 = vld [vmem:[%s11976_s12 + $0xd0] ss:$8 sps:$4 sm:$0xff]   ;;  %v9994_v7 = vld [vmem:[%s11976_s12 + $0xe4] ss:$8 sps:$4 sm:$0xff]   ;;  %v9998_v9 = vld [vmem:[%s11976_s12 + $0xe0] ss:$8 sps:$4 sm:$0xff]  }
  0xbd   : > { %7634 = vmatprep.subr.bf16.mxu0 %v9942_v22  ;;  %v9993_v6 = vld [vmem:[%s11976_s12 + $0x10d0] ss:$8 sps:$4 sm:$0xff]   ;;  %v9996_v8 = vld [vmem:[%s11976_s12 + $0x10e4] ss:$8 sps:$4 sm:$0xff]   ;;  %v9999_v10 = vld [vmem:[%s11976_s12 + $0x10e0] ss:$8 sps:$4 sm:$0xff]  }
  0xbe   : > { %v1407_v60 = vcombine.high %v1399_v55, %v1399_v55  ;;  %v1603_v63 = vcombine.high %v1595_v61, %v1595_v61  ;;  %v10000_v11 = vld [vmem:[%s11976_s12 + $0xf4] ss:$8 sps:$4 sm:$0xff]   ;;  %v10004_v13 = vld [vmem:[%s11976_s12 + $0xf0] ss:$8 sps:$4 sm:$0xff]   ;;  %v10009_v15 = vld [vmem:[%s11976_s12 + $0x104] ss:$8 sps:$4 sm:$0xff]   ;;  %v12075_v17 = vrot.slane %v1399_v55, %v12038_v50  ;;  %v12078_v18 = vrot.slane %v1595_v61, %v12038_v50 }
  0xbf   : > { %6979 = vmatpush1.bf16.msra.mxu1 %v9944_v23  ;;  %v10002_v12 = vld [vmem:[%s11976_s12 + $0x10f4] ss:$8 sps:$4 sm:$0xff]   ;;  %v10005_v14 = vld [vmem:[%s11976_s12 + $0x10f0] ss:$8 sps:$4 sm:$0xff]   ;;  %v10013_v16 = vld [vmem:[%s11976_s12 + $0x1104] ss:$8 sps:$4 sm:$0xff]  }
  0xc0   : > { %7635 = vmatpush1.bf16.msra.mxu0 %v9945_v24  ;;  %6980 = vmatprep.subr.bf16.mxu1 %v9946_v25  ;;  %v1429_v62 = vrot.slane %v1407_v60, %v12038_v50  ;;  %v1625_v4 = vrot.slane %v1603_v63, %v12038_v50  ;;  %v10007_v19 = vld [vmem:[%s11976_s12 + $0x100] ss:$8 sps:$4 sm:$0xff]   ;;  %v10016_v21 = vld [vmem:[%s11976_s12 + $0x114] ss:$8 sps:$4 sm:$0xff]   ;;  %v10014_v25 = vld [vmem:[%s11976_s12 + $0x110] ss:$8 sps:$4 sm:$0xff]  }
  0xc1   : > { %7636 = vmatprep.subr.bf16.mxu0 %v9948_v26  ;;  %v10011_v20 = vld [vmem:[%s11976_s12 + $0x1100] ss:$8 sps:$4 sm:$0xff]   ;;  %v10019_v22 = vld [vmem:[%s11976_s12 + $0x1114] ss:$8 sps:$4 sm:$0xff]   ;;  %v10017_v26 = vld [vmem:[%s11976_s12 + $0x1110] ss:$8 sps:$4 sm:$0xff]  }
  0xc2   : > { %7000 = vmatprep.mubr.bf16.mxu1 %v1429_v62  ;;  %7656 = vmatprep.mubr.bf16.mxu0 %v1625_v4  ;;  %v1439_v23 = vcombine.high %v1429_v62, %v1429_v62  ;;  %v1635_v24 = vcombine.high %v1625_v4, %v1625_v4  ;;  %v10032_v37 = vld [vmem:[%s11976_s12 + $0x140] ss:$8 sps:$4 sm:$0xff]   ;;  %v10040_v39 = vld [vmem:[%s11976_s12 + $0x154] ss:$8 sps:$4 sm:$0xff]   ;;  %v10046_v43 = vld [vmem:[%s11976_s12 + $0x164] ss:$8 sps:$4 sm:$0xff]  }
  0xc3   : > { %6981 = vmatpush1.bf16.msra.mxu1 %v9950_v27  ;;  %v10022_v27 = vld [vmem:[%s11976_s12 + $0x124] ss:$8 sps:$4 sm:$0xff]   ;;  %v10035_v38 = vld [vmem:[%s11976_s12 + $0x1140] ss:$8 sps:$4 sm:$0xff]   ;;  %v10067_v60 = vld [vmem:[%s11976_s12 + $0x1194] ss:$8 sps:$4 sm:$0xff]  }
  0xc4   : > { %7637 = vmatpush1.bf16.msra.mxu0 %v9951_v28  ;;  %6982 = vmatprep.subr.bf16.mxu1 %v9952_v29  ;;  %v10025_v28 = vld [vmem:[%s11976_s12 + $0x1124] ss:$8 sps:$4 sm:$0xff]   ;;  %v10020_v29 = vld [vmem:[%s11976_s12 + $0x120] ss:$8 sps:$4 sm:$0xff]   ;;  %v10062_v61 = vld [vmem:[%s11976_s12 + $0x190] ss:$8 sps:$4 sm:$0xff]  }
  0xc5   : > { %7638 = vmatprep.subr.bf16.mxu0 %v9954_v30  ;;  %v10023_v30 = vld [vmem:[%s11976_s12 + $0x1120] ss:$8 sps:$4 sm:$0xff]   ;;  %v10061_v55 = vld [vmem:[%s11976_s12 + $0x1184] ss:$8 sps:$4 sm:$0xff]   ;;  %v10065_v62 = vld [vmem:[%s11976_s12 + $0x1190] ss:$8 sps:$4 sm:$0xff]  }
  0xc6   : > { %v10070_v63 = vld [vmem:[%s11976_s12 + $0x1a4] ss:$8 sps:$4 sm:$0xff]   ;;  %v10079_v4 = vld [vmem:[%s11976_s12 + $0x11b4] ss:$8 sps:$4 sm:$0xff]   ;;  %vm8439_vm0 = vcmask (!%p9609_p13), 25600  }
  0xc7   : > { %6983 = vmatpush1.bf16.msra.mxu1 %v9956_v31  ;;  %v10028_v31 = vld [vmem:[%s11976_s12 + $0x134] ss:$8 sps:$4 sm:$0xff]  }
  0xc8   : > { %7639 = vmatpush1.bf16.msra.mxu0 %v9957_v32  ;;  %6984 = vmatprep.subr.bf16.mxu1 %v9958_v33  ;;  %v10031_v32 = vld [vmem:[%s11976_s12 + $0x1134] ss:$8 sps:$4 sm:$0xff]   ;;  %v10026_v33 = vld [vmem:[%s11976_s12 + $0x130] ss:$8 sps:$4 sm:$0xff]  }
  0xc9   : > { %7640 = vmatprep.subr.bf16.mxu0 %v9960_v34  ;;  %v10029_v34 = vld [vmem:[%s11976_s12 + $0x1130] ss:$8 sps:$4 sm:$0xff]  }
  0xcb   : > { %6985 = vmatpush1.bf16.msra.mxu1 %v9962_v35  ;;  %v10034_v35 = vld [vmem:[%s11976_s12 + $0x144] ss:$8 sps:$4 sm:$0xff]  }
  0xcc   : > { %7641 = vmatpush1.bf16.msra.mxu0 %v9963_v36  ;;  %6986 = vmatprep.subr.bf16.mxu1 %v9964_v40  ;;  %v10037_v36 = vld [vmem:[%s11976_s12 + $0x1144] ss:$8 sps:$4 sm:$0xff]   ;;  %v10043_v40 = vld [vmem:[%s11976_s12 + $0x1154] ss:$8 sps:$4 sm:$0xff]  }
  0xcd   : > { %7642 = vmatprep.subr.bf16.mxu0 %v9966_v41  ;;  %v10038_v41 = vld [vmem:[%s11976_s12 + $0x150] ss:$8 sps:$4 sm:$0xff]  }
  0xcf   : > { %6987 = vmatpush1.bf16.msra.mxu1 %v9968_v42  ;;  %v10041_v42 = vld [vmem:[%s11976_s12 + $0x1150] ss:$8 sps:$4 sm:$0xff]  }
  0xd0   : > { %7643 = vmatpush1.bf16.msra.mxu0 %v9969_v45  ;;  %6988 = vmatprep.subr.bf16.mxu1 %v9970_v46  ;;  %v10049_v45 = vld [vmem:[%s11976_s12 + $0x1164] ss:$8 sps:$4 sm:$0xff]   ;;  %v10044_v46 = vld [vmem:[%s11976_s12 + $0x160] ss:$8 sps:$4 sm:$0xff]  }
  0xd1   : > { %7644 = vmatprep.subr.bf16.mxu0 %v9972_v47  ;;  %v10047_v47 = vld [vmem:[%s11976_s12 + $0x1160] ss:$8 sps:$4 sm:$0xff]  }
  0xd3   : > { %6989 = vmatpush1.bf16.msra.mxu1 %v9974_v48  ;;  %v10052_v48 = vld [vmem:[%s11976_s12 + $0x174] ss:$8 sps:$4 sm:$0xff]  }
  0xd4   : > { %7645 = vmatpush1.bf16.msra.mxu0 %v9975_v49  ;;  %6990 = vmatprep.subr.bf16.mxu1 %v9976_v51  ;;  %v10055_v49 = vld [vmem:[%s11976_s12 + $0x1174] ss:$8 sps:$4 sm:$0xff]   ;;  %v10050_v51 = vld [vmem:[%s11976_s12 + $0x170] ss:$8 sps:$4 sm:$0xff]  }
  0xd5   : > { %7646 = vmatprep.subr.bf16.mxu0 %v9978_v52  ;;  %v10053_v52 = vld [vmem:[%s11976_s12 + $0x1170] ss:$8 sps:$4 sm:$0xff]  }
  0xd7   : > { %6991 = vmatpush1.bf16.msra.mxu1 %v9980_v54  ;;  %v10058_v54 = vld [vmem:[%s11976_s12 + $0x184] ss:$8 sps:$4 sm:$0xff]  }
  0xd8   : > { %7647 = vmatpush1.bf16.msra.mxu0 %v9981_v56  ;;  %6992 = vmatprep.subr.bf16.mxu1 %v9982_v58  ;;  %v10056_v56 = vld [vmem:[%s11976_s12 + $0x180] ss:$8 sps:$4 sm:$0xff]  }
  0xd9   : > { %7648 = vmatprep.subr.bf16.mxu0 %v9984_v59  ;;  %v10059_v58 = vld [vmem:[%s11976_s12 + $0x1180] ss:$8 sps:$4 sm:$0xff]   ;;  %v10064_v59 = vld [vmem:[%s11976_s12 + $0x194] ss:$8 sps:$4 sm:$0xff]  }
  0xdb   : > { %6993 = vmatpush1.bf16.msra.mxu1 %v9986_v0  ;;  %v10073_v0 = vld [vmem:[%s11976_s12 + $0x11a4] ss:$8 sps:$4 sm:$0xff]  }
  0xdc   : > { %7649 = vmatpush1.bf16.msra.mxu0 %v9987_v1  ;;  %6994 = vmatprep.subr.bf16.mxu1 %v9988_v2  ;;  %v10068_v1 = vld [vmem:[%s11976_s12 + $0x1a0] ss:$8 sps:$4 sm:$0xff]  }
  0xdd   : > { %7650 = vmatprep.subr.bf16.mxu0 %v9990_v3  ;;  %v10071_v2 = vld [vmem:[%s11976_s12 + $0x11a0] ss:$8 sps:$4 sm:$0xff]   ;;  %v10076_v3 = vld [vmem:[%s11976_s12 + $0x1b4] ss:$8 sps:$4 sm:$0xff]  }
  0xdf   : > { %6995 = vmatpush1.bf16.msra.mxu1 %v9992_v5  ;;  %v10074_v5 = vld [vmem:[%s11976_s12 + $0x1b0] ss:$8 sps:$4 sm:$0xff]  }
  0xe0   : > { %7651 = vmatpush1.bf16.msra.mxu0 %v9993_v6  ;;  %6996 = vmatprep.subr.bf16.mxu1 %v9994_v7  ;;  %v10077_v6 = vld [vmem:[%s11976_s12 + $0x11b0] ss:$8 sps:$4 sm:$0xff]   ;;  %v10082_v7 = vld [vmem:[%s11976_s12 + $0x1c4] ss:$8 sps:$4 sm:$0xff]  }
  0xe1   : > { %7652 = vmatprep.subr.bf16.mxu0 %v9996_v8  ;;  %v10085_v8 = vld [vmem:[%s11976_s12 + $0x11c4] ss:$8 sps:$4 sm:$0xff]  }
  0xe3   : > { %6997 = vmatpush1.bf16.msra.mxu1 %v9998_v9  ;;  %v10080_v9 = vld [vmem:[%s11976_s12 + $0x1c0] ss:$8 sps:$4 sm:$0xff]  }
  0xe4   : > { %7653 = vmatpush1.bf16.msra.mxu0 %v9999_v10  ;;  %6998 = vmatprep.subr.bf16.mxu1 %v10000_v11  ;;  %v10083_v10 = vld [vmem:[%s11976_s12 + $0x11c0] ss:$8 sps:$4 sm:$0xff]   ;;  %v10088_v11 = vld [vmem:[%s11976_s12 + $0x1d4] ss:$8 sps:$4 sm:$0xff]  }
  0xe5   : > { %7654 = vmatprep.subr.bf16.mxu0 %v10002_v12  ;;  %v10091_v12 = vld [vmem:[%s11976_s12 + $0x11d4] ss:$8 sps:$4 sm:$0xff]  }
  0xe7   : > { %6999 = vmatpush1.bf16.msra.mxu1 %v10004_v13  ;;  %v10086_v13 = vld [vmem:[%s11976_s12 + $0x1d0] ss:$8 sps:$4 sm:$0xff]  }
  0xe8   : > { %7655 = vmatpush1.bf16.msra.mxu0 %v10005_v14  ;;  %7009 = vmatprep.subr.bf16.mxu1 %v10009_v15  ;;  %v10089_v14 = vld [vmem:[%s11976_s12 + $0x11d0] ss:$8 sps:$4 sm:$0xff]   ;;  %v10094_v15 = vld [vmem:[%s11976_s12 + $0x1e4] ss:$8 sps:$4 sm:$0xff]  }
  0xe9   : > { %7665 = vmatprep.subr.bf16.mxu0 %v10013_v16  ;;  %v10097_v16 = vld [vmem:[%s11976_s12 + $0x11e4] ss:$8 sps:$4 sm:$0xff]  }
  0xea   : > { %7001 = vmatmul.mubr.bf16.vlgmr.msra.gmra.mrb[0].mxu1 %v12075_v17 }
  0xeb   : > { %7657 = vmatmul.mubr.bf16.vlgmr.msra.gmra.mrb[0].mxu0 %v12078_v18  ;;  %7010 = vmatpush1.bf16.msra.mxu1 %v10007_v19  ;;  %v1392_v19 = vcombine.high %v12043_v53, %v12043_v53  ;;  %v10098_v53 = vld [vmem:[%s11976_s12 + $0x1f0] ss:$8 sps:$4 sm:$0xff]  }
  0xec   : > { %7666 = vmatpush1.bf16.msra.mxu0 %v10011_v20  ;;  %7011 = vmatprep.subr.bf16.mxu1 %v10016_v21  ;;  %v1588_v20 = vcombine.high %v12050_v57, %v12050_v57  ;;  %v10092_v21 = vld [vmem:[%s11976_s12 + $0x1e0] ss:$8 sps:$4 sm:$0xff]   ;;  %v10101_v57 = vld [vmem:[%s11976_s12 + $0x11f0] ss:$8 sps:$4 sm:$0xff]  }
  0xed   : > { %7667 = vmatprep.subr.bf16.mxu0 %v10019_v22  ;;  %7041 = vmatprep.mubr.bf16.mxu1 %v1439_v23  ;;  %v10095_v22 = vld [vmem:[%s11976_s12 + $0x11e0] ss:$8 sps:$4 sm:$0xff]   ;;  %v10100_v23 = vld [vmem:[%s11976_s12 + $0x1f4] ss:$8 sps:$4 sm:$0xff]  }
  0xee   : > { %7697 = vmatprep.mubr.bf16.mxu0 %v1635_v24  ;;  %v10103_v24 = vld [vmem:[%s11976_s12 + $0x11f4] ss:$8 sps:$4 sm:$0xff]  }
  0xef   : > { %7012 = vmatpush1.bf16.msra.mxu1 %v10014_v25  ;;  %v12147_v25 = vrot.slane %v1392_v19, %v12038_v50  ;;  %v10170_v19 = vld [vmem:[%s11976_s12 + $0x2b0] ss:$8 sps:$4 sm:$0xff]  }
  0xf0   : > { %7668 = vmatpush1.bf16.msra.mxu0 %v10017_v26  ;;  %7013 = vmatprep.subr.bf16.mxu1 %v10022_v27  ;;  %v12150_v26 = vrot.slane %v1588_v20, %v12038_v50  ;;  %v10106_v27 = vld [vmem:[%s11976_s12 + $0x204] ss:$8 sps:$4 sm:$0xff]   ;;  %v10173_v20 = vld [vmem:[%s11976_s12 + $0x12b0] ss:$8 sps:$4 sm:$0xff]  }
  0xf1   : > { %7669 = vmatprep.subr.bf16.mxu0 %v10025_v28  ;;  %v10109_v28 = vld [vmem:[%s11976_s12 + $0x1204] ss:$8 sps:$4 sm:$0xff]  }
  0xf3   : > { %7014 = vmatpush1.bf16.msra.mxu1 %v10020_v29  ;;  %v1408_v29 = vcombine.high %v12147_v25, %v12147_v25 }
  0xf4   : > { %7670 = vmatpush1.bf16.msra.mxu0 %v10023_v30  ;;  %7015 = vmatprep.subr.bf16.mxu1 %v10028_v31  ;;  %v1604_v30 = vcombine.high %v12150_v26, %v12150_v26  ;;  %v1437_v31 = vcombine.high %v12075_v17, %v12075_v17 }
  0xf5   : > { %7671 = vmatprep.subr.bf16.mxu0 %v10031_v32  ;;  %v1633_v32 = vcombine.high %v12078_v18, %v12078_v18  ;;  %v10110_v18 = vld [vmem:[%s11976_s12 + $0x210] ss:$8 sps:$4 sm:$0xff]  }
  0xf6   : > { %v12172_v17 = vrot.slane %v1604_v30, %v12038_v50  ;;  %v10193_v30 = vld [vmem:[%s11976_s12 + $0x12e4] ss:$8 sps:$4 sm:$0xff]  }
  0xf7   : > { %7016 = vmatpush1.bf16.msra.mxu1 %v10026_v33  ;;  %v10104_v33 = vld [vmem:[%s11976_s12 + $0x200] ss:$8 sps:$4 sm:$0xff]  }
  0xf8   : > { %7672 = vmatpush1.bf16.msra.mxu0 %v10029_v34  ;;  %7017 = vmatprep.subr.bf16.mxu1 %v10034_v35  ;;  %v10107_v34 = vld [vmem:[%s11976_s12 + $0x1200] ss:$8 sps:$4 sm:$0xff]   ;;  %v10112_v35 = vld [vmem:[%s11976_s12 + $0x214] ss:$8 sps:$4 sm:$0xff]  }
  0xf9   : > { %7673 = vmatprep.subr.bf16.mxu0 %v10037_v36  ;;  %v10115_v36 = vld [vmem:[%s11976_s12 + $0x1214] ss:$8 sps:$4 sm:$0xff]  }
  0xfb   : > { %7018 = vmatpush1.bf16.msra.mxu1 %v10032_v37  ;;  %v12169_v37 = vrot.slane %v1408_v29, %v12038_v50  ;;  %v10190_v29 = vld [vmem:[%s11976_s12 + $0x2e4] ss:$8 sps:$4 sm:$0xff]  }
  0xfc   : > { %7674 = vmatpush1.bf16.msra.mxu0 %v10035_v38  ;;  %7019 = vmatprep.subr.bf16.mxu1 %v10040_v39  ;;  %v10113_v38 = vld [vmem:[%s11976_s12 + $0x1210] ss:$8 sps:$4 sm:$0xff]   ;;  %v10118_v39 = vld [vmem:[%s11976_s12 + $0x224] ss:$8 sps:$4 sm:$0xff]  }
  0xfd   : > { %7675 = vmatprep.subr.bf16.mxu0 %v10043_v40  ;;  %v10121_v40 = vld [vmem:[%s11976_s12 + $0x1224] ss:$8 sps:$4 sm:$0xff]  }
  0xff   : > { %7020 = vmatpush1.bf16.msra.mxu1 %v10038_v41  ;;  %v10116_v41 = vld [vmem:[%s11976_s12 + $0x220] ss:$8 sps:$4 sm:$0xff]  }
 0x100   : > { %7676 = vmatpush1.bf16.msra.mxu0 %v10041_v42  ;;  %7021 = vmatprep.subr.bf16.mxu1 %v10046_v43  ;;  %v10119_v42 = vld [vmem:[%s11976_s12 + $0x1220] ss:$8 sps:$4 sm:$0xff]   ;;  %v10124_v43 = vld [vmem:[%s11976_s12 + $0x234] ss:$8 sps:$4 sm:$0xff]  }
 0x101   : > { %7677 = vmatprep.subr.bf16.mxu0 %v10049_v45  ;;  %v10127_v45 = vld [vmem:[%s11976_s12 + $0x1234] ss:$8 sps:$4 sm:$0xff]  }
 0x103   : > { %7022 = vmatpush1.bf16.msra.mxu1 %v10044_v46  ;;  %v10122_v46 = vld [vmem:[%s11976_s12 + $0x230] ss:$8 sps:$4 sm:$0xff]  }
 0x104   : > { %7678 = vmatpush1.bf16.msra.mxu0 %v10047_v47  ;;  %7023 = vmatprep.subr.bf16.mxu1 %v10052_v48  ;;  %v10125_v47 = vld [vmem:[%s11976_s12 + $0x1230] ss:$8 sps:$4 sm:$0xff]   ;;  %v10130_v48 = vld [vmem:[%s11976_s12 + $0x244] ss:$8 sps:$4 sm:$0xff]  }
 0x105   : > { %7679 = vmatprep.subr.bf16.mxu0 %v10055_v49  ;;  %v10133_v49 = vld [vmem:[%s11976_s12 + $0x1244] ss:$8 sps:$4 sm:$0xff]  }
 0x107   : > { %7024 = vmatpush1.bf16.msra.mxu1 %v10050_v51  ;;  %v10128_v51 = vld [vmem:[%s11976_s12 + $0x240] ss:$8 sps:$4 sm:$0xff]  }
 0x108   : > { %7680 = vmatpush1.bf16.msra.mxu0 %v10053_v52  ;;  %7025 = vmatprep.subr.bf16.mxu1 %v10058_v54  ;;  %v10131_v52 = vld [vmem:[%s11976_s12 + $0x1240] ss:$8 sps:$4 sm:$0xff]   ;;  %v10136_v54 = vld [vmem:[%s11976_s12 + $0x254] ss:$8 sps:$4 sm:$0xff]  }
 0x109   : > { %7681 = vmatprep.subr.bf16.mxu0 %v10061_v55  ;;  %v10139_v55 = vld [vmem:[%s11976_s12 + $0x1254] ss:$8 sps:$4 sm:$0xff]  }
 0x10b   : > { %7026 = vmatpush1.bf16.msra.mxu1 %v10056_v56  ;;  %v10134_v56 = vld [vmem:[%s11976_s12 + $0x250] ss:$8 sps:$4 sm:$0xff]  }
 0x10c   : > { %7682 = vmatpush1.bf16.msra.mxu0 %v10059_v58  ;;  %7027 = vmatprep.subr.bf16.mxu1 %v10064_v59  ;;  %v10137_v58 = vld [vmem:[%s11976_s12 + $0x1250] ss:$8 sps:$4 sm:$0xff]   ;;  %v10142_v59 = vld [vmem:[%s11976_s12 + $0x264] ss:$8 sps:$4 sm:$0xff]  }
 0x10d   : > { %7683 = vmatprep.subr.bf16.mxu0 %v10067_v60  ;;  %v10145_v60 = vld [vmem:[%s11976_s12 + $0x1264] ss:$8 sps:$4 sm:$0xff]  }
 0x10f   : > { %7028 = vmatpush1.bf16.msra.mxu1 %v10062_v61  ;;  %v10140_v61 = vld [vmem:[%s11976_s12 + $0x260] ss:$8 sps:$4 sm:$0xff]  }
 0x110   : > { %7684 = vmatpush1.bf16.msra.mxu0 %v10065_v62  ;;  %7029 = vmatprep.subr.bf16.mxu1 %v10070_v63  ;;  %v10143_v62 = vld [vmem:[%s11976_s12 + $0x1260] ss:$8 sps:$4 sm:$0xff]   ;;  %v10148_v63 = vld [vmem:[%s11976_s12 + $0x274] ss:$8 sps:$4 sm:$0xff]  }
 0x111   : > { %7685 = vmatprep.subr.bf16.mxu0 %v10073_v0  ;;  %v10151_v0 = vld [vmem:[%s11976_s12 + $0x1274] ss:$8 sps:$4 sm:$0xff]  }
 0x113   : > { %7030 = vmatpush1.bf16.msra.mxu1 %v10068_v1  ;;  %v10146_v1 = vld [vmem:[%s11976_s12 + $0x270] ss:$8 sps:$4 sm:$0xff]  }
 0x114   : > { %7686 = vmatpush1.bf16.msra.mxu0 %v10071_v2  ;;  %7031 = vmatprep.subr.bf16.mxu1 %v10076_v3  ;;  %v10149_v2 = vld [vmem:[%s11976_s12 + $0x1270] ss:$8 sps:$4 sm:$0xff]   ;;  %v10154_v3 = vld [vmem:[%s11976_s12 + $0x284] ss:$8 sps:$4 sm:$0xff]  }
 0x115   : > { %7687 = vmatprep.subr.bf16.mxu0 %v10079_v4  ;;  %v10157_v4 = vld [vmem:[%s11976_s12 + $0x1284] ss:$8 sps:$4 sm:$0xff]  }
 0x117   : > { %7032 = vmatpush1.bf16.msra.mxu1 %v10074_v5  ;;  %v10152_v5 = vld [vmem:[%s11976_s12 + $0x280] ss:$8 sps:$4 sm:$0xff]  }
 0x118   : > { %7688 = vmatpush1.bf16.msra.mxu0 %v10077_v6  ;;  %7033 = vmatprep.subr.bf16.mxu1 %v10082_v7  ;;  %v10155_v6 = vld [vmem:[%s11976_s12 + $0x1280] ss:$8 sps:$4 sm:$0xff]   ;;  %v10160_v7 = vld [vmem:[%s11976_s12 + $0x294] ss:$8 sps:$4 sm:$0xff]  }
 0x119   : > { %7689 = vmatprep.subr.bf16.mxu0 %v10085_v8  ;;  %v10163_v8 = vld [vmem:[%s11976_s12 + $0x1294] ss:$8 sps:$4 sm:$0xff]  }
 0x11b   : > { %7034 = vmatpush1.bf16.msra.mxu1 %v10080_v9  ;;  %v10158_v9 = vld [vmem:[%s11976_s12 + $0x290] ss:$8 sps:$4 sm:$0xff]  }
 0x11c   : > { %7690 = vmatpush1.bf16.msra.mxu0 %v10083_v10  ;;  %7035 = vmatprep.subr.bf16.mxu1 %v10088_v11  ;;  %v10161_v10 = vld [vmem:[%s11976_s12 + $0x1290] ss:$8 sps:$4 sm:$0xff]   ;;  %v10166_v11 = vld [vmem:[%s11976_s12 + $0x2a4] ss:$8 sps:$4 sm:$0xff]  }
 0x11d   : > { %7691 = vmatprep.subr.bf16.mxu0 %v10091_v12  ;;  %v10169_v12 = vld [vmem:[%s11976_s12 + $0x12a4] ss:$8 sps:$4 sm:$0xff]  }
 0x11f   : > { %7036 = vmatpush1.bf16.msra.mxu1 %v10086_v13  ;;  %v10164_v13 = vld [vmem:[%s11976_s12 + $0x2a0] ss:$8 sps:$4 sm:$0xff]  }
 0x120   : > { %7692 = vmatpush1.bf16.msra.mxu0 %v10089_v14  ;;  %7037 = vmatprep.subr.bf16.mxu1 %v10094_v15  ;;  %v10167_v14 = vld [vmem:[%s11976_s12 + $0x12a0] ss:$8 sps:$4 sm:$0xff]   ;;  %v10172_v15 = vld [vmem:[%s11976_s12 + $0x2b4] ss:$8 sps:$4 sm:$0xff]  }
 0x121   : > { %7693 = vmatprep.subr.bf16.mxu0 %v10097_v16  ;;  %v10175_v16 = vld [vmem:[%s11976_s12 + $0x12b4] ss:$8 sps:$4 sm:$0xff]  }
 0x123   : > { %7038 = vmatpush1.bf16.msra.mxu1 %v10092_v21  ;;  %v10178_v21 = vld [vmem:[%s11976_s12 + $0x2c4] ss:$8 sps:$4 sm:$0xff]  }
 0x124   : > { %7694 = vmatpush1.bf16.msra.mxu0 %v10095_v22  ;;  %7039 = vmatprep.subr.bf16.mxu1 %v10100_v23  ;;  %v10181_v22 = vld [vmem:[%s11976_s12 + $0x12c4] ss:$8 sps:$4 sm:$0xff]   ;;  %v10176_v23 = vld [vmem:[%s11976_s12 + $0x2c0] ss:$8 sps:$4 sm:$0xff]  }
 0x125   : > { %7695 = vmatprep.subr.bf16.mxu0 %v10103_v24  ;;  %v10179_v24 = vld [vmem:[%s11976_s12 + $0x12c0] ss:$8 sps:$4 sm:$0xff]  }
 0x127   : > { %7040 = vmatpush1.bf16.msra.mxu1 %v10098_v53  ;;  %v10184_v53 = vld [vmem:[%s11976_s12 + $0x2d4] ss:$8 sps:$4 sm:$0xff]  }
 0x128   : > { %7696 = vmatpush1.bf16.msra.mxu0 %v10101_v57  ;;  %7050 = vmatprep.subr.bf16.mxu1 %v10106_v27  ;;  %v10187_v57 = vld [vmem:[%s11976_s12 + $0x12d4] ss:$8 sps:$4 sm:$0xff]   ;;  %v10182_v27 = vld [vmem:[%s11976_s12 + $0x2d0] ss:$8 sps:$4 sm:$0xff]  }
 0x129   : > { %7706 = vmatprep.subr.bf16.mxu0 %v10109_v28  ;;  %v10185_v28 = vld [vmem:[%s11976_s12 + $0x12d0] ss:$8 sps:$4 sm:$0xff]  }
 0x12a   : > { %7042 = vmatmul.mubr.bf16.vlgmr.msra.gmra.mrb[0].mxu1 %v1437_v31  ;;  %v10188_v31 = vld [vmem:[%s11976_s12 + $0x2e0] ss:$8 sps:$4 sm:$0xff]  }
 0x12b   : > { %7698 = vmatmul.mubr.bf16.vlgmr.msra.gmra.mrb[0].mxu0 %v1633_v32  ;;  %7051 = vmatpush1.bf16.msra.mxu1 %v10104_v33  ;;  %v10191_v32 = vld [vmem:[%s11976_s12 + $0x12e0] ss:$8 sps:$4 sm:$0xff]   ;;  %v10196_v33 = vld [vmem:[%s11976_s12 + $0x2f4] ss:$8 sps:$4 sm:$0xff]  }
 0x12c   : > { %7707 = vmatpush1.bf16.msra.mxu0 %v10107_v34  ;;  %7052 = vmatprep.subr.bf16.mxu1 %v10112_v35  ;;  %v10199_v34 = vld [vmem:[%s11976_s12 + $0x12f4] ss:$8 sps:$4 sm:$0xff]   ;;  %v10194_v35 = vld [vmem:[%s11976_s12 + $0x2f0] ss:$8 sps:$4 sm:$0xff]  }
 0x12d   : > { %7708 = vmatprep.subr.bf16.mxu0 %v10115_v36  ;;  %7082 = vmatprep.mubr.bf16.mxu1 %v12169_v37  ;;  %v10197_v36 = vld [vmem:[%s11976_s12 + $0x12f0] ss:$8 sps:$4 sm:$0xff]  }
 0x12e   : > { %7738 = vmatprep.mubr.bf16.mxu0 %v12172_v17 }
 0x12f   : > { %7053 = vmatpush1.bf16.msra.mxu1 %v10110_v18  ;;  %v10202_v18 = vld [vmem:[%s11976_s12 + $0x304] ss:$8 sps:$4 sm:$0xff]  }
 0x130   : > { %7709 = vmatpush1.bf16.msra.mxu0 %v10113_v38  ;;  %7054 = vmatprep.subr.bf16.mxu1 %v10118_v39  ;;  %v10205_v38 = vld [vmem:[%s11976_s12 + $0x1304] ss:$8 sps:$4 sm:$0xff]   ;;  %v12238_v39 = vrot.slane %v12147_v25, %v12038_v50  ;;  %v1440_v25 = vcombine.high %v12169_v37, %v12169_v37 }
 0x131   : > { %7710 = vmatprep.subr.bf16.mxu0 %v10121_v40  ;;  %v12242_v40 = vrot.slane %v12150_v26, %v12038_v50  ;;  %v10206_v26 = vld [vmem:[%s11976_s12 + $0x310] ss:$8 sps:$4 sm:$0xff]   ;;  %v10214_v37 = vld [vmem:[%s11976_s12 + $0x324] ss:$8 sps:$4 sm:$0xff]  }
 0x133   : > { %7055 = vmatpush1.bf16.msra.mxu1 %v10116_v41  ;;  %v10200_v41 = vld [vmem:[%s11976_s12 + $0x300] ss:$8 sps:$4 sm:$0xff]  }
 0x134   : > { %7711 = vmatpush1.bf16.msra.mxu0 %v10119_v42  ;;  %7056 = vmatprep.subr.bf16.mxu1 %v10124_v43  ;;  %v10203_v42 = vld [vmem:[%s11976_s12 + $0x1300] ss:$8 sps:$4 sm:$0xff]   ;;  %v10208_v43 = vld [vmem:[%s11976_s12 + $0x314] ss:$8 sps:$4 sm:$0xff]  }
 0x135   : > { %7712 = vmatprep.subr.bf16.mxu0 %v10127_v45  ;;  %v10211_v45 = vld [vmem:[%s11976_s12 + $0x1314] ss:$8 sps:$4 sm:$0xff]  }
 0x137   : > { %7057 = vmatpush1.bf16.msra.mxu1 %v10122_v46  ;;  %v1636_v46 = vcombine.high %v12172_v17, %v12172_v17  ;;  %v10212_v17 = vld [vmem:[%s11976_s12 + $0x320] ss:$8 sps:$4 sm:$0xff]  }
 0x138   : > { %7713 = vmatpush1.bf16.msra.mxu0 %v10125_v47  ;;  %7058 = vmatprep.subr.bf16.mxu1 %v10130_v48  ;;  %v10209_v47 = vld [vmem:[%s11976_s12 + $0x1310] ss:$8 sps:$4 sm:$0xff]   ;;  %v10217_v48 = vld [vmem:[%s11976_s12 + $0x1324] ss:$8 sps:$4 sm:$0xff]  }
 0x139   : > { %7714 = vmatprep.subr.bf16.mxu0 %v10133_v49  ;;  %v10215_v49 = vld [vmem:[%s11976_s12 + $0x1320] ss:$8 sps:$4 sm:$0xff]  }
 0x13b   : > { %7059 = vmatpush1.bf16.msra.mxu1 %v10128_v51  ;;  %v10220_v51 = vld [vmem:[%s11976_s12 + $0x334] ss:$8 sps:$4 sm:$0xff]  }
 0x13c   : > { %7715 = vmatpush1.bf16.msra.mxu0 %v10131_v52  ;;  %7060 = vmatprep.subr.bf16.mxu1 %v10136_v54  ;;  %v10223_v52 = vld [vmem:[%s11976_s12 + $0x1334] ss:$8 sps:$4 sm:$0xff]   ;;  %v10218_v54 = vld [vmem:[%s11976_s12 + $0x330] ss:$8 sps:$4 sm:$0xff]  }
 0x13d   : > { %7716 = vmatprep.subr.bf16.mxu0 %v10139_v55  ;;  %v10221_v55 = vld [vmem:[%s11976_s12 + $0x1330] ss:$8 sps:$4 sm:$0xff]  }
 0x13f   : > { %7061 = vmatpush1.bf16.msra.mxu1 %v10134_v56  ;;  %v10226_v56 = vld [vmem:[%s11976_s12 + $0x344] ss:$8 sps:$4 sm:$0xff]  }
 0x140   : > { %7717 = vmatpush1.bf16.msra.mxu0 %v10137_v58  ;;  %7062 = vmatprep.subr.bf16.mxu1 %v10142_v59  ;;  %v10229_v58 = vld [vmem:[%s11976_s12 + $0x1344] ss:$8 sps:$4 sm:$0xff]   ;;  %v10224_v59 = vld [vmem:[%s11976_s12 + $0x340] ss:$8 sps:$4 sm:$0xff]  }
 0x141   : > { %7718 = vmatprep.subr.bf16.mxu0 %v10145_v60  ;;  %v10227_v60 = vld [vmem:[%s11976_s12 + $0x1340] ss:$8 sps:$4 sm:$0xff]  }
 0x143   : > { %7063 = vmatpush1.bf16.msra.mxu1 %v10140_v61  ;;  %v10232_v61 = vld [vmem:[%s11976_s12 + $0x354] ss:$8 sps:$4 sm:$0xff]  }
 0x144   : > { %7719 = vmatpush1.bf16.msra.mxu0 %v10143_v62  ;;  %7064 = vmatprep.subr.bf16.mxu1 %v10148_v63  ;;  %v10235_v62 = vld [vmem:[%s11976_s12 + $0x1354] ss:$8 sps:$4 sm:$0xff]   ;;  %v10230_v63 = vld [vmem:[%s11976_s12 + $0x350] ss:$8 sps:$4 sm:$0xff]  }
 0x145   : > { %7720 = vmatprep.subr.bf16.mxu0 %v10151_v0  ;;  %v10233_v0 = vld [vmem:[%s11976_s12 + $0x1350] ss:$8 sps:$4 sm:$0xff]  }
 0x147   : > { %7065 = vmatpush1.bf16.msra.mxu1 %v10146_v1  ;;  %v10238_v1 = vld [vmem:[%s11976_s12 + $0x364] ss:$8 sps:$4 sm:$0xff]  }
 0x148   : > { %7721 = vmatpush1.bf16.msra.mxu0 %v10149_v2  ;;  %7066 = vmatprep.subr.bf16.mxu1 %v10154_v3  ;;  %v10241_v2 = vld [vmem:[%s11976_s12 + $0x1364] ss:$8 sps:$4 sm:$0xff]   ;;  %v10236_v3 = vld [vmem:[%s11976_s12 + $0x360] ss:$8 sps:$4 sm:$0xff]  }
 0x149   : > { %7722 = vmatprep.subr.bf16.mxu0 %v10157_v4  ;;  %v10239_v4 = vld [vmem:[%s11976_s12 + $0x1360] ss:$8 sps:$4 sm:$0xff]  }
 0x14b   : > { %7067 = vmatpush1.bf16.msra.mxu1 %v10152_v5  ;;  %v10244_v5 = vld [vmem:[%s11976_s12 + $0x374] ss:$8 sps:$4 sm:$0xff]  }
 0x14c   : > { %7723 = vmatpush1.bf16.msra.mxu0 %v10155_v6  ;;  %7068 = vmatprep.subr.bf16.mxu1 %v10160_v7  ;;  %v10247_v6 = vld [vmem:[%s11976_s12 + $0x1374] ss:$8 sps:$4 sm:$0xff]   ;;  %v10242_v7 = vld [vmem:[%s11976_s12 + $0x370] ss:$8 sps:$4 sm:$0xff]  }
 0x14d   : > { %7724 = vmatprep.subr.bf16.mxu0 %v10163_v8  ;;  %v10245_v8 = vld [vmem:[%s11976_s12 + $0x1370] ss:$8 sps:$4 sm:$0xff]  }
 0x14f   : > { %7069 = vmatpush1.bf16.msra.mxu1 %v10158_v9  ;;  %v10250_v9 = vld [vmem:[%s11976_s12 + $0x384] ss:$8 sps:$4 sm:$0xff]  }
 0x150   : > { %7725 = vmatpush1.bf16.msra.mxu0 %v10161_v10  ;;  %7070 = vmatprep.subr.bf16.mxu1 %v10166_v11  ;;  %v10253_v10 = vld [vmem:[%s11976_s12 + $0x1384] ss:$8 sps:$4 sm:$0xff]   ;;  %v10248_v11 = vld [vmem:[%s11976_s12 + $0x380] ss:$8 sps:$4 sm:$0xff]  }
 0x151   : > { %7726 = vmatprep.subr.bf16.mxu0 %v10169_v12  ;;  %v10251_v12 = vld [vmem:[%s11976_s12 + $0x1380] ss:$8 sps:$4 sm:$0xff]  }
 0x153   : > { %7071 = vmatpush1.bf16.msra.mxu1 %v10164_v13  ;;  %v10256_v13 = vld [vmem:[%s11976_s12 + $0x394] ss:$8 sps:$4 sm:$0xff]  }
 0x154   : > { %7727 = vmatpush1.bf16.msra.mxu0 %v10167_v14  ;;  %7072 = vmatprep.subr.bf16.mxu1 %v10172_v15  ;;  %v10259_v14 = vld [vmem:[%s11976_s12 + $0x1394] ss:$8 sps:$4 sm:$0xff]   ;;  %v10254_v15 = vld [vmem:[%s11976_s12 + $0x390] ss:$8 sps:$4 sm:$0xff]  }
 0x155   : > { %7728 = vmatprep.subr.bf16.mxu0 %v10175_v16  ;;  %v10257_v16 = vld [vmem:[%s11976_s12 + $0x1390] ss:$8 sps:$4 sm:$0xff]  }
 0x157   : > { %7073 = vmatpush1.bf16.msra.mxu1 %v10170_v19  ;;  %v10262_v19 = vld [vmem:[%s11976_s12 + $0x3a4] ss:$8 sps:$4 sm:$0xff]  }
 0x158   : > { %7729 = vmatpush1.bf16.msra.mxu0 %v10173_v20  ;;  %7074 = vmatprep.subr.bf16.mxu1 %v10178_v21  ;;  %v10265_v20 = vld [vmem:[%s11976_s12 + $0x13a4] ss:$8 sps:$4 sm:$0xff]   ;;  %v10260_v21 = vld [vmem:[%s11976_s12 + $0x3a0] ss:$8 sps:$4 sm:$0xff]  }
 0x159   : > { %7730 = vmatprep.subr.bf16.mxu0 %v10181_v22  ;;  %v10263_v22 = vld [vmem:[%s11976_s12 + $0x13a0] ss:$8 sps:$4 sm:$0xff]  }
 0x15b   : > { %7075 = vmatpush1.bf16.msra.mxu1 %v10176_v23  ;;  %v10268_v23 = vld [vmem:[%s11976_s12 + $0x3b4] ss:$8 sps:$4 sm:$0xff]  }
 0x15c   : > { %7731 = vmatpush1.bf16.msra.mxu0 %v10179_v24  ;;  %7076 = vmatprep.subr.bf16.mxu1 %v10184_v53  ;;  %v10271_v24 = vld [vmem:[%s11976_s12 + $0x13b4] ss:$8 sps:$4 sm:$0xff]   ;;  %v10266_v53 = vld [vmem:[%s11976_s12 + $0x3b0] ss:$8 sps:$4 sm:$0xff]  }
 0x15d   : > { %7732 = vmatprep.subr.bf16.mxu0 %v10187_v57  ;;  %v10269_v57 = vld [vmem:[%s11976_s12 + $0x13b0] ss:$8 sps:$4 sm:$0xff]  }
 0x15f   : > { %7077 = vmatpush1.bf16.msra.mxu1 %v10182_v27  ;;  %v10274_v27 = vld [vmem:[%s11976_s12 + $0x3c4] ss:$8 sps:$4 sm:$0xff]  }
 0x160   : > { %7733 = vmatpush1.bf16.msra.mxu0 %v10185_v28  ;;  %7078 = vmatprep.subr.bf16.mxu1 %v10190_v29  ;;  %v10277_v28 = vld [vmem:[%s11976_s12 + $0x13c4] ss:$8 sps:$4 sm:$0xff]   ;;  %v10272_v29 = vld [vmem:[%s11976_s12 + $0x3c0] ss:$8 sps:$4 sm:$0xff]  }
 0x161   : > { %7734 = vmatprep.subr.bf16.mxu0 %v10193_v30  ;;  %v10275_v30 = vld [vmem:[%s11976_s12 + $0x13c0] ss:$8 sps:$4 sm:$0xff]  }
 0x163   : > { %7079 = vmatpush1.bf16.msra.mxu1 %v10188_v31  ;;  %v10280_v31 = vld [vmem:[%s11976_s12 + $0x3d4] ss:$8 sps:$4 sm:$0xff]  }
 0x164   : > { %7735 = vmatpush1.bf16.msra.mxu0 %v10191_v32  ;;  %7080 = vmatprep.subr.bf16.mxu1 %v10196_v33  ;;  %v10283_v32 = vld [vmem:[%s11976_s12 + $0x13d4] ss:$8 sps:$4 sm:$0xff]   ;;  %v10278_v33 = vld [vmem:[%s11976_s12 + $0x3d0] ss:$8 sps:$4 sm:$0xff]  }
 0x165   : > { %7736 = vmatprep.subr.bf16.mxu0 %v10199_v34  ;;  %v10281_v34 = vld [vmem:[%s11976_s12 + $0x13d0] ss:$8 sps:$4 sm:$0xff]  }
 0x167   : > { %7081 = vmatpush1.bf16.msra.mxu1 %v10194_v35  ;;  %v10286_v35 = vld [vmem:[%s11976_s12 + $0x3e4] ss:$8 sps:$4 sm:$0xff]  }
 0x168   : > { %7737 = vmatpush1.bf16.msra.mxu0 %v10197_v36  ;;  %7091 = vmatprep.subr.bf16.mxu1 %v10202_v18  ;;  %v10289_v36 = vld [vmem:[%s11976_s12 + $0x13e4] ss:$8 sps:$4 sm:$0xff]   ;;  %v10284_v18 = vld [vmem:[%s11976_s12 + $0x3e0] ss:$8 sps:$4 sm:$0xff]  }
 0x169   : > { %7747 = vmatprep.subr.bf16.mxu0 %v10205_v38  ;;  %v10287_v38 = vld [vmem:[%s11976_s12 + $0x13e0] ss:$8 sps:$4 sm:$0xff]  }
 0x16a   : > { %7083 = vmatmul.mubr.bf16.vlgmr.msra.gmra.mrb[0].mxu1 %v12238_v39 }
 0x16b   : > { %7739 = vmatmul.mubr.bf16.vlgmr.msra.gmra.mrb[0].mxu0 %v12242_v40  ;;  %7092 = vmatpush1.bf16.msra.mxu1 %v10200_v41  ;;  %v12309_v41 = vld.sshfl [vmem:[%s11969_s8 + $0x8] sm:$0xff pattern:$0x75316420] }
 0x16c   : > { %7748 = vmatpush1.bf16.msra.mxu0 %v10203_v42  ;;  %7093 = vmatprep.subr.bf16.mxu1 %v10208_v43  ;;  %v12312_v42 = vld.sshfl [vmem:[%s11969_s8 + $0x28] sm:$0xff pattern:$0x75316420]  ;;  %v10292_v43 = vld [vmem:[%s11976_s12 + $0x3f4] ss:$8 sps:$4 sm:$0xff]  }
 0x16d   : > { %7749 = vmatprep.subr.bf16.mxu0 %v10211_v45  ;;  %7123 = vmatprep.mubr.bf16.mxu1 %v1440_v25  ;;  %v10295_v45 = vld [vmem:[%s11976_s12 + $0x13f4] ss:$8 sps:$4 sm:$0xff]   ;;  %v10290_v25 = vld [vmem:[%s11976_s12 + $0x3f0] ss:$8 sps:$4 sm:$0xff]  }
 0x16e   : > { %7779 = vmatprep.mubr.bf16.mxu0 %v1636_v46  ;;  %v10293_v46 = vld [vmem:[%s11976_s12 + $0x13f0] ss:$8 sps:$4 sm:$0xff]  }
 0x16f   : > { %7094 = vmatpush1.bf16.msra.mxu1 %v10206_v26  ;;  %v10298_v26 = vld [vmem:[%s11976_s12 + $0x404] ss:$8 sps:$4 sm:$0xff]  }
 0x170   : > { %7750 = vmatpush1.bf16.msra.mxu0 %v10209_v47  ;;  %7095 = vmatprep.subr.bf16.mxu1 %v10214_v37  ;;  %v10301_v47 = vld [vmem:[%s11976_s12 + $0x1404] ss:$8 sps:$4 sm:$0xff]   ;;  %v1456_v37 = vcombine.high %v12309_v41, %v12309_v41 }
 0x171   : > { %7751 = vmatprep.subr.bf16.mxu0 %v10217_v48  ;;  %v1652_v48 = vcombine.high %v12312_v42, %v12312_v42 }
 0x173   : > { %7096 = vmatpush1.bf16.msra.mxu1 %v10212_v17  ;;  %v10296_v17 = vld [vmem:[%s11976_s12 + $0x400] ss:$8 sps:$4 sm:$0xff]  }
 0x174   : > { %7752 = vmatpush1.bf16.msra.mxu0 %v10215_v49  ;;  %7097 = vmatprep.subr.bf16.mxu1 %v10220_v51  ;;  %v10299_v49 = vld [vmem:[%s11976_s12 + $0x1400] ss:$8 sps:$4 sm:$0xff]   ;;  %v1438_v51 = vcombine.high %v12238_v39, %v12238_v39  ;;  %v10302_v39 = vld [vmem:[%s11976_s12 + $0x410] ss:$8 sps:$4 sm:$0xff]  }
 0x175   : > { %7753 = vmatprep.subr.bf16.mxu0 %v10223_v52  ;;  %v1634_v52 = vcombine.high %v12242_v40, %v12242_v40  ;;  %v10305_v40 = vld [vmem:[%s11976_s12 + $0x1410] ss:$8 sps:$4 sm:$0xff]  }
 0x177   : > { %7098 = vmatpush1.bf16.msra.mxu1 %v10218_v54  ;;  %v10304_v54 = vld [vmem:[%s11976_s12 + $0x414] ss:$8 sps:$4 sm:$0xff]  }
 0x178   : > { %7754 = vmatpush1.bf16.msra.mxu0 %v10221_v55  ;;  %7099 = vmatprep.subr.bf16.mxu1 %v10226_v56  ;;  %v10307_v55 = vld [vmem:[%s11976_s12 + $0x1414] ss:$8 sps:$4 sm:$0xff]   ;;  %v12333_v56 = vrot.slane %v1456_v37, %v12038_v50  ;;  %v10382_v37 = vld [vmem:[%s11976_s12 + $0x4e4] ss:$8 sps:$4 sm:$0xff]  }
 0x179   : > { %7755 = vmatprep.subr.bf16.mxu0 %v10229_v58  ;;  %v12336_v58 = vrot.slane %v1652_v48, %v12038_v50  ;;  %v10385_v48 = vld [vmem:[%s11976_s12 + $0x14e4] ss:$8 sps:$4 sm:$0xff]  }
 0x17b   : > { %7100 = vmatpush1.bf16.msra.mxu1 %v10224_v59  ;;  %v10310_v59 = vld [vmem:[%s11976_s12 + $0x424] ss:$8 sps:$4 sm:$0xff]  }
 0x17c   : > { %7756 = vmatpush1.bf16.msra.mxu0 %v10227_v60  ;;  %7101 = vmatprep.subr.bf16.mxu1 %v10232_v61  ;;  %v10313_v60 = vld [vmem:[%s11976_s12 + $0x1424] ss:$8 sps:$4 sm:$0xff]   ;;  %v10308_v61 = vld [vmem:[%s11976_s12 + $0x420] ss:$8 sps:$4 sm:$0xff]  }
 0x17d   : > { %7757 = vmatprep.subr.bf16.mxu0 %v10235_v62  ;;  %v10311_v62 = vld [vmem:[%s11976_s12 + $0x1420] ss:$8 sps:$4 sm:$0xff]  }
 0x17f   : > { %7102 = vmatpush1.bf16.msra.mxu1 %v10230_v63  ;;  %v10316_v63 = vld [vmem:[%s11976_s12 + $0x434] ss:$8 sps:$4 sm:$0xff]  }
 0x180   : > { %7758 = vmatpush1.bf16.msra.mxu0 %v10233_v0  ;;  %7103 = vmatprep.subr.bf16.mxu1 %v10238_v1  ;;  %v10319_v0 = vld [vmem:[%s11976_s12 + $0x1434] ss:$8 sps:$4 sm:$0xff]   ;;  %v10314_v1 = vld [vmem:[%s11976_s12 + $0x430] ss:$8 sps:$4 sm:$0xff]  }
 0x181   : > { %7759 = vmatprep.subr.bf16.mxu0 %v10241_v2  ;;  %v10317_v2 = vld [vmem:[%s11976_s12 + $0x1430] ss:$8 sps:$4 sm:$0xff]  }
 0x183   : > { %7104 = vmatpush1.bf16.msra.mxu1 %v10236_v3  ;;  %v10322_v3 = vld [vmem:[%s11976_s12 + $0x444] ss:$8 sps:$4 sm:$0xff]  }
 0x184   : > { %7760 = vmatpush1.bf16.msra.mxu0 %v10239_v4  ;;  %7105 = vmatprep.subr.bf16.mxu1 %v10244_v5  ;;  %v10325_v4 = vld [vmem:[%s11976_s12 + $0x1444] ss:$8 sps:$4 sm:$0xff]   ;;  %v10320_v5 = vld [vmem:[%s11976_s12 + $0x440] ss:$8 sps:$4 sm:$0xff]  }
 0x185   : > { %7761 = vmatprep.subr.bf16.mxu0 %v10247_v6  ;;  %v10323_v6 = vld [vmem:[%s11976_s12 + $0x1440] ss:$8 sps:$4 sm:$0xff]  }
 0x187   : > { %7106 = vmatpush1.bf16.msra.mxu1 %v10242_v7  ;;  %v10328_v7 = vld [vmem:[%s11976_s12 + $0x454] ss:$8 sps:$4 sm:$0xff]  }
 0x188   : > { %7762 = vmatpush1.bf16.msra.mxu0 %v10245_v8  ;;  %7107 = vmatprep.subr.bf16.mxu1 %v10250_v9  ;;  %v10331_v8 = vld [vmem:[%s11976_s12 + $0x1454] ss:$8 sps:$4 sm:$0xff]   ;;  %v10326_v9 = vld [vmem:[%s11976_s12 + $0x450] ss:$8 sps:$4 sm:$0xff]  }
 0x189   : > { %7763 = vmatprep.subr.bf16.mxu0 %v10253_v10  ;;  %v10329_v10 = vld [vmem:[%s11976_s12 + $0x1450] ss:$8 sps:$4 sm:$0xff]  }
 0x18b   : > { %7108 = vmatpush1.bf16.msra.mxu1 %v10248_v11  ;;  %v10334_v11 = vld [vmem:[%s11976_s12 + $0x464] ss:$8 sps:$4 sm:$0xff]  }
 0x18c   : > { %7764 = vmatpush1.bf16.msra.mxu0 %v10251_v12  ;;  %7109 = vmatprep.subr.bf16.mxu1 %v10256_v13  ;;  %v10337_v12 = vld [vmem:[%s11976_s12 + $0x1464] ss:$8 sps:$4 sm:$0xff]   ;;  %v10332_v13 = vld [vmem:[%s11976_s12 + $0x460] ss:$8 sps:$4 sm:$0xff]  }
 0x18d   : > { %7765 = vmatprep.subr.bf16.mxu0 %v10259_v14  ;;  %v10335_v14 = vld [vmem:[%s11976_s12 + $0x1460] ss:$8 sps:$4 sm:$0xff]  }
 0x18f   : > { %7110 = vmatpush1.bf16.msra.mxu1 %v10254_v15  ;;  %v10340_v15 = vld [vmem:[%s11976_s12 + $0x474] ss:$8 sps:$4 sm:$0xff]  }
 0x190   : > { %7766 = vmatpush1.bf16.msra.mxu0 %v10257_v16  ;;  %7111 = vmatprep.subr.bf16.mxu1 %v10262_v19  ;;  %v10343_v16 = vld [vmem:[%s11976_s12 + $0x1474] ss:$8 sps:$4 sm:$0xff]   ;;  %v10338_v19 = vld [vmem:[%s11976_s12 + $0x470] ss:$8 sps:$4 sm:$0xff]  }
 0x191   : > { %7767 = vmatprep.subr.bf16.mxu0 %v10265_v20  ;;  %v10341_v20 = vld [vmem:[%s11976_s12 + $0x1470] ss:$8 sps:$4 sm:$0xff]  }
 0x193   : > { %7112 = vmatpush1.bf16.msra.mxu1 %v10260_v21  ;;  %v10346_v21 = vld [vmem:[%s11976_s12 + $0x484] ss:$8 sps:$4 sm:$0xff]  }
 0x194   : > { %7768 = vmatpush1.bf16.msra.mxu0 %v10263_v22  ;;  %7113 = vmatprep.subr.bf16.mxu1 %v10268_v23  ;;  %v10349_v22 = vld [vmem:[%s11976_s12 + $0x1484] ss:$8 sps:$4 sm:$0xff]   ;;  %v10344_v23 = vld [vmem:[%s11976_s12 + $0x480] ss:$8 sps:$4 sm:$0xff]  }
 0x195   : > { %7769 = vmatprep.subr.bf16.mxu0 %v10271_v24  ;;  %v10347_v24 = vld [vmem:[%s11976_s12 + $0x1480] ss:$8 sps:$4 sm:$0xff]  }
 0x197   : > { %7114 = vmatpush1.bf16.msra.mxu1 %v10266_v53  ;;  %v10352_v53 = vld [vmem:[%s11976_s12 + $0x494] ss:$8 sps:$4 sm:$0xff]  }
 0x198   : > { %7770 = vmatpush1.bf16.msra.mxu0 %v10269_v57  ;;  %7115 = vmatprep.subr.bf16.mxu1 %v10274_v27  ;;  %v10355_v57 = vld [vmem:[%s11976_s12 + $0x1494] ss:$8 sps:$4 sm:$0xff]   ;;  %v10350_v27 = vld [vmem:[%s11976_s12 + $0x490] ss:$8 sps:$4 sm:$0xff]  }
 0x199   : > { %7771 = vmatprep.subr.bf16.mxu0 %v10277_v28  ;;  %v10353_v28 = vld [vmem:[%s11976_s12 + $0x1490] ss:$8 sps:$4 sm:$0xff]  }
 0x19b   : > { %7116 = vmatpush1.bf16.msra.mxu1 %v10272_v29  ;;  %v10358_v29 = vld [vmem:[%s11976_s12 + $0x4a4] ss:$8 sps:$4 sm:$0xff]  }
 0x19c   : > { %7772 = vmatpush1.bf16.msra.mxu0 %v10275_v30  ;;  %7117 = vmatprep.subr.bf16.mxu1 %v10280_v31  ;;  %v10361_v30 = vld [vmem:[%s11976_s12 + $0x14a4] ss:$8 sps:$4 sm:$0xff]   ;;  %v10356_v31 = vld [vmem:[%s11976_s12 + $0x4a0] ss:$8 sps:$4 sm:$0xff]  }
 0x19d   : > { %7773 = vmatprep.subr.bf16.mxu0 %v10283_v32  ;;  %v10359_v32 = vld [vmem:[%s11976_s12 + $0x14a0] ss:$8 sps:$4 sm:$0xff]  }
 0x19f   : > { %7118 = vmatpush1.bf16.msra.mxu1 %v10278_v33  ;;  %v10364_v33 = vld [vmem:[%s11976_s12 + $0x4b4] ss:$8 sps:$4 sm:$0xff]  }
 0x1a0   : > { %7774 = vmatpush1.bf16.msra.mxu0 %v10281_v34  ;;  %7119 = vmatprep.subr.bf16.mxu1 %v10286_v35  ;;  %v10367_v34 = vld [vmem:[%s11976_s12 + $0x14b4] ss:$8 sps:$4 sm:$0xff]   ;;  %v10362_v35 = vld [vmem:[%s11976_s12 + $0x4b0] ss:$8 sps:$4 sm:$0xff]  }
 0x1a1   : > { %7775 = vmatprep.subr.bf16.mxu0 %v10289_v36  ;;  %v10365_v36 = vld [vmem:[%s11976_s12 + $0x14b0] ss:$8 sps:$4 sm:$0xff]  }
 0x1a3   : > { %7120 = vmatpush1.bf16.msra.mxu1 %v10284_v18  ;;  %v10370_v18 = vld [vmem:[%s11976_s12 + $0x4c4] ss:$8 sps:$4 sm:$0xff]  }
 0x1a4   : > { %7776 = vmatpush1.bf16.msra.mxu0 %v10287_v38  ;;  %7121 = vmatprep.subr.bf16.mxu1 %v10292_v43  ;;  %v10373_v38 = vld [vmem:[%s11976_s12 + $0x14c4] ss:$8 sps:$4 sm:$0xff]   ;;  %v10368_v43 = vld [vmem:[%s11976_s12 + $0x4c0] ss:$8 sps:$4 sm:$0xff]  }
 0x1a5   : > { %7777 = vmatprep.subr.bf16.mxu0 %v10295_v45  ;;  %v10371_v45 = vld [vmem:[%s11976_s12 + $0x14c0] ss:$8 sps:$4 sm:$0xff]  }
 0x1a7   : > { %7122 = vmatpush1.bf16.msra.mxu1 %v10290_v25  ;;  %v10376_v25 = vld [vmem:[%s11976_s12 + $0x4d4] ss:$8 sps:$4 sm:$0xff]  }
 0x1a8   : > { %7778 = vmatpush1.bf16.msra.mxu0 %v10293_v46  ;;  %7132 = vmatprep.subr.bf16.mxu1 %v10298_v26  ;;  %v10379_v46 = vld [vmem:[%s11976_s12 + $0x14d4] ss:$8 sps:$4 sm:$0xff]   ;;  %v10374_v26 = vld [vmem:[%s11976_s12 + $0x4d0] ss:$8 sps:$4 sm:$0xff]  }
 0x1a9   : > { %7788 = vmatprep.subr.bf16.mxu0 %v10301_v47  ;;  %v10377_v47 = vld [vmem:[%s11976_s12 + $0x14d0] ss:$8 sps:$4 sm:$0xff]  }
 0x1aa   : > { %7124 = vmatmul.mubr.bf16.vlgmr.msra.gmra.mrb[0].mxu1 %v1438_v51  ;;  %v10388_v51 = vld [vmem:[%s11976_s12 + $0x4f4] ss:$8 sps:$4 sm:$0xff]  }
 0x1ab   : > { %7780 = vmatmul.mubr.bf16.vlgmr.msra.gmra.mrb[0].mxu0 %v1634_v52  ;;  %7133 = vmatpush1.bf16.msra.mxu1 %v10296_v17  ;;  %v10380_v17 = vld [vmem:[%s11976_s12 + $0x4e0] ss:$8 sps:$4 sm:$0xff]   ;;  %v10391_v52 = vld [vmem:[%s11976_s12 + $0x14f4] ss:$8 sps:$4 sm:$0xff]  }
 0x1ac   : > { %7789 = vmatpush1.bf16.msra.mxu0 %v10299_v49  ;;  %7134 = vmatprep.subr.bf16.mxu1 %v10304_v54  ;;  %v10383_v49 = vld [vmem:[%s11976_s12 + $0x14e0] ss:$8 sps:$4 sm:$0xff]   ;;  %v10386_v54 = vld [vmem:[%s11976_s12 + $0x4f0] ss:$8 sps:$4 sm:$0xff]  }
 0x1ad   : > { %7790 = vmatprep.subr.bf16.mxu0 %v10307_v55  ;;  %7164 = vmatprep.mubr.bf16.mxu1 %v12333_v56  ;;  %v10389_v55 = vld [vmem:[%s11976_s12 + $0x14f0] ss:$8 sps:$4 sm:$0xff]  }
 0x1ae   : > { %7820 = vmatprep.mubr.bf16.mxu0 %v12336_v58 }
 0x1af   : > { %7135 = vmatpush1.bf16.msra.mxu1 %v10302_v39  ;;  %v10394_v39 = vld [vmem:[%s11976_s12 + $0x504] ss:$8 sps:$4 sm:$0xff]  }
 0x1b0   : > { %7791 = vmatpush1.bf16.msra.mxu0 %v10305_v40  ;;  %7136 = vmatprep.subr.bf16.mxu1 %v10310_v59  ;;  %v10397_v40 = vld [vmem:[%s11976_s12 + $0x1504] ss:$8 sps:$4 sm:$0xff]   ;;  %v12402_v59 = vrot.slane %v12309_v41, %v12038_v50  ;;  %v1488_v41 = vcombine.high %v12333_v56, %v12333_v56 }
 0x1b1   : > { %7792 = vmatprep.subr.bf16.mxu0 %v10313_v60  ;;  %v12406_v60 = vrot.slane %v12312_v42, %v12038_v50  ;;  %v10398_v42 = vld [vmem:[%s11976_s12 + $0x510] ss:$8 sps:$4 sm:$0xff]   ;;  %v10406_v56 = vld [vmem:[%s11976_s12 + $0x524] ss:$8 sps:$4 sm:$0xff]  }
 0x1b3   : > { %7137 = vmatpush1.bf16.msra.mxu1 %v10308_v61  ;;  %v10392_v61 = vld [vmem:[%s11976_s12 + $0x500] ss:$8 sps:$4 sm:$0xff]  }
 0x1b4   : > { %7793 = vmatpush1.bf16.msra.mxu0 %v10311_v62  ;;  %7138 = vmatprep.subr.bf16.mxu1 %v10316_v63  ;;  %v10395_v62 = vld [vmem:[%s11976_s12 + $0x1500] ss:$8 sps:$4 sm:$0xff]   ;;  %v10400_v63 = vld [vmem:[%s11976_s12 + $0x514] ss:$8 sps:$4 sm:$0xff]  }
 0x1b5   : > { %7794 = vmatprep.subr.bf16.mxu0 %v10319_v0  ;;  %v10403_v0 = vld [vmem:[%s11976_s12 + $0x1514] ss:$8 sps:$4 sm:$0xff]  }
 0x1b7   : > { %7139 = vmatpush1.bf16.msra.mxu1 %v10314_v1  ;;  %v1684_v1 = vcombine.high %v12336_v58, %v12336_v58  ;;  %v10404_v58 = vld [vmem:[%s11976_s12 + $0x520] ss:$8 sps:$4 sm:$0xff]  }
 0x1b8   : > { %7795 = vmatpush1.bf16.msra.mxu0 %v10317_v2  ;;  %7140 = vmatprep.subr.bf16.mxu1 %v10322_v3  ;;  %v10401_v2 = vld [vmem:[%s11976_s12 + $0x1510] ss:$8 sps:$4 sm:$0xff]   ;;  %v10409_v3 = vld [vmem:[%s11976_s12 + $0x1524] ss:$8 sps:$4 sm:$0xff]  }
 0x1b9   : > { %7796 = vmatprep.subr.bf16.mxu0 %v10325_v4  ;;  %v10407_v4 = vld [vmem:[%s11976_s12 + $0x1520] ss:$8 sps:$4 sm:$0xff]  }
 0x1bb   : > { %7141 = vmatpush1.bf16.msra.mxu1 %v10320_v5  ;;  %v10412_v5 = vld [vmem:[%s11976_s12 + $0x534] ss:$8 sps:$4 sm:$0xff]  }
 0x1bc   : > { %7797 = vmatpush1.bf16.msra.mxu0 %v10323_v6  ;;  %7142 = vmatprep.subr.bf16.mxu1 %v10328_v7  ;;  %v10415_v6 = vld [vmem:[%s11976_s12 + $0x1534] ss:$8 sps:$4 sm:$0xff]   ;;  %v10410_v7 = vld [vmem:[%s11976_s12 + $0x530] ss:$8 sps:$4 sm:$0xff]  }
 0x1bd   : > { %7798 = vmatprep.subr.bf16.mxu0 %v10331_v8  ;;  %v10413_v8 = vld [vmem:[%s11976_s12 + $0x1530] ss:$8 sps:$4 sm:$0xff]  }
 0x1bf   : > { %7143 = vmatpush1.bf16.msra.mxu1 %v10326_v9  ;;  %v10418_v9 = vld [vmem:[%s11976_s12 + $0x544] ss:$8 sps:$4 sm:$0xff]  }
 0x1c0   : > { %7799 = vmatpush1.bf16.msra.mxu0 %v10329_v10  ;;  %7144 = vmatprep.subr.bf16.mxu1 %v10334_v11  ;;  %v10421_v10 = vld [vmem:[%s11976_s12 + $0x1544] ss:$8 sps:$4 sm:$0xff]   ;;  %v10416_v11 = vld [vmem:[%s11976_s12 + $0x540] ss:$8 sps:$4 sm:$0xff]  }
 0x1c1   : > { %7800 = vmatprep.subr.bf16.mxu0 %v10337_v12  ;;  %v10419_v12 = vld [vmem:[%s11976_s12 + $0x1540] ss:$8 sps:$4 sm:$0xff]  }
 0x1c3   : > { %7145 = vmatpush1.bf16.msra.mxu1 %v10332_v13  ;;  %v10424_v13 = vld [vmem:[%s11976_s12 + $0x554] ss:$8 sps:$4 sm:$0xff]  }
 0x1c4   : > { %7801 = vmatpush1.bf16.msra.mxu0 %v10335_v14  ;;  %7146 = vmatprep.subr.bf16.mxu1 %v10340_v15  ;;  %v10427_v14 = vld [vmem:[%s11976_s12 + $0x1554] ss:$8 sps:$4 sm:$0xff]   ;;  %v10422_v15 = vld [vmem:[%s11976_s12 + $0x550] ss:$8 sps:$4 sm:$0xff]  }
 0x1c5   : > { %7802 = vmatprep.subr.bf16.mxu0 %v10343_v16  ;;  %v10425_v16 = vld [vmem:[%s11976_s12 + $0x1550] ss:$8 sps:$4 sm:$0xff]  }
 0x1c7   : > { %7147 = vmatpush1.bf16.msra.mxu1 %v10338_v19  ;;  %v10430_v19 = vld [vmem:[%s11976_s12 + $0x564] ss:$8 sps:$4 sm:$0xff]  }
 0x1c8   : > { %7803 = vmatpush1.bf16.msra.mxu0 %v10341_v20  ;;  %7148 = vmatprep.subr.bf16.mxu1 %v10346_v21  ;;  %v10433_v20 = vld [vmem:[%s11976_s12 + $0x1564] ss:$8 sps:$4 sm:$0xff]   ;;  %v10428_v21 = vld [vmem:[%s11976_s12 + $0x560] ss:$8 sps:$4 sm:$0xff]  }
 0x1c9   : > { %7804 = vmatprep.subr.bf16.mxu0 %v10349_v22  ;;  %v10431_v22 = vld [vmem:[%s11976_s12 + $0x1560] ss:$8 sps:$4 sm:$0xff]  }
 0x1cb   : > { %7149 = vmatpush1.bf16.msra.mxu1 %v10344_v23  ;;  %v10436_v23 = vld [vmem:[%s11976_s12 + $0x574] ss:$8 sps:$4 sm:$0xff]  }
 0x1cc   : > { %7805 = vmatpush1.bf16.msra.mxu0 %v10347_v24  ;;  %7150 = vmatprep.subr.bf16.mxu1 %v10352_v53  ;;  %v10439_v24 = vld [vmem:[%s11976_s12 + $0x1574] ss:$8 sps:$4 sm:$0xff]   ;;  %v10434_v53 = vld [vmem:[%s11976_s12 + $0x570] ss:$8 sps:$4 sm:$0xff]  }
 0x1cd   : > { %7806 = vmatprep.subr.bf16.mxu0 %v10355_v57  ;;  %v10437_v57 = vld [vmem:[%s11976_s12 + $0x1570] ss:$8 sps:$4 sm:$0xff]  }
 0x1cf   : > { %7151 = vmatpush1.bf16.msra.mxu1 %v10350_v27  ;;  %v10442_v27 = vld [vmem:[%s11976_s12 + $0x584] ss:$8 sps:$4 sm:$0xff]  }
 0x1d0   : > { %7807 = vmatpush1.bf16.msra.mxu0 %v10353_v28  ;;  %7152 = vmatprep.subr.bf16.mxu1 %v10358_v29  ;;  %v10445_v28 = vld [vmem:[%s11976_s12 + $0x1584] ss:$8 sps:$4 sm:$0xff]   ;;  %v10440_v29 = vld [vmem:[%s11976_s12 + $0x580] ss:$8 sps:$4 sm:$0xff]  }
 0x1d1   : > { %7808 = vmatprep.subr.bf16.mxu0 %v10361_v30  ;;  %v10443_v30 = vld [vmem:[%s11976_s12 + $0x1580] ss:$8 sps:$4 sm:$0xff]  }
 0x1d3   : > { %7153 = vmatpush1.bf16.msra.mxu1 %v10356_v31  ;;  %v10448_v31 = vld [vmem:[%s11976_s12 + $0x594] ss:$8 sps:$4 sm:$0xff]  }
 0x1d4   : > { %7809 = vmatpush1.bf16.msra.mxu0 %v10359_v32  ;;  %7154 = vmatprep.subr.bf16.mxu1 %v10364_v33  ;;  %v10451_v32 = vld [vmem:[%s11976_s12 + $0x1594] ss:$8 sps:$4 sm:$0xff]   ;;  %v10446_v33 = vld [vmem:[%s11976_s12 + $0x590] ss:$8 sps:$4 sm:$0xff]  }
 0x1d5   : > { %7810 = vmatprep.subr.bf16.mxu0 %v10367_v34  ;;  %v10449_v34 = vld [vmem:[%s11976_s12 + $0x1590] ss:$8 sps:$4 sm:$0xff]  }
 0x1d7   : > { %7155 = vmatpush1.bf16.msra.mxu1 %v10362_v35  ;;  %v10454_v35 = vld [vmem:[%s11976_s12 + $0x5a4] ss:$8 sps:$4 sm:$0xff]  }
 0x1d8   : > { %7811 = vmatpush1.bf16.msra.mxu0 %v10365_v36  ;;  %7156 = vmatprep.subr.bf16.mxu1 %v10370_v18  ;;  %v10457_v36 = vld [vmem:[%s11976_s12 + $0x15a4] ss:$8 sps:$4 sm:$0xff]   ;;  %v10452_v18 = vld [vmem:[%s11976_s12 + $0x5a0] ss:$8 sps:$4 sm:$0xff]  }
 0x1d9   : > { %7812 = vmatprep.subr.bf16.mxu0 %v10373_v38  ;;  %v10455_v38 = vld [vmem:[%s11976_s12 + $0x15a0] ss:$8 sps:$4 sm:$0xff]  }
 0x1db   : > { %7157 = vmatpush1.bf16.msra.mxu1 %v10368_v43  ;;  %v10460_v43 = vld [vmem:[%s11976_s12 + $0x5b4] ss:$8 sps:$4 sm:$0xff]  }
 0x1dc   : > { %7813 = vmatpush1.bf16.msra.mxu0 %v10371_v45  ;;  %7158 = vmatprep.subr.bf16.mxu1 %v10376_v25  ;;  %v10463_v45 = vld [vmem:[%s11976_s12 + $0x15b4] ss:$8 sps:$4 sm:$0xff]   ;;  %v10458_v25 = vld [vmem:[%s11976_s12 + $0x5b0] ss:$8 sps:$4 sm:$0xff]  }
 0x1dd   : > { %7814 = vmatprep.subr.bf16.mxu0 %v10379_v46  ;;  %v10461_v46 = vld [vmem:[%s11976_s12 + $0x15b0] ss:$8 sps:$4 sm:$0xff]  }
 0x1df   : > { %7159 = vmatpush1.bf16.msra.mxu1 %v10374_v26  ;;  %v10466_v26 = vld [vmem:[%s11976_s12 + $0x5c4] ss:$8 sps:$4 sm:$0xff]  }
 0x1e0   : > { %7815 = vmatpush1.bf16.msra.mxu0 %v10377_v47  ;;  %7160 = vmatprep.subr.bf16.mxu1 %v10382_v37  ;;  %v10469_v47 = vld [vmem:[%s11976_s12 + $0x15c4] ss:$8 sps:$4 sm:$0xff]   ;;  %v10464_v37 = vld [vmem:[%s11976_s12 + $0x5c0] ss:$8 sps:$4 sm:$0xff]  }
 0x1e1   : > { %7816 = vmatprep.subr.bf16.mxu0 %v10385_v48  ;;  %v10467_v48 = vld [vmem:[%s11976_s12 + $0x15c0] ss:$8 sps:$4 sm:$0xff]  }
 0x1e3   : > { %7161 = vmatpush1.bf16.msra.mxu1 %v10380_v17  ;;  %v10472_v17 = vld [vmem:[%s11976_s12 + $0x5d4] ss:$8 sps:$4 sm:$0xff]  }
 0x1e4   : > { %7817 = vmatpush1.bf16.msra.mxu0 %v10383_v49  ;;  %7162 = vmatprep.subr.bf16.mxu1 %v10388_v51  ;;  %v10475_v49 = vld [vmem:[%s11976_s12 + $0x15d4] ss:$8 sps:$4 sm:$0xff]   ;;  %v10470_v51 = vld [vmem:[%s11976_s12 + $0x5d0] ss:$8 sps:$4 sm:$0xff]  }
 0x1e5   : > { %7818 = vmatprep.subr.bf16.mxu0 %v10391_v52  ;;  %v10473_v52 = vld [vmem:[%s11976_s12 + $0x15d0] ss:$8 sps:$4 sm:$0xff]  }
 0x1e7   : > { %7163 = vmatpush1.bf16.msra.mxu1 %v10386_v54  ;;  %v10478_v54 = vld [vmem:[%s11976_s12 + $0x5e4] ss:$8 sps:$4 sm:$0xff]  }
 0x1e8   : > { %7819 = vmatpush1.bf16.msra.mxu0 %v10389_v55  ;;  %7173 = vmatprep.subr.bf16.mxu1 %v10394_v39  ;;  %v10481_v55 = vld [vmem:[%s11976_s12 + $0x15e4] ss:$8 sps:$4 sm:$0xff]  }
 0x1e9   : > { %7829 = vmatprep.subr.bf16.mxu0 %v10397_v40  ;;  %v11454_v39 = vld [vmem:[%s11969_s8 + $0x8] sm:$0xff] }
 0x1ea   : > { %7165 = vmatmul.mubr.bf16.vlgmr.msra.gmra.mrb[0].mxu1 %v12402_v59  ;;  %v1441_v40 = vcombine.high %v11454_v39, %v11454_v39  ;;  %v10556_v39 = vld [vmem:[%s11976_s12 + $0x6b4] ss:$8 sps:$4 sm:$0xff]  }
 0x1eb   : > { %7821 = vmatmul.mubr.bf16.vlgmr.msra.gmra.mrb[0].mxu0 %v12406_v60  ;;  %7174 = vmatpush1.bf16.msra.mxu1 %v10392_v61  ;;  %v11455_v61 = vld [vmem:[%s11969_s8 + $0x28] sm:$0xff] }
 0x1ec   : > { %7830 = vmatpush1.bf16.msra.mxu0 %v10395_v62  ;;  %7175 = vmatprep.subr.bf16.mxu1 %v10400_v63  ;;  %v1637_v62 = vcombine.high %v11455_v61, %v11455_v61  ;;  %v10476_v63 = vld [vmem:[%s11976_s12 + $0x5e0] ss:$8 sps:$4 sm:$0xff]   ;;  %v10554_v61 = vld [vmem:[%s11976_s12 + $0x6b0] ss:$8 sps:$4 sm:$0xff]  }
 0x1ed   : > { %7831 = vmatprep.subr.bf16.mxu0 %v10403_v0  ;;  %7205 = vmatprep.mubr.bf16.mxu1 %v1488_v41  ;;  %v10479_v0 = vld [vmem:[%s11976_s12 + $0x15e0] ss:$8 sps:$4 sm:$0xff]   ;;  %v10484_v41 = vld [vmem:[%s11976_s12 + $0x5f4] ss:$8 sps:$4 sm:$0xff]  }
 0x1ee   : > { %7861 = vmatprep.mubr.bf16.mxu0 %v1684_v1  ;;  %v10487_v1 = vld [vmem:[%s11976_s12 + $0x15f4] ss:$8 sps:$4 sm:$0xff]  }
 0x1ef   : > { %7176 = vmatpush1.bf16.msra.mxu1 %v10398_v42  ;;  %v12477_v42 = vrot.slane %v1441_v40, %v12038_v50  ;;  %v10559_v40 = vld [vmem:[%s11976_s12 + $0x16b4] ss:$8 sps:$4 sm:$0xff]  }
 0x1f0   : > { %7832 = vmatpush1.bf16.msra.mxu0 %v10401_v2  ;;  %7177 = vmatprep.subr.bf16.mxu1 %v10406_v56  ;;  %v12480_v2 = vrot.slane %v1637_v62, %v12038_v50  ;;  %v10482_v56 = vld [vmem:[%s11976_s12 + $0x5f0] ss:$8 sps:$4 sm:$0xff]  }
 0x1f1   : > { %7833 = vmatprep.subr.bf16.mxu0 %v10409_v3  ;;  %v10485_v3 = vld [vmem:[%s11976_s12 + $0x15f0] ss:$8 sps:$4 sm:$0xff]  }
 0x1f2   : > { %v10557_v62 = vld [vmem:[%s11976_s12 + $0x16b0] ss:$8 sps:$4 sm:$0xff]  }
 0x1f3   : > { %7178 = vmatpush1.bf16.msra.mxu1 %v10404_v58  ;;  %v10490_v58 = vld [vmem:[%s11976_s12 + $0x604] ss:$8 sps:$4 sm:$0xff]  }
 0x1f4   : > { %7834 = vmatpush1.bf16.msra.mxu0 %v10407_v4  ;;  %7179 = vmatprep.subr.bf16.mxu1 %v10412_v5  ;;  %v10493_v4 = vld [vmem:[%s11976_s12 + $0x1604] ss:$8 sps:$4 sm:$0xff]   ;;  %v1457_v5 = vcombine.high %v12477_v42, %v12477_v42 }
 0x1f5   : > { %7835 = vmatprep.subr.bf16.mxu0 %v10415_v6  ;;  %v1653_v6 = vcombine.high %v12480_v2, %v12480_v2 }
 0x1f7   : > { %7180 = vmatpush1.bf16.msra.mxu1 %v10410_v7  ;;  %v1486_v7 = vcombine.high %v12402_v59, %v12402_v59  ;;  %v12502_v59 = vrot.slane %v1653_v6, %v12038_v50  ;;  %v10577_v6 = vld [vmem:[%s11976_s12 + $0x16e4] ss:$8 sps:$4 sm:$0xff]  }
 0x1f8   : > { %7836 = vmatpush1.bf16.msra.mxu0 %v10413_v8  ;;  %7181 = vmatprep.subr.bf16.mxu1 %v10418_v9  ;;  %v1682_v8 = vcombine.high %v12406_v60, %v12406_v60  ;;  %v10488_v9 = vld [vmem:[%s11976_s12 + $0x600] ss:$8 sps:$4 sm:$0xff]   ;;  %v10494_v60 = vld [vmem:[%s11976_s12 + $0x610] ss:$8 sps:$4 sm:$0xff]  }
 0x1f9   : > { %7837 = vmatprep.subr.bf16.mxu0 %v10421_v10  ;;  %v10491_v10 = vld [vmem:[%s11976_s12 + $0x1600] ss:$8 sps:$4 sm:$0xff]  }
 0x1fb   : > { %7182 = vmatpush1.bf16.msra.mxu1 %v10416_v11  ;;  %v10496_v11 = vld [vmem:[%s11976_s12 + $0x614] ss:$8 sps:$4 sm:$0xff]  }
 0x1fc   : > { %7838 = vmatpush1.bf16.msra.mxu0 %v10419_v12  ;;  %7183 = vmatprep.subr.bf16.mxu1 %v10424_v13  ;;  %v10499_v12 = vld [vmem:[%s11976_s12 + $0x1614] ss:$8 sps:$4 sm:$0xff]   ;;  %v12499_v13 = vrot.slane %v1457_v5, %v12038_v50  ;;  %v10574_v5 = vld [vmem:[%s11976_s12 + $0x6e4] ss:$8 sps:$4 sm:$0xff]  }
 0x1fd   : > { %7839 = vmatprep.subr.bf16.mxu0 %v10427_v14  ;;  %v10497_v14 = vld [vmem:[%s11976_s12 + $0x1610] ss:$8 sps:$4 sm:$0xff]  }
 0x1ff   : > { %7184 = vmatpush1.bf16.msra.mxu1 %v10422_v15  ;;  %v10502_v15 = vld [vmem:[%s11976_s12 + $0x624] ss:$8 sps:$4 sm:$0xff]  }
 0x200   : > { %7840 = vmatpush1.bf16.msra.mxu0 %v10425_v16  ;;  %7185 = vmatprep.subr.bf16.mxu1 %v10430_v19  ;;  %v10505_v16 = vld [vmem:[%s11976_s12 + $0x1624] ss:$8 sps:$4 sm:$0xff]   ;;  %v10500_v19 = vld [vmem:[%s11976_s12 + $0x620] ss:$8 sps:$4 sm:$0xff]  }
 0x201   : > { %7841 = vmatprep.subr.bf16.mxu0 %v10433_v20  ;;  %v10503_v20 = vld [vmem:[%s11976_s12 + $0x1620] ss:$8 sps:$4 sm:$0xff]  }
 0x203   : > { %7186 = vmatpush1.bf16.msra.mxu1 %v10428_v21  ;;  %v10508_v21 = vld [vmem:[%s11976_s12 + $0x634] ss:$8 sps:$4 sm:$0xff]  }
 0x204   : > { %7842 = vmatpush1.bf16.msra.mxu0 %v10431_v22  ;;  %7187 = vmatprep.subr.bf16.mxu1 %v10436_v23  ;;  %v10511_v22 = vld [vmem:[%s11976_s12 + $0x1634] ss:$8 sps:$4 sm:$0xff]   ;;  %v10506_v23 = vld [vmem:[%s11976_s12 + $0x630] ss:$8 sps:$4 sm:$0xff]  }
 0x205   : > { %7843 = vmatprep.subr.bf16.mxu0 %v10439_v24  ;;  %v10509_v24 = vld [vmem:[%s11976_s12 + $0x1630] ss:$8 sps:$4 sm:$0xff]  }
 0x207   : > { %7188 = vmatpush1.bf16.msra.mxu1 %v10434_v53  ;;  %v10514_v53 = vld [vmem:[%s11976_s12 + $0x644] ss:$8 sps:$4 sm:$0xff]  }
 0x208   : > { %7844 = vmatpush1.bf16.msra.mxu0 %v10437_v57  ;;  %7189 = vmatprep.subr.bf16.mxu1 %v10442_v27  ;;  %v10517_v57 = vld [vmem:[%s11976_s12 + $0x1644] ss:$8 sps:$4 sm:$0xff]   ;;  %v10512_v27 = vld [vmem:[%s11976_s12 + $0x640] ss:$8 sps:$4 sm:$0xff]  }
 0x209   : > { %7845 = vmatprep.subr.bf16.mxu0 %v10445_v28  ;;  %v10515_v28 = vld [vmem:[%s11976_s12 + $0x1640] ss:$8 sps:$4 sm:$0xff]  }
 0x20b   : > { %7190 = vmatpush1.bf16.msra.mxu1 %v10440_v29  ;;  %v10520_v29 = vld [vmem:[%s11976_s12 + $0x654] ss:$8 sps:$4 sm:$0xff]  }
 0x20c   : > { %7846 = vmatpush1.bf16.msra.mxu0 %v10443_v30  ;;  %7191 = vmatprep.subr.bf16.mxu1 %v10448_v31  ;;  %v10523_v30 = vld [vmem:[%s11976_s12 + $0x1654] ss:$8 sps:$4 sm:$0xff]   ;;  %v10518_v31 = vld [vmem:[%s11976_s12 + $0x650] ss:$8 sps:$4 sm:$0xff]  }
 0x20d   : > { %7847 = vmatprep.subr.bf16.mxu0 %v10451_v32  ;;  %v10521_v32 = vld [vmem:[%s11976_s12 + $0x1650] ss:$8 sps:$4 sm:$0xff]  }
 0x20f   : > { %7192 = vmatpush1.bf16.msra.mxu1 %v10446_v33  ;;  %v10526_v33 = vld [vmem:[%s11976_s12 + $0x664] ss:$8 sps:$4 sm:$0xff]  }
 0x210   : > { %7848 = vmatpush1.bf16.msra.mxu0 %v10449_v34  ;;  %7193 = vmatprep.subr.bf16.mxu1 %v10454_v35  ;;  %v10529_v34 = vld [vmem:[%s11976_s12 + $0x1664] ss:$8 sps:$4 sm:$0xff]   ;;  %v10524_v35 = vld [vmem:[%s11976_s12 + $0x660] ss:$8 sps:$4 sm:$0xff]  }
 0x211   : > { %7849 = vmatprep.subr.bf16.mxu0 %v10457_v36  ;;  %v10527_v36 = vld [vmem:[%s11976_s12 + $0x1660] ss:$8 sps:$4 sm:$0xff]  }
 0x213   : > { %7194 = vmatpush1.bf16.msra.mxu1 %v10452_v18  ;;  %v10532_v18 = vld [vmem:[%s11976_s12 + $0x674] ss:$8 sps:$4 sm:$0xff]  }
 0x214   : > { %7850 = vmatpush1.bf16.msra.mxu0 %v10455_v38  ;;  %7195 = vmatprep.subr.bf16.mxu1 %v10460_v43  ;;  %v10535_v38 = vld [vmem:[%s11976_s12 + $0x1674] ss:$8 sps:$4 sm:$0xff]   ;;  %v10530_v43 = vld [vmem:[%s11976_s12 + $0x670] ss:$8 sps:$4 sm:$0xff]  }
 0x215   : > { %7851 = vmatprep.subr.bf16.mxu0 %v10463_v45  ;;  %v10533_v45 = vld [vmem:[%s11976_s12 + $0x1670] ss:$8 sps:$4 sm:$0xff]  }
 0x217   : > { %7196 = vmatpush1.bf16.msra.mxu1 %v10458_v25  ;;  %v10538_v25 = vld [vmem:[%s11976_s12 + $0x684] ss:$8 sps:$4 sm:$0xff]  }
 0x218   : > { %7852 = vmatpush1.bf16.msra.mxu0 %v10461_v46  ;;  %7197 = vmatprep.subr.bf16.mxu1 %v10466_v26  ;;  %v10541_v46 = vld [vmem:[%s11976_s12 + $0x1684] ss:$8 sps:$4 sm:$0xff]   ;;  %v10536_v26 = vld [vmem:[%s11976_s12 + $0x680] ss:$8 sps:$4 sm:$0xff]  }
 0x219   : > { %7853 = vmatprep.subr.bf16.mxu0 %v10469_v47  ;;  %v10539_v47 = vld [vmem:[%s11976_s12 + $0x1680] ss:$8 sps:$4 sm:$0xff]  }
 0x21b   : > { %7198 = vmatpush1.bf16.msra.mxu1 %v10464_v37  ;;  %v10544_v37 = vld [vmem:[%s11976_s12 + $0x694] ss:$8 sps:$4 sm:$0xff]  }
 0x21c   : > { %7854 = vmatpush1.bf16.msra.mxu0 %v10467_v48  ;;  %7199 = vmatprep.subr.bf16.mxu1 %v10472_v17  ;;  %v10547_v48 = vld [vmem:[%s11976_s12 + $0x1694] ss:$8 sps:$4 sm:$0xff]   ;;  %v10542_v17 = vld [vmem:[%s11976_s12 + $0x690] ss:$8 sps:$4 sm:$0xff]  }
 0x21d   : > { %7855 = vmatprep.subr.bf16.mxu0 %v10475_v49  ;;  %v10545_v49 = vld [vmem:[%s11976_s12 + $0x1690] ss:$8 sps:$4 sm:$0xff]  }
 0x21f   : > { %7200 = vmatpush1.bf16.msra.mxu1 %v10470_v51  ;;  %v10550_v51 = vld [vmem:[%s11976_s12 + $0x6a4] ss:$8 sps:$4 sm:$0xff]  }
 0x220   : > { %7856 = vmatpush1.bf16.msra.mxu0 %v10473_v52  ;;  %7201 = vmatprep.subr.bf16.mxu1 %v10478_v54  ;;  %v10553_v52 = vld [vmem:[%s11976_s12 + $0x16a4] ss:$8 sps:$4 sm:$0xff]   ;;  %v10548_v54 = vld [vmem:[%s11976_s12 + $0x6a0] ss:$8 sps:$4 sm:$0xff]  }
 0x221   : > { %7857 = vmatprep.subr.bf16.mxu0 %v10481_v55  ;;  %v10551_v55 = vld [vmem:[%s11976_s12 + $0x16a0] ss:$8 sps:$4 sm:$0xff]  }
 0x223   : > { %7202 = vmatpush1.bf16.msra.mxu1 %v10476_v63  ;;  %v10562_v63 = vld [vmem:[%s11976_s12 + $0x6c4] ss:$8 sps:$4 sm:$0xff]  }
 0x224   : > { %7858 = vmatpush1.bf16.msra.mxu0 %v10479_v0  ;;  %7203 = vmatprep.subr.bf16.mxu1 %v10484_v41  ;;  %v10565_v0 = vld [vmem:[%s11976_s12 + $0x16c4] ss:$8 sps:$4 sm:$0xff]   ;;  %v10560_v41 = vld [vmem:[%s11976_s12 + $0x6c0] ss:$8 sps:$4 sm:$0xff]  }
 0x225   : > { %7859 = vmatprep.subr.bf16.mxu0 %v10487_v1  ;;  %v10563_v1 = vld [vmem:[%s11976_s12 + $0x16c0] ss:$8 sps:$4 sm:$0xff]  }
 0x227   : > { %7204 = vmatpush1.bf16.msra.mxu1 %v10482_v56  ;;  %v10568_v56 = vld [vmem:[%s11976_s12 + $0x6d4] ss:$8 sps:$4 sm:$0xff]  }
 0x228   : > { %7860 = vmatpush1.bf16.msra.mxu0 %v10485_v3  ;;  %7214 = vmatprep.subr.bf16.mxu1 %v10490_v58  ;;  %v10571_v3 = vld [vmem:[%s11976_s12 + $0x16d4] ss:$8 sps:$4 sm:$0xff]   ;;  %v10566_v58 = vld [vmem:[%s11976_s12 + $0x6d0] ss:$8 sps:$4 sm:$0xff]  }
 0x229   : > { %7870 = vmatprep.subr.bf16.mxu0 %v10493_v4  ;;  %v10569_v4 = vld [vmem:[%s11976_s12 + $0x16d0] ss:$8 sps:$4 sm:$0xff]  }
 0x22a   : > { %7206 = vmatmul.mubr.bf16.vlgmr.msra.gmra.mrb[0].mxu1 %v1486_v7  ;;  %v10572_v7 = vld [vmem:[%s11976_s12 + $0x6e0] ss:$8 sps:$4 sm:$0xff]  }
 0x22b   : > { %7862 = vmatmul.mubr.bf16.vlgmr.msra.gmra.mrb[0].mxu0 %v1682_v8  ;;  %7215 = vmatpush1.bf16.msra.mxu1 %v10488_v9  ;;  %v10575_v8 = vld [vmem:[%s11976_s12 + $0x16e0] ss:$8 sps:$4 sm:$0xff]   ;;  %v10580_v9 = vld [vmem:[%s11976_s12 + $0x6f4] ss:$8 sps:$4 sm:$0xff]  }
 0x22c   : > { %7871 = vmatpush1.bf16.msra.mxu0 %v10491_v10  ;;  %7216 = vmatprep.subr.bf16.mxu1 %v10496_v11  ;;  %v10583_v10 = vld [vmem:[%s11976_s12 + $0x16f4] ss:$8 sps:$4 sm:$0xff]   ;;  %v10578_v11 = vld [vmem:[%s11976_s12 + $0x6f0] ss:$8 sps:$4 sm:$0xff]  }
 0x22d   : > { %7872 = vmatprep.subr.bf16.mxu0 %v10499_v12  ;;  %7246 = vmatprep.mubr.bf16.mxu1 %v12499_v13  ;;  %v10581_v12 = vld [vmem:[%s11976_s12 + $0x16f0] ss:$8 sps:$4 sm:$0xff]  }
 0x22e   : > { %7902 = vmatprep.mubr.bf16.mxu0 %v12502_v59 }
 0x22f   : > { %7217 = vmatpush1.bf16.msra.mxu1 %v10494_v60  ;;  %v10587_v60 = vld [vmem:[%s11976_s12 + $0x704] ss:$8 sps:$4 sm:$0xff]  }
 0x230   : > { %7873 = vmatpush1.bf16.msra.mxu0 %v10497_v14  ;;  %7218 = vmatprep.subr.bf16.mxu1 %v10502_v15  ;;  %v10591_v14 = vld [vmem:[%s11976_s12 + $0x1704] ss:$8 sps:$4 sm:$0xff]   ;;  %v12568_v15 = vrot.slane %v12477_v42, %v12038_v50  ;;  %v1489_v42 = vcombine.high %v12499_v13, %v12499_v13 }
 0x231   : > { %7874 = vmatprep.subr.bf16.mxu0 %v10505_v16  ;;  %v12572_v16 = vrot.slane %v12480_v2, %v12038_v50  ;;  %v10592_v2 = vld [vmem:[%s11976_s12 + $0x710] ss:$8 sps:$4 sm:$0xff]   ;;  %v10600_v13 = vld [vmem:[%s11976_s12 + $0x724] ss:$8 sps:$4 sm:$0xff]  }
 0x233   : > { %7219 = vmatpush1.bf16.msra.mxu1 %v10500_v19  ;;  %v10585_v19 = vld [vmem:[%s11976_s12 + $0x700] ss:$8 sps:$4 sm:$0xff]  }
 0x234   : > { %7875 = vmatpush1.bf16.msra.mxu0 %v10503_v20  ;;  %7220 = vmatprep.subr.bf16.mxu1 %v10508_v21  ;;  %v10589_v20 = vld [vmem:[%s11976_s12 + $0x1700] ss:$8 sps:$4 sm:$0xff]   ;;  %v10594_v21 = vld [vmem:[%s11976_s12 + $0x714] ss:$8 sps:$4 sm:$0xff]  }
 0x235   : > { %7876 = vmatprep.subr.bf16.mxu0 %v10511_v22  ;;  %v10597_v22 = vld [vmem:[%s11976_s12 + $0x1714] ss:$8 sps:$4 sm:$0xff]  }
 0x237   : > { %7221 = vmatpush1.bf16.msra.mxu1 %v10506_v23  ;;  %v1685_v23 = vcombine.high %v12502_v59, %v12502_v59  ;;  %v10598_v59 = vld [vmem:[%s11976_s12 + $0x720] ss:$8 sps:$4 sm:$0xff]  }
 0x238   : > { %7877 = vmatpush1.bf16.msra.mxu0 %v10509_v24  ;;  %7222 = vmatprep.subr.bf16.mxu1 %v10514_v53  ;;  %v10595_v24 = vld [vmem:[%s11976_s12 + $0x1710] ss:$8 sps:$4 sm:$0xff]   ;;  %v10603_v53 = vld [vmem:[%s11976_s12 + $0x1724] ss:$8 sps:$4 sm:$0xff]  }
 0x239   : > { %7878 = vmatprep.subr.bf16.mxu0 %v10517_v57  ;;  %v10601_v57 = vld [vmem:[%s11976_s12 + $0x1720] ss:$8 sps:$4 sm:$0xff]  }
 0x23b   : > { %7223 = vmatpush1.bf16.msra.mxu1 %v10512_v27  ;;  %v10606_v27 = vld [vmem:[%s11976_s12 + $0x734] ss:$8 sps:$4 sm:$0xff]  }
 0x23c   : > { %7879 = vmatpush1.bf16.msra.mxu0 %v10515_v28  ;;  %7224 = vmatprep.subr.bf16.mxu1 %v10520_v29  ;;  %v10609_v28 = vld [vmem:[%s11976_s12 + $0x1734] ss:$8 sps:$4 sm:$0xff]   ;;  %v10604_v29 = vld [vmem:[%s11976_s12 + $0x730] ss:$8 sps:$4 sm:$0xff]  }
 0x23d   : > { %7880 = vmatprep.subr.bf16.mxu0 %v10523_v30  ;;  %v10607_v30 = vld [vmem:[%s11976_s12 + $0x1730] ss:$8 sps:$4 sm:$0xff]  }
 0x23f   : > { %7225 = vmatpush1.bf16.msra.mxu1 %v10518_v31  ;;  %v10612_v31 = vld [vmem:[%s11976_s12 + $0x744] ss:$8 sps:$4 sm:$0xff]  }
 0x240   : > { %7881 = vmatpush1.bf16.msra.mxu0 %v10521_v32  ;;  %7226 = vmatprep.subr.bf16.mxu1 %v10526_v33  ;;  %v10615_v32 = vld [vmem:[%s11976_s12 + $0x1744] ss:$8 sps:$4 sm:$0xff]   ;;  %v10610_v33 = vld [vmem:[%s11976_s12 + $0x740] ss:$8 sps:$4 sm:$0xff]  }
 0x241   : > { %7882 = vmatprep.subr.bf16.mxu0 %v10529_v34  ;;  %v10613_v34 = vld [vmem:[%s11976_s12 + $0x1740] ss:$8 sps:$4 sm:$0xff]  }
 0x243   : > { %7227 = vmatpush1.bf16.msra.mxu1 %v10524_v35  ;;  %v10618_v35 = vld [vmem:[%s11976_s12 + $0x754] ss:$8 sps:$4 sm:$0xff]  }
 0x244   : > { %7883 = vmatpush1.bf16.msra.mxu0 %v10527_v36  ;;  %7228 = vmatprep.subr.bf16.mxu1 %v10532_v18  ;;  %v10621_v36 = vld [vmem:[%s11976_s12 + $0x1754] ss:$8 sps:$4 sm:$0xff]   ;;  %v10616_v18 = vld [vmem:[%s11976_s12 + $0x750] ss:$8 sps:$4 sm:$0xff]  }
 0x245   : > { %7884 = vmatprep.subr.bf16.mxu0 %v10535_v38  ;;  %v10619_v38 = vld [vmem:[%s11976_s12 + $0x1750] ss:$8 sps:$4 sm:$0xff]  }
 0x247   : > { %7229 = vmatpush1.bf16.msra.mxu1 %v10530_v43  ;;  %v10624_v43 = vld [vmem:[%s11976_s12 + $0x764] ss:$8 sps:$4 sm:$0xff]  }
 0x248   : > { %7885 = vmatpush1.bf16.msra.mxu0 %v10533_v45  ;;  %7230 = vmatprep.subr.bf16.mxu1 %v10538_v25  ;;  %v10627_v45 = vld [vmem:[%s11976_s12 + $0x1764] ss:$8 sps:$4 sm:$0xff]   ;;  %v10622_v25 = vld [vmem:[%s11976_s12 + $0x760] ss:$8 sps:$4 sm:$0xff]  }
 0x249   : > { %7886 = vmatprep.subr.bf16.mxu0 %v10541_v46  ;;  %v10625_v46 = vld [vmem:[%s11976_s12 + $0x1760] ss:$8 sps:$4 sm:$0xff]  }
 0x24b   : > { %7231 = vmatpush1.bf16.msra.mxu1 %v10536_v26  ;;  %v10630_v26 = vld [vmem:[%s11976_s12 + $0x774] ss:$8 sps:$4 sm:$0xff]  }
 0x24c   : > { %7887 = vmatpush1.bf16.msra.mxu0 %v10539_v47  ;;  %7232 = vmatprep.subr.bf16.mxu1 %v10544_v37  ;;  %v10633_v47 = vld [vmem:[%s11976_s12 + $0x1774] ss:$8 sps:$4 sm:$0xff]   ;;  %v10628_v37 = vld [vmem:[%s11976_s12 + $0x770] ss:$8 sps:$4 sm:$0xff]  }
 0x24d   : > { %7888 = vmatprep.subr.bf16.mxu0 %v10547_v48  ;;  %v10631_v48 = vld [vmem:[%s11976_s12 + $0x1770] ss:$8 sps:$4 sm:$0xff]  }
 0x24f   : > { %7233 = vmatpush1.bf16.msra.mxu1 %v10542_v17  ;;  %v10636_v17 = vld [vmem:[%s11976_s12 + $0x784] ss:$8 sps:$4 sm:$0xff]  }
 0x250   : > { %7889 = vmatpush1.bf16.msra.mxu0 %v10545_v49  ;;  %7234 = vmatprep.subr.bf16.mxu1 %v10550_v51  ;;  %v10639_v49 = vld [vmem:[%s11976_s12 + $0x1784] ss:$8 sps:$4 sm:$0xff]   ;;  %v10634_v51 = vld [vmem:[%s11976_s12 + $0x780] ss:$8 sps:$4 sm:$0xff]  }
 0x251   : > { %7890 = vmatprep.subr.bf16.mxu0 %v10553_v52  ;;  %v10637_v52 = vld [vmem:[%s11976_s12 + $0x1780] ss:$8 sps:$4 sm:$0xff]  }
 0x253   : > { %7235 = vmatpush1.bf16.msra.mxu1 %v10548_v54  ;;  %v10642_v54 = vld [vmem:[%s11976_s12 + $0x794] ss:$8 sps:$4 sm:$0xff]  }
 0x254   : > { %7891 = vmatpush1.bf16.msra.mxu0 %v10551_v55  ;;  %7236 = vmatprep.subr.bf16.mxu1 %v10556_v39  ;;  %v10645_v55 = vld [vmem:[%s11976_s12 + $0x1794] ss:$8 sps:$4 sm:$0xff]   ;;  %v10640_v39 = vld [vmem:[%s11976_s12 + $0x790] ss:$8 sps:$4 sm:$0xff]  }
 0x255   : > { %7892 = vmatprep.subr.bf16.mxu0 %v10559_v40  ;;  %v10643_v40 = vld [vmem:[%s11976_s12 + $0x1790] ss:$8 sps:$4 sm:$0xff]  }
 0x257   : > { %7237 = vmatpush1.bf16.msra.mxu1 %v10554_v61  ;;  %v10648_v61 = vld [vmem:[%s11976_s12 + $0x7a4] ss:$8 sps:$4 sm:$0xff]  }
 0x258   : > { %7893 = vmatpush1.bf16.msra.mxu0 %v10557_v62  ;;  %7238 = vmatprep.subr.bf16.mxu1 %v10562_v63  ;;  %v10651_v62 = vld [vmem:[%s11976_s12 + $0x17a4] ss:$8 sps:$4 sm:$0xff]   ;;  %v10646_v63 = vld [vmem:[%s11976_s12 + $0x7a0] ss:$8 sps:$4 sm:$0xff]  }
 0x259   : > { %7894 = vmatprep.subr.bf16.mxu0 %v10565_v0  ;;  %v10649_v0 = vld [vmem:[%s11976_s12 + $0x17a0] ss:$8 sps:$4 sm:$0xff]  }
 0x25b   : > { %7239 = vmatpush1.bf16.msra.mxu1 %v10560_v41  ;;  %v10654_v41 = vld [vmem:[%s11976_s12 + $0x7b4] ss:$8 sps:$4 sm:$0xff]  }
 0x25c   : > { %7895 = vmatpush1.bf16.msra.mxu0 %v10563_v1  ;;  %7240 = vmatprep.subr.bf16.mxu1 %v10568_v56  ;;  %v10657_v1 = vld [vmem:[%s11976_s12 + $0x17b4] ss:$8 sps:$4 sm:$0xff]   ;;  %v10652_v56 = vld [vmem:[%s11976_s12 + $0x7b0] ss:$8 sps:$4 sm:$0xff]  }
 0x25d   : > { %7896 = vmatprep.subr.bf16.mxu0 %v10571_v3  ;;  %v10655_v3 = vld [vmem:[%s11976_s12 + $0x17b0] ss:$8 sps:$4 sm:$0xff]  }
 0x25f   : > { %7241 = vmatpush1.bf16.msra.mxu1 %v10566_v58  ;;  %v10660_v58 = vld [vmem:[%s11976_s12 + $0x7c4] ss:$8 sps:$4 sm:$0xff]  }
 0x260   : > { %7897 = vmatpush1.bf16.msra.mxu0 %v10569_v4  ;;  %7242 = vmatprep.subr.bf16.mxu1 %v10574_v5  ;;  %v10663_v4 = vld [vmem:[%s11976_s12 + $0x17c4] ss:$8 sps:$4 sm:$0xff]   ;;  %v10658_v5 = vld [vmem:[%s11976_s12 + $0x7c0] ss:$8 sps:$4 sm:$0xff]  }
 0x261   : > { %7898 = vmatprep.subr.bf16.mxu0 %v10577_v6  ;;  %v10661_v6 = vld [vmem:[%s11976_s12 + $0x17c0] ss:$8 sps:$4 sm:$0xff]  }
 0x263   : > { %7243 = vmatpush1.bf16.msra.mxu1 %v10572_v7  ;;  %v10666_v7 = vld [vmem:[%s11976_s12 + $0x7d4] ss:$8 sps:$4 sm:$0xff]  }
 0x264   : > { %7899 = vmatpush1.bf16.msra.mxu0 %v10575_v8  ;;  %7244 = vmatprep.subr.bf16.mxu1 %v10580_v9  ;;  %v10669_v8 = vld [vmem:[%s11976_s12 + $0x17d4] ss:$8 sps:$4 sm:$0xff]   ;;  %v10664_v9 = vld [vmem:[%s11976_s12 + $0x7d0] ss:$8 sps:$4 sm:$0xff]  }
 0x265   : > { %7900 = vmatprep.subr.bf16.mxu0 %v10583_v10  ;;  %v10667_v10 = vld [vmem:[%s11976_s12 + $0x17d0] ss:$8 sps:$4 sm:$0xff]  }
 0x267   : > { %7245 = vmatpush1.bf16.msra.mxu1 %v10578_v11  ;;  %v10672_v11 = vld [vmem:[%s11976_s12 + $0x7e4] ss:$8 sps:$4 sm:$0xff]  }
 0x268   : > { %7901 = vmatpush1.bf16.msra.mxu0 %v10581_v12  ;;  %7255 = vmatprep.subr.bf16.mxu1 %v10587_v60  ;;  %v10675_v12 = vld [vmem:[%s11976_s12 + $0x17e4] ss:$8 sps:$4 sm:$0xff]   ;;  %v12637_v60 = vld [vmem:[%s11969_s8 + $0x10] sm:$0xff] }
 0x269   : > { %7911 = vmatprep.subr.bf16.mxu0 %v10591_v14  ;;  %v12640_v14 = vld [vmem:[%s11969_s8 + $0x30] sm:$0xff] }
 0x26a   : > { %7247 = vmatmul.mubr.bf16.vlgmr.msra.gmra.mrb[0].mxu1 %v12568_v15 }
 0x26b   : > { %7903 = vmatmul.mubr.bf16.vlgmr.msra.gmra.mrb[0].mxu0 %v12572_v16  ;;  %7256 = vmatpush1.bf16.msra.mxu1 %v10585_v19  ;;  %v10670_v19 = vld [vmem:[%s11976_s12 + $0x7e0] ss:$8 sps:$4 sm:$0xff]  }
 0x26c   : > { %7912 = vmatpush1.bf16.msra.mxu0 %v10589_v20  ;;  %7257 = vmatprep.subr.bf16.mxu1 %v10594_v21  ;;  %v10673_v20 = vld [vmem:[%s11976_s12 + $0x17e0] ss:$8 sps:$4 sm:$0xff]   ;;  %v10678_v21 = vld [vmem:[%s11976_s12 + $0x7f4] ss:$8 sps:$4 sm:$0xff]  }
 0x26d   : > { %7913 = vmatprep.subr.bf16.mxu0 %v10597_v22  ;;  %7287 = vmatprep.mubr.bf16.mxu1 %v1489_v42  ;;  %v10681_v22 = vld [vmem:[%s11976_s12 + $0x17f4] ss:$8 sps:$4 sm:$0xff]   ;;  %v12648_v42 = vrot.slane %v12637_v60, %v12038_v50 }
 0x26e   : > { %7943 = vmatprep.mubr.bf16.mxu0 %v1685_v23  ;;  %v12652_v23 = vrot.slane %v12640_v14, %v12038_v50 }
 0x26f   : > { %7258 = vmatpush1.bf16.msra.mxu1 %v10592_v2  ;;  %v10676_v2 = vld [vmem:[%s11976_s12 + $0x7f0] ss:$8 sps:$4 sm:$0xff]  }
 0x270   : > { %7914 = vmatpush1.bf16.msra.mxu0 %v10595_v24  ;;  %7259 = vmatprep.subr.bf16.mxu1 %v10600_v13  ;;  %v10679_v24 = vld [vmem:[%s11976_s12 + $0x17f0] ss:$8 sps:$4 sm:$0xff]   ;;  %v10684_v13 = vld [vmem:[%s11976_s12 + $0x804] ss:$8 sps:$4 sm:$0xff]  }
 0x271   : > { %7915 = vmatprep.subr.bf16.mxu0 %v10603_v53  ;;  %v10687_v53 = vld [vmem:[%s11976_s12 + $0x1804] ss:$8 sps:$4 sm:$0xff]  }
 0x273   : > { %7260 = vmatpush1.bf16.msra.mxu1 %v10598_v59  ;;  %v1505_v59 = vcombine.high %v12648_v42, %v12648_v42 }
 0x274   : > { %7916 = vmatpush1.bf16.msra.mxu0 %v10601_v57  ;;  %7261 = vmatprep.subr.bf16.mxu1 %v10606_v27  ;;  %v1701_v57 = vcombine.high %v12652_v23, %v12652_v23  ;;  %v1487_v27 = vcombine.high %v12568_v15, %v12568_v15 }
 0x275   : > { %7917 = vmatprep.subr.bf16.mxu0 %v10609_v28  ;;  %v1683_v28 = vcombine.high %v12572_v16, %v12572_v16  ;;  %v10688_v16 = vld [vmem:[%s11976_s12 + $0x810] ss:$8 sps:$4 sm:$0xff]  }
 0x276   : > { %v12674_v15 = vrot.slane %v1701_v57, %v12038_v50  ;;  %v10763_v57 = vld [vmem:[%s11976_s12 + $0x18d0] ss:$8 sps:$4 sm:$0xff]  }
 0x277   : > { %7262 = vmatpush1.bf16.msra.mxu1 %v10604_v29  ;;  %v10682_v29 = vld [vmem:[%s11976_s12 + $0x800] ss:$8 sps:$4 sm:$0xff]  }
 0x278   : > { %7918 = vmatpush1.bf16.msra.mxu0 %v10607_v30  ;;  %7263 = vmatprep.subr.bf16.mxu1 %v10612_v31  ;;  %v10685_v30 = vld [vmem:[%s11976_s12 + $0x1800] ss:$8 sps:$4 sm:$0xff]   ;;  %v10690_v31 = vld [vmem:[%s11976_s12 + $0x814] ss:$8 sps:$4 sm:$0xff]  }
 0x279   : > { %7919 = vmatprep.subr.bf16.mxu0 %v10615_v32  ;;  %v10693_v32 = vld [vmem:[%s11976_s12 + $0x1814] ss:$8 sps:$4 sm:$0xff]  }
 0x27b   : > { %7264 = vmatpush1.bf16.msra.mxu1 %v10610_v33  ;;  %v12671_v33 = vrot.slane %v1505_v59, %v12038_v50  ;;  %v10760_v59 = vld [vmem:[%s11976_s12 + $0x8d0] ss:$8 sps:$4 sm:$0xff]  }
 0x27c   : > { %7920 = vmatpush1.bf16.msra.mxu0 %v10613_v34  ;;  %7265 = vmatprep.subr.bf16.mxu1 %v10618_v35  ;;  %v10691_v34 = vld [vmem:[%s11976_s12 + $0x1810] ss:$8 sps:$4 sm:$0xff]   ;;  %v10696_v35 = vld [vmem:[%s11976_s12 + $0x824] ss:$8 sps:$4 sm:$0xff]  }
 0x27d   : > { %7921 = vmatprep.subr.bf16.mxu0 %v10621_v36  ;;  %v10699_v36 = vld [vmem:[%s11976_s12 + $0x1824] ss:$8 sps:$4 sm:$0xff]  }
 0x27f   : > { %7266 = vmatpush1.bf16.msra.mxu1 %v10616_v18  ;;  %v10694_v18 = vld [vmem:[%s11976_s12 + $0x820] ss:$8 sps:$4 sm:$0xff]  }
 0x280   : > { %7922 = vmatpush1.bf16.msra.mxu0 %v10619_v38  ;;  %7267 = vmatprep.subr.bf16.mxu1 %v10624_v43  ;;  %v10697_v38 = vld [vmem:[%s11976_s12 + $0x1820] ss:$8 sps:$4 sm:$0xff]   ;;  %v10702_v43 = vld [vmem:[%s11976_s12 + $0x834] ss:$8 sps:$4 sm:$0xff]  }
 0x281   : > { %7923 = vmatprep.subr.bf16.mxu0 %v10627_v45  ;;  %v10705_v45 = vld [vmem:[%s11976_s12 + $0x1834] ss:$8 sps:$4 sm:$0xff]  }
 0x283   : > { %7268 = vmatpush1.bf16.msra.mxu1 %v10622_v25  ;;  %v10700_v25 = vld [vmem:[%s11976_s12 + $0x830] ss:$8 sps:$4 sm:$0xff]  }
 0x284   : > { %7924 = vmatpush1.bf16.msra.mxu0 %v10625_v46  ;;  %7269 = vmatprep.subr.bf16.mxu1 %v10630_v26  ;;  %v10703_v46 = vld [vmem:[%s11976_s12 + $0x1830] ss:$8 sps:$4 sm:$0xff]   ;;  %v10708_v26 = vld [vmem:[%s11976_s12 + $0x844] ss:$8 sps:$4 sm:$0xff]  }
 0x285   : > { %7925 = vmatprep.subr.bf16.mxu0 %v10633_v47  ;;  %v10711_v47 = vld [vmem:[%s11976_s12 + $0x1844] ss:$8 sps:$4 sm:$0xff]  }
 0x287   : > { %7270 = vmatpush1.bf16.msra.mxu1 %v10628_v37  ;;  %v10706_v37 = vld [vmem:[%s11976_s12 + $0x840] ss:$8 sps:$4 sm:$0xff]  }
 0x288   : > { %7926 = vmatpush1.bf16.msra.mxu0 %v10631_v48  ;;  %7271 = vmatprep.subr.bf16.mxu1 %v10636_v17  ;;  %v10709_v48 = vld [vmem:[%s11976_s12 + $0x1840] ss:$8 sps:$4 sm:$0xff]   ;;  %v10714_v17 = vld [vmem:[%s11976_s12 + $0x854] ss:$8 sps:$4 sm:$0xff]  }
 0x289   : > { %7927 = vmatprep.subr.bf16.mxu0 %v10639_v49  ;;  %v10717_v49 = vld [vmem:[%s11976_s12 + $0x1854] ss:$8 sps:$4 sm:$0xff]  }
 0x28b   : > { %7272 = vmatpush1.bf16.msra.mxu1 %v10634_v51  ;;  %v10712_v51 = vld [vmem:[%s11976_s12 + $0x850] ss:$8 sps:$4 sm:$0xff]  }
 0x28c   : > { %7928 = vmatpush1.bf16.msra.mxu0 %v10637_v52  ;;  %7273 = vmatprep.subr.bf16.mxu1 %v10642_v54  ;;  %v10715_v52 = vld [vmem:[%s11976_s12 + $0x1850] ss:$8 sps:$4 sm:$0xff]   ;;  %v10720_v54 = vld [vmem:[%s11976_s12 + $0x864] ss:$8 sps:$4 sm:$0xff]  }
 0x28d   : > { %7929 = vmatprep.subr.bf16.mxu0 %v10645_v55  ;;  %v10723_v55 = vld [vmem:[%s11976_s12 + $0x1864] ss:$8 sps:$4 sm:$0xff]  }
 0x28f   : > { %7274 = vmatpush1.bf16.msra.mxu1 %v10640_v39  ;;  %v10718_v39 = vld [vmem:[%s11976_s12 + $0x860] ss:$8 sps:$4 sm:$0xff]  }
 0x290   : > { %7930 = vmatpush1.bf16.msra.mxu0 %v10643_v40  ;;  %7275 = vmatprep.subr.bf16.mxu1 %v10648_v61  ;;  %v10721_v40 = vld [vmem:[%s11976_s12 + $0x1860] ss:$8 sps:$4 sm:$0xff]   ;;  %v10726_v61 = vld [vmem:[%s11976_s12 + $0x874] ss:$8 sps:$4 sm:$0xff]  }
 0x291   : > { %7931 = vmatprep.subr.bf16.mxu0 %v10651_v62  ;;  %v10729_v62 = vld [vmem:[%s11976_s12 + $0x1874] ss:$8 sps:$4 sm:$0xff]  }
 0x293   : > { %7276 = vmatpush1.bf16.msra.mxu1 %v10646_v63  ;;  %v10724_v63 = vld [vmem:[%s11976_s12 + $0x870] ss:$8 sps:$4 sm:$0xff]  }
 0x294   : > { %7932 = vmatpush1.bf16.msra.mxu0 %v10649_v0  ;;  %7277 = vmatprep.subr.bf16.mxu1 %v10654_v41  ;;  %v10727_v0 = vld [vmem:[%s11976_s12 + $0x1870] ss:$8 sps:$4 sm:$0xff]   ;;  %v10732_v41 = vld [vmem:[%s11976_s12 + $0x884] ss:$8 sps:$4 sm:$0xff]  }
 0x295   : > { %7933 = vmatprep.subr.bf16.mxu0 %v10657_v1  ;;  %v10735_v1 = vld [vmem:[%s11976_s12 + $0x1884] ss:$8 sps:$4 sm:$0xff]  }
 0x297   : > { %7278 = vmatpush1.bf16.msra.mxu1 %v10652_v56  ;;  %v10730_v56 = vld [vmem:[%s11976_s12 + $0x880] ss:$8 sps:$4 sm:$0xff]  }
 0x298   : > { %7934 = vmatpush1.bf16.msra.mxu0 %v10655_v3  ;;  %7279 = vmatprep.subr.bf16.mxu1 %v10660_v58  ;;  %v10733_v3 = vld [vmem:[%s11976_s12 + $0x1880] ss:$8 sps:$4 sm:$0xff]   ;;  %v10738_v58 = vld [vmem:[%s11976_s12 + $0x894] ss:$8 sps:$4 sm:$0xff]  }
 0x299   : > { %7935 = vmatprep.subr.bf16.mxu0 %v10663_v4  ;;  %v10741_v4 = vld [vmem:[%s11976_s12 + $0x1894] ss:$8 sps:$4 sm:$0xff]  }
 0x29b   : > { %7280 = vmatpush1.bf16.msra.mxu1 %v10658_v5  ;;  %v10736_v5 = vld [vmem:[%s11976_s12 + $0x890] ss:$8 sps:$4 sm:$0xff]  }
 0x29c   : > { %7936 = vmatpush1.bf16.msra.mxu0 %v10661_v6  ;;  %7281 = vmatprep.subr.bf16.mxu1 %v10666_v7  ;;  %v10739_v6 = vld [vmem:[%s11976_s12 + $0x1890] ss:$8 sps:$4 sm:$0xff]   ;;  %v10744_v7 = vld [vmem:[%s11976_s12 + $0x8a4] ss:$8 sps:$4 sm:$0xff]  }
 0x29d   : > { %7937 = vmatprep.subr.bf16.mxu0 %v10669_v8  ;;  %v10747_v8 = vld [vmem:[%s11976_s12 + $0x18a4] ss:$8 sps:$4 sm:$0xff]  }
 0x29f   : > { %7282 = vmatpush1.bf16.msra.mxu1 %v10664_v9  ;;  %v10742_v9 = vld [vmem:[%s11976_s12 + $0x8a0] ss:$8 sps:$4 sm:$0xff]  }
 0x2a0   : > { %7938 = vmatpush1.bf16.msra.mxu0 %v10667_v10  ;;  %7283 = vmatprep.subr.bf16.mxu1 %v10672_v11  ;;  %v10745_v10 = vld [vmem:[%s11976_s12 + $0x18a0] ss:$8 sps:$4 sm:$0xff]   ;;  %v10750_v11 = vld [vmem:[%s11976_s12 + $0x8b4] ss:$8 sps:$4 sm:$0xff]  }
 0x2a1   : > { %7939 = vmatprep.subr.bf16.mxu0 %v10675_v12  ;;  %v10753_v12 = vld [vmem:[%s11976_s12 + $0x18b4] ss:$8 sps:$4 sm:$0xff]  }
 0x2a3   : > { %7284 = vmatpush1.bf16.msra.mxu1 %v10670_v19  ;;  %v10748_v19 = vld [vmem:[%s11976_s12 + $0x8b0] ss:$8 sps:$4 sm:$0xff]  }
 0x2a4   : > { %7940 = vmatpush1.bf16.msra.mxu0 %v10673_v20  ;;  %7285 = vmatprep.subr.bf16.mxu1 %v10678_v21  ;;  %v10751_v20 = vld [vmem:[%s11976_s12 + $0x18b0] ss:$8 sps:$4 sm:$0xff]   ;;  %v10756_v21 = vld [vmem:[%s11976_s12 + $0x8c4] ss:$8 sps:$4 sm:$0xff]  }
 0x2a5   : > { %7941 = vmatprep.subr.bf16.mxu0 %v10681_v22  ;;  %v10759_v22 = vld [vmem:[%s11976_s12 + $0x18c4] ss:$8 sps:$4 sm:$0xff]  }
 0x2a7   : > { %7286 = vmatpush1.bf16.msra.mxu1 %v10676_v2  ;;  %v10754_v2 = vld [vmem:[%s11976_s12 + $0x8c0] ss:$8 sps:$4 sm:$0xff]  }
 0x2a8   : > { %7942 = vmatpush1.bf16.msra.mxu0 %v10679_v24  ;;  %7296 = vmatprep.subr.bf16.mxu1 %v10684_v13  ;;  %v10757_v24 = vld [vmem:[%s11976_s12 + $0x18c0] ss:$8 sps:$4 sm:$0xff]   ;;  %v10762_v13 = vld [vmem:[%s11976_s12 + $0x8d4] ss:$8 sps:$4 sm:$0xff]  }
 0x2a9   : > { %7952 = vmatprep.subr.bf16.mxu0 %v10687_v53  ;;  %v10765_v53 = vld [vmem:[%s11976_s12 + $0x18d4] ss:$8 sps:$4 sm:$0xff]  }
 0x2aa   : > { %7288 = vmatmul.mubr.bf16.vlgmr.msra.gmra.mrb[0].mxu1 %v1487_v27  ;;  %v10768_v27 = vld [vmem:[%s11976_s12 + $0x8e4] ss:$8 sps:$4 sm:$0xff]  }
 0x2ab   : > { %7944 = vmatmul.mubr.bf16.vlgmr.msra.gmra.mrb[0].mxu0 %v1683_v28  ;;  %7297 = vmatpush1.bf16.msra.mxu1 %v10682_v29  ;;  %v10771_v28 = vld [vmem:[%s11976_s12 + $0x18e4] ss:$8 sps:$4 sm:$0xff]   ;;  %v10766_v29 = vld [vmem:[%s11976_s12 + $0x8e0] ss:$8 sps:$4 sm:$0xff]  }
 0x2ac   : > { %7953 = vmatpush1.bf16.msra.mxu0 %v10685_v30  ;;  %7298 = vmatprep.subr.bf16.mxu1 %v10690_v31  ;;  %v10769_v30 = vld [vmem:[%s11976_s12 + $0x18e0] ss:$8 sps:$4 sm:$0xff]   ;;  %v10774_v31 = vld [vmem:[%s11976_s12 + $0x8f4] ss:$8 sps:$4 sm:$0xff]  }
 0x2ad   : > { %7954 = vmatprep.subr.bf16.mxu0 %v10693_v32  ;;  %7328 = vmatprep.mubr.bf16.mxu1 %v12671_v33  ;;  %v10777_v32 = vld [vmem:[%s11976_s12 + $0x18f4] ss:$8 sps:$4 sm:$0xff]  }
 0x2ae   : > { %7984 = vmatprep.mubr.bf16.mxu0 %v12674_v15 }
 0x2af   : > { %7299 = vmatpush1.bf16.msra.mxu1 %v10688_v16  ;;  %v10772_v16 = vld [vmem:[%s11976_s12 + $0x8f0] ss:$8 sps:$4 sm:$0xff]  }
 0x2b0   : > { %7955 = vmatpush1.bf16.msra.mxu0 %v10691_v34  ;;  %7300 = vmatprep.subr.bf16.mxu1 %v10696_v35  ;;  %v10775_v34 = vld [vmem:[%s11976_s12 + $0x18f0] ss:$8 sps:$4 sm:$0xff]   ;;  %v10780_v35 = vld [vmem:[%s11976_s12 + $0x904] ss:$8 sps:$4 sm:$0xff]  }
 0x2b1   : > { %7956 = vmatprep.subr.bf16.mxu0 %v10699_v36  ;;  %v10783_v36 = vld [vmem:[%s11976_s12 + $0x1904] ss:$8 sps:$4 sm:$0xff]  }
 0x2b3   : > { %7301 = vmatpush1.bf16.msra.mxu1 %v10694_v18  ;;  %v12740_v18 = vrot.slane %v12648_v42, %v12038_v50  ;;  %v1537_v42 = vcombine.high %v12671_v33, %v12671_v33  ;;  %v10792_v33 = vld [vmem:[%s11976_s12 + $0x924] ss:$8 sps:$4 sm:$0xff]  }
 0x2b4   : > { %7957 = vmatpush1.bf16.msra.mxu0 %v10697_v38  ;;  %7302 = vmatprep.subr.bf16.mxu1 %v10702_v43  ;;  %v12744_v38 = vrot.slane %v12652_v23, %v12038_v50  ;;  %v10778_v43 = vld [vmem:[%s11976_s12 + $0x900] ss:$8 sps:$4 sm:$0xff]   ;;  %v10784_v23 = vld [vmem:[%s11976_s12 + $0x910] ss:$8 sps:$4 sm:$0xff]  }
 0x2b5   : > { %7958 = vmatprep.subr.bf16.mxu0 %v10705_v45  ;;  %v10781_v45 = vld [vmem:[%s11976_s12 + $0x1900] ss:$8 sps:$4 sm:$0xff]  }
 0x2b7   : > { %7303 = vmatpush1.bf16.msra.mxu1 %v10700_v25  ;;  %v10786_v25 = vld [vmem:[%s11976_s12 + $0x914] ss:$8 sps:$4 sm:$0xff]  }
 0x2b8   : > { %7959 = vmatpush1.bf16.msra.mxu0 %v10703_v46  ;;  %7304 = vmatprep.subr.bf16.mxu1 %v10708_v26  ;;  %v10789_v46 = vld [vmem:[%s11976_s12 + $0x1914] ss:$8 sps:$4 sm:$0xff]   ;;  %v1733_v26 = vcombine.high %v12674_v15, %v12674_v15  ;;  %v10790_v15 = vld [vmem:[%s11976_s12 + $0x920] ss:$8 sps:$4 sm:$0xff]  }
 0x2b9   : > { %7960 = vmatprep.subr.bf16.mxu0 %v10711_v47  ;;  %v10787_v47 = vld [vmem:[%s11976_s12 + $0x1910] ss:$8 sps:$4 sm:$0xff]  }
 0x2bb   : > { %7305 = vmatpush1.bf16.msra.mxu1 %v10706_v37  ;;  %v10795_v37 = vld [vmem:[%s11976_s12 + $0x1924] ss:$8 sps:$4 sm:$0xff]  }
 0x2bc   : > { %7961 = vmatpush1.bf16.msra.mxu0 %v10709_v48  ;;  %7306 = vmatprep.subr.bf16.mxu1 %v10714_v17  ;;  %v10793_v48 = vld [vmem:[%s11976_s12 + $0x1920] ss:$8 sps:$4 sm:$0xff]   ;;  %v10798_v17 = vld [vmem:[%s11976_s12 + $0x934] ss:$8 sps:$4 sm:$0xff]  }
 0x2bd   : > { %7962 = vmatprep.subr.bf16.mxu0 %v10717_v49  ;;  %v10801_v49 = vld [vmem:[%s11976_s12 + $0x1934] ss:$8 sps:$4 sm:$0xff]  }
 0x2bf   : > { %7307 = vmatpush1.bf16.msra.mxu1 %v10712_v51  ;;  %v10796_v51 = vld [vmem:[%s11976_s12 + $0x930] ss:$8 sps:$4 sm:$0xff]  }
 0x2c0   : > { %7963 = vmatpush1.bf16.msra.mxu0 %v10715_v52  ;;  %7308 = vmatprep.subr.bf16.mxu1 %v10720_v54  ;;  %v10799_v52 = vld [vmem:[%s11976_s12 + $0x1930] ss:$8 sps:$4 sm:$0xff]   ;;  %v10804_v54 = vld [vmem:[%s11976_s12 + $0x944] ss:$8 sps:$4 sm:$0xff]  }
 0x2c1   : > { %7964 = vmatprep.subr.bf16.mxu0 %v10723_v55  ;;  %v10807_v55 = vld [vmem:[%s11976_s12 + $0x1944] ss:$8 sps:$4 sm:$0xff]  }
 0x2c3   : > { %7309 = vmatpush1.bf16.msra.mxu1 %v10718_v39  ;;  %v10802_v39 = vld [vmem:[%s11976_s12 + $0x940] ss:$8 sps:$4 sm:$0xff]  }
 0x2c4   : > { %7965 = vmatpush1.bf16.msra.mxu0 %v10721_v40  ;;  %7310 = vmatprep.subr.bf16.mxu1 %v10726_v61  ;;  %v10805_v40 = vld [vmem:[%s11976_s12 + $0x1940] ss:$8 sps:$4 sm:$0xff]   ;;  %v10810_v61 = vld [vmem:[%s11976_s12 + $0x954] ss:$8 sps:$4 sm:$0xff]  }
 0x2c5   : > { %7966 = vmatprep.subr.bf16.mxu0 %v10729_v62  ;;  %v10813_v62 = vld [vmem:[%s11976_s12 + $0x1954] ss:$8 sps:$4 sm:$0xff]  }
 0x2c7   : > { %7311 = vmatpush1.bf16.msra.mxu1 %v10724_v63  ;;  %v10808_v63 = vld [vmem:[%s11976_s12 + $0x950] ss:$8 sps:$4 sm:$0xff]  }
 0x2c8   : > { %7967 = vmatpush1.bf16.msra.mxu0 %v10727_v0  ;;  %7312 = vmatprep.subr.bf16.mxu1 %v10732_v41  ;;  %v10811_v0 = vld [vmem:[%s11976_s12 + $0x1950] ss:$8 sps:$4 sm:$0xff]   ;;  %v10816_v41 = vld [vmem:[%s11976_s12 + $0x964] ss:$8 sps:$4 sm:$0xff]  }
 0x2c9   : > { %7968 = vmatprep.subr.bf16.mxu0 %v10735_v1  ;;  %v10819_v1 = vld [vmem:[%s11976_s12 + $0x1964] ss:$8 sps:$4 sm:$0xff]  }
 0x2cb   : > { %7313 = vmatpush1.bf16.msra.mxu1 %v10730_v56  ;;  %v10814_v56 = vld [vmem:[%s11976_s12 + $0x960] ss:$8 sps:$4 sm:$0xff]  }
 0x2cc   : > { %7969 = vmatpush1.bf16.msra.mxu0 %v10733_v3  ;;  %7314 = vmatprep.subr.bf16.mxu1 %v10738_v58  ;;  %v10817_v3 = vld [vmem:[%s11976_s12 + $0x1960] ss:$8 sps:$4 sm:$0xff]   ;;  %v10822_v58 = vld [vmem:[%s11976_s12 + $0x974] ss:$8 sps:$4 sm:$0xff]  }
 0x2cd   : > { %7970 = vmatprep.subr.bf16.mxu0 %v10741_v4  ;;  %v10825_v4 = vld [vmem:[%s11976_s12 + $0x1974] ss:$8 sps:$4 sm:$0xff]  }
 0x2cf   : > { %7315 = vmatpush1.bf16.msra.mxu1 %v10736_v5  ;;  %v10820_v5 = vld [vmem:[%s11976_s12 + $0x970] ss:$8 sps:$4 sm:$0xff]  }
 0x2d0   : > { %7971 = vmatpush1.bf16.msra.mxu0 %v10739_v6  ;;  %7316 = vmatprep.subr.bf16.mxu1 %v10744_v7  ;;  %v10823_v6 = vld [vmem:[%s11976_s12 + $0x1970] ss:$8 sps:$4 sm:$0xff]   ;;  %v10828_v7 = vld [vmem:[%s11976_s12 + $0x984] ss:$8 sps:$4 sm:$0xff]  }
 0x2d1   : > { %7972 = vmatprep.subr.bf16.mxu0 %v10747_v8  ;;  %v10831_v8 = vld [vmem:[%s11976_s12 + $0x1984] ss:$8 sps:$4 sm:$0xff]  }
 0x2d3   : > { %7317 = vmatpush1.bf16.msra.mxu1 %v10742_v9  ;;  %v10826_v9 = vld [vmem:[%s11976_s12 + $0x980] ss:$8 sps:$4 sm:$0xff]  }
 0x2d4   : > { %7973 = vmatpush1.bf16.msra.mxu0 %v10745_v10  ;;  %7318 = vmatprep.subr.bf16.mxu1 %v10750_v11  ;;  %v10829_v10 = vld [vmem:[%s11976_s12 + $0x1980] ss:$8 sps:$4 sm:$0xff]   ;;  %v10834_v11 = vld [vmem:[%s11976_s12 + $0x994] ss:$8 sps:$4 sm:$0xff]  }
 0x2d5   : > { %7974 = vmatprep.subr.bf16.mxu0 %v10753_v12  ;;  %v10837_v12 = vld [vmem:[%s11976_s12 + $0x1994] ss:$8 sps:$4 sm:$0xff]  }
 0x2d7   : > { %7319 = vmatpush1.bf16.msra.mxu1 %v10748_v19  ;;  %v10832_v19 = vld [vmem:[%s11976_s12 + $0x990] ss:$8 sps:$4 sm:$0xff]  }
 0x2d8   : > { %7975 = vmatpush1.bf16.msra.mxu0 %v10751_v20  ;;  %7320 = vmatprep.subr.bf16.mxu1 %v10756_v21  ;;  %v10835_v20 = vld [vmem:[%s11976_s12 + $0x1990] ss:$8 sps:$4 sm:$0xff]   ;;  %v10840_v21 = vld [vmem:[%s11976_s12 + $0x9a4] ss:$8 sps:$4 sm:$0xff]  }
 0x2d9   : > { %7976 = vmatprep.subr.bf16.mxu0 %v10759_v22  ;;  %v10843_v22 = vld [vmem:[%s11976_s12 + $0x19a4] ss:$8 sps:$4 sm:$0xff]  }
 0x2db   : > { %7321 = vmatpush1.bf16.msra.mxu1 %v10754_v2  ;;  %v10838_v2 = vld [vmem:[%s11976_s12 + $0x9a0] ss:$8 sps:$4 sm:$0xff]  }
 0x2dc   : > { %7977 = vmatpush1.bf16.msra.mxu0 %v10757_v24  ;;  %7322 = vmatprep.subr.bf16.mxu1 %v10762_v13  ;;  %v10841_v24 = vld [vmem:[%s11976_s12 + $0x19a0] ss:$8 sps:$4 sm:$0xff]   ;;  %v10846_v13 = vld [vmem:[%s11976_s12 + $0x9b4] ss:$8 sps:$4 sm:$0xff]  }
 0x2dd   : > { %7978 = vmatprep.subr.bf16.mxu0 %v10765_v53  ;;  %v10849_v53 = vld [vmem:[%s11976_s12 + $0x19b4] ss:$8 sps:$4 sm:$0xff]  }
 0x2df   : > { %7323 = vmatpush1.bf16.msra.mxu1 %v10760_v59  ;;  %v10844_v59 = vld [vmem:[%s11976_s12 + $0x9b0] ss:$8 sps:$4 sm:$0xff]  }
 0x2e0   : > { %7979 = vmatpush1.bf16.msra.mxu0 %v10763_v57  ;;  %7324 = vmatprep.subr.bf16.mxu1 %v10768_v27  ;;  %v10847_v57 = vld [vmem:[%s11976_s12 + $0x19b0] ss:$8 sps:$4 sm:$0xff]   ;;  %v10852_v27 = vld [vmem:[%s11976_s12 + $0x9c4] ss:$8 sps:$4 sm:$0xff]  }
 0x2e1   : > { %7980 = vmatprep.subr.bf16.mxu0 %v10771_v28  ;;  %v10855_v28 = vld [vmem:[%s11976_s12 + $0x19c4] ss:$8 sps:$4 sm:$0xff]  }
 0x2e3   : > { %7325 = vmatpush1.bf16.msra.mxu1 %v10766_v29  ;;  %v10850_v29 = vld [vmem:[%s11976_s12 + $0x9c0] ss:$8 sps:$4 sm:$0xff]  }
 0x2e4   : > { %7981 = vmatpush1.bf16.msra.mxu0 %v10769_v30  ;;  %7326 = vmatprep.subr.bf16.mxu1 %v10774_v31  ;;  %v10853_v30 = vld [vmem:[%s11976_s12 + $0x19c0] ss:$8 sps:$4 sm:$0xff]   ;;  %v10858_v31 = vld [vmem:[%s11976_s12 + $0x9d4] ss:$8 sps:$4 sm:$0xff]  }
 0x2e5   : > { %7982 = vmatprep.subr.bf16.mxu0 %v10777_v32  ;;  %v10861_v32 = vld [vmem:[%s11976_s12 + $0x19d4] ss:$8 sps:$4 sm:$0xff]  }
 0x2e7   : > { %7327 = vmatpush1.bf16.msra.mxu1 %v10772_v16  ;;  %v10856_v16 = vld [vmem:[%s11976_s12 + $0x9d0] ss:$8 sps:$4 sm:$0xff]  }
 0x2e8   : > { %7983 = vmatpush1.bf16.msra.mxu0 %v10775_v34  ;;  %7337 = vmatprep.subr.bf16.mxu1 %v10780_v35  ;;  %v10859_v34 = vld [vmem:[%s11976_s12 + $0x19d0] ss:$8 sps:$4 sm:$0xff]   ;;  %v10864_v35 = vld [vmem:[%s11976_s12 + $0x9e4] ss:$8 sps:$4 sm:$0xff]  }
 0x2e9   : > { %7993 = vmatprep.subr.bf16.mxu0 %v10783_v36  ;;  %v10867_v36 = vld [vmem:[%s11976_s12 + $0x19e4] ss:$8 sps:$4 sm:$0xff]  }
 0x2ea   : > { %7329 = vmatmul.mubr.bf16.vlgmr.msra.gmra.mrb[0].mxu1 %v12740_v18 }
 0x2eb   : > { %7985 = vmatmul.mubr.bf16.vlgmr.msra.gmra.mrb[0].mxu0 %v12744_v38  ;;  %7338 = vmatpush1.bf16.msra.mxu1 %v10778_v43  ;;  %v1490_v43 = vcombine.high %v12637_v60, %v12637_v60  ;;  %v10868_v60 = vld [vmem:[%s11976_s12 + $0x9f0] ss:$8 sps:$4 sm:$0xff]  }
 0x2ec   : > { %7994 = vmatpush1.bf16.msra.mxu0 %v10781_v45  ;;  %7339 = vmatprep.subr.bf16.mxu1 %v10786_v25  ;;  %v1686_v45 = vcombine.high %v12640_v14, %v12640_v14  ;;  %v10862_v25 = vld [vmem:[%s11976_s12 + $0x9e0] ss:$8 sps:$4 sm:$0xff]   ;;  %v10871_v14 = vld [vmem:[%s11976_s12 + $0x19f0] ss:$8 sps:$4 sm:$0xff]  }
 0x2ed   : > { %7995 = vmatprep.subr.bf16.mxu0 %v10789_v46  ;;  %7369 = vmatprep.mubr.bf16.mxu1 %v1537_v42  ;;  %v10865_v46 = vld [vmem:[%s11976_s12 + $0x19e0] ss:$8 sps:$4 sm:$0xff]   ;;  %v10870_v42 = vld [vmem:[%s11976_s12 + $0x9f4] ss:$8 sps:$4 sm:$0xff]  }
 0x2ee   : > { %8025 = vmatprep.mubr.bf16.mxu0 %v1733_v26  ;;  %v10873_v26 = vld [vmem:[%s11976_s12 + $0x19f4] ss:$8 sps:$4 sm:$0xff]  }
 0x2ef   : > { %7340 = vmatpush1.bf16.msra.mxu1 %v10784_v23  ;;  %v12817_v23 = vrot.slane %v1490_v43, %v12038_v50  ;;  %v10940_v43 = vld [vmem:[%s11976_s12 + $0xab0] ss:$8 sps:$4 sm:$0xff]  }
 0x2f0   : > { %7996 = vmatpush1.bf16.msra.mxu0 %v10787_v47  ;;  %7341 = vmatprep.subr.bf16.mxu1 %v10792_v33  ;;  %v12820_v47 = vrot.slane %v1686_v45, %v12038_v50  ;;  %v10876_v33 = vld [vmem:[%s11976_s12 + $0xa04] ss:$8 sps:$4 sm:$0xff]   ;;  %v10943_v45 = vld [vmem:[%s11976_s12 + $0x1ab0] ss:$8 sps:$4 sm:$0xff]  }
 0x2f1   : > { %7997 = vmatprep.subr.bf16.mxu0 %v10795_v37  ;;  %v10879_v37 = vld [vmem:[%s11976_s12 + $0x1a04] ss:$8 sps:$4 sm:$0xff]  }
 0x2f3   : > { %7342 = vmatpush1.bf16.msra.mxu1 %v10790_v15  ;;  %v1506_v15 = vcombine.high %v12817_v23, %v12817_v23 }
 0x2f4   : > { %7998 = vmatpush1.bf16.msra.mxu0 %v10793_v48  ;;  %7343 = vmatprep.subr.bf16.mxu1 %v10798_v17  ;;  %v1702_v48 = vcombine.high %v12820_v47, %v12820_v47  ;;  %v1535_v17 = vcombine.high %v12740_v18, %v12740_v18 }
 0x2f5   : > { %7999 = vmatprep.subr.bf16.mxu0 %v10801_v49  ;;  %v1731_v49 = vcombine.high %v12744_v38, %v12744_v38  ;;  %v10880_v38 = vld [vmem:[%s11976_s12 + $0xa10] ss:$8 sps:$4 sm:$0xff]  }
 0x2f6   : > { %v12842_v18 = vrot.slane %v1702_v48, %v12038_v50  ;;  %v10963_v48 = vld [vmem:[%s11976_s12 + $0x1ae4] ss:$8 sps:$4 sm:$0xff]  }
 0x2f7   : > { %7344 = vmatpush1.bf16.msra.mxu1 %v10796_v51  ;;  %v10874_v51 = vld [vmem:[%s11976_s12 + $0xa00] ss:$8 sps:$4 sm:$0xff]  }
 0x2f8   : > { %8000 = vmatpush1.bf16.msra.mxu0 %v10799_v52  ;;  %7345 = vmatprep.subr.bf16.mxu1 %v10804_v54  ;;  %v10877_v52 = vld [vmem:[%s11976_s12 + $0x1a00] ss:$8 sps:$4 sm:$0xff]   ;;  %v10882_v54 = vld [vmem:[%s11976_s12 + $0xa14] ss:$8 sps:$4 sm:$0xff]  }
 0x2f9   : > { %8001 = vmatprep.subr.bf16.mxu0 %v10807_v55  ;;  %v10885_v55 = vld [vmem:[%s11976_s12 + $0x1a14] ss:$8 sps:$4 sm:$0xff]  }
 0x2fb   : > { %7346 = vmatpush1.bf16.msra.mxu1 %v10802_v39  ;;  %v12839_v39 = vrot.slane %v1506_v15, %v12038_v50  ;;  %v10960_v15 = vld [vmem:[%s11976_s12 + $0xae4] ss:$8 sps:$4 sm:$0xff]  }
 0x2fc   : > { %8002 = vmatpush1.bf16.msra.mxu0 %v10805_v40  ;;  %7347 = vmatprep.subr.bf16.mxu1 %v10810_v61  ;;  %v10883_v40 = vld [vmem:[%s11976_s12 + $0x1a10] ss:$8 sps:$4 sm:$0xff]   ;;  %v10888_v61 = vld [vmem:[%s11976_s12 + $0xa24] ss:$8 sps:$4 sm:$0xff]  }
 0x2fd   : > { %8003 = vmatprep.subr.bf16.mxu0 %v10813_v62  ;;  %v10891_v62 = vld [vmem:[%s11976_s12 + $0x1a24] ss:$8 sps:$4 sm:$0xff]  }
 0x2ff   : > { %7348 = vmatpush1.bf16.msra.mxu1 %v10808_v63  ;;  %v10886_v63 = vld [vmem:[%s11976_s12 + $0xa20] ss:$8 sps:$4 sm:$0xff]  }
 0x300   : > { %8004 = vmatpush1.bf16.msra.mxu0 %v10811_v0  ;;  %7349 = vmatprep.subr.bf16.mxu1 %v10816_v41  ;;  %v10889_v0 = vld [vmem:[%s11976_s12 + $0x1a20] ss:$8 sps:$4 sm:$0xff]   ;;  %v10894_v41 = vld [vmem:[%s11976_s12 + $0xa34] ss:$8 sps:$4 sm:$0xff]  }
 0x301   : > { %8005 = vmatprep.subr.bf16.mxu0 %v10819_v1  ;;  %v10897_v1 = vld [vmem:[%s11976_s12 + $0x1a34] ss:$8 sps:$4 sm:$0xff]  }
 0x303   : > { %7350 = vmatpush1.bf16.msra.mxu1 %v10814_v56  ;;  %v10892_v56 = vld [vmem:[%s11976_s12 + $0xa30] ss:$8 sps:$4 sm:$0xff]  }
 0x304   : > { %8006 = vmatpush1.bf16.msra.mxu0 %v10817_v3  ;;  %7351 = vmatprep.subr.bf16.mxu1 %v10822_v58  ;;  %v10895_v3 = vld [vmem:[%s11976_s12 + $0x1a30] ss:$8 sps:$4 sm:$0xff]   ;;  %v10900_v58 = vld [vmem:[%s11976_s12 + $0xa44] ss:$8 sps:$4 sm:$0xff]  }
 0x305   : > { %8007 = vmatprep.subr.bf16.mxu0 %v10825_v4  ;;  %v10903_v4 = vld [vmem:[%s11976_s12 + $0x1a44] ss:$8 sps:$4 sm:$0xff]  }
 0x307   : > { %7352 = vmatpush1.bf16.msra.mxu1 %v10820_v5  ;;  %v10898_v5 = vld [vmem:[%s11976_s12 + $0xa40] ss:$8 sps:$4 sm:$0xff]  }
 0x308   : > { %8008 = vmatpush1.bf16.msra.mxu0 %v10823_v6  ;;  %7353 = vmatprep.subr.bf16.mxu1 %v10828_v7  ;;  %v10901_v6 = vld [vmem:[%s11976_s12 + $0x1a40] ss:$8 sps:$4 sm:$0xff]   ;;  %v10906_v7 = vld [vmem:[%s11976_s12 + $0xa54] ss:$8 sps:$4 sm:$0xff]  }
 0x309   : > { %8009 = vmatprep.subr.bf16.mxu0 %v10831_v8  ;;  %v10909_v8 = vld [vmem:[%s11976_s12 + $0x1a54] ss:$8 sps:$4 sm:$0xff]  }
 0x30b   : > { %7354 = vmatpush1.bf16.msra.mxu1 %v10826_v9  ;;  %v10904_v9 = vld [vmem:[%s11976_s12 + $0xa50] ss:$8 sps:$4 sm:$0xff]  }
 0x30c   : > { %8010 = vmatpush1.bf16.msra.mxu0 %v10829_v10  ;;  %7355 = vmatprep.subr.bf16.mxu1 %v10834_v11  ;;  %v10907_v10 = vld [vmem:[%s11976_s12 + $0x1a50] ss:$8 sps:$4 sm:$0xff]   ;;  %v10912_v11 = vld [vmem:[%s11976_s12 + $0xa64] ss:$8 sps:$4 sm:$0xff]  }
 0x30d   : > { %8011 = vmatprep.subr.bf16.mxu0 %v10837_v12  ;;  %v10915_v12 = vld [vmem:[%s11976_s12 + $0x1a64] ss:$8 sps:$4 sm:$0xff]  }
 0x30f   : > { %7356 = vmatpush1.bf16.msra.mxu1 %v10832_v19  ;;  %v10910_v19 = vld [vmem:[%s11976_s12 + $0xa60] ss:$8 sps:$4 sm:$0xff]  }
 0x310   : > { %8012 = vmatpush1.bf16.msra.mxu0 %v10835_v20  ;;  %7357 = vmatprep.subr.bf16.mxu1 %v10840_v21  ;;  %v10913_v20 = vld [vmem:[%s11976_s12 + $0x1a60] ss:$8 sps:$4 sm:$0xff]   ;;  %v10918_v21 = vld [vmem:[%s11976_s12 + $0xa74] ss:$8 sps:$4 sm:$0xff]  }
 0x311   : > { %8013 = vmatprep.subr.bf16.mxu0 %v10843_v22  ;;  %v10921_v22 = vld [vmem:[%s11976_s12 + $0x1a74] ss:$8 sps:$4 sm:$0xff]  }
 0x313   : > { %7358 = vmatpush1.bf16.msra.mxu1 %v10838_v2  ;;  %v10916_v2 = vld [vmem:[%s11976_s12 + $0xa70] ss:$8 sps:$4 sm:$0xff]  }
 0x314   : > { %8014 = vmatpush1.bf16.msra.mxu0 %v10841_v24  ;;  %7359 = vmatprep.subr.bf16.mxu1 %v10846_v13  ;;  %v10919_v24 = vld [vmem:[%s11976_s12 + $0x1a70] ss:$8 sps:$4 sm:$0xff]   ;;  %v10924_v13 = vld [vmem:[%s11976_s12 + $0xa84] ss:$8 sps:$4 sm:$0xff]  }
 0x315   : > { %8015 = vmatprep.subr.bf16.mxu0 %v10849_v53  ;;  %v10927_v53 = vld [vmem:[%s11976_s12 + $0x1a84] ss:$8 sps:$4 sm:$0xff]  }
 0x317   : > { %7360 = vmatpush1.bf16.msra.mxu1 %v10844_v59  ;;  %v10922_v59 = vld [vmem:[%s11976_s12 + $0xa80] ss:$8 sps:$4 sm:$0xff]  }
 0x318   : > { %8016 = vmatpush1.bf16.msra.mxu0 %v10847_v57  ;;  %7361 = vmatprep.subr.bf16.mxu1 %v10852_v27  ;;  %v10925_v57 = vld [vmem:[%s11976_s12 + $0x1a80] ss:$8 sps:$4 sm:$0xff]   ;;  %v10930_v27 = vld [vmem:[%s11976_s12 + $0xa94] ss:$8 sps:$4 sm:$0xff]  }
 0x319   : > { %8017 = vmatprep.subr.bf16.mxu0 %v10855_v28  ;;  %v10933_v28 = vld [vmem:[%s11976_s12 + $0x1a94] ss:$8 sps:$4 sm:$0xff]  }
 0x31b   : > { %7362 = vmatpush1.bf16.msra.mxu1 %v10850_v29  ;;  %v10928_v29 = vld [vmem:[%s11976_s12 + $0xa90] ss:$8 sps:$4 sm:$0xff]  }
 0x31c   : > { %8018 = vmatpush1.bf16.msra.mxu0 %v10853_v30  ;;  %7363 = vmatprep.subr.bf16.mxu1 %v10858_v31  ;;  %v10931_v30 = vld [vmem:[%s11976_s12 + $0x1a90] ss:$8 sps:$4 sm:$0xff]   ;;  %v10936_v31 = vld [vmem:[%s11976_s12 + $0xaa4] ss:$8 sps:$4 sm:$0xff]  }
 0x31d   : > { %8019 = vmatprep.subr.bf16.mxu0 %v10861_v32  ;;  %v10939_v32 = vld [vmem:[%s11976_s12 + $0x1aa4] ss:$8 sps:$4 sm:$0xff]  }
 0x31f   : > { %7364 = vmatpush1.bf16.msra.mxu1 %v10856_v16  ;;  %v10934_v16 = vld [vmem:[%s11976_s12 + $0xaa0] ss:$8 sps:$4 sm:$0xff]  }
 0x320   : > { %8020 = vmatpush1.bf16.msra.mxu0 %v10859_v34  ;;  %7365 = vmatprep.subr.bf16.mxu1 %v10864_v35  ;;  %v10937_v34 = vld [vmem:[%s11976_s12 + $0x1aa0] ss:$8 sps:$4 sm:$0xff]   ;;  %v10942_v35 = vld [vmem:[%s11976_s12 + $0xab4] ss:$8 sps:$4 sm:$0xff]  }
 0x321   : > { %8021 = vmatprep.subr.bf16.mxu0 %v10867_v36  ;;  %v10945_v36 = vld [vmem:[%s11976_s12 + $0x1ab4] ss:$8 sps:$4 sm:$0xff]  }
 0x323   : > { %7366 = vmatpush1.bf16.msra.mxu1 %v10862_v25  ;;  %v10948_v25 = vld [vmem:[%s11976_s12 + $0xac4] ss:$8 sps:$4 sm:$0xff]  }
 0x324   : > { %8022 = vmatpush1.bf16.msra.mxu0 %v10865_v46  ;;  %7367 = vmatprep.subr.bf16.mxu1 %v10870_v42  ;;  %v10951_v46 = vld [vmem:[%s11976_s12 + $0x1ac4] ss:$8 sps:$4 sm:$0xff]   ;;  %v10946_v42 = vld [vmem:[%s11976_s12 + $0xac0] ss:$8 sps:$4 sm:$0xff]  }
 0x325   : > { %8023 = vmatprep.subr.bf16.mxu0 %v10873_v26  ;;  %v10949_v26 = vld [vmem:[%s11976_s12 + $0x1ac0] ss:$8 sps:$4 sm:$0xff]  }
 0x327   : > { %7368 = vmatpush1.bf16.msra.mxu1 %v10868_v60  ;;  %v10954_v60 = vld [vmem:[%s11976_s12 + $0xad4] ss:$8 sps:$4 sm:$0xff]  }
 0x328   : > { %8024 = vmatpush1.bf16.msra.mxu0 %v10871_v14  ;;  %7378 = vmatprep.subr.bf16.mxu1 %v10876_v33  ;;  %v10957_v14 = vld [vmem:[%s11976_s12 + $0x1ad4] ss:$8 sps:$4 sm:$0xff]   ;;  %v10952_v33 = vld [vmem:[%s11976_s12 + $0xad0] ss:$8 sps:$4 sm:$0xff]  }
 0x329   : > { %8034 = vmatprep.subr.bf16.mxu0 %v10879_v37  ;;  %v10955_v37 = vld [vmem:[%s11976_s12 + $0x1ad0] ss:$8 sps:$4 sm:$0xff]  }
 0x32a   : > { %7370 = vmatmul.mubr.bf16.vlgmr.msra.gmra.mrb[0].mxu1 %v1535_v17  ;;  %v10958_v17 = vld [vmem:[%s11976_s12 + $0xae0] ss:$8 sps:$4 sm:$0xff]  }
 0x32b   : > { %8026 = vmatmul.mubr.bf16.vlgmr.msra.gmra.mrb[0].mxu0 %v1731_v49  ;;  %7379 = vmatpush1.bf16.msra.mxu1 %v10874_v51  ;;  %v10961_v49 = vld [vmem:[%s11976_s12 + $0x1ae0] ss:$8 sps:$4 sm:$0xff]   ;;  %v10966_v51 = vld [vmem:[%s11976_s12 + $0xaf4] ss:$8 sps:$4 sm:$0xff]  }
 0x32c   : > { %8035 = vmatpush1.bf16.msra.mxu0 %v10877_v52  ;;  %7380 = vmatprep.subr.bf16.mxu1 %v10882_v54  ;;  %v10969_v52 = vld [vmem:[%s11976_s12 + $0x1af4] ss:$8 sps:$4 sm:$0xff]   ;;  %v10964_v54 = vld [vmem:[%s11976_s12 + $0xaf0] ss:$8 sps:$4 sm:$0xff]  }
 0x32d   : > { %8036 = vmatprep.subr.bf16.mxu0 %v10885_v55  ;;  %7410 = vmatprep.mubr.bf16.mxu1 %v12839_v39  ;;  %v10967_v55 = vld [vmem:[%s11976_s12 + $0x1af0] ss:$8 sps:$4 sm:$0xff]  }
 0x32e   : > { %8066 = vmatprep.mubr.bf16.mxu0 %v12842_v18 }
 0x32f   : > { %7381 = vmatpush1.bf16.msra.mxu1 %v10880_v38  ;;  %v10973_v38 = vld [vmem:[%s11976_s12 + $0xb04] ss:$8 sps:$4 sm:$0xff]  }
 0x330   : > { %8037 = vmatpush1.bf16.msra.mxu0 %v10883_v40  ;;  %7382 = vmatprep.subr.bf16.mxu1 %v10888_v61  ;;  %v10977_v40 = vld [vmem:[%s11976_s12 + $0x1b04] ss:$8 sps:$4 sm:$0xff]   ;;  %v12908_v61 = vrot.slane %v12817_v23, %v12038_v50  ;;  %v1538_v23 = vcombine.high %v12839_v39, %v12839_v39 }
 0x331   : > { %8038 = vmatprep.subr.bf16.mxu0 %v10891_v62  ;;  %v12912_v62 = vrot.slane %v12820_v47, %v12038_v50  ;;  %v10978_v47 = vld [vmem:[%s11976_s12 + $0xb10] ss:$8 sps:$4 sm:$0xff]   ;;  %v10986_v39 = vld [vmem:[%s11976_s12 + $0xb24] ss:$8 sps:$4 sm:$0xff]  }
 0x333   : > { %7383 = vmatpush1.bf16.msra.mxu1 %v10886_v63  ;;  %v10971_v63 = vld [vmem:[%s11976_s12 + $0xb00] ss:$8 sps:$4 sm:$0xff]  }
 0x334   : > { %8039 = vmatpush1.bf16.msra.mxu0 %v10889_v0  ;;  %7384 = vmatprep.subr.bf16.mxu1 %v10894_v41  ;;  %v10975_v0 = vld [vmem:[%s11976_s12 + $0x1b00] ss:$8 sps:$4 sm:$0xff]   ;;  %v10980_v41 = vld [vmem:[%s11976_s12 + $0xb14] ss:$8 sps:$4 sm:$0xff]  }
 0x335   : > { %8040 = vmatprep.subr.bf16.mxu0 %v10897_v1  ;;  %v10983_v1 = vld [vmem:[%s11976_s12 + $0x1b14] ss:$8 sps:$4 sm:$0xff]  }
 0x337   : > { %7385 = vmatpush1.bf16.msra.mxu1 %v10892_v56  ;;  %v1734_v56 = vcombine.high %v12842_v18, %v12842_v18  ;;  %v10984_v18 = vld [vmem:[%s11976_s12 + $0xb20] ss:$8 sps:$4 sm:$0xff]  }
 0x338   : > { %8041 = vmatpush1.bf16.msra.mxu0 %v10895_v3  ;;  %7386 = vmatprep.subr.bf16.mxu1 %v10900_v58  ;;  %v10981_v3 = vld [vmem:[%s11976_s12 + $0x1b10] ss:$8 sps:$4 sm:$0xff]   ;;  %v10989_v58 = vld [vmem:[%s11976_s12 + $0x1b24] ss:$8 sps:$4 sm:$0xff]  }
 0x339   : > { %8042 = vmatprep.subr.bf16.mxu0 %v10903_v4  ;;  %v10987_v4 = vld [vmem:[%s11976_s12 + $0x1b20] ss:$8 sps:$4 sm:$0xff]  }
 0x33b   : > { %7387 = vmatpush1.bf16.msra.mxu1 %v10898_v5  ;;  %v10992_v5 = vld [vmem:[%s11976_s12 + $0xb34] ss:$8 sps:$4 sm:$0xff]  }
 0x33c   : > { %8043 = vmatpush1.bf16.msra.mxu0 %v10901_v6  ;;  %7388 = vmatprep.subr.bf16.mxu1 %v10906_v7  ;;  %v10995_v6 = vld [vmem:[%s11976_s12 + $0x1b34] ss:$8 sps:$4 sm:$0xff]   ;;  %v10990_v7 = vld [vmem:[%s11976_s12 + $0xb30] ss:$8 sps:$4 sm:$0xff]  }
 0x33d   : > { %8044 = vmatprep.subr.bf16.mxu0 %v10909_v8  ;;  %v10993_v8 = vld [vmem:[%s11976_s12 + $0x1b30] ss:$8 sps:$4 sm:$0xff]  }
 0x33f   : > { %7389 = vmatpush1.bf16.msra.mxu1 %v10904_v9  ;;  %v10998_v9 = vld [vmem:[%s11976_s12 + $0xb44] ss:$8 sps:$4 sm:$0xff]  }
 0x340   : > { %8045 = vmatpush1.bf16.msra.mxu0 %v10907_v10  ;;  %7390 = vmatprep.subr.bf16.mxu1 %v10912_v11  ;;  %v11001_v10 = vld [vmem:[%s11976_s12 + $0x1b44] ss:$8 sps:$4 sm:$0xff]   ;;  %v10996_v11 = vld [vmem:[%s11976_s12 + $0xb40] ss:$8 sps:$4 sm:$0xff]  }
 0x341   : > { %8046 = vmatprep.subr.bf16.mxu0 %v10915_v12  ;;  %v10999_v12 = vld [vmem:[%s11976_s12 + $0x1b40] ss:$8 sps:$4 sm:$0xff]  }
 0x343   : > { %7391 = vmatpush1.bf16.msra.mxu1 %v10910_v19  ;;  %v11004_v19 = vld [vmem:[%s11976_s12 + $0xb54] ss:$8 sps:$4 sm:$0xff]  }
 0x344   : > { %8047 = vmatpush1.bf16.msra.mxu0 %v10913_v20  ;;  %7392 = vmatprep.subr.bf16.mxu1 %v10918_v21  ;;  %v11007_v20 = vld [vmem:[%s11976_s12 + $0x1b54] ss:$8 sps:$4 sm:$0xff]   ;;  %v11002_v21 = vld [vmem:[%s11976_s12 + $0xb50] ss:$8 sps:$4 sm:$0xff]  }
 0x345   : > { %8048 = vmatprep.subr.bf16.mxu0 %v10921_v22  ;;  %v11005_v22 = vld [vmem:[%s11976_s12 + $0x1b50] ss:$8 sps:$4 sm:$0xff]  }
 0x347   : > { %7393 = vmatpush1.bf16.msra.mxu1 %v10916_v2  ;;  %v11010_v2 = vld [vmem:[%s11976_s12 + $0xb64] ss:$8 sps:$4 sm:$0xff]  }
 0x348   : > { %8049 = vmatpush1.bf16.msra.mxu0 %v10919_v24  ;;  %7394 = vmatprep.subr.bf16.mxu1 %v10924_v13  ;;  %v11013_v24 = vld [vmem:[%s11976_s12 + $0x1b64] ss:$8 sps:$4 sm:$0xff]   ;;  %v11008_v13 = vld [vmem:[%s11976_s12 + $0xb60] ss:$8 sps:$4 sm:$0xff]  }
 0x349   : > { %8050 = vmatprep.subr.bf16.mxu0 %v10927_v53  ;;  %v11011_v53 = vld [vmem:[%s11976_s12 + $0x1b60] ss:$8 sps:$4 sm:$0xff]  }
 0x34b   : > { %7395 = vmatpush1.bf16.msra.mxu1 %v10922_v59  ;;  %v11016_v59 = vld [vmem:[%s11976_s12 + $0xb74] ss:$8 sps:$4 sm:$0xff]  }
 0x34c   : > { %8051 = vmatpush1.bf16.msra.mxu0 %v10925_v57  ;;  %7396 = vmatprep.subr.bf16.mxu1 %v10930_v27  ;;  %v11019_v57 = vld [vmem:[%s11976_s12 + $0x1b74] ss:$8 sps:$4 sm:$0xff]   ;;  %v11014_v27 = vld [vmem:[%s11976_s12 + $0xb70] ss:$8 sps:$4 sm:$0xff]  }
 0x34d   : > { %8052 = vmatprep.subr.bf16.mxu0 %v10933_v28  ;;  %v11017_v28 = vld [vmem:[%s11976_s12 + $0x1b70] ss:$8 sps:$4 sm:$0xff]  }
 0x34f   : > { %7397 = vmatpush1.bf16.msra.mxu1 %v10928_v29  ;;  %v11022_v29 = vld [vmem:[%s11976_s12 + $0xb84] ss:$8 sps:$4 sm:$0xff]  }
 0x350   : > { %8053 = vmatpush1.bf16.msra.mxu0 %v10931_v30  ;;  %7398 = vmatprep.subr.bf16.mxu1 %v10936_v31  ;;  %v11025_v30 = vld [vmem:[%s11976_s12 + $0x1b84] ss:$8 sps:$4 sm:$0xff]   ;;  %v11020_v31 = vld [vmem:[%s11976_s12 + $0xb80] ss:$8 sps:$4 sm:$0xff]  }
 0x351   : > { %8054 = vmatprep.subr.bf16.mxu0 %v10939_v32  ;;  %v11023_v32 = vld [vmem:[%s11976_s12 + $0x1b80] ss:$8 sps:$4 sm:$0xff]  }
 0x353   : > { %7399 = vmatpush1.bf16.msra.mxu1 %v10934_v16  ;;  %v11028_v16 = vld [vmem:[%s11976_s12 + $0xb94] ss:$8 sps:$4 sm:$0xff]  }
 0x354   : > { %8055 = vmatpush1.bf16.msra.mxu0 %v10937_v34  ;;  %7400 = vmatprep.subr.bf16.mxu1 %v10942_v35  ;;  %v11031_v34 = vld [vmem:[%s11976_s12 + $0x1b94] ss:$8 sps:$4 sm:$0xff]   ;;  %v11026_v35 = vld [vmem:[%s11976_s12 + $0xb90] ss:$8 sps:$4 sm:$0xff]  }
 0x355   : > { %8056 = vmatprep.subr.bf16.mxu0 %v10945_v36  ;;  %v11029_v36 = vld [vmem:[%s11976_s12 + $0x1b90] ss:$8 sps:$4 sm:$0xff]  }
 0x357   : > { %7401 = vmatpush1.bf16.msra.mxu1 %v10940_v43  ;;  %v11034_v43 = vld [vmem:[%s11976_s12 + $0xba4] ss:$8 sps:$4 sm:$0xff]  }
 0x358   : > { %8057 = vmatpush1.bf16.msra.mxu0 %v10943_v45  ;;  %7402 = vmatprep.subr.bf16.mxu1 %v10948_v25  ;;  %v11037_v45 = vld [vmem:[%s11976_s12 + $0x1ba4] ss:$8 sps:$4 sm:$0xff]   ;;  %v11032_v25 = vld [vmem:[%s11976_s12 + $0xba0] ss:$8 sps:$4 sm:$0xff]  }
 0x359   : > { %8058 = vmatprep.subr.bf16.mxu0 %v10951_v46  ;;  %v11035_v46 = vld [vmem:[%s11976_s12 + $0x1ba0] ss:$8 sps:$4 sm:$0xff]  }
 0x35b   : > { %7403 = vmatpush1.bf16.msra.mxu1 %v10946_v42  ;;  %v11040_v42 = vld [vmem:[%s11976_s12 + $0xbb4] ss:$8 sps:$4 sm:$0xff]  }
 0x35c   : > { %8059 = vmatpush1.bf16.msra.mxu0 %v10949_v26  ;;  %7404 = vmatprep.subr.bf16.mxu1 %v10954_v60  ;;  %v11043_v26 = vld [vmem:[%s11976_s12 + $0x1bb4] ss:$8 sps:$4 sm:$0xff]   ;;  %v11038_v60 = vld [vmem:[%s11976_s12 + $0xbb0] ss:$8 sps:$4 sm:$0xff]  }
 0x35d   : > { %8060 = vmatprep.subr.bf16.mxu0 %v10957_v14  ;;  %v11041_v14 = vld [vmem:[%s11976_s12 + $0x1bb0] ss:$8 sps:$4 sm:$0xff]  }
 0x35f   : > { %7405 = vmatpush1.bf16.msra.mxu1 %v10952_v33  ;;  %v11046_v33 = vld [vmem:[%s11976_s12 + $0xbc4] ss:$8 sps:$4 sm:$0xff]  }
 0x360   : > { %8061 = vmatpush1.bf16.msra.mxu0 %v10955_v37  ;;  %7406 = vmatprep.subr.bf16.mxu1 %v10960_v15  ;;  %v11049_v37 = vld [vmem:[%s11976_s12 + $0x1bc4] ss:$8 sps:$4 sm:$0xff]   ;;  %v11044_v15 = vld [vmem:[%s11976_s12 + $0xbc0] ss:$8 sps:$4 sm:$0xff]  }
 0x361   : > { %8062 = vmatprep.subr.bf16.mxu0 %v10963_v48  ;;  %v11047_v48 = vld [vmem:[%s11976_s12 + $0x1bc0] ss:$8 sps:$4 sm:$0xff]  }
 0x363   : > { %7407 = vmatpush1.bf16.msra.mxu1 %v10958_v17  ;;  %v11052_v17 = vld [vmem:[%s11976_s12 + $0xbd4] ss:$8 sps:$4 sm:$0xff]  }
 0x364   : > { %8063 = vmatpush1.bf16.msra.mxu0 %v10961_v49  ;;  %7408 = vmatprep.subr.bf16.mxu1 %v10966_v51  ;;  %v11055_v49 = vld [vmem:[%s11976_s12 + $0x1bd4] ss:$8 sps:$4 sm:$0xff]   ;;  %v11050_v51 = vld [vmem:[%s11976_s12 + $0xbd0] ss:$8 sps:$4 sm:$0xff]  }
 0x365   : > { %8064 = vmatprep.subr.bf16.mxu0 %v10969_v52  ;;  %v11053_v52 = vld [vmem:[%s11976_s12 + $0x1bd0] ss:$8 sps:$4 sm:$0xff]  }
 0x367   : > { %7409 = vmatpush1.bf16.msra.mxu1 %v10964_v54  ;;  %v11058_v54 = vld [vmem:[%s11976_s12 + $0xbe4] ss:$8 sps:$4 sm:$0xff]  }
 0x368   : > { %8065 = vmatpush1.bf16.msra.mxu0 %v10967_v55  ;;  %7419 = vmatprep.subr.bf16.mxu1 %v10973_v38  ;;  %v11061_v55 = vld [vmem:[%s11976_s12 + $0x1be4] ss:$8 sps:$4 sm:$0xff]   ;;  %v12977_v38 = vld [vmem:[%s11969_s8 + $0x18] sm:$0xff] }
 0x369   : > { %8075 = vmatprep.subr.bf16.mxu0 %v10977_v40  ;;  %v12980_v40 = vld [vmem:[%s11969_s8 + $0x38] sm:$0xff] }
 0x36a   : > { %7411 = vmatmul.mubr.bf16.vlgmr.msra.gmra.mrb[0].mxu1 %v12908_v61 }
 0x36b   : > { %8067 = vmatmul.mubr.bf16.vlgmr.msra.gmra.mrb[0].mxu0 %v12912_v62  ;;  %7420 = vmatpush1.bf16.msra.mxu1 %v10971_v63  ;;  %v11056_v63 = vld [vmem:[%s11976_s12 + $0xbe0] ss:$8 sps:$4 sm:$0xff]  }
 0x36c   : > { %8076 = vmatpush1.bf16.msra.mxu0 %v10975_v0  ;;  %7421 = vmatprep.subr.bf16.mxu1 %v10980_v41  ;;  %v11059_v0 = vld [vmem:[%s11976_s12 + $0x1be0] ss:$8 sps:$4 sm:$0xff]   ;;  %v11064_v41 = vld [vmem:[%s11976_s12 + $0xbf4] ss:$8 sps:$4 sm:$0xff]  }
 0x36d   : > { %8077 = vmatprep.subr.bf16.mxu0 %v10983_v1  ;;  %7451 = vmatprep.mubr.bf16.mxu1 %v1538_v23  ;;  %v11067_v1 = vld [vmem:[%s11976_s12 + $0x1bf4] ss:$8 sps:$4 sm:$0xff]   ;;  %v12988_v23 = vrot.slane %v12977_v38, %v12038_v50 }
 0x36e   : > { %8107 = vmatprep.mubr.bf16.mxu0 %v1734_v56  ;;  %v12992_v56 = vrot.slane %v12980_v40, %v12038_v50 }
 0x36f   : > { %7422 = vmatpush1.bf16.msra.mxu1 %v10978_v47  ;;  %v11062_v47 = vld [vmem:[%s11976_s12 + $0xbf0] ss:$8 sps:$4 sm:$0xff]  }
 0x370   : > { %8078 = vmatpush1.bf16.msra.mxu0 %v10981_v3  ;;  %7423 = vmatprep.subr.bf16.mxu1 %v10986_v39  ;;  %v11065_v3 = vld [vmem:[%s11976_s12 + $0x1bf0] ss:$8 sps:$4 sm:$0xff]   ;;  %v11070_v39 = vld [vmem:[%s11976_s12 + $0xc04] ss:$8 sps:$4 sm:$0xff]  }
 0x371   : > { %8079 = vmatprep.subr.bf16.mxu0 %v10989_v58  ;;  %v11073_v58 = vld [vmem:[%s11976_s12 + $0x1c04] ss:$8 sps:$4 sm:$0xff]  }
 0x373   : > { %7424 = vmatpush1.bf16.msra.mxu1 %v10984_v18  ;;  %v1554_v18 = vcombine.high %v12988_v23, %v12988_v23 }
 0x374   : > { %8080 = vmatpush1.bf16.msra.mxu0 %v10987_v4  ;;  %7425 = vmatprep.subr.bf16.mxu1 %v10992_v5  ;;  %v1750_v4 = vcombine.high %v12992_v56, %v12992_v56  ;;  %v1536_v5 = vcombine.high %v12908_v61, %v12908_v61 }
 0x375   : > { %8081 = vmatprep.subr.bf16.mxu0 %v10995_v6  ;;  %v1732_v6 = vcombine.high %v12912_v62, %v12912_v62  ;;  %v11074_v62 = vld [vmem:[%s11976_s12 + $0xc10] ss:$8 sps:$4 sm:$0xff]  }
 0x376   : > { %v13014_v61 = vrot.slane %v1750_v4, %v12038_v50  ;;  %v11149_v4 = vld [vmem:[%s11976_s12 + $0x1cd0] ss:$8 sps:$4 sm:$0xff]  }
 0x377   : > { %7426 = vmatpush1.bf16.msra.mxu1 %v10990_v7  ;;  %v11068_v7 = vld [vmem:[%s11976_s12 + $0xc00] ss:$8 sps:$4 sm:$0xff]  }
 0x378   : > { %8082 = vmatpush1.bf16.msra.mxu0 %v10993_v8  ;;  %7427 = vmatprep.subr.bf16.mxu1 %v10998_v9  ;;  %v11071_v8 = vld [vmem:[%s11976_s12 + $0x1c00] ss:$8 sps:$4 sm:$0xff]   ;;  %v11076_v9 = vld [vmem:[%s11976_s12 + $0xc14] ss:$8 sps:$4 sm:$0xff]  }
 0x379   : > { %8083 = vmatprep.subr.bf16.mxu0 %v11001_v10  ;;  %v11079_v10 = vld [vmem:[%s11976_s12 + $0x1c14] ss:$8 sps:$4 sm:$0xff]  }
 0x37b   : > { %7428 = vmatpush1.bf16.msra.mxu1 %v10996_v11  ;;  %v13011_v11 = vrot.slane %v1554_v18, %v12038_v50  ;;  %v11146_v18 = vld [vmem:[%s11976_s12 + $0xcd0] ss:$8 sps:$4 sm:$0xff]  }
 0x37c   : > { %8084 = vmatpush1.bf16.msra.mxu0 %v10999_v12  ;;  %7429 = vmatprep.subr.bf16.mxu1 %v11004_v19  ;;  %v11077_v12 = vld [vmem:[%s11976_s12 + $0x1c10] ss:$8 sps:$4 sm:$0xff]   ;;  %v11082_v19 = vld [vmem:[%s11976_s12 + $0xc24] ss:$8 sps:$4 sm:$0xff]  }
 0x37d   : > { %8085 = vmatprep.subr.bf16.mxu0 %v11007_v20  ;;  %v11085_v20 = vld [vmem:[%s11976_s12 + $0x1c24] ss:$8 sps:$4 sm:$0xff]  }
 0x37f   : > { %7430 = vmatpush1.bf16.msra.mxu1 %v11002_v21  ;;  %v11080_v21 = vld [vmem:[%s11976_s12 + $0xc20] ss:$8 sps:$4 sm:$0xff]  }
 0x380   : > { %8086 = vmatpush1.bf16.msra.mxu0 %v11005_v22  ;;  %7431 = vmatprep.subr.bf16.mxu1 %v11010_v2  ;;  %v11083_v22 = vld [vmem:[%s11976_s12 + $0x1c20] ss:$8 sps:$4 sm:$0xff]   ;;  %v11088_v2 = vld [vmem:[%s11976_s12 + $0xc34] ss:$8 sps:$4 sm:$0xff]  }
 0x381   : > { %8087 = vmatprep.subr.bf16.mxu0 %v11013_v24  ;;  %v11091_v24 = vld [vmem:[%s11976_s12 + $0x1c34] ss:$8 sps:$4 sm:$0xff]  }
 0x383   : > { %7432 = vmatpush1.bf16.msra.mxu1 %v11008_v13  ;;  %v11086_v13 = vld [vmem:[%s11976_s12 + $0xc30] ss:$8 sps:$4 sm:$0xff]  }
 0x384   : > { %8088 = vmatpush1.bf16.msra.mxu0 %v11011_v53  ;;  %7433 = vmatprep.subr.bf16.mxu1 %v11016_v59  ;;  %v11089_v53 = vld [vmem:[%s11976_s12 + $0x1c30] ss:$8 sps:$4 sm:$0xff]   ;;  %v11094_v59 = vld [vmem:[%s11976_s12 + $0xc44] ss:$8 sps:$4 sm:$0xff]  }
 0x385   : > { %8089 = vmatprep.subr.bf16.mxu0 %v11019_v57  ;;  %v11097_v57 = vld [vmem:[%s11976_s12 + $0x1c44] ss:$8 sps:$4 sm:$0xff]  }
 0x387   : > { %7434 = vmatpush1.bf16.msra.mxu1 %v11014_v27  ;;  %v11092_v27 = vld [vmem:[%s11976_s12 + $0xc40] ss:$8 sps:$4 sm:$0xff]  }
 0x388   : > { %8090 = vmatpush1.bf16.msra.mxu0 %v11017_v28  ;;  %7435 = vmatprep.subr.bf16.mxu1 %v11022_v29  ;;  %v11095_v28 = vld [vmem:[%s11976_s12 + $0x1c40] ss:$8 sps:$4 sm:$0xff]   ;;  %v11100_v29 = vld [vmem:[%s11976_s12 + $0xc54] ss:$8 sps:$4 sm:$0xff]  }
 0x389   : > { %8091 = vmatprep.subr.bf16.mxu0 %v11025_v30  ;;  %v11103_v30 = vld [vmem:[%s11976_s12 + $0x1c54] ss:$8 sps:$4 sm:$0xff]  }
 0x38b   : > { %7436 = vmatpush1.bf16.msra.mxu1 %v11020_v31  ;;  %v11098_v31 = vld [vmem:[%s11976_s12 + $0xc50] ss:$8 sps:$4 sm:$0xff]  }
 0x38c   : > { %8092 = vmatpush1.bf16.msra.mxu0 %v11023_v32  ;;  %7437 = vmatprep.subr.bf16.mxu1 %v11028_v16  ;;  %v11101_v32 = vld [vmem:[%s11976_s12 + $0x1c50] ss:$8 sps:$4 sm:$0xff]   ;;  %v11106_v16 = vld [vmem:[%s11976_s12 + $0xc64] ss:$8 sps:$4 sm:$0xff]  }
 0x38d   : > { %8093 = vmatprep.subr.bf16.mxu0 %v11031_v34  ;;  %v11109_v34 = vld [vmem:[%s11976_s12 + $0x1c64] ss:$8 sps:$4 sm:$0xff]  }
 0x38f   : > { %7438 = vmatpush1.bf16.msra.mxu1 %v11026_v35  ;;  %v11104_v35 = vld [vmem:[%s11976_s12 + $0xc60] ss:$8 sps:$4 sm:$0xff]  }
 0x390   : > { %8094 = vmatpush1.bf16.msra.mxu0 %v11029_v36  ;;  %7439 = vmatprep.subr.bf16.mxu1 %v11034_v43  ;;  %v11107_v36 = vld [vmem:[%s11976_s12 + $0x1c60] ss:$8 sps:$4 sm:$0xff]   ;;  %v11112_v43 = vld [vmem:[%s11976_s12 + $0xc74] ss:$8 sps:$4 sm:$0xff]  }
 0x391   : > { %8095 = vmatprep.subr.bf16.mxu0 %v11037_v45  ;;  %v11115_v45 = vld [vmem:[%s11976_s12 + $0x1c74] ss:$8 sps:$4 sm:$0xff]  }
 0x393   : > { %7440 = vmatpush1.bf16.msra.mxu1 %v11032_v25  ;;  %v11110_v25 = vld [vmem:[%s11976_s12 + $0xc70] ss:$8 sps:$4 sm:$0xff]  }
 0x394   : > { %8096 = vmatpush1.bf16.msra.mxu0 %v11035_v46  ;;  %7441 = vmatprep.subr.bf16.mxu1 %v11040_v42  ;;  %v11113_v46 = vld [vmem:[%s11976_s12 + $0x1c70] ss:$8 sps:$4 sm:$0xff]   ;;  %v11118_v42 = vld [vmem:[%s11976_s12 + $0xc84] ss:$8 sps:$4 sm:$0xff]  }
 0x395   : > { %8097 = vmatprep.subr.bf16.mxu0 %v11043_v26  ;;  %v11121_v26 = vld [vmem:[%s11976_s12 + $0x1c84] ss:$8 sps:$4 sm:$0xff]  }
 0x397   : > { %7442 = vmatpush1.bf16.msra.mxu1 %v11038_v60  ;;  %v11116_v60 = vld [vmem:[%s11976_s12 + $0xc80] ss:$8 sps:$4 sm:$0xff]  }
 0x398   : > { %8098 = vmatpush1.bf16.msra.mxu0 %v11041_v14  ;;  %7443 = vmatprep.subr.bf16.mxu1 %v11046_v33  ;;  %v11119_v14 = vld [vmem:[%s11976_s12 + $0x1c80] ss:$8 sps:$4 sm:$0xff]   ;;  %v11124_v33 = vld [vmem:[%s11976_s12 + $0xc94] ss:$8 sps:$4 sm:$0xff]  }
 0x399   : > { %8099 = vmatprep.subr.bf16.mxu0 %v11049_v37  ;;  %v11127_v37 = vld [vmem:[%s11976_s12 + $0x1c94] ss:$8 sps:$4 sm:$0xff]  }
 0x39b   : > { %7444 = vmatpush1.bf16.msra.mxu1 %v11044_v15  ;;  %v11122_v15 = vld [vmem:[%s11976_s12 + $0xc90] ss:$8 sps:$4 sm:$0xff]  }
 0x39c   : > { %8100 = vmatpush1.bf16.msra.mxu0 %v11047_v48  ;;  %7445 = vmatprep.subr.bf16.mxu1 %v11052_v17  ;;  %v11125_v48 = vld [vmem:[%s11976_s12 + $0x1c90] ss:$8 sps:$4 sm:$0xff]   ;;  %v11130_v17 = vld [vmem:[%s11976_s12 + $0xca4] ss:$8 sps:$4 sm:$0xff]  }
 0x39d   : > { %8101 = vmatprep.subr.bf16.mxu0 %v11055_v49  ;;  %v11133_v49 = vld [vmem:[%s11976_s12 + $0x1ca4] ss:$8 sps:$4 sm:$0xff]  }
 0x39f   : > { %7446 = vmatpush1.bf16.msra.mxu1 %v11050_v51  ;;  %v11128_v51 = vld [vmem:[%s11976_s12 + $0xca0] ss:$8 sps:$4 sm:$0xff]  }
 0x3a0   : > { %8102 = vmatpush1.bf16.msra.mxu0 %v11053_v52  ;;  %7447 = vmatprep.subr.bf16.mxu1 %v11058_v54  ;;  %v11131_v52 = vld [vmem:[%s11976_s12 + $0x1ca0] ss:$8 sps:$4 sm:$0xff]   ;;  %v11136_v54 = vld [vmem:[%s11976_s12 + $0xcb4] ss:$8 sps:$4 sm:$0xff]  }
 0x3a1   : > { %8103 = vmatprep.subr.bf16.mxu0 %v11061_v55  ;;  %v11139_v55 = vld [vmem:[%s11976_s12 + $0x1cb4] ss:$8 sps:$4 sm:$0xff]  }
 0x3a3   : > { %7448 = vmatpush1.bf16.msra.mxu1 %v11056_v63  ;;  %v11134_v63 = vld [vmem:[%s11976_s12 + $0xcb0] ss:$8 sps:$4 sm:$0xff]  }
 0x3a4   : > { %8104 = vmatpush1.bf16.msra.mxu0 %v11059_v0  ;;  %7449 = vmatprep.subr.bf16.mxu1 %v11064_v41  ;;  %v11137_v0 = vld [vmem:[%s11976_s12 + $0x1cb0] ss:$8 sps:$4 sm:$0xff]   ;;  %v11142_v41 = vld [vmem:[%s11976_s12 + $0xcc4] ss:$8 sps:$4 sm:$0xff]  }
 0x3a5   : > { %8105 = vmatprep.subr.bf16.mxu0 %v11067_v1  ;;  %v11145_v1 = vld [vmem:[%s11976_s12 + $0x1cc4] ss:$8 sps:$4 sm:$0xff]  }
 0x3a7   : > { %7450 = vmatpush1.bf16.msra.mxu1 %v11062_v47  ;;  %v11140_v47 = vld [vmem:[%s11976_s12 + $0xcc0] ss:$8 sps:$4 sm:$0xff]  }
 0x3a8   : > { %8106 = vmatpush1.bf16.msra.mxu0 %v11065_v3  ;;  %7460 = vmatprep.subr.bf16.mxu1 %v11070_v39  ;;  %v11143_v3 = vld [vmem:[%s11976_s12 + $0x1cc0] ss:$8 sps:$4 sm:$0xff]   ;;  %v11148_v39 = vld [vmem:[%s11976_s12 + $0xcd4] ss:$8 sps:$4 sm:$0xff]  }
 0x3a9   : > { %8116 = vmatprep.subr.bf16.mxu0 %v11073_v58  ;;  %v11151_v58 = vld [vmem:[%s11976_s12 + $0x1cd4] ss:$8 sps:$4 sm:$0xff]  }
 0x3aa   : > { %7452 = vmatmul.mubr.bf16.vlgmr.msra.gmra.mrb[0].mxu1 %v1536_v5  ;;  %v11154_v5 = vld [vmem:[%s11976_s12 + $0xce4] ss:$8 sps:$4 sm:$0xff]  }
 0x3ab   : > { %8108 = vmatmul.mubr.bf16.vlgmr.msra.gmra.mrb[0].mxu0 %v1732_v6  ;;  %7461 = vmatpush1.bf16.msra.mxu1 %v11068_v7  ;;  %v11157_v6 = vld [vmem:[%s11976_s12 + $0x1ce4] ss:$8 sps:$4 sm:$0xff]   ;;  %v11152_v7 = vld [vmem:[%s11976_s12 + $0xce0] ss:$8 sps:$4 sm:$0xff]  }
 0x3ac   : > { %8117 = vmatpush1.bf16.msra.mxu0 %v11071_v8  ;;  %7462 = vmatprep.subr.bf16.mxu1 %v11076_v9  ;;  %v11155_v8 = vld [vmem:[%s11976_s12 + $0x1ce0] ss:$8 sps:$4 sm:$0xff]   ;;  %v11160_v9 = vld [vmem:[%s11976_s12 + $0xcf4] ss:$8 sps:$4 sm:$0xff]  }
 0x3ad   : > { %8118 = vmatprep.subr.bf16.mxu0 %v11079_v10  ;;  %7492 = vmatprep.mubr.bf16.mxu1 %v13011_v11  ;;  %v11163_v10 = vld [vmem:[%s11976_s12 + $0x1cf4] ss:$8 sps:$4 sm:$0xff]  }
 0x3ae   : > { %8148 = vmatprep.mubr.bf16.mxu0 %v13014_v61 }
 0x3af   : > { %7463 = vmatpush1.bf16.msra.mxu1 %v11074_v62  ;;  %v11158_v62 = vld [vmem:[%s11976_s12 + $0xcf0] ss:$8 sps:$4 sm:$0xff]  }
 0x3b0   : > { %8119 = vmatpush1.bf16.msra.mxu0 %v11077_v12  ;;  %7464 = vmatprep.subr.bf16.mxu1 %v11082_v19  ;;  %v11161_v12 = vld [vmem:[%s11976_s12 + $0x1cf0] ss:$8 sps:$4 sm:$0xff]   ;;  %v11166_v19 = vld [vmem:[%s11976_s12 + $0xd04] ss:$8 sps:$4 sm:$0xff]  }
 0x3b1   : > { %8120 = vmatprep.subr.bf16.mxu0 %v11085_v20  ;;  %v11169_v20 = vld [vmem:[%s11976_s12 + $0x1d04] ss:$8 sps:$4 sm:$0xff]  }
 0x3b3   : > { %7465 = vmatpush1.bf16.msra.mxu1 %v11080_v21  ;;  %v13080_v21 = vrot.slane %v12988_v23, %v12038_v50  ;;  %v1586_v23 = vcombine.high %v13011_v11, %v13011_v11  ;;  %v11178_v11 = vld [vmem:[%s11976_s12 + $0xd24] ss:$8 sps:$4 sm:$0xff]  }
 0x3b4   : > { %8121 = vmatpush1.bf16.msra.mxu0 %v11083_v22  ;;  %7466 = vmatprep.subr.bf16.mxu1 %v11088_v2  ;;  %v13084_v22 = vrot.slane %v12992_v56, %v12038_v50  ;;  %v11164_v2 = vld [vmem:[%s11976_s12 + $0xd00] ss:$8 sps:$4 sm:$0xff]   ;;  %v11170_v56 = vld [vmem:[%s11976_s12 + $0xd10] ss:$8 sps:$4 sm:$0xff]  }
 0x3b5   : > { %8122 = vmatprep.subr.bf16.mxu0 %v11091_v24  ;;  %v11167_v24 = vld [vmem:[%s11976_s12 + $0x1d00] ss:$8 sps:$4 sm:$0xff]  }
 0x3b7   : > { %7467 = vmatpush1.bf16.msra.mxu1 %v11086_v13  ;;  %v11172_v13 = vld [vmem:[%s11976_s12 + $0xd14] ss:$8 sps:$4 sm:$0xff]  }
 0x3b8   : > { %8123 = vmatpush1.bf16.msra.mxu0 %v11089_v53  ;;  %7468 = vmatprep.subr.bf16.mxu1 %v11094_v59  ;;  %v11175_v53 = vld [vmem:[%s11976_s12 + $0x1d14] ss:$8 sps:$4 sm:$0xff]   ;;  %v1782_v59 = vcombine.high %v13014_v61, %v13014_v61  ;;  %v11176_v61 = vld [vmem:[%s11976_s12 + $0xd20] ss:$8 sps:$4 sm:$0xff]  }
 0x3b9   : > { %8124 = vmatprep.subr.bf16.mxu0 %v11097_v57  ;;  %v11173_v57 = vld [vmem:[%s11976_s12 + $0x1d10] ss:$8 sps:$4 sm:$0xff]  }
 0x3bb   : > { %7469 = vmatpush1.bf16.msra.mxu1 %v11092_v27  ;;  %v11181_v27 = vld [vmem:[%s11976_s12 + $0x1d24] ss:$8 sps:$4 sm:$0xff]  }
 0x3bc   : > { %8125 = vmatpush1.bf16.msra.mxu0 %v11095_v28  ;;  %7470 = vmatprep.subr.bf16.mxu1 %v11100_v29  ;;  %v11179_v28 = vld [vmem:[%s11976_s12 + $0x1d20] ss:$8 sps:$4 sm:$0xff]   ;;  %v11184_v29 = vld [vmem:[%s11976_s12 + $0xd34] ss:$8 sps:$4 sm:$0xff]  }
 0x3bd   : > { %8126 = vmatprep.subr.bf16.mxu0 %v11103_v30  ;;  %v11187_v30 = vld [vmem:[%s11976_s12 + $0x1d34] ss:$8 sps:$4 sm:$0xff]  }
 0x3bf   : > { %7471 = vmatpush1.bf16.msra.mxu1 %v11098_v31  ;;  %v11182_v31 = vld [vmem:[%s11976_s12 + $0xd30] ss:$8 sps:$4 sm:$0xff]  }
 0x3c0   : > { %8127 = vmatpush1.bf16.msra.mxu0 %v11101_v32  ;;  %7472 = vmatprep.subr.bf16.mxu1 %v11106_v16  ;;  %v11185_v32 = vld [vmem:[%s11976_s12 + $0x1d30] ss:$8 sps:$4 sm:$0xff]   ;;  %v11190_v16 = vld [vmem:[%s11976_s12 + $0xd44] ss:$8 sps:$4 sm:$0xff]  }
 0x3c1   : > { %8128 = vmatprep.subr.bf16.mxu0 %v11109_v34  ;;  %v11193_v34 = vld [vmem:[%s11976_s12 + $0x1d44] ss:$8 sps:$4 sm:$0xff]  }
 0x3c3   : > { %7473 = vmatpush1.bf16.msra.mxu1 %v11104_v35  ;;  %v11188_v35 = vld [vmem:[%s11976_s12 + $0xd40] ss:$8 sps:$4 sm:$0xff]  }
 0x3c4   : > { %8129 = vmatpush1.bf16.msra.mxu0 %v11107_v36  ;;  %7474 = vmatprep.subr.bf16.mxu1 %v11112_v43  ;;  %v11191_v36 = vld [vmem:[%s11976_s12 + $0x1d40] ss:$8 sps:$4 sm:$0xff]   ;;  %v11196_v43 = vld [vmem:[%s11976_s12 + $0xd54] ss:$8 sps:$4 sm:$0xff]  }
 0x3c5   : > { %8130 = vmatprep.subr.bf16.mxu0 %v11115_v45  ;;  %v11199_v45 = vld [vmem:[%s11976_s12 + $0x1d54] ss:$8 sps:$4 sm:$0xff]  }
 0x3c7   : > { %7475 = vmatpush1.bf16.msra.mxu1 %v11110_v25  ;;  %v11194_v25 = vld [vmem:[%s11976_s12 + $0xd50] ss:$8 sps:$4 sm:$0xff]  }
 0x3c8   : > { %8131 = vmatpush1.bf16.msra.mxu0 %v11113_v46  ;;  %7476 = vmatprep.subr.bf16.mxu1 %v11118_v42  ;;  %v11197_v46 = vld [vmem:[%s11976_s12 + $0x1d50] ss:$8 sps:$4 sm:$0xff]   ;;  %v11202_v42 = vld [vmem:[%s11976_s12 + $0xd64] ss:$8 sps:$4 sm:$0xff]  }
 0x3c9   : > { %8132 = vmatprep.subr.bf16.mxu0 %v11121_v26  ;;  %v11205_v26 = vld [vmem:[%s11976_s12 + $0x1d64] ss:$8 sps:$4 sm:$0xff]  }
 0x3cb   : > { %7477 = vmatpush1.bf16.msra.mxu1 %v11116_v60  ;;  %v11200_v60 = vld [vmem:[%s11976_s12 + $0xd60] ss:$8 sps:$4 sm:$0xff]  }
 0x3cc   : > { %8133 = vmatpush1.bf16.msra.mxu0 %v11119_v14  ;;  %7478 = vmatprep.subr.bf16.mxu1 %v11124_v33  ;;  %v11203_v14 = vld [vmem:[%s11976_s12 + $0x1d60] ss:$8 sps:$4 sm:$0xff]   ;;  %v11208_v33 = vld [vmem:[%s11976_s12 + $0xd74] ss:$8 sps:$4 sm:$0xff]  }
 0x3cd   : > { %8134 = vmatprep.subr.bf16.mxu0 %v11127_v37  ;;  %v11211_v37 = vld [vmem:[%s11976_s12 + $0x1d74] ss:$8 sps:$4 sm:$0xff]  }
 0x3cf   : > { %7479 = vmatpush1.bf16.msra.mxu1 %v11122_v15  ;;  %v11206_v15 = vld [vmem:[%s11976_s12 + $0xd70] ss:$8 sps:$4 sm:$0xff]  }
 0x3d0   : > { %8135 = vmatpush1.bf16.msra.mxu0 %v11125_v48  ;;  %7480 = vmatprep.subr.bf16.mxu1 %v11130_v17  ;;  %v11209_v48 = vld [vmem:[%s11976_s12 + $0x1d70] ss:$8 sps:$4 sm:$0xff]   ;;  %v11214_v17 = vld [vmem:[%s11976_s12 + $0xd84] ss:$8 sps:$4 sm:$0xff]  }
 0x3d1   : > { %8136 = vmatprep.subr.bf16.mxu0 %v11133_v49  ;;  %v11217_v49 = vld [vmem:[%s11976_s12 + $0x1d84] ss:$8 sps:$4 sm:$0xff]  }
 0x3d3   : > { %7481 = vmatpush1.bf16.msra.mxu1 %v11128_v51  ;;  %v11212_v51 = vld [vmem:[%s11976_s12 + $0xd80] ss:$8 sps:$4 sm:$0xff]  }
 0x3d4   : > { %8137 = vmatpush1.bf16.msra.mxu0 %v11131_v52  ;;  %7482 = vmatprep.subr.bf16.mxu1 %v11136_v54  ;;  %v11215_v52 = vld [vmem:[%s11976_s12 + $0x1d80] ss:$8 sps:$4 sm:$0xff]   ;;  %v11220_v54 = vld [vmem:[%s11976_s12 + $0xd94] ss:$8 sps:$4 sm:$0xff]  }
 0x3d5   : > { %8138 = vmatprep.subr.bf16.mxu0 %v11139_v55  ;;  %v11223_v55 = vld [vmem:[%s11976_s12 + $0x1d94] ss:$8 sps:$4 sm:$0xff]  }
 0x3d7   : > { %7483 = vmatpush1.bf16.msra.mxu1 %v11134_v63  ;;  %v11218_v63 = vld [vmem:[%s11976_s12 + $0xd90] ss:$8 sps:$4 sm:$0xff]  }
 0x3d8   : > { %8139 = vmatpush1.bf16.msra.mxu0 %v11137_v0  ;;  %7484 = vmatprep.subr.bf16.mxu1 %v11142_v41  ;;  %v11221_v0 = vld [vmem:[%s11976_s12 + $0x1d90] ss:$8 sps:$4 sm:$0xff]   ;;  %v11226_v41 = vld [vmem:[%s11976_s12 + $0xda4] ss:$8 sps:$4 sm:$0xff]  }
 0x3d9   : > { %8140 = vmatprep.subr.bf16.mxu0 %v11145_v1  ;;  %v11229_v1 = vld [vmem:[%s11976_s12 + $0x1da4] ss:$8 sps:$4 sm:$0xff]  }
 0x3db   : > { %7485 = vmatpush1.bf16.msra.mxu1 %v11140_v47  ;;  %v11224_v47 = vld [vmem:[%s11976_s12 + $0xda0] ss:$8 sps:$4 sm:$0xff]  }
 0x3dc   : > { %8141 = vmatpush1.bf16.msra.mxu0 %v11143_v3  ;;  %7486 = vmatprep.subr.bf16.mxu1 %v11148_v39  ;;  %v11227_v3 = vld [vmem:[%s11976_s12 + $0x1da0] ss:$8 sps:$4 sm:$0xff]   ;;  %v11232_v39 = vld [vmem:[%s11976_s12 + $0xdb4] ss:$8 sps:$4 sm:$0xff]  }
 0x3dd   : > { %8142 = vmatprep.subr.bf16.mxu0 %v11151_v58  ;;  %v11235_v58 = vld [vmem:[%s11976_s12 + $0x1db4] ss:$8 sps:$4 sm:$0xff]  }
 0x3df   : > { %7487 = vmatpush1.bf16.msra.mxu1 %v11146_v18  ;;  %v11230_v18 = vld [vmem:[%s11976_s12 + $0xdb0] ss:$8 sps:$4 sm:$0xff]  }
 0x3e0   : > { %8143 = vmatpush1.bf16.msra.mxu0 %v11149_v4  ;;  %7488 = vmatprep.subr.bf16.mxu1 %v11154_v5  ;;  %v11233_v4 = vld [vmem:[%s11976_s12 + $0x1db0] ss:$8 sps:$4 sm:$0xff]   ;;  %v11238_v5 = vld [vmem:[%s11976_s12 + $0xdc4] ss:$8 sps:$4 sm:$0xff]  }
 0x3e1   : > { %8144 = vmatprep.subr.bf16.mxu0 %v11157_v6  ;;  %v11241_v6 = vld [vmem:[%s11976_s12 + $0x1dc4] ss:$8 sps:$4 sm:$0xff]  }
 0x3e3   : > { %7489 = vmatpush1.bf16.msra.mxu1 %v11152_v7  ;;  %v11236_v7 = vld [vmem:[%s11976_s12 + $0xdc0] ss:$8 sps:$4 sm:$0xff]  }
 0x3e4   : > { %8145 = vmatpush1.bf16.msra.mxu0 %v11155_v8  ;;  %7490 = vmatprep.subr.bf16.mxu1 %v11160_v9  ;;  %v11239_v8 = vld [vmem:[%s11976_s12 + $0x1dc0] ss:$8 sps:$4 sm:$0xff]   ;;  %v11244_v9 = vld [vmem:[%s11976_s12 + $0xdd4] ss:$8 sps:$4 sm:$0xff]  }
 0x3e5   : > { %8146 = vmatprep.subr.bf16.mxu0 %v11163_v10  ;;  %v11247_v10 = vld [vmem:[%s11976_s12 + $0x1dd4] ss:$8 sps:$4 sm:$0xff]  }
 0x3e7   : > { %7491 = vmatpush1.bf16.msra.mxu1 %v11158_v62  ;;  %v11242_v62 = vld [vmem:[%s11976_s12 + $0xdd0] ss:$8 sps:$4 sm:$0xff]  }
 0x3e8   : > { %8147 = vmatpush1.bf16.msra.mxu0 %v11161_v12  ;;  %7501 = vmatprep.subr.bf16.mxu1 %v11166_v19  ;;  %v11245_v12 = vld [vmem:[%s11976_s12 + $0x1dd0] ss:$8 sps:$4 sm:$0xff]   ;;  %v11250_v19 = vld [vmem:[%s11976_s12 + $0xde4] ss:$8 sps:$4 sm:$0xff]  }
 0x3e9   : > { %8157 = vmatprep.subr.bf16.mxu0 %v11169_v20  ;;  %v11253_v20 = vld [vmem:[%s11976_s12 + $0x1de4] ss:$8 sps:$4 sm:$0xff]  }
 0x3ea   : > { %7493 = vmatmul.mubr.bf16.vlgmr.msra.gmra.mrb[0].mxu1 %v13080_v21 }
 0x3eb   : > { %8149 = vmatmul.mubr.bf16.vlgmr.msra.gmra.mrb[0].mxu0 %v13084_v22  ;;  %7502 = vmatpush1.bf16.msra.mxu1 %v11164_v2  ;;  %v1539_v2 = vcombine.high %v12977_v38, %v12977_v38  ;;  %v11254_v38 = vld [vmem:[%s11976_s12 + $0xdf0] ss:$8 sps:$4 sm:$0xff]  }
 0x3ec   : > { %8158 = vmatpush1.bf16.msra.mxu0 %v11167_v24  ;;  %7503 = vmatprep.subr.bf16.mxu1 %v11172_v13  ;;  %v1735_v24 = vcombine.high %v12980_v40, %v12980_v40  ;;  %v11248_v13 = vld [vmem:[%s11976_s12 + $0xde0] ss:$8 sps:$4 sm:$0xff]   ;;  %v11257_v40 = vld [vmem:[%s11976_s12 + $0x1df0] ss:$8 sps:$4 sm:$0xff]  }
 0x3ed   : > { %8159 = vmatprep.subr.bf16.mxu0 %v11175_v53  ;;  %7533 = vmatprep.mubr.bf16.mxu1 %v1586_v23  ;;  %v11251_v53 = vld [vmem:[%s11976_s12 + $0x1de0] ss:$8 sps:$4 sm:$0xff]   ;;  %v11256_v23 = vld [vmem:[%s11976_s12 + $0xdf4] ss:$8 sps:$4 sm:$0xff]  }
 0x3ee   : > { %8189 = vmatprep.mubr.bf16.mxu0 %v1782_v59  ;;  %v11259_v59 = vld [vmem:[%s11976_s12 + $0x1df4] ss:$8 sps:$4 sm:$0xff]  }
 0x3ef   : > { %7504 = vmatpush1.bf16.msra.mxu1 %v11170_v56  ;;  %v13157_v56 = vrot.slane %v1539_v2, %v12038_v50  ;;  %v11326_v2 = vld [vmem:[%s11976_s12 + $0xeb0] ss:$8 sps:$4 sm:$0xff]  }
 0x3f0   : > { %8160 = vmatpush1.bf16.msra.mxu0 %v11173_v57  ;;  %7505 = vmatprep.subr.bf16.mxu1 %v11178_v11  ;;  %v13160_v57 = vrot.slane %v1735_v24, %v12038_v50  ;;  %v11262_v11 = vld [vmem:[%s11976_s12 + $0xe04] ss:$8 sps:$4 sm:$0xff]   ;;  %v11329_v24 = vld [vmem:[%s11976_s12 + $0x1eb0] ss:$8 sps:$4 sm:$0xff]  }
 0x3f1   : > { %8161 = vmatprep.subr.bf16.mxu0 %v11181_v27  ;;  %v11265_v27 = vld [vmem:[%s11976_s12 + $0x1e04] ss:$8 sps:$4 sm:$0xff]  }
 0x3f3   : > { %7506 = vmatpush1.bf16.msra.mxu1 %v11176_v61  ;;  %v1555_v61 = vcombine.high %v13157_v56, %v13157_v56 }
 0x3f4   : > { %8162 = vmatpush1.bf16.msra.mxu0 %v11179_v28  ;;  %7507 = vmatprep.subr.bf16.mxu1 %v11184_v29  ;;  %v1751_v28 = vcombine.high %v13160_v57, %v13160_v57  ;;  %v1584_v29 = vcombine.high %v13080_v21, %v13080_v21 }
 0x3f5   : > { %8163 = vmatprep.subr.bf16.mxu0 %v11187_v30  ;;  %v1780_v30 = vcombine.high %v13084_v22, %v13084_v22  ;;  %v11266_v22 = vld [vmem:[%s11976_s12 + $0xe10] ss:$8 sps:$4 sm:$0xff]  }
 0x3f6   : > { %v13182_v21 = vrot.slane %v1751_v28, %v12038_v50  ;;  %v11349_v28 = vld [vmem:[%s11976_s12 + $0x1ee4] ss:$8 sps:$4 sm:$0xff]  }
 0x3f7   : > { %7508 = vmatpush1.bf16.msra.mxu1 %v11182_v31  ;;  %v11260_v31 = vld [vmem:[%s11976_s12 + $0xe00] ss:$8 sps:$4 sm:$0xff]  }
 0x3f8   : > { %8164 = vmatpush1.bf16.msra.mxu0 %v11185_v32  ;;  %7509 = vmatprep.subr.bf16.mxu1 %v11190_v16  ;;  %v11263_v32 = vld [vmem:[%s11976_s12 + $0x1e00] ss:$8 sps:$4 sm:$0xff]   ;;  %v11268_v16 = vld [vmem:[%s11976_s12 + $0xe14] ss:$8 sps:$4 sm:$0xff]  }
 0x3f9   : > { %8165 = vmatprep.subr.bf16.mxu0 %v11193_v34  ;;  %v11271_v34 = vld [vmem:[%s11976_s12 + $0x1e14] ss:$8 sps:$4 sm:$0xff]  }
 0x3fb   : > { %7510 = vmatpush1.bf16.msra.mxu1 %v11188_v35  ;;  %v13179_v35 = vrot.slane %v1555_v61, %v12038_v50  ;;  %v11346_v61 = vld [vmem:[%s11976_s12 + $0xee4] ss:$8 sps:$4 sm:$0xff]  }
 0x3fc   : > { %8166 = vmatpush1.bf16.msra.mxu0 %v11191_v36  ;;  %7511 = vmatprep.subr.bf16.mxu1 %v11196_v43  ;;  %v11269_v36 = vld [vmem:[%s11976_s12 + $0x1e10] ss:$8 sps:$4 sm:$0xff]   ;;  %v11274_v43 = vld [vmem:[%s11976_s12 + $0xe24] ss:$8 sps:$4 sm:$0xff]  }
 0x3fd   : > { %8167 = vmatprep.subr.bf16.mxu0 %v11199_v45  ;;  %v11277_v45 = vld [vmem:[%s11976_s12 + $0x1e24] ss:$8 sps:$4 sm:$0xff]  }
 0x3ff   : > { %7512 = vmatpush1.bf16.msra.mxu1 %v11194_v25  ;;  %v11272_v25 = vld [vmem:[%s11976_s12 + $0xe20] ss:$8 sps:$4 sm:$0xff]  }
 0x400   : > { %8168 = vmatpush1.bf16.msra.mxu0 %v11197_v46  ;;  %7513 = vmatprep.subr.bf16.mxu1 %v11202_v42  ;;  %v11275_v46 = vld [vmem:[%s11976_s12 + $0x1e20] ss:$8 sps:$4 sm:$0xff]   ;;  %v11280_v42 = vld [vmem:[%s11976_s12 + $0xe34] ss:$8 sps:$4 sm:$0xff]  }
 0x401   : > { %8169 = vmatprep.subr.bf16.mxu0 %v11205_v26  ;;  %v11283_v26 = vld [vmem:[%s11976_s12 + $0x1e34] ss:$8 sps:$4 sm:$0xff]  }
 0x403   : > { %7514 = vmatpush1.bf16.msra.mxu1 %v11200_v60  ;;  %v11278_v60 = vld [vmem:[%s11976_s12 + $0xe30] ss:$8 sps:$4 sm:$0xff]  }
 0x404   : > { %8170 = vmatpush1.bf16.msra.mxu0 %v11203_v14  ;;  %7515 = vmatprep.subr.bf16.mxu1 %v11208_v33  ;;  %v11281_v14 = vld [vmem:[%s11976_s12 + $0x1e30] ss:$8 sps:$4 sm:$0xff]   ;;  %v11286_v33 = vld [vmem:[%s11976_s12 + $0xe44] ss:$8 sps:$4 sm:$0xff]  }
 0x405   : > { %8171 = vmatprep.subr.bf16.mxu0 %v11211_v37  ;;  %v11289_v37 = vld [vmem:[%s11976_s12 + $0x1e44] ss:$8 sps:$4 sm:$0xff]  }
 0x407   : > { %7516 = vmatpush1.bf16.msra.mxu1 %v11206_v15  ;;  %v11284_v15 = vld [vmem:[%s11976_s12 + $0xe40] ss:$8 sps:$4 sm:$0xff]  }
 0x408   : > { %8172 = vmatpush1.bf16.msra.mxu0 %v11209_v48  ;;  %7517 = vmatprep.subr.bf16.mxu1 %v11214_v17  ;;  %v11287_v48 = vld [vmem:[%s11976_s12 + $0x1e40] ss:$8 sps:$4 sm:$0xff]   ;;  %v11292_v17 = vld [vmem:[%s11976_s12 + $0xe54] ss:$8 sps:$4 sm:$0xff]  }
 0x409   : > { %8173 = vmatprep.subr.bf16.mxu0 %v11217_v49  ;;  %v11295_v49 = vld [vmem:[%s11976_s12 + $0x1e54] ss:$8 sps:$4 sm:$0xff]  }
 0x40b   : > { %7518 = vmatpush1.bf16.msra.mxu1 %v11212_v51  ;;  %v11290_v51 = vld [vmem:[%s11976_s12 + $0xe50] ss:$8 sps:$4 sm:$0xff]  }
 0x40c   : > { %8174 = vmatpush1.bf16.msra.mxu0 %v11215_v52  ;;  %7519 = vmatprep.subr.bf16.mxu1 %v11220_v54  ;;  %v11293_v52 = vld [vmem:[%s11976_s12 + $0x1e50] ss:$8 sps:$4 sm:$0xff]   ;;  %v11298_v54 = vld [vmem:[%s11976_s12 + $0xe64] ss:$8 sps:$4 sm:$0xff]  }
 0x40d   : > { %8175 = vmatprep.subr.bf16.mxu0 %v11223_v55  ;;  %v11301_v55 = vld [vmem:[%s11976_s12 + $0x1e64] ss:$8 sps:$4 sm:$0xff]  }
 0x40f   : > { %7520 = vmatpush1.bf16.msra.mxu1 %v11218_v63  ;;  %v11296_v63 = vld [vmem:[%s11976_s12 + $0xe60] ss:$8 sps:$4 sm:$0xff]  }
 0x410   : > { %8176 = vmatpush1.bf16.msra.mxu0 %v11221_v0  ;;  %7521 = vmatprep.subr.bf16.mxu1 %v11226_v41  ;;  %v11299_v0 = vld [vmem:[%s11976_s12 + $0x1e60] ss:$8 sps:$4 sm:$0xff]   ;;  %v11304_v41 = vld [vmem:[%s11976_s12 + $0xe74] ss:$8 sps:$4 sm:$0xff]  }
 0x411   : > { %8177 = vmatprep.subr.bf16.mxu0 %v11229_v1  ;;  %v11307_v1 = vld [vmem:[%s11976_s12 + $0x1e74] ss:$8 sps:$4 sm:$0xff]  }
 0x413   : > { %7522 = vmatpush1.bf16.msra.mxu1 %v11224_v47  ;;  %v11302_v47 = vld [vmem:[%s11976_s12 + $0xe70] ss:$8 sps:$4 sm:$0xff]  }
 0x414   : > { %8178 = vmatpush1.bf16.msra.mxu0 %v11227_v3  ;;  %7523 = vmatprep.subr.bf16.mxu1 %v11232_v39  ;;  %v11305_v3 = vld [vmem:[%s11976_s12 + $0x1e70] ss:$8 sps:$4 sm:$0xff]   ;;  %v11310_v39 = vld [vmem:[%s11976_s12 + $0xe84] ss:$8 sps:$4 sm:$0xff]  }
 0x415   : > { %8179 = vmatprep.subr.bf16.mxu0 %v11235_v58  ;;  %v11313_v58 = vld [vmem:[%s11976_s12 + $0x1e84] ss:$8 sps:$4 sm:$0xff]  }
 0x417   : > { %7524 = vmatpush1.bf16.msra.mxu1 %v11230_v18  ;;  %v11308_v18 = vld [vmem:[%s11976_s12 + $0xe80] ss:$8 sps:$4 sm:$0xff]  }
 0x418   : > { %8180 = vmatpush1.bf16.msra.mxu0 %v11233_v4  ;;  %7525 = vmatprep.subr.bf16.mxu1 %v11238_v5  ;;  %v11311_v4 = vld [vmem:[%s11976_s12 + $0x1e80] ss:$8 sps:$4 sm:$0xff]   ;;  %v11316_v5 = vld [vmem:[%s11976_s12 + $0xe94] ss:$8 sps:$4 sm:$0xff]  }
 0x419   : > { %8181 = vmatprep.subr.bf16.mxu0 %v11241_v6  ;;  %v11319_v6 = vld [vmem:[%s11976_s12 + $0x1e94] ss:$8 sps:$4 sm:$0xff]  }
 0x41b   : > { %7526 = vmatpush1.bf16.msra.mxu1 %v11236_v7  ;;  %v11314_v7 = vld [vmem:[%s11976_s12 + $0xe90] ss:$8 sps:$4 sm:$0xff]  }
 0x41c   : > { %8182 = vmatpush1.bf16.msra.mxu0 %v11239_v8  ;;  %7527 = vmatprep.subr.bf16.mxu1 %v11244_v9  ;;  %v11317_v8 = vld [vmem:[%s11976_s12 + $0x1e90] ss:$8 sps:$4 sm:$0xff]   ;;  %v11322_v9 = vld [vmem:[%s11976_s12 + $0xea4] ss:$8 sps:$4 sm:$0xff]  }
 0x41d   : > { %8183 = vmatprep.subr.bf16.mxu0 %v11247_v10  ;;  %v11325_v10 = vld [vmem:[%s11976_s12 + $0x1ea4] ss:$8 sps:$4 sm:$0xff]  }
 0x41f   : > { %7528 = vmatpush1.bf16.msra.mxu1 %v11242_v62  ;;  %v11320_v62 = vld [vmem:[%s11976_s12 + $0xea0] ss:$8 sps:$4 sm:$0xff]  }
 0x420   : > { %8184 = vmatpush1.bf16.msra.mxu0 %v11245_v12  ;;  %7529 = vmatprep.subr.bf16.mxu1 %v11250_v19  ;;  %v11323_v12 = vld [vmem:[%s11976_s12 + $0x1ea0] ss:$8 sps:$4 sm:$0xff]   ;;  %v11328_v19 = vld [vmem:[%s11976_s12 + $0xeb4] ss:$8 sps:$4 sm:$0xff]  }
 0x421   : > { %8185 = vmatprep.subr.bf16.mxu0 %v11253_v20  ;;  %v11331_v20 = vld [vmem:[%s11976_s12 + $0x1eb4] ss:$8 sps:$4 sm:$0xff]  }
 0x423   : > { %7530 = vmatpush1.bf16.msra.mxu1 %v11248_v13  ;;  %v11334_v13 = vld [vmem:[%s11976_s12 + $0xec4] ss:$8 sps:$4 sm:$0xff]  }
 0x424   : > { %8186 = vmatpush1.bf16.msra.mxu0 %v11251_v53  ;;  %7531 = vmatprep.subr.bf16.mxu1 %v11256_v23  ;;  %v11337_v53 = vld [vmem:[%s11976_s12 + $0x1ec4] ss:$8 sps:$4 sm:$0xff]   ;;  %v11332_v23 = vld [vmem:[%s11976_s12 + $0xec0] ss:$8 sps:$4 sm:$0xff]  }
 0x425   : > { %8187 = vmatprep.subr.bf16.mxu0 %v11259_v59  ;;  %v11335_v59 = vld [vmem:[%s11976_s12 + $0x1ec0] ss:$8 sps:$4 sm:$0xff]  }
 0x427   : > { %7532 = vmatpush1.bf16.msra.mxu1 %v11254_v38  ;;  %v11340_v38 = vld [vmem:[%s11976_s12 + $0xed4] ss:$8 sps:$4 sm:$0xff]  }
 0x428   : > { %8188 = vmatpush1.bf16.msra.mxu0 %v11257_v40  ;;  %7542 = vmatprep.subr.bf16.mxu1 %v11262_v11  ;;  %v11343_v40 = vld [vmem:[%s11976_s12 + $0x1ed4] ss:$8 sps:$4 sm:$0xff]   ;;  %v11338_v11 = vld [vmem:[%s11976_s12 + $0xed0] ss:$8 sps:$4 sm:$0xff]  }
 0x429   : > { %8198 = vmatprep.subr.bf16.mxu0 %v11265_v27  ;;  %v11341_v27 = vld [vmem:[%s11976_s12 + $0x1ed0] ss:$8 sps:$4 sm:$0xff]  }
 0x42a   : > { %7534 = vmatmul.mubr.bf16.vlgmr.msra.gmra.mrb[0].mxu1 %v1584_v29  ;;  %v11344_v29 = vld [vmem:[%s11976_s12 + $0xee0] ss:$8 sps:$4 sm:$0xff]  }
 0x42b   : > { %8190 = vmatmul.mubr.bf16.vlgmr.msra.gmra.mrb[0].mxu0 %v1780_v30  ;;  %7543 = vmatpush1.bf16.msra.mxu1 %v11260_v31  ;;  %v11347_v30 = vld [vmem:[%s11976_s12 + $0x1ee0] ss:$8 sps:$4 sm:$0xff]   ;;  %v11352_v31 = vld [vmem:[%s11976_s12 + $0xef4] ss:$8 sps:$4 sm:$0xff]  }
 0x42c   : > { %8199 = vmatpush1.bf16.msra.mxu0 %v11263_v32  ;;  %7544 = vmatprep.subr.bf16.mxu1 %v11268_v16  ;;  %v11355_v32 = vld [vmem:[%s11976_s12 + $0x1ef4] ss:$8 sps:$4 sm:$0xff]   ;;  %v11350_v16 = vld [vmem:[%s11976_s12 + $0xef0] ss:$8 sps:$4 sm:$0xff]  }
 0x42d   : > { %8200 = vmatprep.subr.bf16.mxu0 %v11271_v34  ;;  %7574 = vmatprep.mubr.bf16.mxu1 %v13179_v35  ;;  %v11353_v34 = vld [vmem:[%s11976_s12 + $0x1ef0] ss:$8 sps:$4 sm:$0xff]  }
 0x42e   : > { %8230 = vmatprep.mubr.bf16.mxu0 %v13182_v21 }
 0x42f   : > { %7545 = vmatpush1.bf16.msra.mxu1 %v11266_v22  ;;  %v11359_v22 = vld [vmem:[%s11976_s12 + $0xf04] ss:$8 sps:$4 sm:$0xff]  }
 0x430   : > { %8201 = vmatpush1.bf16.msra.mxu0 %v11269_v36  ;;  %7546 = vmatprep.subr.bf16.mxu1 %v11274_v43  ;;  %v11363_v36 = vld [vmem:[%s11976_s12 + $0x1f04] ss:$8 sps:$4 sm:$0xff]   ;;  %v13248_v43 = vrot.slane %v13157_v56, %v12038_v50  ;;  %v1587_v56 = vcombine.high %v13179_v35, %v13179_v35 }
 0x431   : > { %8202 = vmatprep.subr.bf16.mxu0 %v11277_v45  ;;  %v13252_v45 = vrot.slane %v13160_v57, %v12038_v50  ;;  %v11364_v50 = vld [vmem:[%s11976_s12 + $0xf10] ss:$8 sps:$4 sm:$0xff]   ;;  %v11372_v35 = vld [vmem:[%s11976_s12 + $0xf24] ss:$8 sps:$4 sm:$0xff]  }
 0x432   : > { %v11367_v57 = vld [vmem:[%s11976_s12 + $0x1f10] ss:$8 sps:$4 sm:$0xff]  }
 0x433   : > { %7547 = vmatpush1.bf16.msra.mxu1 %v11272_v25  ;;  %v11357_v25 = vld [vmem:[%s11976_s12 + $0xf00] ss:$8 sps:$4 sm:$0xff]  }
 0x434   : > { %8203 = vmatpush1.bf16.msra.mxu0 %v11275_v46  ;;  %7548 = vmatprep.subr.bf16.mxu1 %v11280_v42  ;;  %v11361_v46 = vld [vmem:[%s11976_s12 + $0x1f00] ss:$8 sps:$4 sm:$0xff]   ;;  %v11366_v42 = vld [vmem:[%s11976_s12 + $0xf14] ss:$8 sps:$4 sm:$0xff]  }
 0x435   : > { %8204 = vmatprep.subr.bf16.mxu0 %v11283_v26  ;;  %v11369_v26 = vld [vmem:[%s11976_s12 + $0x1f14] ss:$8 sps:$4 sm:$0xff]  }
 0x437   : > { %7549 = vmatpush1.bf16.msra.mxu1 %v11278_v60  ;;  %v1783_v60 = vcombine.high %v13182_v21, %v13182_v21  ;;  %v11370_v21 = vld [vmem:[%s11976_s12 + $0xf20] ss:$8 sps:$4 sm:$0xff]  }
 0x438   : > { %8205 = vmatpush1.bf16.msra.mxu0 %v11281_v14  ;;  %7550 = vmatprep.subr.bf16.mxu1 %v11286_v33  ;;  %v11375_v14 = vld [vmem:[%s11976_s12 + $0x1f24] ss:$8 sps:$4 sm:$0xff]   ;;  %v11373_v33 = vld [vmem:[%s11976_s12 + $0x1f20] ss:$8 sps:$4 sm:$0xff]  }
 0x439   : > { %8206 = vmatprep.subr.bf16.mxu0 %v11289_v37  ;;  %v11378_v37 = vld [vmem:[%s11976_s12 + $0xf34] ss:$8 sps:$4 sm:$0xff]  }
 0x43b   : > { %7551 = vmatpush1.bf16.msra.mxu1 %v11284_v15  ;;  %v11381_v15 = vld [vmem:[%s11976_s12 + $0x1f34] ss:$8 sps:$4 sm:$0xff]  }
 0x43c   : > { %8207 = vmatpush1.bf16.msra.mxu0 %v11287_v48  ;;  %7552 = vmatprep.subr.bf16.mxu1 %v11292_v17  ;;  %v11376_v48 = vld [vmem:[%s11976_s12 + $0xf30] ss:$8 sps:$4 sm:$0xff]  }
 0x43d   : > { %8208 = vmatprep.subr.bf16.mxu0 %v11295_v49  ;;  %v11379_v17 = vld [vmem:[%s11976_s12 + $0x1f30] ss:$8 sps:$4 sm:$0xff]   ;;  %v11384_v49 = vld [vmem:[%s11976_s12 + $0xf44] ss:$8 sps:$4 sm:$0xff]  }
 0x43f   : > { %7553 = vmatpush1.bf16.msra.mxu1 %v11290_v51  ;;  %v11387_v51 = vld [vmem:[%s11976_s12 + $0x1f44] ss:$8 sps:$4 sm:$0xff]  }
 0x440   : > { %8209 = vmatpush1.bf16.msra.mxu0 %v11293_v52  ;;  %7554 = vmatprep.subr.bf16.mxu1 %v11298_v54  ;;  %v11382_v52 = vld [vmem:[%s11976_s12 + $0xf40] ss:$8 sps:$4 sm:$0xff]  }
 0x441   : > { %8210 = vmatprep.subr.bf16.mxu0 %v11301_v55  ;;  %v11385_v54 = vld [vmem:[%s11976_s12 + $0x1f40] ss:$8 sps:$4 sm:$0xff]   ;;  %v11390_v55 = vld [vmem:[%s11976_s12 + $0xf54] ss:$8 sps:$4 sm:$0xff]  }
 0x443   : > { %7555 = vmatpush1.bf16.msra.mxu1 %v11296_v63  ;;  %v11393_v63 = vld [vmem:[%s11976_s12 + $0x1f54] ss:$8 sps:$4 sm:$0xff]  }
 0x444   : > { %8211 = vmatpush1.bf16.msra.mxu0 %v11299_v0  ;;  %7556 = vmatprep.subr.bf16.mxu1 %v11304_v41  ;;  %v11388_v0 = vld [vmem:[%s11976_s12 + $0xf50] ss:$8 sps:$4 sm:$0xff]  }
 0x445   : > { %8212 = vmatprep.subr.bf16.mxu0 %v11307_v1  ;;  %v11391_v41 = vld [vmem:[%s11976_s12 + $0x1f50] ss:$8 sps:$4 sm:$0xff]   ;;  %v11396_v1 = vld [vmem:[%s11976_s12 + $0xf64] ss:$8 sps:$4 sm:$0xff]  }
 0x447   : > { %7557 = vmatpush1.bf16.msra.mxu1 %v11302_v47  ;;  %v11399_v47 = vld [vmem:[%s11976_s12 + $0x1f64] ss:$8 sps:$4 sm:$0xff]  }
 0x448   : > { %8213 = vmatpush1.bf16.msra.mxu0 %v11305_v3  ;;  %7558 = vmatprep.subr.bf16.mxu1 %v11310_v39  ;;  %v11394_v3 = vld [vmem:[%s11976_s12 + $0xf60] ss:$8 sps:$4 sm:$0xff]  }
 0x449   : > { %8214 = vmatprep.subr.bf16.mxu0 %v11313_v58  ;;  %v11397_v39 = vld [vmem:[%s11976_s12 + $0x1f60] ss:$8 sps:$4 sm:$0xff]   ;;  %v11402_v58 = vld [vmem:[%s11976_s12 + $0xf74] ss:$8 sps:$4 sm:$0xff]  }
 0x44b   : > { %7559 = vmatpush1.bf16.msra.mxu1 %v11308_v18  ;;  %v11405_v18 = vld [vmem:[%s11976_s12 + $0x1f74] ss:$8 sps:$4 sm:$0xff]  }
 0x44c   : > { %8215 = vmatpush1.bf16.msra.mxu0 %v11311_v4  ;;  %7560 = vmatprep.subr.bf16.mxu1 %v11316_v5  ;;  %v11400_v4 = vld [vmem:[%s11976_s12 + $0xf70] ss:$8 sps:$4 sm:$0xff]  }
 0x44d   : > { %8216 = vmatprep.subr.bf16.mxu0 %v11319_v6  ;;  %v11403_v5 = vld [vmem:[%s11976_s12 + $0x1f70] ss:$8 sps:$4 sm:$0xff]   ;;  %v11408_v6 = vld [vmem:[%s11976_s12 + $0xf84] ss:$8 sps:$4 sm:$0xff]  }
 0x44f   : > { %7561 = vmatpush1.bf16.msra.mxu1 %v11314_v7  ;;  %v11411_v7 = vld [vmem:[%s11976_s12 + $0x1f84] ss:$8 sps:$4 sm:$0xff]  }
 0x450   : > { %8217 = vmatpush1.bf16.msra.mxu0 %v11317_v8  ;;  %7562 = vmatprep.subr.bf16.mxu1 %v11322_v9  ;;  %v11406_v8 = vld [vmem:[%s11976_s12 + $0xf80] ss:$8 sps:$4 sm:$0xff]  }
 0x451   : > { %8218 = vmatprep.subr.bf16.mxu0 %v11325_v10  ;;  %v11409_v9 = vld [vmem:[%s11976_s12 + $0x1f80] ss:$8 sps:$4 sm:$0xff]   ;;  %v11414_v10 = vld [vmem:[%s11976_s12 + $0xf94] ss:$8 sps:$4 sm:$0xff]  }
 0x453   : > { %7563 = vmatpush1.bf16.msra.mxu1 %v11320_v62  ;;  %v11417_v62 = vld [vmem:[%s11976_s12 + $0x1f94] ss:$8 sps:$4 sm:$0xff]  }
 0x454   : > { %8219 = vmatpush1.bf16.msra.mxu0 %v11323_v12  ;;  %7564 = vmatprep.subr.bf16.mxu1 %v11328_v19  ;;  %v11412_v12 = vld [vmem:[%s11976_s12 + $0xf90] ss:$8 sps:$4 sm:$0xff]  }
 0x455   : > { %8220 = vmatprep.subr.bf16.mxu0 %v11331_v20  ;;  %v11415_v19 = vld [vmem:[%s11976_s12 + $0x1f90] ss:$8 sps:$4 sm:$0xff]   ;;  %v11420_v20 = vld [vmem:[%s11976_s12 + $0xfa4] ss:$8 sps:$4 sm:$0xff]  }
 0x457   : > { %7565 = vmatpush1.bf16.msra.mxu1 %v11326_v2  ;;  %v11423_v2 = vld [vmem:[%s11976_s12 + $0x1fa4] ss:$8 sps:$4 sm:$0xff]  }
 0x458   : > { %8221 = vmatpush1.bf16.msra.mxu0 %v11329_v24  ;;  %7566 = vmatprep.subr.bf16.mxu1 %v11334_v13  ;;  %v11418_v24 = vld [vmem:[%s11976_s12 + $0xfa0] ss:$8 sps:$4 sm:$0xff]  }
 0x459   : > { %8222 = vmatprep.subr.bf16.mxu0 %v11337_v53  ;;  %v11421_v13 = vld [vmem:[%s11976_s12 + $0x1fa0] ss:$8 sps:$4 sm:$0xff]   ;;  %v11426_v53 = vld [vmem:[%s11976_s12 + $0xfb4] ss:$8 sps:$4 sm:$0xff]  }
 0x45b   : > { %7567 = vmatpush1.bf16.msra.mxu1 %v11332_v23  ;;  %v11429_v23 = vld [vmem:[%s11976_s12 + $0x1fb4] ss:$8 sps:$4 sm:$0xff]  }
 0x45c   : > { %8223 = vmatpush1.bf16.msra.mxu0 %v11335_v59  ;;  %7568 = vmatprep.subr.bf16.mxu1 %v11340_v38  ;;  %v11424_v59 = vld [vmem:[%s11976_s12 + $0xfb0] ss:$8 sps:$4 sm:$0xff]  }
 0x45d   : > { %8224 = vmatprep.subr.bf16.mxu0 %v11343_v40  ;;  %v11427_v38 = vld [vmem:[%s11976_s12 + $0x1fb0] ss:$8 sps:$4 sm:$0xff]   ;;  %v11432_v40 = vld [vmem:[%s11976_s12 + $0xfc4] ss:$8 sps:$4 sm:$0xff]  }
 0x45f   : > { %7569 = vmatpush1.bf16.msra.mxu1 %v11338_v11  ;;  %v11435_v11 = vld [vmem:[%s11976_s12 + $0x1fc4] ss:$8 sps:$4 sm:$0xff]  }
 0x460   : > { %8225 = vmatpush1.bf16.msra.mxu0 %v11341_v27  ;;  %7570 = vmatprep.subr.bf16.mxu1 %v11346_v61  ;;  %v11430_v27 = vld [vmem:[%s11976_s12 + $0xfc0] ss:$8 sps:$4 sm:$0xff]  }
 0x461   : > { %8226 = vmatprep.subr.bf16.mxu0 %v11349_v28  ;;  %v11433_v61 = vld [vmem:[%s11976_s12 + $0x1fc0] ss:$8 sps:$4 sm:$0xff]   ;;  %v11438_v28 = vld [vmem:[%s11976_s12 + $0xfd4] ss:$8 sps:$4 sm:$0xff]  }
 0x463   : > { %7571 = vmatpush1.bf16.msra.mxu1 %v11344_v29  ;;  %v11441_v29 = vld [vmem:[%s11976_s12 + $0x1fd4] ss:$8 sps:$4 sm:$0xff]  }
 0x464   : > { %8227 = vmatpush1.bf16.msra.mxu0 %v11347_v30  ;;  %7572 = vmatprep.subr.bf16.mxu1 %v11352_v31  ;;  %v11436_v30 = vld [vmem:[%s11976_s12 + $0xfd0] ss:$8 sps:$4 sm:$0xff]  }
 0x465   : > { %8228 = vmatprep.subr.bf16.mxu0 %v11355_v32  ;;  %v11439_v31 = vld [vmem:[%s11976_s12 + $0x1fd0] ss:$8 sps:$4 sm:$0xff]   ;;  %v11444_v32 = vld [vmem:[%s11976_s12 + $0xfe4] ss:$8 sps:$4 sm:$0xff]  }
 0x467   : > { %7573 = vmatpush1.bf16.msra.mxu1 %v11350_v16  ;;  %v11447_v16 = vld [vmem:[%s11976_s12 + $0x1fe4] ss:$8 sps:$4 sm:$0xff]  }
 0x468   : > { %8229 = vmatpush1.bf16.msra.mxu0 %v11353_v34  ;;  %7583 = vmatprep.subr.bf16.mxu1 %v11359_v22  ;;  %v11442_v34 = vld [vmem:[%s11976_s12 + $0xfe0] ss:$8 sps:$4 sm:$0xff]  }
 0x469   : > { %8239 = vmatprep.subr.bf16.mxu0 %v11363_v36  ;;  %v11445_v22 = vld [vmem:[%s11976_s12 + $0x1fe0] ss:$8 sps:$4 sm:$0xff]   ;;  %v11450_v36 = vld [vmem:[%s11976_s12 + $0xff4] ss:$8 sps:$4 sm:$0xff]  }
 0x46a   : > { %7575 = vmatmul.mubr.bf16.vlgmr.msra.gmra.mrb[0].mxu1 %v13248_v43 }
 0x46b   : > { %8231 = vmatmul.mubr.bf16.vlgmr.msra.gmra.mrb[0].mxu0 %v13252_v45  ;;  %7584 = vmatpush1.bf16.msra.mxu1 %v11357_v25  ;;  %v11453_v25 = vld [vmem:[%s11976_s12 + $0x1ff4] ss:$8 sps:$4 sm:$0xff]  }
 0x46c   : > { %8240 = vmatpush1.bf16.msra.mxu0 %v11361_v46  ;;  %7585 = vmatprep.subr.bf16.mxu1 %v11366_v42  ;;  %v11448_v46 = vld [vmem:[%s11976_s12 + $0xff0] ss:$8 sps:$4 sm:$0xff]  }
 0x46d   : > { %8241 = vmatprep.subr.bf16.mxu0 %v11369_v26  ;;  %7615 = vmatprep.mubr.bf16.mxu1 %v1587_v56  ;;  %v11451_v42 = vld [vmem:[%s11976_s12 + $0x1ff0] ss:$8 sps:$4 sm:$0xff]   ;;  %v1585_v26 = vcombine.high %v13248_v43, %v13248_v43  ;;  %v1781_v56 = vcombine.high %v13252_v45, %v13252_v45 }
 0x46e   : > { %8271 = vmatprep.mubr.bf16.mxu0 %v1783_v60  ;;  %v11705_v60 = vmov 1983009808  }
 0x46f   : > { %7586 = vmatpush1.bf16.msra.mxu1 %v11364_v50  ;;  %v8284_v50 = vunpack.c.l.s4 %v11705_v60 }
 0x470   : > { %8242 = vmatpush1.bf16.msra.mxu0 %v11367_v57  ;;  %7587 = vmatprep.subr.bf16.mxu1 %v11372_v35 }
 0x471   : > { %8243 = vmatprep.subr.bf16.mxu0 %v11375_v14  ;;  %v8285_v57 = vunpack.c.0.s8 %v8284_v50 }
 0x473   : > { %7588 = vmatpush1.bf16.msra.mxu1 %v11370_v21 }
 0x474   : > { %8244 = vmatpush1.bf16.msra.mxu0 %v11373_v33  ;;  %7589 = vmatprep.subr.bf16.mxu1 %v11378_v37 }
 0x475   : > { %8245 = vmatprep.subr.bf16.mxu0 %v11381_v15 }
 0x477   : > { %7590 = vmatpush1.bf16.msra.mxu1 %v11376_v48  ;;  %v13327_v48 = vsub.s32 %v8285_v57, %v12030_v44 }
 0x478   : > { %8246 = vmatpush1.bf16.msra.mxu0 %v11379_v17  ;;  %7591 = vmatprep.subr.bf16.mxu1 %v11384_v49 }
 0x479   : > { %8247 = vmatprep.subr.bf16.mxu0 %v11387_v51 }
 0x47b   : > { %7592 = vmatpush1.bf16.msra.mxu1 %v11382_v52  ;;  %v351_v52 = vld [vmem:[#allocation2] sm:$0xf] }
 0x47c   : > { %8248 = vmatpush1.bf16.msra.mxu0 %v11385_v54  ;;  %7593 = vmatprep.subr.bf16.mxu1 %v11390_v55 }
 0x47d   : > { %8249 = vmatprep.subr.bf16.mxu0 %v11393_v63  ;;  %v8335_v63 = vld [vmem:[#allocation9 + $0x80] sm:$0xff] (!%p9609_p13) }
 0x47f   : > { %7594 = vmatpush1.bf16.msra.mxu1 %v11388_v0  ;;  %v8336_v0 = vld [vmem:[#allocation9 + $0x88] sm:$0xff] (!%p9609_p13) }
 0x480   : > { %8250 = vmatpush1.bf16.msra.mxu0 %v11391_v41  ;;  %7595 = vmatprep.subr.bf16.mxu1 %v11396_v1  ;;  %v8319_v41 = vld [vmem:[#allocation9] sm:$0xff] (!%p9609_p13)  ;;  %v9653_v1 = vpack.c.bf16 (!%p9609_p13), %v8336_v0, %v8335_v63 }
 0x481   : > { %8251 = vmatprep.subr.bf16.mxu0 %v11399_v47  ;;  %v8320_v47 = vld [vmem:[#allocation9 + $0x8] sm:$0xff] (!%p9609_p13) }
 0x483   : > { %7596 = vmatpush1.bf16.msra.mxu1 %v11394_v3  ;;  %v8337_v3 = vld [vmem:[#allocation9 + $0x90] sm:$0xff] (!%p9609_p13) }
 0x484   : > { %8252 = vmatpush1.bf16.msra.mxu0 %v11397_v39  ;;  %7597 = vmatprep.subr.bf16.mxu1 %v11402_v58  ;;  %v8338_v39 = vld [vmem:[#allocation9 + $0x98] sm:$0xff] (!%p9609_p13)  ;;  %v9655_v58 = vpack.c.bf16 (!%p9609_p13), %v8320_v47, %v8319_v41 }
 0x485   : > { %8253 = vmatprep.subr.bf16.mxu0 %v11405_v18  ;;  %v9657_v18 = vpack.c.bf16 (!%p9609_p13), %v8338_v39, %v8337_v3 }
 0x487   : > { %7598 = vmatpush1.bf16.msra.mxu1 %v11400_v4  ;;  %v8321_v4 = vld [vmem:[#allocation9 + $0x10] sm:$0xff] (!%p9609_p13) }
 0x488   : > { %8254 = vmatpush1.bf16.msra.mxu0 %v11403_v5  ;;  %7599 = vmatprep.subr.bf16.mxu1 %v11408_v6  ;;  %v8322_v5 = vld [vmem:[#allocation9 + $0x18] sm:$0xff] (!%p9609_p13)  ;;  %v8339_v6 = vld [vmem:[#allocation9 + $0xa0] sm:$0xff] (!%p9609_p13) }
 0x489   : > { %8255 = vmatprep.subr.bf16.mxu0 %v11411_v7  ;;  %v8340_v7 = vld [vmem:[#allocation9 + $0xa8] sm:$0xff] (!%p9609_p13) }
 0x48b   : > { %7600 = vmatpush1.bf16.msra.mxu1 %v11406_v8  ;;  %v9659_v8 = vpack.c.bf16 (!%p9609_p13), %v8322_v5, %v8321_v4 }
 0x48c   : > { %8256 = vmatpush1.bf16.msra.mxu0 %v11409_v9  ;;  %7601 = vmatprep.subr.bf16.mxu1 %v11414_v10  ;;  %v9661_v9 = vpack.c.bf16 (!%p9609_p13), %v8340_v7, %v8339_v6  ;;  %v8323_v10 = vld [vmem:[#allocation9 + $0x20] sm:$0xff] (!%p9609_p13) }
 0x48d   : > { %8257 = vmatprep.subr.bf16.mxu0 %v11417_v62  ;;  %v8324_v62 = vld [vmem:[#allocation9 + $0x28] sm:$0xff] (!%p9609_p13) }
 0x48f   : > { %7602 = vmatpush1.bf16.msra.mxu1 %v11412_v12  ;;  %v8341_v12 = vld [vmem:[#allocation9 + $0xb0] sm:$0xff] (!%p9609_p13) }
 0x490   : > { %8258 = vmatpush1.bf16.msra.mxu0 %v11415_v19  ;;  %7603 = vmatprep.subr.bf16.mxu1 %v11420_v20  ;;  %v8342_v19 = vld [vmem:[#allocation9 + $0xb8] sm:$0xff] (!%p9609_p13)  ;;  %v9663_v20 = vpack.c.bf16 (!%p9609_p13), %v8324_v62, %v8323_v10 }
 0x491   : > { %8259 = vmatprep.subr.bf16.mxu0 %v11423_v2  ;;  %v8302_v2 = vsub.s32 (!%p9609_p13), 0, %v12030_v44 }
 0x493   : > { %7604 = vmatpush1.bf16.msra.mxu1 %v11418_v24  ;;  %v8306_v24 = vsub.s32 (!%p9609_p13), 1, %v12030_v44 }
 0x494   : > { %8260 = vmatpush1.bf16.msra.mxu0 %v11421_v13  ;;  %7605 = vmatprep.subr.bf16.mxu1 %v11426_v53  ;;  %v9665_v13 = vpack.c.bf16 (!%p9609_p13), %v8342_v19, %v8341_v12  ;;  %v8325_v53 = vld [vmem:[#allocation9 + $0x30] sm:$0xff] (!%p9609_p13) }
 0x495   : > { %8261 = vmatprep.subr.bf16.mxu0 %v11429_v23  ;;  %v8326_v23 = vld [vmem:[#allocation9 + $0x38] sm:$0xff] (!%p9609_p13) }
 0x497   : > { %7606 = vmatpush1.bf16.msra.mxu1 %v11424_v59  ;;  %v8343_v59 = vld [vmem:[#allocation9 + $0xc0] sm:$0xff] (!%p9609_p13) }
 0x498   : > { %8262 = vmatpush1.bf16.msra.mxu0 %v11427_v38  ;;  %7607 = vmatprep.subr.bf16.mxu1 %v11432_v40  ;;  %v8344_v38 = vld [vmem:[#allocation9 + $0xc8] sm:$0xff] (!%p9609_p13)  ;;  %v8298_v40 = vld [vmem:[#allocation8] sm:$0x3] (!%p9609_p13) }
 0x499   : > { %8263 = vmatprep.subr.bf16.mxu0 %v11435_v11  ;;  %v9667_v11 = vpack.c.bf16 (!%p9609_p13), %v8326_v23, %v8325_v53 }
 0x49b   : > { %7608 = vmatpush1.bf16.msra.mxu1 %v11430_v27  ;;  %v8303_v27 = vrot.slane (!%p9609_p13), %v8298_v40, %v8302_v2 }
 0x49c   : > { %8264 = vmatpush1.bf16.msra.mxu0 %v11433_v61  ;;  %7609 = vmatprep.subr.bf16.mxu1 %v11438_v28  ;;  %v8307_v61 = vrot.slane (!%p9609_p13), %v8298_v40, %v8306_v24  ;;  %v9669_v28 = vpack.c.bf16 (!%p9609_p13), %v8344_v38, %v8343_v59 }
 0x49d   : > { %8265 = vmatprep.subr.bf16.mxu0 %v11441_v29  ;;  %v8327_v29 = vld [vmem:[#allocation9 + $0x40] sm:$0xff] (!%p9609_p13) }
 0x49f   : > { %7610 = vmatpush1.bf16.msra.mxu1 %v11436_v30  ;;  %v8328_v30 = vld [vmem:[#allocation9 + $0x48] sm:$0xff] (!%p9609_p13) }
 0x4a0   : > { %8266 = vmatpush1.bf16.msra.mxu0 %v11439_v31  ;;  %7611 = vmatprep.subr.bf16.mxu1 %v11444_v32  ;;  %v8345_v31 = vld [vmem:[#allocation9 + $0xd0] sm:$0xff] (!%p9609_p13)  ;;  %v8346_v32 = vld [vmem:[#allocation9 + $0xd8] sm:$0xff] (!%p9609_p13)  ;;  %v9671_v44 = vpack.c.bf16 (!%p9609_p13), %v8328_v30, %v8327_v29 }
 0x4a1   : > { %8267 = vmatprep.subr.bf16.mxu0 %v11447_v16  ;;  %v8308_v16 = vcombine.low (!%p9609_p13), %v8303_v27, %v8307_v61 }
 0x4a3   : > { %7612 = vmatpush1.bf16.msra.mxu1 %v11442_v34 }
 0x4a4   : > { %8268 = vmatpush1.bf16.msra.mxu0 %v11445_v22  ;;  %7613 = vmatprep.subr.bf16.mxu1 %v11450_v36  ;;  %v8315_v22 = vrot.slane (!%p9609_p13), %v8308_v16, %v13327_v48  ;;  %v9673_v36 = vpack.c.bf16 (!%p9609_p13), %v8346_v32, %v8345_v31 }
 0x4a5   : > { %8269 = vmatprep.subr.bf16.mxu0 %v11453_v25  ;;  %v8329_v25 = vld [vmem:[#allocation9 + $0x50] sm:$0xff] (!%p9609_p13) }
 0x4a7   : > { %7614 = vmatpush1.bf16.msra.mxu1 %v11448_v46  ;;  %v8330_v46 = vld [vmem:[#allocation9 + $0x58] sm:$0xff] (!%p9609_p13) }
 0x4a8   : > { %8270 = vmatpush1.bf16.msra.mxu0 %v11451_v42  ;;  %v8347_v42 = vld [vmem:[#allocation9 + $0xe0] sm:$0xff] (!%p9609_p13)  ;;  %v9675_v60 = vpack.c.bf16 (!%p9609_p13), %v8330_v46, %v8329_v25 }
 0x4a9   : > { %9654 = vmatprep.subr.bf16.mxu0 (!%p9609_p13), %v9653_v1 }
 0x4aa   : > { %7616 = vmatmul.mubr.bf16.vlgmr.msra.gmra.mrb[0].mxu1 %v1585_v26  ;;  %v8348_v26 = vld [vmem:[#allocation9 + $0xe8] sm:$0xff] (!%p9609_p13) }
 0x4ab   : > { %8272 = vmatmul.mubr.bf16.vlgmr.msra.gmra.mrb[0].mxu0 %v1781_v56  ;;  %v9677_v57 = vpack.c.bf16 (!%p9609_p13), %v8348_v26, %v8347_v42 }
 0x4ac   : > { %9656 = vmatpush3.bf16.msra.mxu0 (!%p9609_p13), %v9655_v58 }
 0x4ad   : > { %9658 = vmatprep.subr.bf16.mxu0 (!%p9609_p13), %v9657_v18 }
 0x4b0   : > { %9660 = vmatpush3.bf16.msra.mxu0 (!%p9609_p13), %v9659_v8 }
 0x4b1   : > { %9662 = vmatprep.subr.bf16.mxu0 (!%p9609_p13), %v9661_v9 }
 0x4b4   : > { %9664 = vmatpush3.bf16.msra.mxu0 (!%p9609_p13), %v9663_v20 }
 0x4b5   : > { %9666 = vmatprep.subr.bf16.mxu0 (!%p9609_p13), %v9665_v13 }
 0x4b8   : > { %9668 = vmatpush3.bf16.msra.mxu0 (!%p9609_p13), %v9667_v11 }
 0x4b9   : > { %9670 = vmatprep.subr.bf16.mxu0 (!%p9609_p13), %v9669_v28 }
 0x4bc   : > { %9672 = vmatpush3.bf16.msra.mxu0 (!%p9609_p13), %v9671_v44 }
 0x4bd   : > { %9674 = vmatprep.subr.bf16.mxu0 (!%p9609_p13), %v9673_v36 }
 0x4c0   : > { %9676 = vmatpush3.bf16.msra.mxu0 (!%p9609_p13), %v9675_v60 }
 0x4c1   : > { %9678 = vmatprep.subr.bf16.mxu0 (!%p9609_p13), %v9677_v57 }
 0x57d   : > { %v7617_v35 = vpop.f32.mrb[0].mxu1 }
 0x57e   : > { %v8273_v14 = vpop.f32.mrb[0].mxu0  ;;  %v7619_v33 = vpop.f32.mrb[1].mxu1 }
 0x57f   : > { %v9685_v21 = vadd.f32 %v8273_v14, %v7617_v35  ;;  %v8275_v37 = vpop.f32.mrb[1].mxu0  ;;  %v7621_v43 = vpop.f32.mrb[2].mxu1  ;;  %v8331_v35 = vld [vmem:[#allocation9 + $0x60] sm:$0xff] (!%p9609_p13)  ;;  %v8332_v14 = vld [vmem:[#allocation9 + $0x68] sm:$0xff] (!%p9609_p13) }
 0x580   : > { %v9686_v15 = vadd.f32 %v8275_v37, %v7619_v33  ;;  %v8277_v17 = vpop.f32.mrb[2].mxu0  ;;  %v7622_v49 = vpop.f32.mrb[3].mxu1  ;;  %v8350_v33 = vld [vmem:[#allocation9 + $0xf8] sm:$0xff] (!%p9609_p13) }
 0x581   : > { %v8278_v45 = vpop.f32.mrb[3].mxu0  ;;  %v8333_v49 = vld [vmem:[#allocation9 + $0x70] sm:$0xff] (!%p9609_p13) }
 0x582   : > { %v8282_v51 = vcombine.low %v9685_v21, %v9686_v15  ;;  %8296 = sbr.rel (%p9609_p13) target bundleno = 1651 (0x673), region = 68  ;;  %v8349_v21 = vld [vmem:[#allocation9 + $0xf0] sm:$0xff] (!%p9609_p13)  ;;  %v9679_v15 = vpack.c.bf16 (!%p9609_p13), %v8332_v14, %v8331_v35  ;;  %v8334_v45 = vld [vmem:[#allocation9 + $0x78] sm:$0xff] (!%p9609_p13) }
 0x583   : > { %v9681_v17 = vpack.c.bf16 (!%p9609_p13), %v8350_v33, %v8349_v21 }
 0x584   : > { %v8289_v54 = vrot.slane %v8282_v51, %v13327_v48  ;;  %9680 = vmatpush3.bf16.msra.mxu0 (!%p9609_p13), %v9679_v15  ;;  %v9683_v51 = vpack.c.bf16 (!%p9609_p13), %v8334_v45, %v8333_v49 }
 0x585   : > { %9682 = vmatprep.subr.bf16.mxu0 (!%p9609_p13), %v9681_v17 }
 0x586   : > { %v8291_v55 = vadd.f32 %v8289_v54, %v351_v52  ;;  %v9610_v54 = vld [vmem:[#allocation11] ss:$0 sm:$0xff] (!%p9609_p13) }
 0x588   : > { %8292 = vst [vmem:[#allocation2] sm:$0xf] %v8291_v55  ;;  %9684 = vmatpush3.bf16.msra.mxu0 (!%p9609_p13), %v9683_v51 }
 0x58f   : > { %v8297_v34 = vld [vmem:[#allocation2] sm:$0xf] }
 0x590   : > { %v8317_v56 = vadd.f32 %v8315_v22, %v8297_v34 }
 0x592   : > { %v8318_v50 = vmax.f32 %v8317_v56, 0.0 }
 0x594   : > { %v8365_v37 = vrot.slane %v8318_v50, %v13327_v48 }
 0x596   : > { %v8366_v43 = vcombine.high %v8365_v37, %v8365_v37 }
 0x598   : > { %8433 = vmatprep.mubr.f32.mxu0 %v8366_v43 }
 0x599   : > { %8434 = vmatmul.mubr.f32.vlgmr.msra.gmra.mrb[0].mxu0 %v8365_v37 }
 0x66c   : > { %v9650_v52 = vpop.f32.mrb[0].mxu0 }
 0x66d   : > { %v9651_v55 = vpop.f32.mrb[1].mxu0 }
 0x66e   : > { %v9652_v63 = vadd.f32 %v9651_v55, %v9650_v52 }
 0x670   : > { %v8436_v0 = vadd.f32 %v9652_v63, %v9610_v54 }
 0x672   : > { %8440 = vst.msk [vmem:[#allocation12] sm:$0x3] %vm8439_vm0, %v8436_v0 }
 0x673 PF: > { %p9851_p2 = scmp.eq.s32.totalorder %s11766_s24, 3  ;;  %s11706_s21 = smov [#allocation12]  }
 0x674   : > { %s8448_s25 = sshll.u32 %s11706_s21, 4  ;;  %s8449_s25 = int_to_ptr.vmem [resolvable:$true] %s8448_s25 }
 0x675   : > { %s11602_s26 = scalar_lea.vmem %s8449_s25, 32  ;;  %p11609_p8 = scmp.lt.s32.totalorder %s8449_s25, %s8449_s25 }
 0x676   : > { %p11603_p3 = scmp.ne.s32.totalorder %s8449_s25, %s11602_s26  ;;  %p11610_p10 = scmp.lt.s32.totalorder %s11602_s26, %s11602_s26 }
 0x678   : > { %p11604_p0 = pnand %p11603_p3, %p9851_p2  ;;  %p11611_p12 = por %p11610_p10, %p11609_p8 }
 0x67a   : > { %p11605_p6 = pneg %p11604_p0 }
 0x67c   : > { %p11612_p9 = pnand %p11611_p12, %p11605_p6 }
 0x67e   : > { %11615 = shalt.err (!%p11612_p9)
}
 0x67f   : > { %s11616_s15 = scalar_lea.hbm %s13381_s5, 32 }
 0x680   : > { %p11617_p5 = scmp.ne.s32.totalorder %s13381_s5, %s11616_s15  ;;  %p11622_p7 = scmp.lt.u32.totalorder %s11616_s15, %s13381_s5 }
 0x682   : > { %p11618_p1 = pnand %p11617_p5, %p9851_p2 }
 0x684   : > { %p11619_p4 = pneg %p11618_p1 }
 0x686   : > { %p11624_p11 = pnand %p11622_p7, %p11619_p4 }
 0x688   : > { %11627 = shalt.err (!%p11624_p11)
}
 0x689   : > { %9824 = dma.vmem_to_hbm [thread:$0]  (%p9851_p2), %s8449_s25, 32, %s13381_s5, [#allocation5]  }
 0x68a   : > { %11669 = dma.done.wait (%p9851_p2), [#allocation5], 32  }
 0x68b   : > { %11671 = vsyncadd (%p9851_p2), [#allocation5], 4294967264 }
 0x68c PF: > { %s23_s23 = sadd.s32 1, %s11694_s23   ;;  %s13400_s14 = smov %s13407_s18 }
 0x68d   : > { %p20_p13 = scmp.ge.s32.totalorder %s23_s23, 6   ;;  %s13401_s18 = smov %s11678_s19 }
 0x68e   : > { %s13402_s19 = smov %s11682_s20  ;;  %s13403_s20 = smov %s11879_s10 }
 0x68f   : > { %s13404_s21 = smov %s11690_s22  ;;  %s13405_s22 = smov %s13400_s14 }
 0x690   :  { %22 = sbr.rel (!%p20_p13) target bundleno = 8 (0x8), region = 112 }
 0x697   :  { %8461 = vsyncpa [#allocation4], 1 }
 0x698   :  { %8463 = vsyncpa [#allocation4 + $0x1], 1 }
 0x699   :  { %8464 = vsyncpa [#allocation7], 1 }
 0x69a   :  { %8466 = vsyncpa [#allocation7 + $0x1], 1 }
 0x69b   :  { %8467 = vsyncpa [#allocation10], 1 }
 0x69c   :  { %8468 = vsyncpa [#allocation5], 1 }
 0x69d   :  { %8470 = vsyncpa [#allocation5 + $0x1], 1 }

</bundles_post_ra>
